<compile_context>
chip_gen: v7x
topology: tpu7x:2x2x1
jax: 0.10.0
libtpu: 0.0.40
codegen_flags: <defaults>
</compile_context>

<pallas_src>
import jax
import jax.numpy as jnp
from jax.experimental import pallas as pl
from jax.experimental.pallas import tpu as pltpu

H = W = 256                    # spatial grid implied by forward()
KS = 16                        # AvgPool2d kernel_size == stride
HIDDEN = 256                   # hidden_size (must be 256, see forward())
PROJ = 128                     # projector_dim
ZDIM = 32                      # z_dim
NP = (H // KS) * (W // KS)     # 256 patches
ROWS_PER_STEP = 2              # patch-rows of the image handled per grid step
BLK_ROWS = ROWS_PER_STEP * KS * W          # 8192 image rows per step (8 MiB f32)
OUT_ROWS = ROWS_PER_STEP * (W // KS)       # 32 output patches per step


def _fused_kernel(x_ref, pm_ref, w1_ref, b1_ref, w2_ref, b2_ref, w3_ref, b3_ref,
                  o_ref):
    # x_ref : (BLK_ROWS, HIDDEN)  -- ROWS_PER_STEP patch-rows of image rows,
    #          local row index = pr*KS*W + h_local*W + w.
    # pm_ref: (W//KS, W) constant pooling matrix, pm[pw, w] = 1/(KS*KS) if
    #          w // KS == pw else 0 (average scale pre-folded).
    # o_ref : (OUT_ROWS, ZDIM)
    pm = pm_ref[...]

    pooled_rows = []
    for pr in range(ROWS_PER_STEP):
        base = pr * KS * W
        # Height reduction: 16 contiguous (W, HIDDEN) VALU adds (no big-tile
        # reshape / sublane relayout on the 4 MiB slab).
        acc = x_ref[pl.ds(base, W), :]
        for h in range(1, KS):
            acc = acc + x_ref[pl.ds(base + h * W, W), :]
        # Width reduction (+ average scale) on the MXU:
        # (16, W) @ (W, HIDDEN) -> (16, HIDDEN).
        pooled_rows.append(
            jnp.dot(pm, acc, preferred_element_type=jnp.float32))
    pooled = jnp.concatenate(pooled_rows, axis=0)              # (OUT_ROWS, HIDDEN)

    # Fused MLP epilogue (rides free under the 8 MiB input DMA).
    h1 = jnp.dot(pooled, w1_ref[...], preferred_element_type=jnp.float32) + b1_ref[...]
    h1 = h1 * jax.nn.sigmoid(h1)                               # SiLU
    h2 = jnp.dot(h1, w2_ref[...], preferred_element_type=jnp.float32) + b2_ref[...]
    h2 = h2 * jax.nn.sigmoid(h2)                               # SiLU
    o_ref[...] = jnp.dot(h2, w3_ref[...], preferred_element_type=jnp.float32) + b3_ref[...]


def projector_forward(x, params):
    """x: (1, H*W, HIDDEN) f32 -> (1, NP, ZDIM) f32."""
    w1, b1, w2, b2, w3, b3 = params
    assert x.shape == (1, H * W, HIDDEN), x.shape   # forward() hardcodes these
    x2d = x[0]                                      # (H*W, HIDDEN), row = h*W + w

    # Constant pooling matrix with the 1/(KS*KS) average folded in:
    # pm[pw, w] = 1/256 if w // KS == pw else 0.
    pool_mat = (jnp.arange(W, dtype=jnp.int32) // KS
                == jnp.arange(W // KS, dtype=jnp.int32)[:, None]
                ).astype(jnp.float32) * (1.0 / (KS * KS))

    const = lambda i: (0, 0)
    out = pl.pallas_call(
        _fused_kernel,
        out_shape=jax.ShapeDtypeStruct((NP, ZDIM), jnp.float32),
        grid=((H // KS) // ROWS_PER_STEP,),                       # 8 steps
        in_specs=[
            pl.BlockSpec((BLK_ROWS, HIDDEN), lambda i: (i, 0)),   # x slab (8 MiB)
            pl.BlockSpec((W // KS, W), const),                    # pooling matrix
            pl.BlockSpec((HIDDEN, PROJ), const),                  # w1
            pl.BlockSpec((1, PROJ), const),                       # b1
            pl.BlockSpec((PROJ, PROJ), const),                    # w2
            pl.BlockSpec((1, PROJ), const),                       # b2
            pl.BlockSpec((PROJ, ZDIM), const),                    # w3
            pl.BlockSpec((1, ZDIM), const),                       # b3
        ],
        out_specs=pl.BlockSpec((OUT_ROWS, ZDIM), lambda i: (i, 0)),
        compiler_params=pltpu.CompilerParams(
            dimension_semantics=("parallel",),        # megacore sharding on v7x
            vmem_limit_bytes=32 * 1024 * 1024,        # 2x8 MiB in-bufs also fit v5e
        ),
        cost_estimate=pl.CostEstimate(
            flops=77_000_000,                         # pool adds + pool/MLP matmuls
            transcendentals=65_536,                   # SiLU sigmoids
            bytes_accessed=67_400_000,                # dominated by 64 MiB read of x
        ),
    )(x2d, pool_mat, w1, b1, w2, b2, w3, b3)

    return out[None]                                  # (1, NP, ZDIM)


def ref_forward(x, params):
    """Literal re-implementation of the PyTorch forward in plain JAX."""
    w1, b1, w2, b2, w3, b3 = params
    B, L, C = x.shape
    h = jnp.transpose(x, (0, 2, 1)).reshape(B, C, H, W)                 # NCHW
    h = h.reshape(B, C, H // KS, KS, W // KS, KS).mean(axis=(3, 5))     # avgpool
    h = h.reshape(1, 256, -1)
    h = jnp.transpose(h, (0, 2, 1))
    h = h @ w1 + b1
    h = h * jax.nn.sigmoid(h)
    h = h @ w2 + b2
    h = h * jax.nn.sigmoid(h)
    h = h @ w3 + b3
    return h


def make_params(key):
    k1, k2, k3, k4, k5, k6 = jax.random.split(key, 6)
    w1 = jax.random.normal(k1, (HIDDEN, PROJ), jnp.float32) * (1.0 / HIDDEN ** 0.5)
    b1 = jax.random.normal(k2, (1, PROJ), jnp.float32) * 0.01
    w2 = jax.random.normal(k3, (PROJ, PROJ), jnp.float32) * (1.0 / PROJ ** 0.5)
    b2 = jax.random.normal(k4, (1, PROJ), jnp.float32) * 0.01
    w3 = jax.random.normal(k5, (PROJ, ZDIM), jnp.float32) * (1.0 / PROJ ** 0.5)
    b3 = jax.random.normal(k6, (1, ZDIM), jnp.float32) * 0.01
    return (w1, b1, w2, b2, w3, b3)


if __name__ == "__main__":
    key = jax.random.PRNGKey(0)
    kx, kp = jax.random.split(key)
    # B=1, seq=H*W=65536, hidden=256 -- the shapes the forward() hardcodes.
    x = jax.random.normal(kx, (1, H * W, HIDDEN), dtype=jnp.float32)
    params = make_params(kp)

    out = jax.block_until_ready(projector_forward(x, params))
    ref = jax.block_until_ready(ref_forward(x, params))

    assert out.shape == (1, NP, ZDIM), out.shape
    err = float(jnp.max(jnp.abs(out - ref)))
    assert err < 1e-3, f"max abs error {err}"
    print("KERNEL_OK")
</pallas_src>

<mosaic_0001>
module attributes {stable_mosaic.version = 11 : i64} {
  func.func @_fused_kernel(%arg0: i32, %arg1: memref<8192x256xf32, #tpu.memory_space<vmem>>, %arg2: memref<16x256xf32, #tpu.memory_space<vmem>>, %arg3: memref<256x128xf32, #tpu.memory_space<vmem>>, %arg4: memref<1x128xf32, #tpu.memory_space<vmem>>, %arg5: memref<128x128xf32, #tpu.memory_space<vmem>>, %arg6: memref<1x128xf32, #tpu.memory_space<vmem>>, %arg7: memref<128x32xf32, #tpu.memory_space<vmem>>, %arg8: memref<1x32xf32, #tpu.memory_space<vmem>>, %arg9: memref<32x32xf32, #tpu.memory_space<vmem>>) attributes {dimension_semantics = [#tpu.dimension_semantics<parallel>], iteration_bounds = array<i64: 8>, scalar_prefetch = 0 : i64, scratch_operands = 0 : i64, tpu.core_type = #tpu.core_type<tc>, window_params = [{transform_indices = @transform_0, window_bounds = array<i64: 8192, 256>}, {pipeline_mode = #tpu.pipeline_mode<synchronous>, transform_indices = @transform_1, window_bounds = array<i64: 16, 256>}, {pipeline_mode = #tpu.pipeline_mode<synchronous>, transform_indices = @transform_2, window_bounds = array<i64: 256, 128>}, {pipeline_mode = #tpu.pipeline_mode<synchronous>, transform_indices = @transform_3, window_bounds = array<i64: 1, 128>}, {pipeline_mode = #tpu.pipeline_mode<synchronous>, transform_indices = @transform_4, window_bounds = array<i64: 128, 128>}, {pipeline_mode = #tpu.pipeline_mode<synchronous>, transform_indices = @transform_5, window_bounds = array<i64: 1, 128>}, {pipeline_mode = #tpu.pipeline_mode<synchronous>, transform_indices = @transform_6, window_bounds = array<i64: 128, 32>}, {pipeline_mode = #tpu.pipeline_mode<synchronous>, transform_indices = @transform_7, window_bounds = array<i64: 1, 32>}, {transform_indices = @transform_8, window_bounds = array<i64: 32, 32>}]} {
    %c0 = arith.constant 0 : index
    %c0_0 = arith.constant 0 : index
    %0 = vector.load %arg2[%c0, %c0_0] : memref<16x256xf32, #tpu.memory_space<vmem>>, vector<16x256xf32>
    %c0_1 = arith.constant 0 : index
    %c0_2 = arith.constant 0 : index
    %1 = vector.load %arg1[%c0_1, %c0_2] : memref<8192x256xf32, #tpu.memory_space<vmem>>, vector<256x256xf32>
    %c256 = arith.constant 256 : index
    %c0_3 = arith.constant 0 : index
    %2 = vector.load %arg1[%c256, %c0_3] : memref<8192x256xf32, #tpu.memory_space<vmem>>, vector<256x256xf32>
    %3 = arith.addf %1, %2 : vector<256x256xf32>
    %c512 = arith.constant 512 : index
    %c0_4 = arith.constant 0 : index
    %4 = vector.load %arg1[%c512, %c0_4] : memref<8192x256xf32, #tpu.memory_space<vmem>>, vector<256x256xf32>
    %5 = arith.addf %3, %4 : vector<256x256xf32>
    %c768 = arith.constant 768 : index
    %c0_5 = arith.constant 0 : index
    %6 = vector.load %arg1[%c768, %c0_5] : memref<8192x256xf32, #tpu.memory_space<vmem>>, vector<256x256xf32>
    %7 = arith.addf %5, %6 : vector<256x256xf32>
    %c1024 = arith.constant 1024 : index
    %c0_6 = arith.constant 0 : index
    %8 = vector.load %arg1[%c1024, %c0_6] : memref<8192x256xf32, #tpu.memory_space<vmem>>, vector<256x256xf32>
    %9 = arith.addf %7, %8 : vector<256x256xf32>
    %c1280 = arith.constant 1280 : index
    %c0_7 = arith.constant 0 : index
    %10 = vector.load %arg1[%c1280, %c0_7] : memref<8192x256xf32, #tpu.memory_space<vmem>>, vector<256x256xf32>
    %11 = arith.addf %9, %10 : vector<256x256xf32>
    %c1536 = arith.constant 1536 : index
    %c0_8 = arith.constant 0 : index
    %12 = vector.load %arg1[%c1536, %c0_8] : memref<8192x256xf32, #tpu.memory_space<vmem>>, vector<256x256xf32>
    %13 = arith.addf %11, %12 : vector<256x256xf32>
    %c1792 = arith.constant 1792 : index
    %c0_9 = arith.constant 0 : index
    %14 = vector.load %arg1[%c1792, %c0_9] : memref<8192x256xf32, #tpu.memory_space<vmem>>, vector<256x256xf32>
    %15 = arith.addf %13, %14 : vector<256x256xf32>
    %c2048 = arith.constant 2048 : index
    %c0_10 = arith.constant 0 : index
    %16 = vector.load %arg1[%c2048, %c0_10] : memref<8192x256xf32, #tpu.memory_space<vmem>>, vector<256x256xf32>
    %17 = arith.addf %15, %16 : vector<256x256xf32>
    %c2304 = arith.constant 2304 : index
    %c0_11 = arith.constant 0 : index
    %18 = vector.load %arg1[%c2304, %c0_11] : memref<8192x256xf32, #tpu.memory_space<vmem>>, vector<256x256xf32>
    %19 = arith.addf %17, %18 : vector<256x256xf32>
    %c2560 = arith.constant 2560 : index
    %c0_12 = arith.constant 0 : index
    %20 = vector.load %arg1[%c2560, %c0_12] : memref<8192x256xf32, #tpu.memory_space<vmem>>, vector<256x256xf32>
    %21 = arith.addf %19, %20 : vector<256x256xf32>
    %c2816 = arith.constant 2816 : index
    %c0_13 = arith.constant 0 : index
    %22 = vector.load %arg1[%c2816, %c0_13] : memref<8192x256xf32, #tpu.memory_space<vmem>>, vector<256x256xf32>
    %23 = arith.addf %21, %22 : vector<256x256xf32>
    %c3072 = arith.constant 3072 : index
    %c0_14 = arith.constant 0 : index
    %24 = vector.load %arg1[%c3072, %c0_14] : memref<8192x256xf32, #tpu.memory_space<vmem>>, vector<256x256xf32>
    %25 = arith.addf %23, %24 : vector<256x256xf32>
    %c3328 = arith.constant 3328 : index
    %c0_15 = arith.constant 0 : index
    %26 = vector.load %arg1[%c3328, %c0_15] : memref<8192x256xf32, #tpu.memory_space<vmem>>, vector<256x256xf32>
    %27 = arith.addf %25, %26 : vector<256x256xf32>
    %c3584 = arith.constant 3584 : index
    %c0_16 = arith.constant 0 : index
    %28 = vector.load %arg1[%c3584, %c0_16] : memref<8192x256xf32, #tpu.memory_space<vmem>>, vector<256x256xf32>
    %29 = arith.addf %27, %28 : vector<256x256xf32>
    %c3840 = arith.constant 3840 : index
    %c0_17 = arith.constant 0 : index
    %30 = vector.load %arg1[%c3840, %c0_17] : memref<8192x256xf32, #tpu.memory_space<vmem>>, vector<256x256xf32>
    %31 = arith.addf %29, %30 : vector<256x256xf32>
    %cst = arith.constant dense<0.000000e+00> : vector<16x256xf32>
    %32 = tpu.matmul %0, %31, %cst {dimension_numbers = #tpu.dot_dimension_numbers<[1], [0], [0], [1], [0, 0, 1, 1], [], []>} : vector<16x256xf32>, vector<256x256xf32>, vector<16x256xf32> -> vector<16x256xf32>
    %c4096 = arith.constant 4096 : index
    %c0_18 = arith.constant 0 : index
    %33 = vector.load %arg1[%c4096, %c0_18] : memref<8192x256xf32, #tpu.memory_space<vmem>>, vector<256x256xf32>
    %c4352 = arith.constant 4352 : index
    %c0_19 = arith.constant 0 : index
    %34 = vector.load %arg1[%c4352, %c0_19] : memref<8192x256xf32, #tpu.memory_space<vmem>>, vector<256x256xf32>
    %35 = arith.addf %33, %34 : vector<256x256xf32>
    %c4608 = arith.constant 4608 : index
    %c0_20 = arith.constant 0 : index
    %36 = vector.load %arg1[%c4608, %c0_20] : memref<8192x256xf32, #tpu.memory_space<vmem>>, vector<256x256xf32>
    %37 = arith.addf %35, %36 : vector<256x256xf32>
    %c4864 = arith.constant 4864 : index
    %c0_21 = arith.constant 0 : index
    %38 = vector.load %arg1[%c4864, %c0_21] : memref<8192x256xf32, #tpu.memory_space<vmem>>, vector<256x256xf32>
    %39 = arith.addf %37, %38 : vector<256x256xf32>
    %c5120 = arith.constant 5120 : index
    %c0_22 = arith.constant 0 : index
    %40 = vector.load %arg1[%c5120, %c0_22] : memref<8192x256xf32, #tpu.memory_space<vmem>>, vector<256x256xf32>
    %41 = arith.addf %39, %40 : vector<256x256xf32>
    %c5376 = arith.constant 5376 : index
    %c0_23 = arith.constant 0 : index
    %42 = vector.load %arg1[%c5376, %c0_23] : memref<8192x256xf32, #tpu.memory_space<vmem>>, vector<256x256xf32>
    %43 = arith.addf %41, %42 : vector<256x256xf32>
    %c5632 = arith.constant 5632 : index
    %c0_24 = arith.constant 0 : index
    %44 = vector.load %arg1[%c5632, %c0_24] : memref<8192x256xf32, #tpu.memory_space<vmem>>, vector<256x256xf32>
    %45 = arith.addf %43, %44 : vector<256x256xf32>
    %c5888 = arith.constant 5888 : index
    %c0_25 = arith.constant 0 : index
    %46 = vector.load %arg1[%c5888, %c0_25] : memref<8192x256xf32, #tpu.memory_space<vmem>>, vector<256x256xf32>
    %47 = arith.addf %45, %46 : vector<256x256xf32>
    %c6144 = arith.constant 6144 : index
    %c0_26 = arith.constant 0 : index
    %48 = vector.load %arg1[%c6144, %c0_26] : memref<8192x256xf32, #tpu.memory_space<vmem>>, vector<256x256xf32>
    %49 = arith.addf %47, %48 : vector<256x256xf32>
    %c6400 = arith.constant 6400 : index
    %c0_27 = arith.constant 0 : index
    %50 = vector.load %arg1[%c6400, %c0_27] : memref<8192x256xf32, #tpu.memory_space<vmem>>, vector<256x256xf32>
    %51 = arith.addf %49, %50 : vector<256x256xf32>
    %c6656 = arith.constant 6656 : index
    %c0_28 = arith.constant 0 : index
    %52 = vector.load %arg1[%c6656, %c0_28] : memref<8192x256xf32, #tpu.memory_space<vmem>>, vector<256x256xf32>
    %53 = arith.addf %51, %52 : vector<256x256xf32>
    %c6912 = arith.constant 6912 : index
    %c0_29 = arith.constant 0 : index
    %54 = vector.load %arg1[%c6912, %c0_29] : memref<8192x256xf32, #tpu.memory_space<vmem>>, vector<256x256xf32>
    %55 = arith.addf %53, %54 : vector<256x256xf32>
    %c7168 = arith.constant 7168 : index
    %c0_30 = arith.constant 0 : index
    %56 = vector.load %arg1[%c7168, %c0_30] : memref<8192x256xf32, #tpu.memory_space<vmem>>, vector<256x256xf32>
    %57 = arith.addf %55, %56 : vector<256x256xf32>
    %c7424 = arith.constant 7424 : index
    %c0_31 = arith.constant 0 : index
    %58 = vector.load %arg1[%c7424, %c0_31] : memref<8192x256xf32, #tpu.memory_space<vmem>>, vector<256x256xf32>
    %59 = arith.addf %57, %58 : vector<256x256xf32>
    %c7680 = arith.constant 7680 : index
    %c0_32 = arith.constant 0 : index
    %60 = vector.load %arg1[%c7680, %c0_32] : memref<8192x256xf32, #tpu.memory_space<vmem>>, vector<256x256xf32>
    %61 = arith.addf %59, %60 : vector<256x256xf32>
    %c7936 = arith.constant 7936 : index
    %c0_33 = arith.constant 0 : index
    %62 = vector.load %arg1[%c7936, %c0_33] : memref<8192x256xf32, #tpu.memory_space<vmem>>, vector<256x256xf32>
    %63 = arith.addf %61, %62 : vector<256x256xf32>
    %cst_34 = arith.constant dense<0.000000e+00> : vector<16x256xf32>
    %64 = tpu.matmul %0, %63, %cst_34 {dimension_numbers = #tpu.dot_dimension_numbers<[1], [0], [0], [1], [0, 0, 1, 1], [], []>} : vector<16x256xf32>, vector<256x256xf32>, vector<16x256xf32> -> vector<16x256xf32>
    %65 = tpu.concatenate %32, %64 in 0 : vector<16x256xf32>, vector<16x256xf32> -> vector<32x256xf32>
    %c0_35 = arith.constant 0 : index
    %c0_36 = arith.constant 0 : index
    %66 = vector.load %arg3[%c0_35, %c0_36] : memref<256x128xf32, #tpu.memory_space<vmem>>, vector<256x128xf32>
    %cst_37 = arith.constant dense<0.000000e+00> : vector<32x128xf32>
    %67 = tpu.matmul %65, %66, %cst_37 {dimension_numbers = #tpu.dot_dimension_numbers<[1], [0], [0], [1], [0, 0, 1, 1], [], []>} : vector<32x256xf32>, vector<256x128xf32>, vector<32x128xf32> -> vector<32x128xf32>
    %c0_38 = arith.constant 0 : index
    %c0_39 = arith.constant 0 : index
    %68 = vector.load %arg4[%c0_38, %c0_39] : memref<1x128xf32, #tpu.memory_space<vmem>>, vector<1x128xf32>
    %69 = vector.broadcast %68 : vector<1x128xf32> to vector<32x128xf32>
    %70 = arith.addf %67, %69 : vector<32x128xf32>
    %71 = arith.negf %70 : vector<32x128xf32>
    %72 = math.exp %71 : vector<32x128xf32>
    %cst_40 = arith.constant 1.000000e+00 : f32
    %73 = vector.broadcast %cst_40 : f32 to vector<32x128xf32>
    %74 = arith.addf %73, %72 : vector<32x128xf32>
    %75 = arith.divf %73, %74 : vector<32x128xf32>
    %76 = arith.mulf %70, %75 : vector<32x128xf32>
    %c0_41 = arith.constant 0 : index
    %c0_42 = arith.constant 0 : index
    %77 = vector.load %arg5[%c0_41, %c0_42] : memref<128x128xf32, #tpu.memory_space<vmem>>, vector<128x128xf32>
    %cst_43 = arith.constant dense<0.000000e+00> : vector<32x128xf32>
    %78 = tpu.matmul %76, %77, %cst_43 {dimension_numbers = #tpu.dot_dimension_numbers<[1], [0], [0], [1], [0, 0, 1, 1], [], []>} : vector<32x128xf32>, vector<128x128xf32>, vector<32x128xf32> -> vector<32x128xf32>
    %c0_44 = arith.constant 0 : index
    %c0_45 = arith.constant 0 : index
    %79 = vector.load %arg6[%c0_44, %c0_45] : memref<1x128xf32, #tpu.memory_space<vmem>>, vector<1x128xf32>
    %80 = vector.broadcast %79 : vector<1x128xf32> to vector<32x128xf32>
    %81 = arith.addf %78, %80 : vector<32x128xf32>
    %82 = arith.negf %81 : vector<32x128xf32>
    %83 = math.exp %82 : vector<32x128xf32>
    %cst_46 = arith.constant 1.000000e+00 : f32
    %84 = vector.broadcast %cst_46 : f32 to vector<32x128xf32>
    %85 = arith.addf %84, %83 : vector<32x128xf32>
    %86 = arith.divf %84, %85 : vector<32x128xf32>
    %87 = arith.mulf %81, %86 : vector<32x128xf32>
    %c0_47 = arith.constant 0 : index
    %c0_48 = arith.constant 0 : index
    %88 = vector.load %arg7[%c0_47, %c0_48] : memref<128x32xf32, #tpu.memory_space<vmem>>, vector<128x32xf32>
    %cst_49 = arith.constant dense<0.000000e+00> : vector<32x32xf32>
    %89 = tpu.matmul %87, %88, %cst_49 {dimension_numbers = #tpu.dot_dimension_numbers<[1], [0], [0], [1], [0, 0, 1, 1], [], []>} : vector<32x128xf32>, vector<128x32xf32>, vector<32x32xf32> -> vector<32x32xf32>
    %c0_50 = arith.constant 0 : index
    %c0_51 = arith.constant 0 : index
    %90 = vector.load %arg8[%c0_50, %c0_51] : memref<1x32xf32, #tpu.memory_space<vmem>>, vector<1x32xf32>
    %91 = vector.broadcast %90 : vector<1x32xf32> to vector<32x32xf32>
    %92 = arith.addf %89, %91 : vector<32x32xf32>
    %c0_52 = arith.constant 0 : index
    %c0_53 = arith.constant 0 : index
    %93 = vector.load %arg9[%c0_52, %c0_53] : memref<32x32xf32, #tpu.memory_space<vmem>>, vector<32x32xf32>
    tpu.vector_store %arg9[%c0_52, %c0_53], %92 {strides = array<i32>} : memref<32x32xf32, #tpu.memory_space<vmem>>, vector<32x32xf32>,
    return
  }
  func.func @transform_0(%arg0: i32) -> (i32, i32) {
    %c0_i32 = arith.constant 0 : i32
    %c0_i32_0 = arith.constant 0 : i32
    return %arg0, %c0_i32 : i32, i32
  }
  func.func @transform_1(%arg0: i32) -> (i32, i32) {
    %c0_i32 = arith.constant 0 : i32
    %c0_i32_0 = arith.constant 0 : i32
    %c0_i32_1 = arith.constant 0 : i32
    return %c0_i32, %c0_i32_0 : i32, i32
  }
  func.func @transform_2(%arg0: i32) -> (i32, i32) {
    %c0_i32 = arith.constant 0 : i32
    %c0_i32_0 = arith.constant 0 : i32
    %c0_i32_1 = arith.constant 0 : i32
    return %c0_i32, %c0_i32_0 : i32, i32
  }
  func.func @transform_3(%arg0: i32) -> (i32, i32) {
    %c0_i32 = arith.constant 0 : i32
    %c0_i32_0 = arith.constant 0 : i32
    %c0_i32_1 = arith.constant 0 : i32
    return %c0_i32, %c0_i32_0 : i32, i32
  }
  func.func @transform_4(%arg0: i32) -> (i32, i32) {
    %c0_i32 = arith.constant 0 : i32
    %c0_i32_0 = arith.constant 0 : i32
    %c0_i32_1 = arith.constant 0 : i32
    return %c0_i32, %c0_i32_0 : i32, i32
  }
  func.func @transform_5(%arg0: i32) -> (i32, i32) {
    %c0_i32 = arith.constant 0 : i32
    %c0_i32_0 = arith.constant 0 : i32
    %c0_i32_1 = arith.constant 0 : i32
    return %c0_i32, %c0_i32_0 : i32, i32
  }
  func.func @transform_6(%arg0: i32) -> (i32, i32) {
    %c0_i32 = arith.constant 0 : i32
    %c0_i32_0 = arith.constant 0 : i32
    %c0_i32_1 = arith.constant 0 : i32
    return %c0_i32, %c0_i32_0 : i32, i32
  }
  func.func @transform_7(%arg0: i32) -> (i32, i32) {
    %c0_i32 = arith.constant 0 : i32
    %c0_i32_0 = arith.constant 0 : i32
    %c0_i32_1 = arith.constant 0 : i32
    return %c0_i32, %c0_i32_0 : i32, i32
  }
  func.func @transform_8(%arg0: i32) -> (i32, i32) {
    %c0_i32 = arith.constant 0 : i32
    %c0_i32_0 = arith.constant 0 : i32
    return %arg0, %c0_i32 : i32, i32
  }
}

</mosaic_0001>

<bundles_post_ra>
// kernel: tpu_custom_call.1
= control target key start
LH: loop header
LB: loop body
LE: loop exit
PB: predicated region body
PF: predicated region fallthrough
CT: control target
= control target key end

     0   :  { %13 = vsyncpa [#allocation3], 0  ;;  %s8339_s0 = inlined_call_operand.hbm [shape: f32[65536,256], index: 0, kind: input, shape index: {}]   ;;  %s8340_s1 = inlined_call_operand.hbm [shape: f32[16,256], index: 1, kind: input, shape index: {}]   ;;  %s8341_s2 = inlined_call_operand.hbm [shape: f32[256,128], index: 2, kind: input, shape index: {}]   ;;  %s8342_s3 = inlined_call_operand.hbm [shape: f32[1,128], index: 3, kind: input, shape index: {}]   ;;  %s8343_s4 = inlined_call_operand.hbm [shape: f32[128,128], index: 4, kind: input, shape index: {}]   ;;  %s8344_s5 = inlined_call_operand.hbm [shape: f32[1,128], index: 5, kind: input, shape index: {}]   ;;  %s8345_s6 = inlined_call_operand.vmem [shape: f32[128,32], index: 6, kind: input, shape index: {}]   ;;  %s8346_s7 = inlined_call_operand.hbm [shape: f32[1,32], index: 7, kind: input, shape index: {}]   ;;  %s8347_s8 = inlined_call_operand.vmem [shape: f32[256,32], index: 8, kind: output, shape index: {}]  }
   0x1   :  { %15 = vsyncpa [#allocation3 + $0x1], 0 }
   0x2   :  { %16 = vsyncpa [#allocation5], 0 }
   0x3   :  { %17 = vsyncpa [#allocation8], 0 }
   0x4   :  { %18 = vsyncpa [#allocation11], 0  ;;  %s5938_s27 = smov 0   ;;  %s5940_s28 = smov 0  }
   0x5   :  { %s5942_s29 = smov 0   ;;  %s5944_s30 = smov 0  }
   0x6 LB: > { %s5882_s9 = smov [#allocation4]   ;;  %s8348_s11 = sadd.s32 4294967295, %s5880_s30   ;;  %s5880_s30 = sphi %s5944_s30, %s8369_s30   ;;  %s5876_s29 = sphi %s5942_s29, %s8368_s29   ;;  %s5872_s28 = sphi %s5940_s28, %s8367_s28   ;;  %s5868_s27 = sphi %s5938_s27, %s8366_s27  }
   0x7   : > { %s240_s10 = sshll.u32 %s5882_s9, 4  ;;  %p5063_p0 = scmp.ge.s32.totalorder %s5880_s30, 1  ;;  %s5967_s10 = int_to_ptr.vmem [resolvable:$true] %s240_s10 }
   0x8   : > { %p5962_p1 = scmp.eq.s32.totalorder %s8348_s11, 0  ;;  %p228_p2 = scmp.lt.s32.totalorder %s5880_s30, 9 }
   0x9   : > { %s5883_s14 = smov [#allocation7]   ;;  %s5884_s17 = smov [#allocation10]  }
   0xa   : > { %s8354_s12 = scalar_select %p5962_p1, 1, 0 }
   0xb   : > { %p5969_p3 = pnand %p5063_p0, %p228_p2  ;;  %s267_s15 = sshll.u32 %s5883_s14, 4  ;;  %s5981_s15 = int_to_ptr.vmem [resolvable:$true] %s267_s15 }
   0xc   : > { %s291_s18 = sshll.u32 %s5884_s17, 4  ;;  %s5636_s21 = scalar_lea.hbm %s8340_s1, 512  ;;  %s5983_s18 = int_to_ptr.vmem [resolvable:$true] %s291_s18 }
   0xd   : > { %s8355_s13 = scalar_select %p5969_p3, 1, 0 }
   0xe   : > { %p5526_p4 = pneg %p5969_p3  ;;  %p5637_p6 = scmp.ne.s32.totalorder %s8340_s1, %s5636_s21 }
   0xf   : > { %p5643_p10 = scmp.lt.u32.totalorder %s5636_s21, %s8340_s1 }
  0x10   : > { %p5977_p5 = pnand %p5526_p4, %p5962_p1 }
  0x12   : > { %p5993_p7 = pneg %p5977_p5 }
  0x14   : > { %p5639_p8 = pnand %p5993_p7, %p5637_p6 }
  0x16   : > { %p5640_p9 = pneg %p5639_p8 }
  0x18   : > { %p5645_p11 = pnand %p5643_p10, %p5640_p9 }
  0x1a   : > { %5648 = shalt.err (!%p5645_p11)
}
  0x1b   : > { %s5649_s9 = scalar_lea.vmem %s5967_s10, 512  ;;  %p5657_p2 = scmp.lt.s32.totalorder %s5967_s10, %s5967_s10 }
  0x1c   : > { %p5650_p12 = scmp.ne.s32.totalorder %s5967_s10, %s5649_s9  ;;  %p5658_p4 = scmp.lt.s32.totalorder %s5649_s9, %s5649_s9 }
  0x1e   : > { %p5652_p13 = pnand %p5650_p12, %p5993_p7  ;;  %p5659_p6 = por %p5658_p4, %p5657_p2 }
  0x20   : > { %p5653_p0 = pneg %p5652_p13 }
  0x22   : > { %p5660_p8 = pnand %p5659_p6, %p5653_p0 }
  0x24   : > { %5663 = shalt.err (!%p5660_p8)
}
  0x25   : > { %s8352_s14 = smov 256   ;;  %s8353_s17 = smov 16  }
  0x26   : > { %5529 = dma.hbm_to_vmem [thread:$0]  (!%p5977_p5), %s8340_s1, 512, %s5967_s10, [#allocation5], %s8352_s14, %s8352_s14, %s8353_s17  }
  0x27   : > { %s5664_s23 = scalar_lea.hbm %s8342_s3, 16 }
  0x28   : > { %p5665_p9 = scmp.ne.s32.totalorder %s8342_s3, %s5664_s23  ;;  %p5671_p12 = scmp.lt.u32.totalorder %s5664_s23, %s8342_s3 }
  0x2a   : > { %p5667_p10 = pnand %p5665_p9, %p5993_p7 }
  0x2c   : > { %p5668_p11 = pneg %p5667_p10 }
  0x2e   : > { %p5673_p13 = pnand %p5671_p12, %p5668_p11 }
  0x30   : > { %5676 = shalt.err (!%p5673_p13)
}
  0x31   : > { %s5677_s10 = scalar_lea.vmem %s5981_s15, 16  ;;  %s5684_s19 = scalar_lea.vmem %s5981_s15, 32 }
  0x32   : > { %p5678_p0 = scmp.ne.s32.totalorder %s5981_s15, %s5677_s10  ;;  %p5685_p6 = scmp.lt.s32.totalorder %s5981_s15, %s5981_s15 }
  0x33   : > { %p5686_p8 = scmp.lt.s32.totalorder %s5684_s19, %s5677_s10 }
  0x34   : > { %p5680_p2 = pnand %p5678_p0, %p5993_p7 }
  0x35   : > { %p5687_p9 = por %p5686_p8, %p5685_p6 }
  0x36   : > { %p5681_p4 = pneg %p5680_p2 }
  0x38   : > { %p5688_p10 = pnand %p5687_p9, %p5681_p4 }
  0x3a   : > { %5691 = shalt.err (!%p5688_p10)
}
  0x3b   : > { %5535 = dma.hbm_to_vmem [thread:$0]  (!%p5977_p5), %s8342_s3, 16, %s5981_s15, [#allocation8]  }
  0x3c   : > { %s5692_s23 = scalar_lea.hbm %s8344_s5, 16 }
  0x3d   : > { %p5693_p11 = scmp.ne.s32.totalorder %s8344_s5, %s5692_s23  ;;  %p5699_p0 = scmp.lt.u32.totalorder %s5692_s23, %s8344_s5 }
  0x3f   : > { %p5695_p12 = pnand %p5693_p11, %p5993_p7 }
  0x41   : > { %p5696_p13 = pneg %p5695_p12 }
  0x43   : > { %p5701_p2 = pnand %p5699_p0, %p5696_p13 }
  0x45   : > { %5704 = shalt.err (!%p5701_p2)
}
  0x46   : > { %s5705_s15 = scalar_lea.vmem %s5983_s18, 16  ;;  %s5712_s19 = scalar_lea.vmem %s5983_s18, 32 }
  0x47   : > { %p5706_p4 = scmp.ne.s32.totalorder %s5983_s18, %s5705_s15  ;;  %p5713_p9 = scmp.lt.s32.totalorder %s5983_s18, %s5983_s18 }
  0x48   : > { %p5714_p10 = scmp.lt.s32.totalorder %s5712_s19, %s5705_s15 }
  0x49   : > { %p5708_p6 = pnand %p5706_p4, %p5993_p7 }
  0x4a   : > { %p5715_p11 = por %p5714_p10, %p5713_p9 }
  0x4b   : > { %p5709_p8 = pneg %p5708_p6 }
  0x4d   : > { %p5716_p12 = pnand %p5715_p11, %p5709_p8 }
  0x4f   : > { %5719 = shalt.err (!%p5716_p12)
}
  0x50   : > { %5541 = dma.hbm_to_vmem [thread:$0]  (!%p5977_p5), %s8344_s5, 16, %s5983_s18, [#allocation11]  }
  0x51   : > { %s5887_s21 = smov [#allocation6]   ;;  %s5720_s26 = scalar_lea.hbm %s8341_s2, 4096 }
  0x52   : > { %s253_s22 = sshll.u32 %s5887_s21, 4  ;;  %p5721_p13 = scmp.ne.s32.totalorder %s8341_s2, %s5720_s26  ;;  %s254_s22 = int_to_ptr.vmem [resolvable:$true] %s253_s22 }
  0x53   : > { %p5727_p4 = scmp.lt.u32.totalorder %s5720_s26, %s8341_s2 }
  0x54   : > { %p5723_p0 = pnand %p5721_p13, %p5993_p7 }
  0x56   : > { %p5724_p2 = pneg %p5723_p0 }
  0x58   : > { %p5729_p6 = pnand %p5727_p4, %p5724_p2 }
  0x5a   : > { %5732 = shalt.err (!%p5729_p6)
}
  0x5b   : > { %s5733_s18 = scalar_lea.vmem %s254_s22, 4096  ;;  %p5741_p11 = scmp.lt.s32.totalorder %s254_s22, %s254_s22 }
  0x5c   : > { %p5734_p8 = scmp.ne.s32.totalorder %s254_s22, %s5733_s18  ;;  %p5742_p12 = scmp.lt.s32.totalorder %s5733_s18, %s5733_s18 }
  0x5e   : > { %p5736_p9 = pnand %p5734_p8, %p5993_p7  ;;  %p5743_p3 = por %p5742_p12, %p5741_p11 }
  0x60   : > { %p5737_p10 = pneg %p5736_p9 }
  0x62   : > { %p5744_p1 = pnand %p5743_p3, %p5737_p10 }
  0x64   : > { %5747 = shalt.err (!%p5744_p1)
}
  0x65   : > { %s5888_s11 = smov 128   ;;  %s5889_s20 = smov 8  }
  0x66   : > { %5532 = dma.hbm_to_vmem [thread:$0]  (!%p5977_p5), %s8341_s2, 4096, %s254_s22, [#allocation5], %s5888_s11, %s5888_s11, %s5889_s20  }
  0x67   : > { %s5890_s25 = smov [#allocation9]   ;;  %s5891_s9 = smov [#allocation12]  }
  0x68   : > { %s277_s26 = sshll.u32 %s5890_s25, 4  ;;  %s305_s10 = sshll.u32 %s5891_s9, 4  ;;  %s278_s26 = int_to_ptr.vmem [resolvable:$true] %s277_s26  ;;  %s6083_s10 = int_to_ptr.vmem [resolvable:$true] %s305_s10 }
  0x69   : > { %s5748_s18 = scalar_lea.hbm %s8343_s4, 2048 }
  0x6a   : > { %p5749_p1 = scmp.ne.s32.totalorder %s8343_s4, %s5748_s18  ;;  %p5755_p0 = scmp.lt.u32.totalorder %s5748_s18, %s8343_s4 }
  0x6c   : > { %p5751_p3 = pnand %p5749_p1, %p5993_p7 }
  0x6e   : > { %p5752_p13 = pneg %p5751_p3 }
  0x70   : > { %p5757_p2 = pnand %p5755_p0, %p5752_p13 }
  0x72   : > { %5760 = shalt.err (!%p5757_p2)
}
  0x73   : > { %s5761_s23 = scalar_lea.vmem %s278_s26, 2048  ;;  %p5769_p9 = scmp.lt.s32.totalorder %s278_s26, %s278_s26 }
  0x74   : > { %p5762_p4 = scmp.ne.s32.totalorder %s278_s26, %s5761_s23  ;;  %p5770_p10 = scmp.lt.s32.totalorder %s5761_s23, %s5761_s23 }
  0x76   : > { %p5764_p6 = pnand %p5762_p4, %p5993_p7  ;;  %p5771_p11 = por %p5770_p10, %p5769_p9 }
  0x78   : > { %p5765_p8 = pneg %p5764_p6 }
  0x7a   : > { %p5772_p12 = pnand %p5771_p11, %p5765_p8 }
  0x7c   : > { %5775 = shalt.err (!%p5772_p12)
}
  0x7d   : > { %5538 = dma.hbm_to_vmem [thread:$0]  (!%p5977_p5), %s8343_s4, 2048, %s278_s26, [#allocation8], %s5888_s11, %s5888_s11, %s5889_s20  }
  0x7e   : > { %s5776_s15 = scalar_lea.hbm %s8346_s7, 16 }
  0x7f   : > { %p5777_p1 = scmp.ne.s32.totalorder %s8346_s7, %s5776_s15  ;;  %p5783_p0 = scmp.lt.u32.totalorder %s5776_s15, %s8346_s7 }
  0x81   : > { %p5779_p3 = pnand %p5777_p1, %p5993_p7 }
  0x83   : > { %p5780_p13 = pneg %p5779_p3 }
  0x85   : > { %p5785_p2 = pnand %p5783_p0, %p5780_p13 }
  0x87   : > { %5788 = shalt.err (!%p5785_p2)
}
  0x88   : > { %s5789_s11 = scalar_lea.vmem %s6083_s10, 16  ;;  %s5796_s20 = scalar_lea.vmem %s6083_s10, 32 }
  0x89   : > { %p5790_p4 = scmp.ne.s32.totalorder %s6083_s10, %s5789_s11  ;;  %p5797_p9 = scmp.lt.s32.totalorder %s6083_s10, %s6083_s10 }
  0x8a   : > { %p5798_p10 = scmp.lt.s32.totalorder %s5796_s20, %s5789_s11 }
  0x8b   : > { %p5792_p6 = pnand %p5790_p4, %p5993_p7 }
  0x8c   : > { %p5799_p11 = por %p5798_p10, %p5797_p9 }
  0x8d   : > { %p5793_p8 = pneg %p5792_p6 }
  0x8f   : > { %p5800_p12 = pnand %p5799_p11, %p5793_p8 }
  0x91   : > { %5803 = shalt.err (!%p5800_p12)
}
  0x92   : > { %5544 = dma.hbm_to_vmem [thread:$0]  (!%p5977_p5), %s8346_s7, 16, %s6083_s10, [#allocation11]  }
  0x93   : > { %s6128_s24 = sadd.s32 1, %s5880_s30   ;;  %s31_s16 = sadd.s32 1, %s5876_s29 }
  0x94   : > { %s28_s14 = ssub.s32 %s5880_s30, %s6128_s24  ;;  %p38_p7 = scmp.ne.s32.totalorder %s5876_s29, %s5872_s28 }
  0x95   : > { %p29_p1 = scmp.eq.s32.totalorder %s28_s14, 0  ;;  %p39_p3 = scmp.eq.s32.totalorder %s5880_s30, 0 }
  0x96   : > { %p44_p13 = scmp.ne.s32.totalorder %s5872_s28, %s5868_s27  ;;  %p5555_p0 = scmp.lt.s32.totalorder %s5880_s30, 8 }
  0x97   : > { %s6140_s17 = scalar_select %p29_p1, %s5876_s29, %s31_s16  }
  0x98   : > { %p40_p2 = por %p39_p3, %p38_p7  ;;  %p8358_p4 = scmp.ne.s32.totalorder %s8354_s12, 0 }
  0x99   : > { %s316_s9 = sand.u32 1, %s5876_s29   ;;  %s5099_s10 = sshll.u32 %s5880_s30, 18 }
  0x9a   : > { %p6144_p6 = por %p8358_p4, %p44_p13  ;;  %s5071_s15 = sshll.u32 %s316_s9, 14 }
  0x9b   : > { %s6153_s21 = scalar_lea.hbm %s8339_s0, %s5099_s10  ;;  %s320_s27 = scalar_lea.vmem [#allocation2], %s5071_s15 }
  0x9c   : > { %s328_s22 = sshll.u32 %s320_s27, 4  ;;  %p6155_p5 = pnand %p5555_p0, %p40_p2  ;;  %s6159_s22 = int_to_ptr.vmem [resolvable:$true] %s328_s22 }
  0x9d   : > { %s6161_s20 = scalar_lea.sflag [#allocation3], %s316_s9  ;;  %s5804_s26 = scalar_lea.hbm %s6153_s21, 262144 }
  0x9e   : > { %p5805_p8 = scmp.ne.s32.totalorder %s6153_s21, %s5804_s26  ;;  %p5806_p9 = pneg %p6155_p5 }
  0x9f   : > { %s5809_s14 = scalar_lea.hbm %s8339_s0, 2097152  ;;  %p5810_p12 = scmp.lt.u32.totalorder %s6153_s21, %s8339_s0 }
  0xa0   : > { %p5807_p10 = pnand %p5806_p9, %p5805_p8  ;;  %p5811_p7 = scmp.lt.u32.totalorder %s5809_s14, %s5804_s26 }
  0xa1   : > { %p5813_p3 = scmp.lt.u32.totalorder %s5804_s26, %s6153_s21 }
  0xa2   : > { %p5808_p11 = pneg %p5807_p10  ;;  %p5812_p1 = por %p5811_p7, %p5810_p12 }
  0xa4   : > { %p5814_p13 = por %p5813_p3, %p5812_p1 }
  0xa6   : > { %p5815_p0 = pnand %p5814_p13, %p5808_p11 }
  0xa8   : > { %5818 = shalt.err (!%p5815_p0)
}
  0xa9   : > { %s5819_s9 = scalar_lea.vmem %s6159_s22, 262144  ;;  %s5892_s19 = smov [#allocation2]  }
  0xaa   : > { %p5820_p2 = scmp.ne.s32.totalorder %s6159_s22, %s5819_s9  ;;  %s5824_s18 = sshll.u32 %s5892_s19, 4  ;;  %s5825_s18 = int_to_ptr.vmem [resolvable:$false] %s5824_s18 }
  0xab   : > { %s5826_s27 = scalar_lea.vmem %s5825_s18, 524288  ;;  %p5827_p10 = scmp.lt.s32.totalorder %s6159_s22, %s5825_s18 }
  0xac   : > { %p5822_p4 = pnand %p5820_p2, %p5806_p9  ;;  %p5828_p12 = scmp.lt.s32.totalorder %s5826_s27, %s5819_s9 }
  0xae   : > { %p5823_p8 = pneg %p5822_p4  ;;  %p5829_p7 = por %p5828_p12, %p5827_p10 }
  0xb0   : > { %p5830_p1 = pnand %p5829_p7, %p5823_p8 }
  0xb2   : > { %5833 = shalt.err (!%p5830_p1)
}
  0xb3   : > { %s8361_s26 = smov 16   ;;  %s8362_s23 = smov 256  }
  0xb4   : > { %5548 = dma.hbm_to_vmem [thread:$0]  (!%p6155_p5), %s6153_s21, 262144, %s6159_s22, %s6161_s20, %s8362_s23, %s8362_s23, %s8361_s26  }
  0xb5   : > { %p8363_p9 = scmp.ne.s32.totalorder %s8355_s13, 0 }
  0xb6   : > { %s342_s16 = sand.u32 (!%p8363_p9), 1, %s5872_s28  }
  0xb7   : > { %340 = sbr.rel (%p8363_p9) target bundleno = 1826 (0x722), region = 52  ;;  %s5076_s14 = sshll.u32 (!%p8363_p9), %s342_s16, 14 }
  0xb8   : > { %s343_s10 = scalar_lea.sflag (!%p8363_p9), [#allocation3], %s342_s16  ;;  %s6195_s15 = scalar_lea.vmem (!%p8363_p9), [#allocation2], %s5076_s14 }
  0xbe   : > { %5851 = dma.done.wait (%p6144_p6), %s343_s10, 262144  }
  0xbf   : > { %5853 = vsyncadd (%p6144_p6), %s343_s10, 4294705152  ;;  %p8364_p11 = scmp.ne.s32.totalorder %s8354_s12, 0 }
  0xc1   : > { %5855 = dma.done.wait (%p8364_p11), [#allocation5], 4608  }
  0xc2   : > { %5857 = vsyncadd (%p8364_p11), [#allocation5], 4294962688 }
  0xc3   : > { %5859 = dma.done.wait (%p8364_p11), [#allocation8], 2064  }
  0xc4   : > { %5861 = vsyncadd (%p8364_p11), [#allocation8], 4294965232 }
  0xc5   : > { %5863 = dma.done.wait (%p8364_p11), [#allocation11], 32  }
  0xc6   : > { %5865 = vsyncadd (%p8364_p11), [#allocation11], 4294967264  ;;  %v415_v0 = vld [vmem:[%s6195_s15 + $0x8] sm:$0xff]  ;;  %v417_v1 = vld [vmem:[%s6195_s15 + $0x18] sm:$0xff]  ;;  %s8365_s10 = sadd.s32 4294967295, %s5880_s30   ;;  %vm4932_vm0 = vcmask 261120  }
  0xc7   : > { %v479_v2 = vld [vmem:[%s6195_s15 + $0x208] sm:$0xff]  ;;  %v481_v3 = vld [vmem:[%s6195_s15 + $0x218] sm:$0xff]  ;;  %v414_v26 = vld [vmem:[%s6195_s15] sm:$0xff] }
  0xc8   : > { %v543_v4 = vadd.f32 %v479_v2, %v415_v0  ;;  %v607_v5 = vld [vmem:[%s6195_s15 + $0x408] sm:$0xff]  ;;  %v609_v6 = vld [vmem:[%s6195_s15 + $0x418] sm:$0xff]  ;;  %v545_v7 = vadd.f32 %v481_v3, %v417_v1  ;;  %v416_v28 = vld [vmem:[%s6195_s15 + $0x10] sm:$0xff] }
  0xc9   : > { %v735_v8 = vld [vmem:[%s6195_s15 + $0x608] sm:$0xff]  ;;  %v737_v10 = vld [vmem:[%s6195_s15 + $0x618] sm:$0xff]  ;;  %v478_v29 = vld [vmem:[%s6195_s15 + $0x200] sm:$0xff] }
  0xca   : > { %v671_v9 = vadd.f32 %v607_v5, %v543_v4  ;;  %v673_v11 = vadd.f32 %v609_v6, %v545_v7  ;;  %v863_v12 = vld [vmem:[%s6195_s15 + $0x808] sm:$0xff]  ;;  %v865_v14 = vld [vmem:[%s6195_s15 + $0x818] sm:$0xff]  ;;  %v480_v30 = vld [vmem:[%s6195_s15 + $0x210] sm:$0xff]  ;;  %v542_v33 = vadd.f32 %v478_v29, %v414_v26 }
  0xcb   : > { %v991_v16 = vld [vmem:[%s6195_s15 + $0xa08] sm:$0xff]  ;;  %v993_v18 = vld [vmem:[%s6195_s15 + $0xa18] sm:$0xff]  ;;  %v544_v34 = vadd.f32 %v480_v30, %v416_v28  ;;  %v606_v35 = vld [vmem:[%s6195_s15 + $0x400] sm:$0xff] }
  0xcc   : > { %v799_v13 = vadd.f32 %v735_v8, %v671_v9  ;;  %v801_v15 = vadd.f32 %v737_v10, %v673_v11  ;;  %v1119_v20 = vld [vmem:[%s6195_s15 + $0xc08] sm:$0xff]  ;;  %v1121_v22 = vld [vmem:[%s6195_s15 + $0xc18] sm:$0xff]  ;;  %v608_v36 = vld [vmem:[%s6195_s15 + $0x410] sm:$0xff]  ;;  %v670_v43 = vadd.f32 %v606_v35, %v542_v33 }
  0xcd   : > { %v1247_v24 = vld [vmem:[%s6195_s15 + $0xe08] sm:$0xff]  ;;  %v1249_v25 = vld [vmem:[%s6195_s15 + $0xe18] sm:$0xff]  ;;  %v734_v39 = vld [vmem:[%s6195_s15 + $0x600] sm:$0xff]  ;;  %v672_v44 = vadd.f32 %v608_v36, %v544_v34 }
  0xce   : > { %v927_v17 = vadd.f32 %v863_v12, %v799_v13  ;;  %v929_v19 = vadd.f32 %v865_v14, %v801_v15  ;;  %v1375_v32 = vld [vmem:[%s6195_s15 + $0x1008] sm:$0xff]  ;;  %v1377_v38 = vld [vmem:[%s6195_s15 + $0x1018] sm:$0xff]  ;;  %v736_v40 = vld [vmem:[%s6195_s15 + $0x610] sm:$0xff]  ;;  %v798_v51 = vadd.f32 %v734_v39, %v670_v43 }
  0xcf   : > { %v1503_v42 = vld [vmem:[%s6195_s15 + $0x1208] sm:$0xff]  ;;  %v1505_v46 = vld [vmem:[%s6195_s15 + $0x1218] sm:$0xff]  ;;  %v862_v47 = vld [vmem:[%s6195_s15 + $0x800] sm:$0xff]  ;;  %v800_v52 = vadd.f32 %v736_v40, %v672_v44 }
  0xd0   : > { %v1055_v21 = vadd.f32 %v991_v16, %v927_v17  ;;  %v1057_v23 = vadd.f32 %v993_v18, %v929_v19  ;;  %v864_v48 = vld [vmem:[%s6195_s15 + $0x810] sm:$0xff]  ;;  %v1631_v50 = vld [vmem:[%s6195_s15 + $0x1408] sm:$0xff]  ;;  %v1633_v54 = vld [vmem:[%s6195_s15 + $0x1418] sm:$0xff]  ;;  %v926_v60 = vadd.f32 %v862_v47, %v798_v51 }
  0xd1   : > { %v990_v55 = vld [vmem:[%s6195_s15 + $0xa00] sm:$0xff]  ;;  %v992_v56 = vld [vmem:[%s6195_s15 + $0xa10] sm:$0xff]  ;;  %v1759_v58 = vld [vmem:[%s6195_s15 + $0x1608] sm:$0xff]  ;;  %v928_v61 = vadd.f32 %v864_v48, %v800_v52 }
  0xd2   : > { %v1183_v27 = vadd.f32 %v1119_v20, %v1055_v21  ;;  %v1185_v31 = vadd.f32 %v1121_v22, %v1057_v23  ;;  %v1761_v59 = vld [vmem:[%s6195_s15 + $0x1618] sm:$0xff]  ;;  %v1887_v63 = vld [vmem:[%s6195_s15 + $0x1808] sm:$0xff]  ;;  %v1118_v0 = vld [vmem:[%s6195_s15 + $0xc00] sm:$0xff]  ;;  %v1054_v5 = vadd.f32 %v990_v55, %v926_v60 }
  0xd3   : > { %v1120_v1 = vld [vmem:[%s6195_s15 + $0xc10] sm:$0xff]  ;;  %v1889_v3 = vld [vmem:[%s6195_s15 + $0x1818] sm:$0xff]  ;;  %v2015_v4 = vld [vmem:[%s6195_s15 + $0x1a08] sm:$0xff]  ;;  %v1056_v6 = vadd.f32 %v992_v56, %v928_v61 }
  0xd4   : > { %v1311_v37 = vadd.f32 %v1247_v24, %v1183_v27  ;;  %v1313_v41 = vadd.f32 %v1249_v25, %v1185_v31  ;;  %v1246_v7 = vld [vmem:[%s6195_s15 + $0xe00] sm:$0xff]  ;;  %v2017_v9 = vld [vmem:[%s6195_s15 + $0x1a18] sm:$0xff]  ;;  %v1248_v10 = vld [vmem:[%s6195_s15 + $0xe10] sm:$0xff]  ;;  %v1182_v14 = vadd.f32 %v1118_v0, %v1054_v5 }
  0xd5   : > { %v419_v11 = vld [vmem:[%s6195_s15 + $0x28] sm:$0xff]  ;;  %v421_v12 = vld [vmem:[%s6195_s15 + $0x38] sm:$0xff]  ;;  %v1184_v15 = vadd.f32 %v1120_v1, %v1056_v6  ;;  %v1374_v20 = vld [vmem:[%s6195_s15 + $0x1000] sm:$0xff] }
  0xd6   : > { %v1439_v45 = vadd.f32 %v1375_v32, %v1311_v37  ;;  %v1441_v49 = vadd.f32 %v1377_v38, %v1313_v41  ;;  %v483_v16 = vld [vmem:[%s6195_s15 + $0x228] sm:$0xff]  ;;  %v485_v17 = vld [vmem:[%s6195_s15 + $0x238] sm:$0xff]  ;;  %v1376_v21 = vld [vmem:[%s6195_s15 + $0x1010] sm:$0xff]  ;;  %v1310_v27 = vadd.f32 %v1246_v7, %v1182_v14 }
  0xd7   : > { %v611_v18 = vld [vmem:[%s6195_s15 + $0x428] sm:$0xff]  ;;  %v547_v22 = vadd.f32 %v483_v16, %v419_v11  ;;  %v549_v23 = vadd.f32 %v485_v17, %v421_v12  ;;  %v613_v24 = vld [vmem:[%s6195_s15 + $0x438] sm:$0xff]  ;;  %v1312_v28 = vadd.f32 %v1248_v10, %v1184_v15  ;;  %v1502_v33 = vld [vmem:[%s6195_s15 + $0x1200] sm:$0xff] }
  0xd8   : > { %v1567_v53 = vadd.f32 %v1503_v42, %v1439_v45  ;;  %v1569_v57 = vadd.f32 %v1505_v46, %v1441_v49  ;;  %v2143_v26 = vld [vmem:[%s6195_s15 + $0x1c08] sm:$0xff]  ;;  %v741_v30 = vld [vmem:[%s6195_s15 + $0x638] sm:$0xff]  ;;  %v1504_v34 = vld [vmem:[%s6195_s15 + $0x1210] sm:$0xff]  ;;  %v1438_v39 = vadd.f32 %v1374_v20, %v1310_v27 }
  0xd9   : > { %v739_v29 = vld [vmem:[%s6195_s15 + $0x628] sm:$0xff]  ;;  %v2145_v32 = vld [vmem:[%s6195_s15 + $0x1c18] sm:$0xff]  ;;  %v675_v35 = vadd.f32 %v611_v18, %v547_v22  ;;  %v677_v36 = vadd.f32 %v613_v24, %v549_v23  ;;  %v1440_v40 = vadd.f32 %v1376_v21, %v1312_v28  ;;  %v1630_v45 = vld [vmem:[%s6195_s15 + $0x1400] sm:$0xff] }
  0xda   : > { %v1695_v62 = vadd.f32 %v1631_v50, %v1567_v53  ;;  %v1697_v2 = vadd.f32 %v1633_v54, %v1569_v57  ;;  %v2271_v38 = vld [vmem:[%s6195_s15 + $0x1e08] sm:$0xff]  ;;  %v869_v42 = vld [vmem:[%s6195_s15 + $0x838] sm:$0xff]  ;;  %v1632_v46 = vld [vmem:[%s6195_s15 + $0x1410] sm:$0xff]  ;;  %v1566_v50 = vadd.f32 %v1502_v33, %v1438_v39 }
  0xdb   : > { %v867_v41 = vld [vmem:[%s6195_s15 + $0x828] sm:$0xff]  ;;  %v2273_v44 = vld [vmem:[%s6195_s15 + $0x1e18] sm:$0xff]  ;;  %v803_v47 = vadd.f32 %v739_v29, %v675_v35  ;;  %v805_v48 = vadd.f32 %v741_v30, %v677_v36  ;;  %v1568_v51 = vadd.f32 %v1504_v34, %v1440_v40  ;;  %v1758_v55 = vld [vmem:[%s6195_s15 + $0x1600] sm:$0xff] }
  0xdc   : > { %v1823_v8 = vadd.f32 %v1759_v58, %v1695_v62  ;;  %v1825_v13 = vadd.f32 %v1761_v59, %v1697_v2  ;;  %v995_v52 = vld [vmem:[%s6195_s15 + $0xa28] sm:$0xff]  ;;  %v997_v53 = vld [vmem:[%s6195_s15 + $0xa38] sm:$0xff]  ;;  %v1760_v56 = vld [vmem:[%s6195_s15 + $0x1610] sm:$0xff]  ;;  %v1694_v61 = vadd.f32 %v1630_v45, %v1566_v50 }
  0xdd   : > { %v1886_v57 = vld [vmem:[%s6195_s15 + $0x1800] sm:$0xff]  ;;  %v931_v58 = vadd.f32 %v867_v41, %v803_v47  ;;  %v933_v59 = vadd.f32 %v869_v42, %v805_v48  ;;  %v1696_v62 = vadd.f32 %v1632_v46, %v1568_v51  ;;  %v1123_v0 = vld [vmem:[%s6195_s15 + $0xc28] sm:$0xff]  ;;  %v1125_v1 = vld [vmem:[%s6195_s15 + $0xc38] sm:$0xff] }
  0xde   : > { %v1951_v19 = vadd.f32 %v1887_v63, %v1823_v8  ;;  %v1953_v25 = vadd.f32 %v1889_v3, %v1825_v13  ;;  %v1888_v63 = vld [vmem:[%s6195_s15 + $0x1810] sm:$0xff]  ;;  %v2014_v2 = vld [vmem:[%s6195_s15 + $0x1a00] sm:$0xff]  ;;  %v1251_v6 = vld [vmem:[%s6195_s15 + $0xe28] sm:$0xff] }
  0xdf   : > { %v2016_v3 = vld [vmem:[%s6195_s15 + $0x1a10] sm:$0xff]  ;;  %v1061_v5 = vadd.f32 %v997_v53, %v933_v59  ;;  %v1253_v7 = vld [vmem:[%s6195_s15 + $0xe38] sm:$0xff]  ;;  %v1824_v10 = vadd.f32 %v1760_v56, %v1696_v62  ;;  %v418_v11 = vld [vmem:[%s6195_s15 + $0x20] sm:$0xff] }
  0xe0   : > { %v2079_v31 = vadd.f32 %v2015_v4, %v1951_v19  ;;  %v2081_v37 = vadd.f32 %v2017_v9, %v1953_v25  ;;  %v1059_v4 = vadd.f32 %v995_v52, %v931_v58  ;;  %v1822_v9 = vadd.f32 %v1758_v55, %v1694_v61  ;;  %v420_v12 = vld [vmem:[%s6195_s15 + $0x30] sm:$0xff]  ;;  %v482_v13 = vld [vmem:[%s6195_s15 + $0x220] sm:$0xff]  ;;  %v1379_v22 = vld [vmem:[%s6195_s15 + $0x1028] sm:$0xff] }
  0xe1   : > { %v1189_v15 = vadd.f32 %v1125_v1, %v1061_v5  ;;  %v484_v16 = vld [vmem:[%s6195_s15 + $0x230] sm:$0xff]  ;;  %v546_v17 = vadd.f32 %v482_v13, %v418_v11  ;;  %v610_v18 = vld [vmem:[%s6195_s15 + $0x420] sm:$0xff]  ;;  %v1952_v21 = vadd.f32 %v1888_v63, %v1824_v10  ;;  %v1381_v23 = vld [vmem:[%s6195_s15 + $0x1038] sm:$0xff] }
  0xe2   : > { %v2207_v43 = vadd.f32 %v2143_v26, %v2079_v31  ;;  %v2209_v49 = vadd.f32 %v2145_v32, %v2081_v37  ;;  %v1187_v14 = vadd.f32 %v1123_v0, %v1059_v4  ;;  %v612_v19 = vld [vmem:[%s6195_s15 + $0x430] sm:$0xff]  ;;  %v1950_v20 = vadd.f32 %v1886_v57, %v1822_v9  ;;  %v738_v25 = vld [vmem:[%s6195_s15 + $0x620] sm:$0xff]  ;;  %v1507_v34 = vld [vmem:[%s6195_s15 + $0x1228] sm:$0xff] }
  0xe3   : > { %v548_v24 = vadd.f32 %v484_v16, %v420_v12  ;;  %v2142_v26 = vld [vmem:[%s6195_s15 + $0x1c00] sm:$0xff]  ;;  %v2144_v27 = vld [vmem:[%s6195_s15 + $0x1c10] sm:$0xff]  ;;  %v1317_v29 = vadd.f32 %v1253_v7, %v1189_v15  ;;  %v674_v30 = vadd.f32 %v610_v18, %v546_v17  ;;  %v2080_v33 = vadd.f32 %v2016_v3, %v1952_v21  ;;  %v1509_v35 = vld [vmem:[%s6195_s15 + $0x1238] sm:$0xff] }
  0xe4   : > { %v2335_v54 = vadd.f32 %v2271_v38, %v2207_v43  ;;  %v2337_v60 = vadd.f32 %v2273_v44, %v2209_v49  ;;  %v1315_v28 = vadd.f32 %v1251_v6, %v1187_v14  ;;  %v740_v31 = vld [vmem:[%s6195_s15 + $0x630] sm:$0xff]  ;;  %v2078_v32 = vadd.f32 %v2014_v2, %v1950_v20  ;;  %v866_v37 = vld [vmem:[%s6195_s15 + $0x820] sm:$0xff]  ;;  %v1635_v46 = vld [vmem:[%s6195_s15 + $0x1428] sm:$0xff] }
  0xe5   : > { %v676_v36 = vadd.f32 %v612_v19, %v548_v24  ;;  %v2270_v38 = vld [vmem:[%s6195_s15 + $0x1e00] sm:$0xff]  ;;  %v2272_v39 = vld [vmem:[%s6195_s15 + $0x1e10] sm:$0xff]  ;;  %v1445_v41 = vadd.f32 %v1381_v23, %v1317_v29  ;;  %v802_v42 = vadd.f32 %v738_v25, %v674_v30  ;;  %v2208_v45 = vadd.f32 %v2144_v27, %v2080_v33  ;;  %v1637_v47 = vld [vmem:[%s6195_s15 + $0x1438] sm:$0xff] }
  0xe6   : > { %v5260_v8 = vpack.c.bf16 %v2337_v60, %v2335_v54  ;;  %v1443_v40 = vadd.f32 %v1379_v22, %v1315_v28  ;;  %v868_v43 = vld [vmem:[%s6195_s15 + $0x830] sm:$0xff]  ;;  %v2206_v44 = vadd.f32 %v2142_v26, %v2078_v32  ;;  %v994_v49 = vld [vmem:[%s6195_s15 + $0xa20] sm:$0xff]  ;;  %v1763_v56 = vld [vmem:[%s6195_s15 + $0x1628] sm:$0xff] }
  0xe7   : > { %v804_v48 = vadd.f32 %v740_v31, %v676_v36  ;;  %v1573_v51 = vadd.f32 %v1509_v35, %v1445_v41  ;;  %v930_v52 = vadd.f32 %v866_v37, %v802_v42  ;;  %v996_v53 = vld [vmem:[%s6195_s15 + $0xa30] sm:$0xff]  ;;  %v2336_v55 = vadd.f32 %v2272_v39, %v2208_v45  ;;  %v1765_v57 = vld [vmem:[%s6195_s15 + $0x1638] sm:$0xff]  ;;  %v1122_v59 = vld [vmem:[%s6195_s15 + $0xc20] sm:$0xff] }
  0xe8   : > { %5261 = vmatprep.subr.bf16.mxu0 %v5260_v8  ;;  %v1571_v50 = vadd.f32 %v1507_v34, %v1443_v40  ;;  %v2334_v54 = vadd.f32 %v2270_v38, %v2206_v44  ;;  %v1891_v62 = vld [vmem:[%s6195_s15 + $0x1828] sm:$0xff]  ;;  %v1893_v63 = vld [vmem:[%s6195_s15 + $0x1838] sm:$0xff]  ;;  %v1124_v1 = vld [vmem:[%s6195_s15 + $0xc30] sm:$0xff] }
  0xe9   : > { %v932_v58 = vadd.f32 %v868_v43, %v804_v48  ;;  %v1701_v61 = vadd.f32 %v1637_v47, %v1573_v51  ;;  %v1058_v0 = vadd.f32 %v994_v49, %v930_v52  ;;  %v2019_v3 = vld [vmem:[%s6195_s15 + $0x1a28] sm:$0xff]  ;;  %v2021_v4 = vld [vmem:[%s6195_s15 + $0x1a38] sm:$0xff]  ;;  %v1250_v6 = vld [vmem:[%s6195_s15 + $0xe20] sm:$0xff] }
  0xea   : > { %v1699_v60 = vadd.f32 %v1635_v46, %v1571_v50  ;;  %v5262_v2 = vpack.c.bf16 %v2336_v55, %v2334_v54  ;;  %v1252_v7 = vld [vmem:[%s6195_s15 + $0xe30] sm:$0xff]  ;;  %v2476_v8 = vld [vmem:[%s6195_s15 + $0x2008] sm:$0xff]  ;;  %v2478_v12 = vld [vmem:[%s6195_s15 + $0x2018] sm:$0xff] }
  0xeb   : > { %v1060_v5 = vadd.f32 %v996_v53, %v932_v58  ;;  %v1829_v10 = vadd.f32 %v1765_v57, %v1701_v61  ;;  %v1186_v11 = vadd.f32 %v1122_v59, %v1058_v0  ;;  %v2540_v13 = vld [vmem:[%s6195_s15 + $0x2208] sm:$0xff]  ;;  %v2542_v14 = vld [vmem:[%s6195_s15 + $0x2218] sm:$0xff]  ;;  %v1378_v16 = vld [vmem:[%s6195_s15 + $0x1020] sm:$0xff] }
  0xec   : > { %v1827_v9 = vadd.f32 %v1763_v56, %v1699_v60  ;;  %5263 = vmatpush1.bf16.msra.mxu0 %v5262_v2  ;;  %v2604_v17 = vadd.f32 %v2540_v13, %v2476_v8  ;;  %v2606_v18 = vadd.f32 %v2542_v14, %v2478_v12  ;;  %v2668_v19 = vld [vmem:[%s6195_s15 + $0x2408] sm:$0xff]  ;;  %v2670_v20 = vld [vmem:[%s6195_s15 + $0x2418] sm:$0xff]  ;;  %v1380_v24 = vld [vmem:[%s6195_s15 + $0x1030] sm:$0xff] }
  0xed   : > { %v1188_v15 = vadd.f32 %v1124_v1, %v1060_v5  ;;  %v1957_v22 = vadd.f32 %v1893_v63, %v1829_v10  ;;  %v1314_v23 = vadd.f32 %v1250_v6, %v1186_v11  ;;  %v2796_v25 = vld [vmem:[%s6195_s15 + $0x2608] sm:$0xff]  ;;  %v2798_v26 = vld [vmem:[%s6195_s15 + $0x2618] sm:$0xff]  ;;  %v1506_v30 = vld [vmem:[%s6195_s15 + $0x1220] sm:$0xff] }
  0xee   : > { %v1955_v21 = vadd.f32 %v1891_v62, %v1827_v9  ;;  %v2147_v27 = vld [vmem:[%s6195_s15 + $0x1c28] sm:$0xff]  ;;  %v2149_v28 = vld [vmem:[%s6195_s15 + $0x1c38] sm:$0xff]  ;;  %v2732_v31 = vadd.f32 %v2668_v19, %v2604_v17  ;;  %v2734_v32 = vadd.f32 %v2670_v20, %v2606_v18  ;;  %v1508_v36 = vld [vmem:[%s6195_s15 + $0x1230] sm:$0xff] }
  0xef   : > { %v1316_v29 = vadd.f32 %v1252_v7, %v1188_v15  ;;  %v2085_v34 = vadd.f32 %v2021_v4, %v1957_v22  ;;  %v1442_v35 = vadd.f32 %v1378_v16, %v1314_v23  ;;  %v2924_v37 = vld [vmem:[%s6195_s15 + $0x2808] sm:$0xff]  ;;  %v2926_v38 = vld [vmem:[%s6195_s15 + $0x2818] sm:$0xff]  ;;  %v1634_v42 = vld [vmem:[%s6195_s15 + $0x1420] sm:$0xff] }
  0xf0   : > { %v2083_v33 = vadd.f32 %v2019_v3, %v1955_v21  ;;  %v2275_v39 = vld [vmem:[%s6195_s15 + $0x1e28] sm:$0xff]  ;;  %v2277_v40 = vld [vmem:[%s6195_s15 + $0x1e38] sm:$0xff]  ;;  %v2860_v43 = vadd.f32 %v2796_v25, %v2732_v31  ;;  %v2862_v44 = vadd.f32 %v2798_v26, %v2734_v32  ;;  %v1636_v48 = vld [vmem:[%s6195_s15 + $0x1430] sm:$0xff] }
  0xf1   : > { %v1444_v41 = vadd.f32 %v1380_v24, %v1316_v29  ;;  %v2213_v46 = vadd.f32 %v2149_v28, %v2085_v34  ;;  %v1570_v47 = vadd.f32 %v1506_v30, %v1442_v35  ;;  %v3052_v49 = vld [vmem:[%s6195_s15 + $0x2a08] sm:$0xff]  ;;  %v3054_v50 = vld [vmem:[%s6195_s15 + $0x2a18] sm:$0xff]  ;;  %v1762_v52 = vld [vmem:[%s6195_s15 + $0x1620] sm:$0xff] }
  0xf2   : > { %v2211_v45 = vadd.f32 %v2147_v27, %v2083_v33  ;;  %v1764_v53 = vld [vmem:[%s6195_s15 + $0x1630] sm:$0xff]  ;;  %v2988_v54 = vadd.f32 %v2924_v37, %v2860_v43  ;;  %v2990_v55 = vadd.f32 %v2926_v38, %v2862_v44  ;;  %v1890_v59 = vld [vmem:[%s6195_s15 + $0x1820] sm:$0xff]  ;;  %v3180_v60 = vld [vmem:[%s6195_s15 + $0x2c08] sm:$0xff] }
  0xf3   : > { %v1572_v51 = vadd.f32 %v1508_v36, %v1444_v41  ;;  %v2341_v57 = vadd.f32 %v2277_v40, %v2213_v46  ;;  %v1698_v58 = vadd.f32 %v1634_v42, %v1570_v47  ;;  %v3182_v61 = vld [vmem:[%s6195_s15 + $0x2c18] sm:$0xff]  ;;  %v1892_v63 = vld [vmem:[%s6195_s15 + $0x1830] sm:$0xff]  ;;  %v2018_v0 = vld [vmem:[%s6195_s15 + $0x1a20] sm:$0xff] }
  0xf4   : > { %v2339_v56 = vadd.f32 %v2275_v39, %v2211_v45  ;;  %v3116_v1 = vadd.f32 %v3052_v49, %v2988_v54  ;;  %v3118_v2 = vadd.f32 %v3054_v50, %v2990_v55  ;;  %v3308_v3 = vld [vmem:[%s6195_s15 + $0x2e08] sm:$0xff]  ;;  %v2020_v6 = vld [vmem:[%s6195_s15 + $0x1a30] sm:$0xff]  ;;  %v3310_v7 = vld [vmem:[%s6195_s15 + $0x2e18] sm:$0xff] }
  0xf5   : > { %v1700_v62 = vadd.f32 %v1636_v48, %v1572_v51  ;;  %v1826_v5 = vadd.f32 %v1762_v52, %v1698_v58  ;;  %v423_v8 = vld [vmem:[%s6195_s15 + $0x48] sm:$0xff]  ;;  %v425_v9 = vld [vmem:[%s6195_s15 + $0x58] sm:$0xff]  ;;  %v2146_v23 = vld [vmem:[%s6195_s15 + $0x1c20] sm:$0xff] }
  0xf6   : > { %v5264_v4 = vpack.c.bf16 %v2341_v57, %v2339_v56  ;;  %v3244_v11 = vadd.f32 %v3180_v60, %v3116_v1  ;;  %v3246_v12 = vadd.f32 %v3182_v61, %v3118_v2  ;;  %v487_v13 = vld [vmem:[%s6195_s15 + $0x248] sm:$0xff]  ;;  %v489_v14 = vld [vmem:[%s6195_s15 + $0x258] sm:$0xff]  ;;  %v2148_v29 = vld [vmem:[%s6195_s15 + $0x1c30] sm:$0xff] }
  0xf7   : > { %v1828_v10 = vadd.f32 %v1764_v53, %v1700_v62  ;;  %v615_v15 = vld [vmem:[%s6195_s15 + $0x448] sm:$0xff]  ;;  %v1954_v16 = vadd.f32 %v1890_v59, %v1826_v5  ;;  %v3438_v18 = vld [vmem:[%s6195_s15 + $0x3018] sm:$0xff]  ;;  %v551_v19 = vadd.f32 %v487_v13, %v423_v8  ;;  %v553_v20 = vadd.f32 %v489_v14, %v425_v9  ;;  %v2274_v35 = vld [vmem:[%s6195_s15 + $0x1e20] sm:$0xff] }
  0xf8   : > { %5265 = vmatprep.subr.bf16.mxu0 %v5264_v4  ;;  %v3436_v17 = vld [vmem:[%s6195_s15 + $0x3008] sm:$0xff]  ;;  %v617_v21 = vld [vmem:[%s6195_s15 + $0x458] sm:$0xff]  ;;  %v3372_v24 = vadd.f32 %v3308_v3, %v3244_v11  ;;  %v3374_v25 = vadd.f32 %v3310_v7, %v3246_v12  ;;  %v2276_v41 = vld [vmem:[%s6195_s15 + $0x1e30] sm:$0xff] }
  0xf9   : > { %v1956_v22 = vadd.f32 %v1892_v63, %v1828_v10  ;;  %v743_v26 = vld [vmem:[%s6195_s15 + $0x648] sm:$0xff]  ;;  %v745_v27 = vld [vmem:[%s6195_s15 + $0x658] sm:$0xff]  ;;  %v2082_v28 = vadd.f32 %v2018_v0, %v1954_v16  ;;  %v679_v32 = vadd.f32 %v615_v15, %v551_v19  ;;  %v681_v33 = vadd.f32 %v617_v21, %v553_v20  ;;  %v2475_v8 = vld [vmem:[%s6195_s15 + $0x2000] sm:$0xff] }
  0xfa   : > { %v3564_v30 = vld [vmem:[%s6195_s15 + $0x3208] sm:$0xff]  ;;  %v3566_v31 = vld [vmem:[%s6195_s15 + $0x3218] sm:$0xff]  ;;  %v3500_v36 = vadd.f32 %v3436_v17, %v3372_v24  ;;  %v3502_v37 = vadd.f32 %v3438_v18, %v3374_v25  ;;  %v2477_v9 = vld [vmem:[%s6195_s15 + $0x2010] sm:$0xff] }
  0xfb   : > { %v2084_v34 = vadd.f32 %v2020_v6, %v1956_v22  ;;  %v871_v38 = vld [vmem:[%s6195_s15 + $0x848] sm:$0xff]  ;;  %v873_v39 = vld [vmem:[%s6195_s15 + $0x858] sm:$0xff]  ;;  %v2210_v40 = vadd.f32 %v2146_v23, %v2082_v28  ;;  %v807_v44 = vadd.f32 %v743_v26, %v679_v32  ;;  %v809_v45 = vadd.f32 %v745_v27, %v681_v33  ;;  %v2539_v10 = vld [vmem:[%s6195_s15 + $0x2200] sm:$0xff] }
  0xfc   : > { %v3692_v42 = vld [vmem:[%s6195_s15 + $0x3408] sm:$0xff]  ;;  %v3694_v43 = vld [vmem:[%s6195_s15 + $0x3418] sm:$0xff]  ;;  %v3628_v47 = vadd.f32 %v3564_v30, %v3500_v36  ;;  %v3630_v48 = vadd.f32 %v3566_v31, %v3502_v37  ;;  %v2541_v13 = vld [vmem:[%s6195_s15 + $0x2210] sm:$0xff]  ;;  %v2603_v14 = vadd.f32 %v2539_v10, %v2475_v8 }
  0xfd   : > { %v2212_v46 = vadd.f32 %v2148_v29, %v2084_v34  ;;  %v999_v49 = vld [vmem:[%s6195_s15 + $0xa48] sm:$0xff]  ;;  %v1001_v50 = vld [vmem:[%s6195_s15 + $0xa58] sm:$0xff]  ;;  %v2338_v51 = vadd.f32 %v2274_v35, %v2210_v40  ;;  %v935_v55 = vadd.f32 %v871_v38, %v807_v44  ;;  %v937_v56 = vadd.f32 %v873_v39, %v809_v45  ;;  %v2667_v15 = vld [vmem:[%s6195_s15 + $0x2400] sm:$0xff] }
  0xfe   : > { %v3820_v52 = vld [vmem:[%s6195_s15 + $0x3608] sm:$0xff]  ;;  %v3822_v53 = vld [vmem:[%s6195_s15 + $0x3618] sm:$0xff]  ;;  %v3756_v58 = vadd.f32 %v3692_v42, %v3628_v47  ;;  %v3758_v59 = vadd.f32 %v3694_v43, %v3630_v48  ;;  %v2669_v16 = vld [vmem:[%s6195_s15 + $0x2410] sm:$0xff]  ;;  %v2605_v21 = vadd.f32 %v2541_v13, %v2477_v9  ;;  %v2731_v27 = vadd.f32 %v2667_v15, %v2603_v14 }
  0xff   : > { %v3948_v54 = vld [vmem:[%s6195_s15 + $0x3808] sm:$0xff]  ;;  %v2340_v57 = vadd.f32 %v2276_v41, %v2212_v46  ;;  %v3950_v60 = vld [vmem:[%s6195_s15 + $0x3818] sm:$0xff]  ;;  %v1063_v1 = vadd.f32 %v999_v49, %v935_v55  ;;  %v1065_v2 = vadd.f32 %v1001_v50, %v937_v56  ;;  %v2795_v22 = vld [vmem:[%s6195_s15 + $0x2600] sm:$0xff] }
 0x100   : > { %v1127_v61 = vld [vmem:[%s6195_s15 + $0xc48] sm:$0xff]  ;;  %v1129_v62 = vld [vmem:[%s6195_s15 + $0xc58] sm:$0xff]  ;;  %v3884_v6 = vadd.f32 %v3820_v52, %v3756_v58  ;;  %v3886_v7 = vadd.f32 %v3822_v53, %v3758_v59  ;;  %v2797_v28 = vld [vmem:[%s6195_s15 + $0x2610] sm:$0xff]  ;;  %v2733_v33 = vadd.f32 %v2669_v16, %v2605_v21  ;;  %v2859_v39 = vadd.f32 %v2795_v22, %v2731_v27 }
 0x101   : > { %v4076_v63 = vld [vmem:[%s6195_s15 + $0x3a08] sm:$0xff]  ;;  %v4078_v0 = vld [vmem:[%s6195_s15 + $0x3a18] sm:$0xff]  ;;  %v5266_v5 = vpack.c.bf16 %v2340_v57, %v2338_v51  ;;  %v1191_v11 = vadd.f32 %v1127_v61, %v1063_v1  ;;  %v1193_v12 = vadd.f32 %v1129_v62, %v1065_v2  ;;  %v2923_v34 = vld [vmem:[%s6195_s15 + $0x2800] sm:$0xff] }
 0x102   : > { %v1255_v3 = vld [vmem:[%s6195_s15 + $0xe48] sm:$0xff]  ;;  %v1257_v4 = vld [vmem:[%s6195_s15 + $0xe58] sm:$0xff]  ;;  %v4012_v17 = vadd.f32 %v3948_v54, %v3884_v6  ;;  %v4014_v18 = vadd.f32 %v3950_v60, %v3886_v7  ;;  %v2925_v40 = vld [vmem:[%s6195_s15 + $0x2810] sm:$0xff]  ;;  %v2861_v45 = vadd.f32 %v2797_v28, %v2733_v33  ;;  %v2987_v49 = vadd.f32 %v2923_v34, %v2859_v39 }
 0x103   : > { %5267 = vmatpush1.bf16.msra.mxu0 %v5266_v5  ;;  %v1383_v19 = vld [vmem:[%s6195_s15 + $0x1048] sm:$0xff]  ;;  %v1385_v20 = vld [vmem:[%s6195_s15 + $0x1058] sm:$0xff]  ;;  %v1319_v25 = vadd.f32 %v1255_v3, %v1191_v11  ;;  %v1321_v26 = vadd.f32 %v1257_v4, %v1193_v12  ;;  %v3051_v46 = vld [vmem:[%s6195_s15 + $0x2a00] sm:$0xff] }
 0x104   : > { %v4204_v23 = vld [vmem:[%s6195_s15 + $0x3c08] sm:$0xff]  ;;  %v4206_v24 = vld [vmem:[%s6195_s15 + $0x3c18] sm:$0xff]  ;;  %v4140_v29 = vadd.f32 %v4076_v63, %v4012_v17  ;;  %v4142_v30 = vadd.f32 %v4078_v0, %v4014_v18  ;;  %v3053_v50 = vld [vmem:[%s6195_s15 + $0x2a10] sm:$0xff]  ;;  %v2989_v55 = vadd.f32 %v2925_v40, %v2861_v45  ;;  %v3115_v61 = vadd.f32 %v3051_v46, %v2987_v49 }
 0x105   : > { %v1511_v31 = vld [vmem:[%s6195_s15 + $0x1248] sm:$0xff]  ;;  %v1513_v32 = vld [vmem:[%s6195_s15 + $0x1258] sm:$0xff]  ;;  %v1447_v37 = vadd.f32 %v1383_v19, %v1319_v25  ;;  %v1449_v38 = vadd.f32 %v1385_v20, %v1321_v26  ;;  %v3179_v56 = vld [vmem:[%s6195_s15 + $0x2c00] sm:$0xff] }
 0x106   : > { %v4332_v35 = vld [vmem:[%s6195_s15 + $0x3e08] sm:$0xff]  ;;  %v4334_v36 = vld [vmem:[%s6195_s15 + $0x3e18] sm:$0xff]  ;;  %v4268_v41 = vadd.f32 %v4204_v23, %v4140_v29  ;;  %v4270_v42 = vadd.f32 %v4206_v24, %v4142_v30  ;;  %v3181_v62 = vld [vmem:[%s6195_s15 + $0x2c10] sm:$0xff]  ;;  %v3117_v2 = vadd.f32 %v3053_v50, %v2989_v55  ;;  %v3243_v8 = vadd.f32 %v3179_v56, %v3115_v61 }
 0x107   : > { %v1639_v43 = vld [vmem:[%s6195_s15 + $0x1448] sm:$0xff]  ;;  %v1641_v44 = vld [vmem:[%s6195_s15 + $0x1458] sm:$0xff]  ;;  %v1575_v47 = vadd.f32 %v1511_v31, %v1447_v37  ;;  %v1577_v48 = vadd.f32 %v1513_v32, %v1449_v38  ;;  %v3307_v3 = vld [vmem:[%s6195_s15 + $0x2e00] sm:$0xff] }
 0x108   : > { %v4396_v51 = vadd.f32 %v4332_v35, %v4268_v41  ;;  %v4398_v52 = vadd.f32 %v4334_v36, %v4270_v42  ;;  %v1767_v53 = vld [vmem:[%s6195_s15 + $0x1648] sm:$0xff]  ;;  %v1769_v54 = vld [vmem:[%s6195_s15 + $0x1658] sm:$0xff]  ;;  %v3309_v4 = vld [vmem:[%s6195_s15 + $0x2e10] sm:$0xff]  ;;  %v3245_v12 = vadd.f32 %v3181_v62, %v3117_v2  ;;  %v3371_v20 = vadd.f32 %v3307_v3, %v3243_v8 }
 0x109   : > { %v1703_v57 = vadd.f32 %v1639_v43, %v1575_v47  ;;  %v1705_v58 = vadd.f32 %v1641_v44, %v1577_v48  ;;  %v1895_v59 = vld [vmem:[%s6195_s15 + $0x1848] sm:$0xff]  ;;  %v1897_v60 = vld [vmem:[%s6195_s15 + $0x1858] sm:$0xff]  ;;  %v422_v5 = vld [vmem:[%s6195_s15 + $0x40] sm:$0xff] }
 0x10a   : > { %v5324_v63 = vpack.c.bf16 %v4398_v52, %v4396_v51  ;;  %v2023_v0 = vld [vmem:[%s6195_s15 + $0x1a48] sm:$0xff]  ;;  %v2025_v1 = vld [vmem:[%s6195_s15 + $0x1a58] sm:$0xff]  ;;  %v424_v9 = vld [vmem:[%s6195_s15 + $0x50] sm:$0xff]  ;;  %v3373_v26 = vadd.f32 %v3309_v4, %v3245_v12 }
 0x10b   : > { %v1831_v6 = vadd.f32 %v1767_v53, %v1703_v57  ;;  %v1833_v7 = vadd.f32 %v1769_v54, %v1705_v58  ;;  %v486_v10 = vld [vmem:[%s6195_s15 + $0x240] sm:$0xff]  ;;  %v488_v11 = vld [vmem:[%s6195_s15 + $0x250] sm:$0xff]  ;;  %v2151_v24 = vld [vmem:[%s6195_s15 + $0x1c48] sm:$0xff] }
 0x10c   : > { %5325 = vmatprep.subr.bf16.mxu1 %v5324_v63  ;;  %v3435_v13 = vld [vmem:[%s6195_s15 + $0x3000] sm:$0xff]  ;;  %v550_v14 = vadd.f32 %v486_v10, %v422_v5  ;;  %v552_v15 = vadd.f32 %v488_v11, %v424_v9  ;;  %v616_v17 = vld [vmem:[%s6195_s15 + $0x450] sm:$0xff]  ;;  %v2153_v25 = vld [vmem:[%s6195_s15 + $0x1c58] sm:$0xff] }
 0x10d   : > { %v614_v16 = vld [vmem:[%s6195_s15 + $0x440] sm:$0xff]  ;;  %v1959_v18 = vadd.f32 %v1895_v59, %v1831_v6  ;;  %v1961_v19 = vadd.f32 %v1897_v60, %v1833_v7  ;;  %v3437_v21 = vld [vmem:[%s6195_s15 + $0x3010] sm:$0xff]  ;;  %v3499_v32 = vadd.f32 %v3435_v13, %v3371_v20  ;;  %v2279_v36 = vld [vmem:[%s6195_s15 + $0x1e48] sm:$0xff] }
 0x10e   : > { %v742_v22 = vld [vmem:[%s6195_s15 + $0x640] sm:$0xff]  ;;  %v744_v23 = vld [vmem:[%s6195_s15 + $0x650] sm:$0xff]  ;;  %v678_v28 = vadd.f32 %v614_v16, %v550_v14  ;;  %v680_v29 = vadd.f32 %v616_v17, %v552_v15  ;;  %v2281_v37 = vld [vmem:[%s6195_s15 + $0x1e58] sm:$0xff]  ;;  %v3501_v38 = vadd.f32 %v3437_v21, %v3373_v26 }
 0x10f   : > { %v3563_v27 = vld [vmem:[%s6195_s15 + $0x3200] sm:$0xff]  ;;  %v2087_v30 = vadd.f32 %v2023_v0, %v1959_v18  ;;  %v2089_v31 = vadd.f32 %v2025_v1, %v1961_v19  ;;  %v3565_v33 = vld [vmem:[%s6195_s15 + $0x3210] sm:$0xff]  ;;  %v2480_v5 = vld [vmem:[%s6195_s15 + $0x2028] sm:$0xff] }
 0x110   : > { %v870_v34 = vld [vmem:[%s6195_s15 + $0x840] sm:$0xff]  ;;  %v872_v35 = vld [vmem:[%s6195_s15 + $0x850] sm:$0xff]  ;;  %v806_v40 = vadd.f32 %v742_v22, %v678_v28  ;;  %v808_v41 = vadd.f32 %v744_v23, %v680_v29  ;;  %v3627_v44 = vadd.f32 %v3563_v27, %v3499_v32  ;;  %v3629_v48 = vadd.f32 %v3565_v33, %v3501_v38  ;;  %v2482_v6 = vld [vmem:[%s6195_s15 + $0x2038] sm:$0xff] }
 0x111   : > { %v3691_v39 = vld [vmem:[%s6195_s15 + $0x3400] sm:$0xff]  ;;  %v2215_v42 = vadd.f32 %v2151_v24, %v2087_v30  ;;  %v2217_v43 = vadd.f32 %v2153_v25, %v2089_v31  ;;  %v3693_v45 = vld [vmem:[%s6195_s15 + $0x3410] sm:$0xff]  ;;  %v2544_v10 = vld [vmem:[%s6195_s15 + $0x2228] sm:$0xff] }
 0x112   : > { %v998_v46 = vld [vmem:[%s6195_s15 + $0xa40] sm:$0xff]  ;;  %v1000_v47 = vld [vmem:[%s6195_s15 + $0xa50] sm:$0xff]  ;;  %v934_v51 = vadd.f32 %v870_v34, %v806_v40  ;;  %v936_v52 = vadd.f32 %v872_v35, %v808_v41  ;;  %v3755_v55 = vadd.f32 %v3691_v39, %v3627_v44  ;;  %v3757_v59 = vadd.f32 %v3693_v45, %v3629_v48  ;;  %v2546_v11 = vld [vmem:[%s6195_s15 + $0x2238] sm:$0xff] }
 0x113   : > { %v3819_v49 = vld [vmem:[%s6195_s15 + $0x3600] sm:$0xff]  ;;  %v3821_v50 = vld [vmem:[%s6195_s15 + $0x3610] sm:$0xff]  ;;  %v2343_v53 = vadd.f32 %v2279_v36, %v2215_v42  ;;  %v2345_v54 = vadd.f32 %v2281_v37, %v2217_v43  ;;  %v2672_v12 = vld [vmem:[%s6195_s15 + $0x2428] sm:$0xff]  ;;  %v2608_v16 = vadd.f32 %v2544_v10, %v2480_v5  ;;  %v2610_v17 = vadd.f32 %v2546_v11, %v2482_v6 }
 0x114   : > { %v3947_v56 = vld [vmem:[%s6195_s15 + $0x3800] sm:$0xff]  ;;  %v1128_v58 = vld [vmem:[%s6195_s15 + $0xc50] sm:$0xff]  ;;  %v1062_v62 = vadd.f32 %v998_v46, %v934_v51  ;;  %v1064_v63 = vadd.f32 %v1000_v47, %v936_v52  ;;  %v3883_v2 = vadd.f32 %v3819_v49, %v3755_v55  ;;  %v3885_v7 = vadd.f32 %v3821_v50, %v3757_v59  ;;  %v2674_v18 = vld [vmem:[%s6195_s15 + $0x2438] sm:$0xff] }
 0x115   : > { %v1126_v57 = vld [vmem:[%s6195_s15 + $0xc40] sm:$0xff]  ;;  %v3949_v60 = vld [vmem:[%s6195_s15 + $0x3810] sm:$0xff]  ;;  %v5268_v1 = vpack.c.bf16 %v2345_v54, %v2343_v53  ;;  %v2800_v23 = vld [vmem:[%s6195_s15 + $0x2628] sm:$0xff]  ;;  %v2736_v29 = vadd.f32 %v2672_v12, %v2608_v16  ;;  %v2738_v30 = vadd.f32 %v2674_v18, %v2610_v17 }
 0x116   : > { %v4075_v61 = vld [vmem:[%s6195_s15 + $0x3a00] sm:$0xff]  ;;  %v4077_v3 = vld [vmem:[%s6195_s15 + $0x3a10] sm:$0xff]  ;;  %v1190_v8 = vadd.f32 %v1126_v57, %v1062_v62  ;;  %v1192_v9 = vadd.f32 %v1128_v58, %v1064_v63  ;;  %v4011_v13 = vadd.f32 %v3947_v56, %v3883_v2  ;;  %v4013_v19 = vadd.f32 %v3949_v60, %v3885_v7  ;;  %v2802_v24 = vld [vmem:[%s6195_s15 + $0x2638] sm:$0xff] }
 0x117   : > { %v1254_v0 = vld [vmem:[%s6195_s15 + $0xe40] sm:$0xff]  ;;  %v1256_v4 = vld [vmem:[%s6195_s15 + $0xe50] sm:$0xff]  ;;  %5269 = vmatprep.subr.bf16.mxu0 %v5268_v1  ;;  %v2928_v35 = vld [vmem:[%s6195_s15 + $0x2828] sm:$0xff]  ;;  %v2864_v41 = vadd.f32 %v2800_v23, %v2736_v29  ;;  %v2866_v42 = vadd.f32 %v2802_v24, %v2738_v30 }
 0x118   : > { %v1382_v14 = vld [vmem:[%s6195_s15 + $0x1040] sm:$0xff]  ;;  %v1384_v15 = vld [vmem:[%s6195_s15 + $0x1050] sm:$0xff]  ;;  %v1318_v21 = vadd.f32 %v1254_v0, %v1190_v8  ;;  %v1320_v22 = vadd.f32 %v1256_v4, %v1192_v9  ;;  %v4139_v25 = vadd.f32 %v4075_v61, %v4011_v13  ;;  %v4141_v31 = vadd.f32 %v4077_v3, %v4013_v19  ;;  %v2930_v36 = vld [vmem:[%s6195_s15 + $0x2838] sm:$0xff] }
 0x119   : > { %v4203_v20 = vld [vmem:[%s6195_s15 + $0x3c00] sm:$0xff]  ;;  %v4205_v26 = vld [vmem:[%s6195_s15 + $0x3c10] sm:$0xff]  ;;  %v3056_v46 = vld [vmem:[%s6195_s15 + $0x2a28] sm:$0xff]  ;;  %v2992_v52 = vadd.f32 %v2928_v35, %v2864_v41  ;;  %v2994_v53 = vadd.f32 %v2930_v36, %v2866_v42 }
 0x11a   : > { %v1510_v27 = vld [vmem:[%s6195_s15 + $0x1240] sm:$0xff]  ;;  %v1512_v28 = vld [vmem:[%s6195_s15 + $0x1250] sm:$0xff]  ;;  %v1446_v33 = vadd.f32 %v1382_v14, %v1318_v21  ;;  %v1448_v34 = vadd.f32 %v1384_v15, %v1320_v22  ;;  %v4267_v37 = vadd.f32 %v4203_v20, %v4139_v25  ;;  %v4269_v43 = vadd.f32 %v4205_v26, %v4141_v31  ;;  %v3058_v47 = vld [vmem:[%s6195_s15 + $0x2a38] sm:$0xff] }
 0x11b   : > { %v4331_v32 = vld [vmem:[%s6195_s15 + $0x3e00] sm:$0xff]  ;;  %v4333_v38 = vld [vmem:[%s6195_s15 + $0x3e10] sm:$0xff]  ;;  %v3184_v58 = vld [vmem:[%s6195_s15 + $0x2c28] sm:$0xff]  ;;  %v3120_v62 = vadd.f32 %v3056_v46, %v2992_v52  ;;  %v3122_v63 = vadd.f32 %v3058_v47, %v2994_v53 }
 0x11c   : > { %v1638_v39 = vld [vmem:[%s6195_s15 + $0x1440] sm:$0xff]  ;;  %v1640_v40 = vld [vmem:[%s6195_s15 + $0x1450] sm:$0xff]  ;;  %v1574_v44 = vadd.f32 %v1510_v27, %v1446_v33  ;;  %v1576_v45 = vadd.f32 %v1512_v28, %v1448_v34  ;;  %v4395_v48 = vadd.f32 %v4331_v32, %v4267_v37  ;;  %v4397_v54 = vadd.f32 %v4333_v38, %v4269_v43  ;;  %v3186_v59 = vld [vmem:[%s6195_s15 + $0x2c38] sm:$0xff] }
 0x11d   : > { %v1766_v49 = vld [vmem:[%s6195_s15 + $0x1640] sm:$0xff]  ;;  %v1768_v50 = vld [vmem:[%s6195_s15 + $0x1650] sm:$0xff]  ;;  %v3312_v0 = vld [vmem:[%s6195_s15 + $0x2e28] sm:$0xff]  ;;  %v3248_v8 = vadd.f32 %v3184_v58, %v3120_v62  ;;  %v3250_v9 = vadd.f32 %v3186_v59, %v3122_v63 }
 0x11e   : > { %v1894_v51 = vld [vmem:[%s6195_s15 + $0x1840] sm:$0xff]  ;;  %v1702_v55 = vadd.f32 %v1638_v39, %v1574_v44  ;;  %v1704_v56 = vadd.f32 %v1640_v40, %v1576_v45  ;;  %v1896_v57 = vld [vmem:[%s6195_s15 + $0x1850] sm:$0xff]  ;;  %v3314_v1 = vld [vmem:[%s6195_s15 + $0x2e38] sm:$0xff]  ;;  %v5326_v2 = vpack.c.bf16 %v4397_v54, %v4395_v48 }
 0x11f   : > { %v2022_v60 = vld [vmem:[%s6195_s15 + $0x1a40] sm:$0xff]  ;;  %v2024_v61 = vld [vmem:[%s6195_s15 + $0x1a50] sm:$0xff]  ;;  %v427_v5 = vld [vmem:[%s6195_s15 + $0x68] sm:$0xff]  ;;  %v3376_v22 = vadd.f32 %v3312_v0, %v3248_v8  ;;  %v3378_v23 = vadd.f32 %v3314_v1, %v3250_v9 }
 0x120   : > { %v1830_v3 = vadd.f32 %v1766_v49, %v1702_v55  ;;  %v1832_v4 = vadd.f32 %v1768_v50, %v1704_v56  ;;  %v429_v6 = vld [vmem:[%s6195_s15 + $0x78] sm:$0xff]  ;;  %v491_v7 = vld [vmem:[%s6195_s15 + $0x268] sm:$0xff]  ;;  %5327 = vmatpush1.bf16.msra.mxu1 %v5326_v2  ;;  %v2150_v20 = vld [vmem:[%s6195_s15 + $0x1c40] sm:$0xff] }
 0x121   : > { %v493_v10 = vld [vmem:[%s6195_s15 + $0x278] sm:$0xff]  ;;  %v555_v11 = vadd.f32 %v491_v7, %v427_v5  ;;  %v619_v12 = vld [vmem:[%s6195_s15 + $0x468] sm:$0xff]  ;;  %v2152_v21 = vld [vmem:[%s6195_s15 + $0x1c50] sm:$0xff] }
 0x122   : > { %v621_v13 = vld [vmem:[%s6195_s15 + $0x478] sm:$0xff]  ;;  %v1958_v14 = vadd.f32 %v1894_v51, %v1830_v3  ;;  %v1960_v15 = vadd.f32 %v1896_v57, %v1832_v4  ;;  %v3440_v16 = vld [vmem:[%s6195_s15 + $0x3028] sm:$0xff]  ;;  %v557_v18 = vadd.f32 %v493_v10, %v429_v6  ;;  %v2278_v32 = vld [vmem:[%s6195_s15 + $0x1e40] sm:$0xff] }
 0x123   : > { %v3442_v17 = vld [vmem:[%s6195_s15 + $0x3038] sm:$0xff]  ;;  %v747_v19 = vld [vmem:[%s6195_s15 + $0x668] sm:$0xff]  ;;  %v683_v24 = vadd.f32 %v619_v12, %v555_v11  ;;  %v2280_v33 = vld [vmem:[%s6195_s15 + $0x1e50] sm:$0xff]  ;;  %v3504_v34 = vadd.f32 %v3440_v16, %v3376_v22 }
 0x124   : > { %v749_v25 = vld [vmem:[%s6195_s15 + $0x678] sm:$0xff]  ;;  %v2086_v26 = vadd.f32 %v2022_v60, %v1958_v14  ;;  %v2088_v27 = vadd.f32 %v2024_v61, %v1960_v15  ;;  %v3568_v28 = vld [vmem:[%s6195_s15 + $0x3228] sm:$0xff]  ;;  %v685_v30 = vadd.f32 %v621_v13, %v557_v18  ;;  %v3506_v35 = vadd.f32 %v3442_v17, %v3378_v23  ;;  %v2479_v2 = vld [vmem:[%s6195_s15 + $0x2020] sm:$0xff] }
 0x125   : > { %v3570_v29 = vld [vmem:[%s6195_s15 + $0x3238] sm:$0xff]  ;;  %v875_v31 = vld [vmem:[%s6195_s15 + $0x868] sm:$0xff]  ;;  %v811_v36 = vadd.f32 %v747_v19, %v683_v24  ;;  %v3632_v44 = vadd.f32 %v3568_v28, %v3504_v34  ;;  %v2481_v6 = vld [vmem:[%s6195_s15 + $0x2030] sm:$0xff] }
 0x126   : > { %v877_v37 = vld [vmem:[%s6195_s15 + $0x878] sm:$0xff]  ;;  %v2214_v38 = vadd.f32 %v2150_v20, %v2086_v26  ;;  %v2216_v39 = vadd.f32 %v2152_v21, %v2088_v27  ;;  %v3696_v40 = vld [vmem:[%s6195_s15 + $0x3428] sm:$0xff]  ;;  %v813_v42 = vadd.f32 %v749_v25, %v685_v30  ;;  %v3634_v45 = vadd.f32 %v3570_v29, %v3506_v35  ;;  %v2543_v7 = vld [vmem:[%s6195_s15 + $0x2220] sm:$0xff] }
 0x127   : > { %v3698_v41 = vld [vmem:[%s6195_s15 + $0x3438] sm:$0xff]  ;;  %v1003_v43 = vld [vmem:[%s6195_s15 + $0xa68] sm:$0xff]  ;;  %v939_v46 = vadd.f32 %v875_v31, %v811_v36  ;;  %v3760_v54 = vadd.f32 %v3696_v40, %v3632_v44  ;;  %v2545_v8 = vld [vmem:[%s6195_s15 + $0x2230] sm:$0xff]  ;;  %v2607_v11 = vadd.f32 %v2543_v7, %v2479_v2 }
 0x128   : > { %v1005_v47 = vld [vmem:[%s6195_s15 + $0xa78] sm:$0xff]  ;;  %v2342_v48 = vadd.f32 %v2278_v32, %v2214_v38  ;;  %v2344_v49 = vadd.f32 %v2280_v33, %v2216_v39  ;;  %v3824_v50 = vld [vmem:[%s6195_s15 + $0x3628] sm:$0xff]  ;;  %v941_v52 = vadd.f32 %v877_v37, %v813_v42  ;;  %v3762_v55 = vadd.f32 %v3698_v41, %v3634_v45  ;;  %v2671_v13 = vld [vmem:[%s6195_s15 + $0x2420] sm:$0xff] }
 0x129   : > { %v3826_v51 = vld [vmem:[%s6195_s15 + $0x3638] sm:$0xff]  ;;  %v1131_v53 = vld [vmem:[%s6195_s15 + $0xc68] sm:$0xff]  ;;  %v1067_v58 = vadd.f32 %v1003_v43, %v939_v46  ;;  %v3888_v3 = vadd.f32 %v3824_v50, %v3760_v54  ;;  %v2609_v12 = vadd.f32 %v2545_v8, %v2481_v6  ;;  %v2673_v14 = vld [vmem:[%s6195_s15 + $0x2430] sm:$0xff]  ;;  %v2735_v25 = vadd.f32 %v2671_v13, %v2607_v11 }
 0x12a   : > { %v3952_v56 = vld [vmem:[%s6195_s15 + $0x3828] sm:$0xff]  ;;  %v3954_v57 = vld [vmem:[%s6195_s15 + $0x3838] sm:$0xff]  ;;  %v5270_v60 = vpack.c.bf16 %v2344_v49, %v2342_v48  ;;  %v1069_v63 = vadd.f32 %v1005_v47, %v941_v52  ;;  %v3890_v4 = vadd.f32 %v3826_v51, %v3762_v55  ;;  %v2799_v19 = vld [vmem:[%s6195_s15 + $0x2620] sm:$0xff] }
 0x12b   : > { %v1133_v59 = vld [vmem:[%s6195_s15 + $0xc78] sm:$0xff]  ;;  %v4080_v61 = vld [vmem:[%s6195_s15 + $0x3a28] sm:$0xff]  ;;  %v1195_v5 = vadd.f32 %v1131_v53, %v1067_v58  ;;  %v4016_v15 = vadd.f32 %v3952_v56, %v3888_v3  ;;  %v2801_v20 = vld [vmem:[%s6195_s15 + $0x2630] sm:$0xff]  ;;  %v2737_v26 = vadd.f32 %v2673_v14, %v2609_v12  ;;  %v2863_v37 = vadd.f32 %v2799_v19, %v2735_v25 }
 0x12c   : > { %v4082_v62 = vld [vmem:[%s6195_s15 + $0x3a38] sm:$0xff]  ;;  %v1259_v0 = vld [vmem:[%s6195_s15 + $0xe68] sm:$0xff]  ;;  %5271 = vmatpush1.bf16.msra.mxu0 %v5270_v60  ;;  %v1197_v9 = vadd.f32 %v1133_v59, %v1069_v63  ;;  %v4018_v16 = vadd.f32 %v3954_v57, %v3890_v4  ;;  %v2927_v31 = vld [vmem:[%s6195_s15 + $0x2820] sm:$0xff] }
 0x12d   : > { %v1261_v1 = vld [vmem:[%s6195_s15 + $0xe78] sm:$0xff]  ;;  %v1387_v10 = vld [vmem:[%s6195_s15 + $0x1068] sm:$0xff]  ;;  %v1323_v17 = vadd.f32 %v1259_v0, %v1195_v5  ;;  %v4144_v27 = vadd.f32 %v4080_v61, %v4016_v15  ;;  %v2929_v32 = vld [vmem:[%s6195_s15 + $0x2830] sm:$0xff]  ;;  %v2865_v38 = vadd.f32 %v2801_v20, %v2737_v26  ;;  %v2991_v48 = vadd.f32 %v2927_v31, %v2863_v37 }
 0x12e   : > { %v1389_v18 = vld [vmem:[%s6195_s15 + $0x1078] sm:$0xff]  ;;  %v4208_v21 = vld [vmem:[%s6195_s15 + $0x3c28] sm:$0xff]  ;;  %v1325_v23 = vadd.f32 %v1261_v1, %v1197_v9  ;;  %v4146_v28 = vadd.f32 %v4082_v62, %v4018_v16  ;;  %v3055_v43 = vld [vmem:[%s6195_s15 + $0x2a20] sm:$0xff] }
 0x12f   : > { %v4210_v22 = vld [vmem:[%s6195_s15 + $0x3c38] sm:$0xff]  ;;  %v1515_v24 = vld [vmem:[%s6195_s15 + $0x1268] sm:$0xff]  ;;  %v1451_v29 = vadd.f32 %v1387_v10, %v1323_v17  ;;  %v4272_v39 = vadd.f32 %v4208_v21, %v4144_v27  ;;  %v3057_v44 = vld [vmem:[%s6195_s15 + $0x2a30] sm:$0xff]  ;;  %v2993_v49 = vadd.f32 %v2929_v32, %v2865_v38  ;;  %v3119_v59 = vadd.f32 %v3055_v43, %v2991_v48 }
 0x130   : > { %v1517_v30 = vld [vmem:[%s6195_s15 + $0x1278] sm:$0xff]  ;;  %v4336_v33 = vld [vmem:[%s6195_s15 + $0x3e28] sm:$0xff]  ;;  %v1453_v35 = vadd.f32 %v1389_v18, %v1325_v23  ;;  %v4274_v40 = vadd.f32 %v4210_v22, %v4146_v28  ;;  %v3183_v54 = vld [vmem:[%s6195_s15 + $0x2c20] sm:$0xff] }
 0x131   : > { %v4338_v34 = vld [vmem:[%s6195_s15 + $0x3e38] sm:$0xff]  ;;  %v1643_v36 = vld [vmem:[%s6195_s15 + $0x1468] sm:$0xff]  ;;  %v1579_v41 = vadd.f32 %v1515_v24, %v1451_v29  ;;  %v4400_v50 = vadd.f32 %v4336_v33, %v4272_v39  ;;  %v3185_v55 = vld [vmem:[%s6195_s15 + $0x2c30] sm:$0xff]  ;;  %v3121_v60 = vadd.f32 %v3057_v44, %v2993_v49  ;;  %v3247_v5 = vadd.f32 %v3183_v54, %v3119_v59 }
 0x132   : > { %v1645_v42 = vld [vmem:[%s6195_s15 + $0x1478] sm:$0xff]  ;;  %v1581_v45 = vadd.f32 %v1517_v30, %v1453_v35  ;;  %v1771_v46 = vld [vmem:[%s6195_s15 + $0x1668] sm:$0xff]  ;;  %v4402_v51 = vadd.f32 %v4338_v34, %v4274_v40  ;;  %v3311_v61 = vld [vmem:[%s6195_s15 + $0x2e20] sm:$0xff] }
 0x133   : > { %v1773_v47 = vld [vmem:[%s6195_s15 + $0x1678] sm:$0xff]  ;;  %v1707_v52 = vadd.f32 %v1643_v36, %v1579_v41  ;;  %v1899_v53 = vld [vmem:[%s6195_s15 + $0x1868] sm:$0xff]  ;;  %v3313_v1 = vld [vmem:[%s6195_s15 + $0x2e30] sm:$0xff]  ;;  %v3249_v6 = vadd.f32 %v3185_v55, %v3121_v60  ;;  %v3375_v18 = vadd.f32 %v3311_v61, %v3247_v5 }
 0x134   : > { %v1709_v56 = vadd.f32 %v1645_v42, %v1581_v45  ;;  %v1901_v57 = vld [vmem:[%s6195_s15 + $0x1878] sm:$0xff]  ;;  %v2027_v58 = vld [vmem:[%s6195_s15 + $0x1a68] sm:$0xff]  ;;  %v5328_v62 = vpack.c.bf16 %v4402_v51, %v4400_v50  ;;  %v426_v2 = vld [vmem:[%s6195_s15 + $0x60] sm:$0xff] }
 0x135   : > { %v1835_v63 = vadd.f32 %v1771_v46, %v1707_v52  ;;  %v2029_v0 = vld [vmem:[%s6195_s15 + $0x1a78] sm:$0xff]  ;;  %v428_v3 = vld [vmem:[%s6195_s15 + $0x70] sm:$0xff]  ;;  %v490_v7 = vld [vmem:[%s6195_s15 + $0x260] sm:$0xff]  ;;  %v3377_v19 = vadd.f32 %v3313_v1, %v3249_v6 }
 0x136   : > { %v1837_v4 = vadd.f32 %v1773_v47, %v1709_v56  ;;  %v492_v8 = vld [vmem:[%s6195_s15 + $0x270] sm:$0xff]  ;;  %v618_v9 = vld [vmem:[%s6195_s15 + $0x460] sm:$0xff]  ;;  %5329 = vmatprep.subr.bf16.mxu1 %v5328_v62  ;;  %v554_v13 = vadd.f32 %v490_v7, %v426_v2  ;;  %v2155_v17 = vld [vmem:[%s6195_s15 + $0x1c68] sm:$0xff] }
 0x137   : > { %v1963_v10 = vadd.f32 %v1899_v53, %v1835_v63  ;;  %v3439_v11 = vld [vmem:[%s6195_s15 + $0x3020] sm:$0xff]  ;;  %v3441_v12 = vld [vmem:[%s6195_s15 + $0x3030] sm:$0xff]  ;;  %v556_v14 = vadd.f32 %v492_v8, %v428_v3  ;;  %v2157_v23 = vld [vmem:[%s6195_s15 + $0x1c78] sm:$0xff] }
 0x138   : > { %v620_v15 = vld [vmem:[%s6195_s15 + $0x470] sm:$0xff]  ;;  %v1965_v16 = vadd.f32 %v1901_v57, %v1837_v4  ;;  %v746_v20 = vld [vmem:[%s6195_s15 + $0x660] sm:$0xff]  ;;  %v682_v26 = vadd.f32 %v618_v9, %v554_v13  ;;  %v2283_v29 = vld [vmem:[%s6195_s15 + $0x1e68] sm:$0xff]  ;;  %v3503_v30 = vadd.f32 %v3439_v11, %v3375_v18  ;;  %v3505_v31 = vadd.f32 %v3441_v12, %v3377_v19 }
 0x139   : > { %v748_v21 = vld [vmem:[%s6195_s15 + $0x670] sm:$0xff]  ;;  %v2091_v22 = vadd.f32 %v2027_v58, %v1963_v10  ;;  %v3567_v24 = vld [vmem:[%s6195_s15 + $0x3220] sm:$0xff]  ;;  %v684_v27 = vadd.f32 %v620_v15, %v556_v14  ;;  %v2285_v35 = vld [vmem:[%s6195_s15 + $0x1e78] sm:$0xff] }
 0x13a   : > { %v3569_v25 = vld [vmem:[%s6195_s15 + $0x3230] sm:$0xff]  ;;  %v2093_v28 = vadd.f32 %v2029_v0, %v1965_v16  ;;  %v874_v32 = vld [vmem:[%s6195_s15 + $0x860] sm:$0xff]  ;;  %v810_v38 = vadd.f32 %v746_v20, %v682_v26  ;;  %v3631_v41 = vadd.f32 %v3567_v24, %v3503_v30  ;;  %v2484_v2 = vld [vmem:[%s6195_s15 + $0x2048] sm:$0xff] }
 0x13b   : > { %v876_v33 = vld [vmem:[%s6195_s15 + $0x870] sm:$0xff]  ;;  %v2219_v34 = vadd.f32 %v2155_v17, %v2091_v22  ;;  %v3695_v36 = vld [vmem:[%s6195_s15 + $0x3420] sm:$0xff]  ;;  %v812_v39 = vadd.f32 %v748_v21, %v684_v27  ;;  %v3633_v42 = vadd.f32 %v3569_v25, %v3505_v31  ;;  %v2486_v3 = vld [vmem:[%s6195_s15 + $0x2058] sm:$0xff] }
 0x13c   : > { %v3697_v37 = vld [vmem:[%s6195_s15 + $0x3430] sm:$0xff]  ;;  %v2221_v40 = vadd.f32 %v2157_v23, %v2093_v28  ;;  %v1002_v43 = vld [vmem:[%s6195_s15 + $0xa60] sm:$0xff]  ;;  %v938_v49 = vadd.f32 %v874_v32, %v810_v38  ;;  %v3759_v52 = vadd.f32 %v3695_v36, %v3631_v41  ;;  %v2548_v4 = vld [vmem:[%s6195_s15 + $0x2248] sm:$0xff] }
 0x13d   : > { %v1004_v44 = vld [vmem:[%s6195_s15 + $0xa70] sm:$0xff]  ;;  %v2347_v45 = vadd.f32 %v2283_v29, %v2219_v34  ;;  %v3823_v46 = vld [vmem:[%s6195_s15 + $0x3620] sm:$0xff]  ;;  %v940_v50 = vadd.f32 %v876_v33, %v812_v39  ;;  %v3761_v53 = vadd.f32 %v3697_v37, %v3633_v42  ;;  %v2550_v7 = vld [vmem:[%s6195_s15 + $0x2258] sm:$0xff]  ;;  %v2612_v8 = vadd.f32 %v2548_v4, %v2484_v2 }
 0x13e   : > { %v3825_v47 = vld [vmem:[%s6195_s15 + $0x3630] sm:$0xff]  ;;  %v3951_v48 = vld [vmem:[%s6195_s15 + $0x3820] sm:$0xff]  ;;  %v2349_v51 = vadd.f32 %v2285_v35, %v2221_v40  ;;  %v1066_v59 = vadd.f32 %v1002_v43, %v938_v49  ;;  %v3887_v0 = vadd.f32 %v3823_v46, %v3759_v52  ;;  %v2676_v9 = vld [vmem:[%s6195_s15 + $0x2448] sm:$0xff]  ;;  %v2614_v15 = vadd.f32 %v2550_v7, %v2486_v3 }
 0x13f   : > { %v3953_v54 = vld [vmem:[%s6195_s15 + $0x3830] sm:$0xff]  ;;  %v1130_v55 = vld [vmem:[%s6195_s15 + $0xc60] sm:$0xff]  ;;  %v1068_v60 = vadd.f32 %v1004_v44, %v940_v50  ;;  %v3889_v1 = vadd.f32 %v3825_v47, %v3761_v53  ;;  %v2678_v10 = vld [vmem:[%s6195_s15 + $0x2458] sm:$0xff]  ;;  %v2740_v21 = vadd.f32 %v2676_v9, %v2612_v8 }
 0x140   : > { %v1132_v56 = vld [vmem:[%s6195_s15 + $0xc70] sm:$0xff]  ;;  %v4079_v57 = vld [vmem:[%s6195_s15 + $0x3a20] sm:$0xff]  ;;  %v5272_v63 = vpack.c.bf16 %v2349_v51, %v2347_v45  ;;  %v1194_v5 = vadd.f32 %v1130_v55, %v1066_v59  ;;  %v4015_v11 = vadd.f32 %v3951_v48, %v3887_v0  ;;  %v2804_v16 = vld [vmem:[%s6195_s15 + $0x2648] sm:$0xff]  ;;  %v2742_v27 = vadd.f32 %v2678_v10, %v2614_v15 }
 0x141   : > { %v4081_v58 = vld [vmem:[%s6195_s15 + $0x3a30] sm:$0xff]  ;;  %v1258_v61 = vld [vmem:[%s6195_s15 + $0xe60] sm:$0xff]  ;;  %v1196_v6 = vadd.f32 %v1132_v56, %v1068_v60  ;;  %v4017_v12 = vadd.f32 %v3953_v54, %v3889_v1  ;;  %v2806_v22 = vld [vmem:[%s6195_s15 + $0x2658] sm:$0xff]  ;;  %v2868_v33 = vadd.f32 %v2804_v16, %v2740_v21 }
 0x142   : > { %v1260_v62 = vld [vmem:[%s6195_s15 + $0xe70] sm:$0xff]  ;;  %5273 = vmatprep.subr.bf16.mxu0 %v5272_v63  ;;  %v1386_v13 = vld [vmem:[%s6195_s15 + $0x1060] sm:$0xff]  ;;  %v1322_v19 = vadd.f32 %v1258_v61, %v1194_v5  ;;  %v4143_v23 = vadd.f32 %v4079_v57, %v4015_v11  ;;  %v2932_v28 = vld [vmem:[%s6195_s15 + $0x2848] sm:$0xff]  ;;  %v2870_v39 = vadd.f32 %v2806_v22, %v2742_v27 }
 0x143   : > { %v1388_v14 = vld [vmem:[%s6195_s15 + $0x1070] sm:$0xff]  ;;  %v4207_v17 = vld [vmem:[%s6195_s15 + $0x3c20] sm:$0xff]  ;;  %v1324_v20 = vadd.f32 %v1260_v62, %v1196_v6  ;;  %v4145_v24 = vadd.f32 %v4081_v58, %v4017_v12  ;;  %v2934_v34 = vld [vmem:[%s6195_s15 + $0x2858] sm:$0xff]  ;;  %v2996_v43 = vadd.f32 %v2932_v28, %v2868_v33 }
 0x144   : > { %v4209_v18 = vld [vmem:[%s6195_s15 + $0x3c30] sm:$0xff]  ;;  %v1514_v25 = vld [vmem:[%s6195_s15 + $0x1260] sm:$0xff]  ;;  %v1450_v31 = vadd.f32 %v1386_v13, %v1322_v19  ;;  %v4271_v35 = vadd.f32 %v4207_v17, %v4143_v23  ;;  %v3060_v40 = vld [vmem:[%s6195_s15 + $0x2a48] sm:$0xff]  ;;  %v2998_v49 = vadd.f32 %v2934_v34, %v2870_v39 }
 0x145   : > { %v1516_v26 = vld [vmem:[%s6195_s15 + $0x1270] sm:$0xff]  ;;  %v4335_v29 = vld [vmem:[%s6195_s15 + $0x3e20] sm:$0xff]  ;;  %v1452_v32 = vadd.f32 %v1388_v14, %v1324_v20  ;;  %v4273_v36 = vadd.f32 %v4209_v18, %v4145_v24  ;;  %v3062_v44 = vld [vmem:[%s6195_s15 + $0x2a58] sm:$0xff]  ;;  %v3124_v55 = vadd.f32 %v3060_v40, %v2996_v43 }
 0x146   : > { %v4337_v30 = vld [vmem:[%s6195_s15 + $0x3e30] sm:$0xff]  ;;  %v1642_v37 = vld [vmem:[%s6195_s15 + $0x1460] sm:$0xff]  ;;  %v1578_v41 = vadd.f32 %v1514_v25, %v1450_v31  ;;  %v4399_v45 = vadd.f32 %v4335_v29, %v4271_v35  ;;  %v3188_v50 = vld [vmem:[%s6195_s15 + $0x2c48] sm:$0xff]  ;;  %v3126_v60 = vadd.f32 %v3062_v44, %v2998_v49 }
 0x147   : > { %v1644_v38 = vld [vmem:[%s6195_s15 + $0x1470] sm:$0xff]  ;;  %v1580_v42 = vadd.f32 %v1516_v26, %v1452_v32  ;;  %v4401_v46 = vadd.f32 %v4337_v30, %v4273_v36  ;;  %v1770_v47 = vld [vmem:[%s6195_s15 + $0x1660] sm:$0xff]  ;;  %v3190_v56 = vld [vmem:[%s6195_s15 + $0x2c58] sm:$0xff]  ;;  %v3252_v2 = vadd.f32 %v3188_v50, %v3124_v55 }
 0x148   : > { %v1772_v48 = vld [vmem:[%s6195_s15 + $0x1670] sm:$0xff]  ;;  %v1706_v51 = vadd.f32 %v1642_v37, %v1578_v41  ;;  %v1898_v53 = vld [vmem:[%s6195_s15 + $0x1860] sm:$0xff]  ;;  %v3316_v61 = vld [vmem:[%s6195_s15 + $0x2e48] sm:$0xff]  ;;  %v3254_v6 = vadd.f32 %v3190_v56, %v3126_v60 }
 0x149   : > { %v1708_v52 = vadd.f32 %v1644_v38, %v1580_v42  ;;  %v1900_v54 = vld [vmem:[%s6195_s15 + $0x1870] sm:$0xff]  ;;  %v5330_v57 = vpack.c.bf16 %v4401_v46, %v4399_v45  ;;  %v2026_v58 = vld [vmem:[%s6195_s15 + $0x1a60] sm:$0xff]  ;;  %v3318_v62 = vld [vmem:[%s6195_s15 + $0x2e58] sm:$0xff]  ;;  %v3380_v14 = vadd.f32 %v3316_v61, %v3252_v2 }
 0x14a   : > { %v2028_v59 = vld [vmem:[%s6195_s15 + $0x1a70] sm:$0xff]  ;;  %v431_v63 = vld [vmem:[%s6195_s15 + $0x88] sm:$0xff]  ;;  %v1834_v0 = vadd.f32 %v1770_v47, %v1706_v51  ;;  %v433_v3 = vld [vmem:[%s6195_s15 + $0x98] sm:$0xff]  ;;  %v3382_v20 = vadd.f32 %v3318_v62, %v3254_v6 }
 0x14b   : > { %v1836_v1 = vadd.f32 %v1772_v48, %v1708_v52  ;;  %v495_v4 = vld [vmem:[%s6195_s15 + $0x288] sm:$0xff]  ;;  %v497_v5 = vld [vmem:[%s6195_s15 + $0x298] sm:$0xff]  ;;  %5331 = vmatpush1.bf16.msra.mxu1 %v5330_v57  ;;  %v2154_v18 = vld [vmem:[%s6195_s15 + $0x1c60] sm:$0xff] }
 0x14c   : > { %v3444_v7 = vld [vmem:[%s6195_s15 + $0x3048] sm:$0xff]  ;;  %v559_v8 = vadd.f32 %v495_v4, %v431_v63  ;;  %v561_v9 = vadd.f32 %v497_v5, %v433_v3  ;;  %v625_v11 = vld [vmem:[%s6195_s15 + $0x498] sm:$0xff]  ;;  %v1962_v12 = vadd.f32 %v1898_v53, %v1834_v0  ;;  %v2156_v19 = vld [vmem:[%s6195_s15 + $0x1c70] sm:$0xff] }
 0x14d   : > { %v623_v10 = vld [vmem:[%s6195_s15 + $0x488] sm:$0xff]  ;;  %v1964_v13 = vadd.f32 %v1900_v54, %v1836_v1  ;;  %v3446_v15 = vld [vmem:[%s6195_s15 + $0x3058] sm:$0xff]  ;;  %v3508_v26 = vadd.f32 %v3444_v7, %v3380_v14  ;;  %v2282_v30 = vld [vmem:[%s6195_s15 + $0x1e60] sm:$0xff] }
 0x14e   : > { %v751_v16 = vld [vmem:[%s6195_s15 + $0x688] sm:$0xff]  ;;  %v753_v17 = vld [vmem:[%s6195_s15 + $0x698] sm:$0xff]  ;;  %v687_v22 = vadd.f32 %v623_v10, %v559_v8  ;;  %v689_v23 = vadd.f32 %v625_v11, %v561_v9  ;;  %v2090_v24 = vadd.f32 %v2026_v58, %v1962_v12  ;;  %v2284_v31 = vld [vmem:[%s6195_s15 + $0x1e70] sm:$0xff]  ;;  %v3510_v32 = vadd.f32 %v3446_v15, %v3382_v20 }
 0x14f   : > { %v3572_v21 = vld [vmem:[%s6195_s15 + $0x3248] sm:$0xff]  ;;  %v2092_v25 = vadd.f32 %v2028_v59, %v1964_v13  ;;  %v3574_v27 = vld [vmem:[%s6195_s15 + $0x3258] sm:$0xff]  ;;  %v2483_v63 = vld [vmem:[%s6195_s15 + $0x2040] sm:$0xff] }
 0x150   : > { %v879_v28 = vld [vmem:[%s6195_s15 + $0x888] sm:$0xff]  ;;  %v881_v29 = vld [vmem:[%s6195_s15 + $0x898] sm:$0xff]  ;;  %v815_v34 = vadd.f32 %v751_v16, %v687_v22  ;;  %v817_v35 = vadd.f32 %v753_v17, %v689_v23  ;;  %v2218_v36 = vadd.f32 %v2154_v18, %v2090_v24  ;;  %v3636_v38 = vadd.f32 %v3572_v21, %v3508_v26  ;;  %v2485_v0 = vld [vmem:[%s6195_s15 + $0x2050] sm:$0xff] }
 0x151   : > { %v3700_v33 = vld [vmem:[%s6195_s15 + $0x3448] sm:$0xff]  ;;  %v2220_v37 = vadd.f32 %v2156_v19, %v2092_v25  ;;  %v3702_v39 = vld [vmem:[%s6195_s15 + $0x3458] sm:$0xff]  ;;  %v3638_v42 = vadd.f32 %v3574_v27, %v3510_v32  ;;  %v2547_v4 = vld [vmem:[%s6195_s15 + $0x2240] sm:$0xff] }
 0x152   : > { %v1007_v40 = vld [vmem:[%s6195_s15 + $0xa88] sm:$0xff]  ;;  %v1009_v41 = vld [vmem:[%s6195_s15 + $0xa98] sm:$0xff]  ;;  %v943_v45 = vadd.f32 %v879_v28, %v815_v34  ;;  %v945_v46 = vadd.f32 %v881_v29, %v817_v35  ;;  %v2346_v47 = vadd.f32 %v2282_v30, %v2218_v36  ;;  %v3764_v49 = vadd.f32 %v3700_v33, %v3636_v38  ;;  %v2549_v5 = vld [vmem:[%s6195_s15 + $0x2250] sm:$0xff] }
 0x153   : > { %v3828_v43 = vld [vmem:[%s6195_s15 + $0x3648] sm:$0xff]  ;;  %v3830_v44 = vld [vmem:[%s6195_s15 + $0x3658] sm:$0xff]  ;;  %v2348_v48 = vadd.f32 %v2284_v31, %v2220_v37  ;;  %v3766_v53 = vadd.f32 %v3702_v39, %v3638_v42  ;;  %v2675_v6 = vld [vmem:[%s6195_s15 + $0x2440] sm:$0xff]  ;;  %v2611_v10 = vadd.f32 %v2547_v4, %v2483_v63  ;;  %v2613_v11 = vadd.f32 %v2549_v5, %v2485_v0 }
 0x154   : > { %v3956_v50 = vld [vmem:[%s6195_s15 + $0x3848] sm:$0xff]  ;;  %v1137_v52 = vld [vmem:[%s6195_s15 + $0xc98] sm:$0xff]  ;;  %v1071_v56 = vadd.f32 %v1007_v40, %v943_v45  ;;  %v1073_v57 = vadd.f32 %v1009_v41, %v945_v46  ;;  %v3892_v60 = vadd.f32 %v3828_v43, %v3764_v49  ;;  %v2677_v12 = vld [vmem:[%s6195_s15 + $0x2450] sm:$0xff] }
 0x155   : > { %v1135_v51 = vld [vmem:[%s6195_s15 + $0xc88] sm:$0xff]  ;;  %v3958_v54 = vld [vmem:[%s6195_s15 + $0x3858] sm:$0xff]  ;;  %v5274_v59 = vpack.c.bf16 %v2348_v48, %v2346_v47  ;;  %v3894_v1 = vadd.f32 %v3830_v44, %v3766_v53  ;;  %v2803_v17 = vld [vmem:[%s6195_s15 + $0x2640] sm:$0xff]  ;;  %v2739_v23 = vadd.f32 %v2675_v6, %v2611_v10  ;;  %v2741_v24 = vadd.f32 %v2677_v12, %v2613_v11 }
 0x156   : > { %v4084_v55 = vld [vmem:[%s6195_s15 + $0x3a48] sm:$0xff]  ;;  %v4086_v61 = vld [vmem:[%s6195_s15 + $0x3a58] sm:$0xff]  ;;  %v1199_v2 = vadd.f32 %v1135_v51, %v1071_v56  ;;  %v1201_v3 = vadd.f32 %v1137_v52, %v1073_v57  ;;  %v4020_v7 = vadd.f32 %v3956_v50, %v3892_v60  ;;  %v2805_v18 = vld [vmem:[%s6195_s15 + $0x2650] sm:$0xff] }
 0x157   : > { %v1263_v58 = vld [vmem:[%s6195_s15 + $0xe88] sm:$0xff]  ;;  %v1265_v62 = vld [vmem:[%s6195_s15 + $0xe98] sm:$0xff]  ;;  %5275 = vmatpush1.bf16.msra.mxu0 %v5274_v59  ;;  %v4022_v13 = vadd.f32 %v3958_v54, %v3894_v1  ;;  %v2931_v29 = vld [vmem:[%s6195_s15 + $0x2840] sm:$0xff]  ;;  %v2867_v35 = vadd.f32 %v2803_v17, %v2739_v23  ;;  %v2869_v36 = vadd.f32 %v2805_v18, %v2741_v24 }
 0x158   : > { %v1391_v8 = vld [vmem:[%s6195_s15 + $0x1088] sm:$0xff]  ;;  %v1393_v9 = vld [vmem:[%s6195_s15 + $0x1098] sm:$0xff]  ;;  %v1327_v15 = vadd.f32 %v1263_v58, %v1199_v2  ;;  %v1329_v16 = vadd.f32 %v1265_v62, %v1201_v3  ;;  %v4148_v19 = vadd.f32 %v4084_v55, %v4020_v7  ;;  %v2933_v30 = vld [vmem:[%s6195_s15 + $0x2850] sm:$0xff] }
 0x159   : > { %v4212_v14 = vld [vmem:[%s6195_s15 + $0x3c48] sm:$0xff]  ;;  %v4214_v20 = vld [vmem:[%s6195_s15 + $0x3c58] sm:$0xff]  ;;  %v4150_v25 = vadd.f32 %v4086_v61, %v4022_v13  ;;  %v3059_v40 = vld [vmem:[%s6195_s15 + $0x2a40] sm:$0xff]  ;;  %v2995_v46 = vadd.f32 %v2931_v29, %v2867_v35  ;;  %v2997_v47 = vadd.f32 %v2933_v30, %v2869_v36 }
 0x15a   : > { %v1519_v21 = vld [vmem:[%s6195_s15 + $0x1288] sm:$0xff]  ;;  %v1521_v22 = vld [vmem:[%s6195_s15 + $0x1298] sm:$0xff]  ;;  %v1455_v27 = vadd.f32 %v1391_v8, %v1327_v15  ;;  %v1457_v28 = vadd.f32 %v1393_v9, %v1329_v16  ;;  %v4276_v31 = vadd.f32 %v4212_v14, %v4148_v19  ;;  %v3061_v41 = vld [vmem:[%s6195_s15 + $0x2a50] sm:$0xff] }
 0x15b   : > { %v4340_v26 = vld [vmem:[%s6195_s15 + $0x3e48] sm:$0xff]  ;;  %v4342_v32 = vld [vmem:[%s6195_s15 + $0x3e58] sm:$0xff]  ;;  %v4278_v37 = vadd.f32 %v4214_v20, %v4150_v25  ;;  %v3187_v52 = vld [vmem:[%s6195_s15 + $0x2c40] sm:$0xff]  ;;  %v3123_v56 = vadd.f32 %v3059_v40, %v2995_v46  ;;  %v3125_v57 = vadd.f32 %v3061_v41, %v2997_v47 }
 0x15c   : > { %v1647_v33 = vld [vmem:[%s6195_s15 + $0x1488] sm:$0xff]  ;;  %v1649_v34 = vld [vmem:[%s6195_s15 + $0x1498] sm:$0xff]  ;;  %v1583_v38 = vadd.f32 %v1519_v21, %v1455_v27  ;;  %v1585_v39 = vadd.f32 %v1521_v22, %v1457_v28  ;;  %v4404_v42 = vadd.f32 %v4340_v26, %v4276_v31  ;;  %v3189_v53 = vld [vmem:[%s6195_s15 + $0x2c50] sm:$0xff] }
 0x15d   : > { %v1775_v43 = vld [vmem:[%s6195_s15 + $0x1688] sm:$0xff]  ;;  %v1777_v44 = vld [vmem:[%s6195_s15 + $0x1698] sm:$0xff]  ;;  %v4406_v48 = vadd.f32 %v4342_v32, %v4278_v37  ;;  %v3315_v58 = vld [vmem:[%s6195_s15 + $0x2e40] sm:$0xff]  ;;  %v3251_v2 = vadd.f32 %v3187_v52, %v3123_v56  ;;  %v3253_v3 = vadd.f32 %v3189_v53, %v3125_v57 }
 0x15e   : > { %v1903_v45 = vld [vmem:[%s6195_s15 + $0x1888] sm:$0xff]  ;;  %v1711_v49 = vadd.f32 %v1647_v33, %v1583_v38  ;;  %v1713_v50 = vadd.f32 %v1649_v34, %v1585_v39  ;;  %v1905_v51 = vld [vmem:[%s6195_s15 + $0x1898] sm:$0xff]  ;;  %v3317_v59 = vld [vmem:[%s6195_s15 + $0x2e50] sm:$0xff] }
 0x15f   : > { %v2031_v54 = vld [vmem:[%s6195_s15 + $0x1a88] sm:$0xff]  ;;  %v2033_v55 = vld [vmem:[%s6195_s15 + $0x1a98] sm:$0xff]  ;;  %v5332_v60 = vpack.c.bf16 %v4406_v48, %v4404_v42  ;;  %v430_v63 = vld [vmem:[%s6195_s15 + $0x80] sm:$0xff]  ;;  %v3379_v16 = vadd.f32 %v3315_v58, %v3251_v2  ;;  %v3381_v17 = vadd.f32 %v3317_v59, %v3253_v3 }
 0x160   : > { %v1839_v61 = vadd.f32 %v1775_v43, %v1711_v49  ;;  %v1841_v62 = vadd.f32 %v1777_v44, %v1713_v50  ;;  %v432_v0 = vld [vmem:[%s6195_s15 + $0x90] sm:$0xff]  ;;  %v494_v1 = vld [vmem:[%s6195_s15 + $0x280] sm:$0xff]  ;;  %v2159_v14 = vld [vmem:[%s6195_s15 + $0x1c88] sm:$0xff] }
 0x161   : > { %v496_v4 = vld [vmem:[%s6195_s15 + $0x290] sm:$0xff]  ;;  %v558_v5 = vadd.f32 %v494_v1, %v430_v63  ;;  %v622_v6 = vld [vmem:[%s6195_s15 + $0x480] sm:$0xff]  ;;  %5333 = vmatprep.subr.bf16.mxu1 %v5332_v60  ;;  %v2161_v15 = vld [vmem:[%s6195_s15 + $0x1c98] sm:$0xff] }
 0x162   : > { %v624_v7 = vld [vmem:[%s6195_s15 + $0x490] sm:$0xff]  ;;  %v1967_v8 = vadd.f32 %v1903_v45, %v1839_v61  ;;  %v1969_v9 = vadd.f32 %v1905_v51, %v1841_v62  ;;  %v3443_v10 = vld [vmem:[%s6195_s15 + $0x3040] sm:$0xff]  ;;  %v560_v12 = vadd.f32 %v496_v4, %v432_v0  ;;  %v2287_v26 = vld [vmem:[%s6195_s15 + $0x1e88] sm:$0xff] }
 0x163   : > { %v3445_v11 = vld [vmem:[%s6195_s15 + $0x3050] sm:$0xff]  ;;  %v750_v13 = vld [vmem:[%s6195_s15 + $0x680] sm:$0xff]  ;;  %v686_v18 = vadd.f32 %v622_v6, %v558_v5  ;;  %v2289_v27 = vld [vmem:[%s6195_s15 + $0x1e98] sm:$0xff]  ;;  %v3507_v28 = vadd.f32 %v3443_v10, %v3379_v16 }
 0x164   : > { %v752_v19 = vld [vmem:[%s6195_s15 + $0x690] sm:$0xff]  ;;  %v2095_v20 = vadd.f32 %v2031_v54, %v1967_v8  ;;  %v2097_v21 = vadd.f32 %v2033_v55, %v1969_v9  ;;  %v3571_v22 = vld [vmem:[%s6195_s15 + $0x3240] sm:$0xff]  ;;  %v688_v24 = vadd.f32 %v624_v7, %v560_v12  ;;  %v3509_v29 = vadd.f32 %v3445_v11, %v3381_v17  ;;  %v2488_v60 = vld [vmem:[%s6195_s15 + $0x2068] sm:$0xff] }
 0x165   : > { %v3573_v23 = vld [vmem:[%s6195_s15 + $0x3250] sm:$0xff]  ;;  %v878_v25 = vld [vmem:[%s6195_s15 + $0x880] sm:$0xff]  ;;  %v814_v30 = vadd.f32 %v750_v13, %v686_v18  ;;  %v3635_v38 = vadd.f32 %v3571_v22, %v3507_v28  ;;  %v2490_v0 = vld [vmem:[%s6195_s15 + $0x2078] sm:$0xff] }
 0x166   : > { %v880_v31 = vld [vmem:[%s6195_s15 + $0x890] sm:$0xff]  ;;  %v2223_v32 = vadd.f32 %v2159_v14, %v2095_v20  ;;  %v2225_v33 = vadd.f32 %v2161_v15, %v2097_v21  ;;  %v3699_v34 = vld [vmem:[%s6195_s15 + $0x3440] sm:$0xff]  ;;  %v816_v36 = vadd.f32 %v752_v19, %v688_v24  ;;  %v3637_v39 = vadd.f32 %v3573_v23, %v3509_v29  ;;  %v2552_v1 = vld [vmem:[%s6195_s15 + $0x2268] sm:$0xff] }
 0x167   : > { %v3701_v35 = vld [vmem:[%s6195_s15 + $0x3450] sm:$0xff]  ;;  %v1006_v37 = vld [vmem:[%s6195_s15 + $0xa80] sm:$0xff]  ;;  %v942_v40 = vadd.f32 %v878_v25, %v814_v30  ;;  %v3763_v48 = vadd.f32 %v3699_v34, %v3635_v38  ;;  %v2554_v2 = vld [vmem:[%s6195_s15 + $0x2278] sm:$0xff]  ;;  %v2616_v5 = vadd.f32 %v2552_v1, %v2488_v60 }
 0x168   : > { %v1008_v41 = vld [vmem:[%s6195_s15 + $0xa90] sm:$0xff]  ;;  %v2351_v42 = vadd.f32 %v2287_v26, %v2223_v32  ;;  %v2353_v43 = vadd.f32 %v2289_v27, %v2225_v33  ;;  %v3827_v44 = vld [vmem:[%s6195_s15 + $0x3640] sm:$0xff]  ;;  %v944_v46 = vadd.f32 %v880_v31, %v816_v36  ;;  %v3765_v49 = vadd.f32 %v3701_v35, %v3637_v39  ;;  %v2680_v7 = vld [vmem:[%s6195_s15 + $0x2468] sm:$0xff] }
 0x169   : > { %v3829_v45 = vld [vmem:[%s6195_s15 + $0x3650] sm:$0xff]  ;;  %v1134_v47 = vld [vmem:[%s6195_s15 + $0xc80] sm:$0xff]  ;;  %v1070_v52 = vadd.f32 %v1006_v37, %v942_v40  ;;  %v3891_v61 = vadd.f32 %v3827_v44, %v3763_v48  ;;  %v2618_v6 = vadd.f32 %v2554_v2, %v2490_v0  ;;  %v2682_v8 = vld [vmem:[%s6195_s15 + $0x2478] sm:$0xff]  ;;  %v2744_v19 = vadd.f32 %v2680_v7, %v2616_v5 }
 0x16a   : > { %v3955_v50 = vld [vmem:[%s6195_s15 + $0x3840] sm:$0xff]  ;;  %v3957_v51 = vld [vmem:[%s6195_s15 + $0x3850] sm:$0xff]  ;;  %v5276_v54 = vpack.c.bf16 %v2353_v43, %v2351_v42  ;;  %v1072_v57 = vadd.f32 %v1008_v41, %v944_v46  ;;  %v3893_v62 = vadd.f32 %v3829_v45, %v3765_v49  ;;  %v2808_v13 = vld [vmem:[%s6195_s15 + $0x2668] sm:$0xff] }
 0x16b   : > { %v1136_v53 = vld [vmem:[%s6195_s15 + $0xc90] sm:$0xff]  ;;  %v4083_v55 = vld [vmem:[%s6195_s15 + $0x3a40] sm:$0xff]  ;;  %v1198_v63 = vadd.f32 %v1134_v47, %v1070_v52  ;;  %v4019_v9 = vadd.f32 %v3955_v50, %v3891_v61  ;;  %v2810_v14 = vld [vmem:[%s6195_s15 + $0x2678] sm:$0xff]  ;;  %v2746_v20 = vadd.f32 %v2682_v8, %v2618_v6  ;;  %v2872_v31 = vadd.f32 %v2808_v13, %v2744_v19 }
 0x16c   : > { %v4085_v56 = vld [vmem:[%s6195_s15 + $0x3a50] sm:$0xff]  ;;  %v1262_v58 = vld [vmem:[%s6195_s15 + $0xe80] sm:$0xff]  ;;  %5277 = vmatprep.subr.bf16.mxu0 %v5276_v54  ;;  %v1200_v3 = vadd.f32 %v1136_v53, %v1072_v57  ;;  %v4021_v10 = vadd.f32 %v3957_v51, %v3893_v62  ;;  %v2936_v25 = vld [vmem:[%s6195_s15 + $0x2868] sm:$0xff] }
 0x16d   : > { %v1264_v59 = vld [vmem:[%s6195_s15 + $0xe90] sm:$0xff]  ;;  %v1390_v4 = vld [vmem:[%s6195_s15 + $0x1080] sm:$0xff]  ;;  %v1326_v11 = vadd.f32 %v1262_v58, %v1198_v63  ;;  %v4147_v21 = vadd.f32 %v4083_v55, %v4019_v9  ;;  %v2938_v26 = vld [vmem:[%s6195_s15 + $0x2878] sm:$0xff]  ;;  %v2874_v32 = vadd.f32 %v2810_v14, %v2746_v20  ;;  %v3000_v42 = vadd.f32 %v2936_v25, %v2872_v31 }
 0x16e   : > { %v1392_v12 = vld [vmem:[%s6195_s15 + $0x1090] sm:$0xff]  ;;  %v4211_v15 = vld [vmem:[%s6195_s15 + $0x3c40] sm:$0xff]  ;;  %v1328_v17 = vadd.f32 %v1264_v59, %v1200_v3  ;;  %v4149_v22 = vadd.f32 %v4085_v56, %v4021_v10  ;;  %v3064_v37 = vld [vmem:[%s6195_s15 + $0x2a68] sm:$0xff] }
 0x16f   : > { %v4213_v16 = vld [vmem:[%s6195_s15 + $0x3c50] sm:$0xff]  ;;  %v1518_v18 = vld [vmem:[%s6195_s15 + $0x1280] sm:$0xff]  ;;  %v1454_v23 = vadd.f32 %v1390_v4, %v1326_v11  ;;  %v4275_v33 = vadd.f32 %v4211_v15, %v4147_v21  ;;  %v3066_v38 = vld [vmem:[%s6195_s15 + $0x2a78] sm:$0xff]  ;;  %v3002_v43 = vadd.f32 %v2938_v26, %v2874_v32  ;;  %v3128_v53 = vadd.f32 %v3064_v37, %v3000_v42 }
 0x170   : > { %v1520_v24 = vld [vmem:[%s6195_s15 + $0x1290] sm:$0xff]  ;;  %v4339_v27 = vld [vmem:[%s6195_s15 + $0x3e40] sm:$0xff]  ;;  %v1456_v29 = vadd.f32 %v1392_v12, %v1328_v17  ;;  %v4277_v34 = vadd.f32 %v4213_v16, %v4149_v22  ;;  %v3192_v48 = vld [vmem:[%s6195_s15 + $0x2c68] sm:$0xff] }
 0x171   : > { %v4341_v28 = vld [vmem:[%s6195_s15 + $0x3e50] sm:$0xff]  ;;  %v1646_v30 = vld [vmem:[%s6195_s15 + $0x1480] sm:$0xff]  ;;  %v1582_v35 = vadd.f32 %v1518_v18, %v1454_v23  ;;  %v4403_v44 = vadd.f32 %v4339_v27, %v4275_v33  ;;  %v3194_v49 = vld [vmem:[%s6195_s15 + $0x2c78] sm:$0xff]  ;;  %v3130_v54 = vadd.f32 %v3066_v38, %v3002_v43  ;;  %v3256_v63 = vadd.f32 %v3192_v48, %v3128_v53 }
 0x172   : > { %v1648_v36 = vld [vmem:[%s6195_s15 + $0x1490] sm:$0xff]  ;;  %v1584_v39 = vadd.f32 %v1520_v24, %v1456_v29  ;;  %v1774_v40 = vld [vmem:[%s6195_s15 + $0x1680] sm:$0xff]  ;;  %v4405_v45 = vadd.f32 %v4341_v28, %v4277_v34  ;;  %v3320_v55 = vld [vmem:[%s6195_s15 + $0x2e68] sm:$0xff] }
 0x173   : > { %v1776_v41 = vld [vmem:[%s6195_s15 + $0x1690] sm:$0xff]  ;;  %v1710_v46 = vadd.f32 %v1646_v30, %v1582_v35  ;;  %v1902_v47 = vld [vmem:[%s6195_s15 + $0x1880] sm:$0xff]  ;;  %v3322_v59 = vld [vmem:[%s6195_s15 + $0x2e78] sm:$0xff]  ;;  %v3258_v0 = vadd.f32 %v3194_v49, %v3130_v54  ;;  %v3384_v12 = vadd.f32 %v3320_v55, %v3256_v63 }
 0x174   : > { %v1712_v50 = vadd.f32 %v1648_v36, %v1584_v39  ;;  %v1904_v51 = vld [vmem:[%s6195_s15 + $0x1890] sm:$0xff]  ;;  %v2030_v52 = vld [vmem:[%s6195_s15 + $0x1a80] sm:$0xff]  ;;  %v5334_v56 = vpack.c.bf16 %v4405_v45, %v4403_v44  ;;  %v435_v60 = vld [vmem:[%s6195_s15 + $0xa8] sm:$0xff] }
 0x175   : > { %v1838_v57 = vadd.f32 %v1774_v40, %v1710_v46  ;;  %v2032_v58 = vld [vmem:[%s6195_s15 + $0x1a90] sm:$0xff]  ;;  %v437_v61 = vld [vmem:[%s6195_s15 + $0xb8] sm:$0xff]  ;;  %v499_v1 = vld [vmem:[%s6195_s15 + $0x2a8] sm:$0xff]  ;;  %v3386_v13 = vadd.f32 %v3322_v59, %v3258_v0 }
 0x176   : > { %v1840_v62 = vadd.f32 %v1776_v41, %v1712_v50  ;;  %v501_v2 = vld [vmem:[%s6195_s15 + $0x2b8] sm:$0xff]  ;;  %v627_v3 = vld [vmem:[%s6195_s15 + $0x4a8] sm:$0xff]  ;;  %5335 = vmatpush1.bf16.msra.mxu1 %v5334_v56  ;;  %v563_v7 = vadd.f32 %v499_v1, %v435_v60  ;;  %v2158_v11 = vld [vmem:[%s6195_s15 + $0x1c80] sm:$0xff] }
 0x177   : > { %v1966_v4 = vadd.f32 %v1902_v47, %v1838_v57  ;;  %v3448_v5 = vld [vmem:[%s6195_s15 + $0x3068] sm:$0xff]  ;;  %v3450_v6 = vld [vmem:[%s6195_s15 + $0x3078] sm:$0xff]  ;;  %v565_v8 = vadd.f32 %v501_v2, %v437_v61  ;;  %v2160_v17 = vld [vmem:[%s6195_s15 + $0x1c90] sm:$0xff] }
 0x178   : > { %v629_v9 = vld [vmem:[%s6195_s15 + $0x4b8] sm:$0xff]  ;;  %v1968_v10 = vadd.f32 %v1904_v51, %v1840_v62  ;;  %v755_v14 = vld [vmem:[%s6195_s15 + $0x6a8] sm:$0xff]  ;;  %v691_v20 = vadd.f32 %v627_v3, %v563_v7  ;;  %v2286_v23 = vld [vmem:[%s6195_s15 + $0x1e80] sm:$0xff]  ;;  %v3512_v24 = vadd.f32 %v3448_v5, %v3384_v12  ;;  %v3514_v25 = vadd.f32 %v3450_v6, %v3386_v13 }
 0x179   : > { %v757_v15 = vld [vmem:[%s6195_s15 + $0x6b8] sm:$0xff]  ;;  %v2094_v16 = vadd.f32 %v2030_v52, %v1966_v4  ;;  %v3576_v18 = vld [vmem:[%s6195_s15 + $0x3268] sm:$0xff]  ;;  %v693_v21 = vadd.f32 %v629_v9, %v565_v8  ;;  %v2288_v29 = vld [vmem:[%s6195_s15 + $0x1e90] sm:$0xff] }
 0x17a   : > { %v3578_v19 = vld [vmem:[%s6195_s15 + $0x3278] sm:$0xff]  ;;  %v2096_v22 = vadd.f32 %v2032_v58, %v1968_v10  ;;  %v883_v26 = vld [vmem:[%s6195_s15 + $0x8a8] sm:$0xff]  ;;  %v819_v32 = vadd.f32 %v755_v14, %v691_v20  ;;  %v3640_v35 = vadd.f32 %v3576_v18, %v3512_v24  ;;  %v2487_v60 = vld [vmem:[%s6195_s15 + $0x2060] sm:$0xff] }
 0x17b   : > { %v885_v27 = vld [vmem:[%s6195_s15 + $0x8b8] sm:$0xff]  ;;  %v2222_v28 = vadd.f32 %v2158_v11, %v2094_v16  ;;  %v3704_v30 = vld [vmem:[%s6195_s15 + $0x3468] sm:$0xff]  ;;  %v821_v33 = vadd.f32 %v757_v15, %v693_v21  ;;  %v3642_v36 = vadd.f32 %v3578_v19, %v3514_v25  ;;  %v2489_v61 = vld [vmem:[%s6195_s15 + $0x2070] sm:$0xff] }
 0x17c   : > { %v3706_v31 = vld [vmem:[%s6195_s15 + $0x3478] sm:$0xff]  ;;  %v2224_v34 = vadd.f32 %v2160_v17, %v2096_v22  ;;  %v1011_v37 = vld [vmem:[%s6195_s15 + $0xaa8] sm:$0xff]  ;;  %v947_v43 = vadd.f32 %v883_v26, %v819_v32  ;;  %v3768_v46 = vadd.f32 %v3704_v30, %v3640_v35  ;;  %v2551_v62 = vld [vmem:[%s6195_s15 + $0x2260] sm:$0xff] }
 0x17d   : > { %v1013_v38 = vld [vmem:[%s6195_s15 + $0xab8] sm:$0xff]  ;;  %v2350_v39 = vadd.f32 %v2286_v23, %v2222_v28  ;;  %v3832_v40 = vld [vmem:[%s6195_s15 + $0x3668] sm:$0xff]  ;;  %v949_v44 = vadd.f32 %v885_v27, %v821_v33  ;;  %v3770_v47 = vadd.f32 %v3706_v31, %v3642_v36  ;;  %v2553_v1 = vld [vmem:[%s6195_s15 + $0x2270] sm:$0xff]  ;;  %v2615_v2 = vadd.f32 %v2551_v62, %v2487_v60 }
 0x17e   : > { %v3834_v41 = vld [vmem:[%s6195_s15 + $0x3678] sm:$0xff]  ;;  %v3960_v42 = vld [vmem:[%s6195_s15 + $0x3868] sm:$0xff]  ;;  %v2352_v45 = vadd.f32 %v2288_v29, %v2224_v34  ;;  %v1075_v53 = vadd.f32 %v1011_v37, %v947_v43  ;;  %v3896_v58 = vadd.f32 %v3832_v40, %v3768_v46  ;;  %v2679_v3 = vld [vmem:[%s6195_s15 + $0x2460] sm:$0xff]  ;;  %v2617_v9 = vadd.f32 %v2553_v1, %v2489_v61 }
 0x17f   : > { %v3962_v48 = vld [vmem:[%s6195_s15 + $0x3878] sm:$0xff]  ;;  %v1139_v49 = vld [vmem:[%s6195_s15 + $0xca8] sm:$0xff]  ;;  %v1077_v54 = vadd.f32 %v1013_v38, %v949_v44  ;;  %v3898_v59 = vadd.f32 %v3834_v41, %v3770_v47  ;;  %v2681_v4 = vld [vmem:[%s6195_s15 + $0x2470] sm:$0xff]  ;;  %v2743_v15 = vadd.f32 %v2679_v3, %v2615_v2 }
 0x180   : > { %v1141_v50 = vld [vmem:[%s6195_s15 + $0xcb8] sm:$0xff]  ;;  %v4088_v51 = vld [vmem:[%s6195_s15 + $0x3a68] sm:$0xff]  ;;  %v5278_v57 = vpack.c.bf16 %v2352_v45, %v2350_v39  ;;  %v1203_v63 = vadd.f32 %v1139_v49, %v1075_v53  ;;  %v4024_v5 = vadd.f32 %v3960_v42, %v3896_v58  ;;  %v2807_v10 = vld [vmem:[%s6195_s15 + $0x2660] sm:$0xff]  ;;  %v2745_v21 = vadd.f32 %v2681_v4, %v2617_v9 }
 0x181   : > { %v4090_v52 = vld [vmem:[%s6195_s15 + $0x3a78] sm:$0xff]  ;;  %v1267_v55 = vld [vmem:[%s6195_s15 + $0xea8] sm:$0xff]  ;;  %v1205_v0 = vadd.f32 %v1141_v50, %v1077_v54  ;;  %v4026_v6 = vadd.f32 %v3962_v48, %v3898_v59  ;;  %v2809_v16 = vld [vmem:[%s6195_s15 + $0x2670] sm:$0xff]  ;;  %v2871_v27 = vadd.f32 %v2807_v10, %v2743_v15 }
 0x182   : > { %v1269_v56 = vld [vmem:[%s6195_s15 + $0xeb8] sm:$0xff]  ;;  %5279 = vmatpush1.bf16.msra.mxu0 %v5278_v57  ;;  %v1395_v7 = vld [vmem:[%s6195_s15 + $0x10a8] sm:$0xff]  ;;  %v1331_v13 = vadd.f32 %v1267_v55, %v1203_v63  ;;  %v4152_v17 = vadd.f32 %v4088_v51, %v4024_v5  ;;  %v2935_v22 = vld [vmem:[%s6195_s15 + $0x2860] sm:$0xff]  ;;  %v2873_v33 = vadd.f32 %v2809_v16, %v2745_v21 }
 0x183   : > { %v1397_v8 = vld [vmem:[%s6195_s15 + $0x10b8] sm:$0xff]  ;;  %v4216_v11 = vld [vmem:[%s6195_s15 + $0x3c68] sm:$0xff]  ;;  %v1333_v14 = vadd.f32 %v1269_v56, %v1205_v0  ;;  %v4154_v18 = vadd.f32 %v4090_v52, %v4026_v6  ;;  %v2937_v28 = vld [vmem:[%s6195_s15 + $0x2870] sm:$0xff]  ;;  %v2999_v37 = vadd.f32 %v2935_v22, %v2871_v27 }
 0x184   : > { %v4218_v12 = vld [vmem:[%s6195_s15 + $0x3c78] sm:$0xff]  ;;  %v1523_v19 = vld [vmem:[%s6195_s15 + $0x12a8] sm:$0xff]  ;;  %v1459_v25 = vadd.f32 %v1395_v7, %v1331_v13  ;;  %v4280_v29 = vadd.f32 %v4216_v11, %v4152_v17  ;;  %v3063_v34 = vld [vmem:[%s6195_s15 + $0x2a60] sm:$0xff]  ;;  %v3001_v43 = vadd.f32 %v2937_v28, %v2873_v33 }
 0x185   : > { %v1525_v20 = vld [vmem:[%s6195_s15 + $0x12b8] sm:$0xff]  ;;  %v4344_v23 = vld [vmem:[%s6195_s15 + $0x3e68] sm:$0xff]  ;;  %v1461_v26 = vadd.f32 %v1397_v8, %v1333_v14  ;;  %v4282_v30 = vadd.f32 %v4218_v12, %v4154_v18  ;;  %v3065_v38 = vld [vmem:[%s6195_s15 + $0x2a70] sm:$0xff]  ;;  %v3127_v49 = vadd.f32 %v3063_v34, %v2999_v37 }
 0x186   : > { %v4346_v24 = vld [vmem:[%s6195_s15 + $0x3e78] sm:$0xff]  ;;  %v1651_v31 = vld [vmem:[%s6195_s15 + $0x14a8] sm:$0xff]  ;;  %v1587_v35 = vadd.f32 %v1523_v19, %v1459_v25  ;;  %v4408_v39 = vadd.f32 %v4344_v23, %v4280_v29  ;;  %v3191_v44 = vld [vmem:[%s6195_s15 + $0x2c60] sm:$0xff]  ;;  %v3129_v54 = vadd.f32 %v3065_v38, %v3001_v43 }
 0x187   : > { %v1653_v32 = vld [vmem:[%s6195_s15 + $0x14b8] sm:$0xff]  ;;  %v1589_v36 = vadd.f32 %v1525_v20, %v1461_v26  ;;  %v4410_v40 = vadd.f32 %v4346_v24, %v4282_v30  ;;  %v1779_v41 = vld [vmem:[%s6195_s15 + $0x16a8] sm:$0xff]  ;;  %v3193_v50 = vld [vmem:[%s6195_s15 + $0x2c70] sm:$0xff]  ;;  %v3255_v60 = vadd.f32 %v3191_v44, %v3127_v49 }
 0x188   : > { %v1781_v42 = vld [vmem:[%s6195_s15 + $0x16b8] sm:$0xff]  ;;  %v1715_v45 = vadd.f32 %v1651_v31, %v1587_v35  ;;  %v1907_v47 = vld [vmem:[%s6195_s15 + $0x18a8] sm:$0xff]  ;;  %v3319_v55 = vld [vmem:[%s6195_s15 + $0x2e60] sm:$0xff]  ;;  %v3257_v0 = vadd.f32 %v3193_v50, %v3129_v54 }
 0x189   : > { %v1717_v46 = vadd.f32 %v1653_v32, %v1589_v36  ;;  %v1909_v48 = vld [vmem:[%s6195_s15 + $0x18b8] sm:$0xff]  ;;  %v5336_v51 = vpack.c.bf16 %v4410_v40, %v4408_v39  ;;  %v2035_v52 = vld [vmem:[%s6195_s15 + $0x1aa8] sm:$0xff]  ;;  %v3321_v56 = vld [vmem:[%s6195_s15 + $0x2e70] sm:$0xff]  ;;  %v3383_v8 = vadd.f32 %v3319_v55, %v3255_v60 }
 0x18a   : > { %v2037_v53 = vld [vmem:[%s6195_s15 + $0x1ab8] sm:$0xff]  ;;  %v434_v57 = vld [vmem:[%s6195_s15 + $0xa0] sm:$0xff]  ;;  %v1843_v58 = vadd.f32 %v1779_v41, %v1715_v45  ;;  %v436_v61 = vld [vmem:[%s6195_s15 + $0xb0] sm:$0xff]  ;;  %v3385_v14 = vadd.f32 %v3321_v56, %v3257_v0 }
 0x18b   : > { %v1845_v59 = vadd.f32 %v1781_v42, %v1717_v46  ;;  %v498_v62 = vld [vmem:[%s6195_s15 + $0x2a0] sm:$0xff]  ;;  %v500_v63 = vld [vmem:[%s6195_s15 + $0x2b0] sm:$0xff]  ;;  %5337 = vmatprep.subr.bf16.mxu1 %v5336_v51  ;;  %v2163_v12 = vld [vmem:[%s6195_s15 + $0x1ca8] sm:$0xff] }
 0x18c   : > { %v3447_v1 = vld [vmem:[%s6195_s15 + $0x3060] sm:$0xff]  ;;  %v562_v2 = vadd.f32 %v498_v62, %v434_v57  ;;  %v564_v3 = vadd.f32 %v500_v63, %v436_v61  ;;  %v628_v5 = vld [vmem:[%s6195_s15 + $0x4b0] sm:$0xff]  ;;  %v1971_v6 = vadd.f32 %v1907_v47, %v1843_v58  ;;  %v2165_v13 = vld [vmem:[%s6195_s15 + $0x1cb8] sm:$0xff] }
 0x18d   : > { %v626_v4 = vld [vmem:[%s6195_s15 + $0x4a0] sm:$0xff]  ;;  %v1973_v7 = vadd.f32 %v1909_v48, %v1845_v59  ;;  %v3449_v9 = vld [vmem:[%s6195_s15 + $0x3070] sm:$0xff]  ;;  %v3511_v20 = vadd.f32 %v3447_v1, %v3383_v8  ;;  %v2291_v24 = vld [vmem:[%s6195_s15 + $0x1ea8] sm:$0xff] }
 0x18e   : > { %v754_v10 = vld [vmem:[%s6195_s15 + $0x6a0] sm:$0xff]  ;;  %v756_v11 = vld [vmem:[%s6195_s15 + $0x6b0] sm:$0xff]  ;;  %v690_v16 = vadd.f32 %v626_v4, %v562_v2  ;;  %v692_v17 = vadd.f32 %v628_v5, %v564_v3  ;;  %v2099_v18 = vadd.f32 %v2035_v52, %v1971_v6  ;;  %v2293_v25 = vld [vmem:[%s6195_s15 + $0x1eb8] sm:$0xff]  ;;  %v3513_v26 = vadd.f32 %v3449_v9, %v3385_v14 }
 0x18f   : > { %v3575_v15 = vld [vmem:[%s6195_s15 + $0x3260] sm:$0xff]  ;;  %v2101_v19 = vadd.f32 %v2037_v53, %v1973_v7  ;;  %v3577_v21 = vld [vmem:[%s6195_s15 + $0x3270] sm:$0xff]  ;;  %v2492_v57 = vld [vmem:[%s6195_s15 + $0x2088] sm:$0xff] }
 0x190   : > { %v882_v22 = vld [vmem:[%s6195_s15 + $0x8a0] sm:$0xff]  ;;  %v884_v23 = vld [vmem:[%s6195_s15 + $0x8b0] sm:$0xff]  ;;  %v818_v28 = vadd.f32 %v754_v10, %v690_v16  ;;  %v820_v29 = vadd.f32 %v756_v11, %v692_v17  ;;  %v2227_v30 = vadd.f32 %v2163_v12, %v2099_v18  ;;  %v3639_v32 = vadd.f32 %v3575_v15, %v3511_v20  ;;  %v2494_v58 = vld [vmem:[%s6195_s15 + $0x2098] sm:$0xff] }
 0x191   : > { %v3703_v27 = vld [vmem:[%s6195_s15 + $0x3460] sm:$0xff]  ;;  %v2229_v31 = vadd.f32 %v2165_v13, %v2101_v19  ;;  %v3705_v33 = vld [vmem:[%s6195_s15 + $0x3470] sm:$0xff]  ;;  %v3641_v36 = vadd.f32 %v3577_v21, %v3513_v26  ;;  %v2556_v62 = vld [vmem:[%s6195_s15 + $0x2288] sm:$0xff] }
 0x192   : > { %v1010_v34 = vld [vmem:[%s6195_s15 + $0xaa0] sm:$0xff]  ;;  %v1012_v35 = vld [vmem:[%s6195_s15 + $0xab0] sm:$0xff]  ;;  %v946_v39 = vadd.f32 %v882_v22, %v818_v28  ;;  %v948_v40 = vadd.f32 %v884_v23, %v820_v29  ;;  %v2355_v41 = vadd.f32 %v2291_v24, %v2227_v30  ;;  %v3767_v43 = vadd.f32 %v3703_v27, %v3639_v32  ;;  %v2558_v63 = vld [vmem:[%s6195_s15 + $0x2298] sm:$0xff] }
 0x193   : > { %v3831_v37 = vld [vmem:[%s6195_s15 + $0x3660] sm:$0xff]  ;;  %v3833_v38 = vld [vmem:[%s6195_s15 + $0x3670] sm:$0xff]  ;;  %v2357_v42 = vadd.f32 %v2293_v25, %v2229_v31  ;;  %v3769_v47 = vadd.f32 %v3705_v33, %v3641_v36  ;;  %v2684_v0 = vld [vmem:[%s6195_s15 + $0x2488] sm:$0xff]  ;;  %v2620_v4 = vadd.f32 %v2556_v62, %v2492_v57  ;;  %v2622_v5 = vadd.f32 %v2558_v63, %v2494_v58 }
 0x194   : > { %v3959_v44 = vld [vmem:[%s6195_s15 + $0x3860] sm:$0xff]  ;;  %v1140_v46 = vld [vmem:[%s6195_s15 + $0xcb0] sm:$0xff]  ;;  %v1074_v50 = vadd.f32 %v1010_v34, %v946_v39  ;;  %v1076_v51 = vadd.f32 %v1012_v35, %v948_v40  ;;  %v3895_v54 = vadd.f32 %v3831_v37, %v3767_v43  ;;  %v2686_v6 = vld [vmem:[%s6195_s15 + $0x2498] sm:$0xff] }
 0x195   : > { %v1138_v45 = vld [vmem:[%s6195_s15 + $0xca0] sm:$0xff]  ;;  %v3961_v48 = vld [vmem:[%s6195_s15 + $0x3870] sm:$0xff]  ;;  %v5280_v53 = vpack.c.bf16 %v2357_v42, %v2355_v41  ;;  %v3897_v59 = vadd.f32 %v3833_v38, %v3769_v47  ;;  %v2812_v11 = vld [vmem:[%s6195_s15 + $0x2688] sm:$0xff]  ;;  %v2748_v17 = vadd.f32 %v2684_v0, %v2620_v4  ;;  %v2750_v18 = vadd.f32 %v2686_v6, %v2622_v5 }
 0x196   : > { %v4087_v49 = vld [vmem:[%s6195_s15 + $0x3a60] sm:$0xff]  ;;  %v4089_v55 = vld [vmem:[%s6195_s15 + $0x3a70] sm:$0xff]  ;;  %v1202_v60 = vadd.f32 %v1138_v45, %v1074_v50  ;;  %v1204_v61 = vadd.f32 %v1140_v46, %v1076_v51  ;;  %v4023_v1 = vadd.f32 %v3959_v44, %v3895_v54  ;;  %v2814_v12 = vld [vmem:[%s6195_s15 + $0x2698] sm:$0xff] }
 0x197   : > { %v1266_v52 = vld [vmem:[%s6195_s15 + $0xea0] sm:$0xff]  ;;  %v1268_v56 = vld [vmem:[%s6195_s15 + $0xeb0] sm:$0xff]  ;;  %5281 = vmatprep.subr.bf16.mxu0 %v5280_v53  ;;  %v4025_v7 = vadd.f32 %v3961_v48, %v3897_v59  ;;  %v2940_v23 = vld [vmem:[%s6195_s15 + $0x2888] sm:$0xff]  ;;  %v2876_v29 = vadd.f32 %v2812_v11, %v2748_v17  ;;  %v2878_v30 = vadd.f32 %v2814_v12, %v2750_v18 }
 0x198   : > { %v1394_v2 = vld [vmem:[%s6195_s15 + $0x10a0] sm:$0xff]  ;;  %v1396_v3 = vld [vmem:[%s6195_s15 + $0x10b0] sm:$0xff]  ;;  %v1330_v9 = vadd.f32 %v1266_v52, %v1202_v60  ;;  %v1332_v10 = vadd.f32 %v1268_v56, %v1204_v61  ;;  %v4151_v13 = vadd.f32 %v4087_v49, %v4023_v1  ;;  %v2942_v24 = vld [vmem:[%s6195_s15 + $0x2898] sm:$0xff] }
 0x199   : > { %v4215_v8 = vld [vmem:[%s6195_s15 + $0x3c60] sm:$0xff]  ;;  %v4217_v14 = vld [vmem:[%s6195_s15 + $0x3c70] sm:$0xff]  ;;  %v4153_v19 = vadd.f32 %v4089_v55, %v4025_v7  ;;  %v3068_v34 = vld [vmem:[%s6195_s15 + $0x2a88] sm:$0xff]  ;;  %v3004_v40 = vadd.f32 %v2940_v23, %v2876_v29  ;;  %v3006_v41 = vadd.f32 %v2942_v24, %v2878_v30 }
 0x19a   : > { %v1522_v15 = vld [vmem:[%s6195_s15 + $0x12a0] sm:$0xff]  ;;  %v1524_v16 = vld [vmem:[%s6195_s15 + $0x12b0] sm:$0xff]  ;;  %v1458_v21 = vadd.f32 %v1394_v2, %v1330_v9  ;;  %v1460_v22 = vadd.f32 %v1396_v3, %v1332_v10  ;;  %v4279_v25 = vadd.f32 %v4215_v8, %v4151_v13  ;;  %v3070_v35 = vld [vmem:[%s6195_s15 + $0x2a98] sm:$0xff] }
 0x19b   : > { %v4343_v20 = vld [vmem:[%s6195_s15 + $0x3e60] sm:$0xff]  ;;  %v4345_v26 = vld [vmem:[%s6195_s15 + $0x3e70] sm:$0xff]  ;;  %v4281_v31 = vadd.f32 %v4217_v14, %v4153_v19  ;;  %v3196_v46 = vld [vmem:[%s6195_s15 + $0x2c88] sm:$0xff]  ;;  %v3132_v50 = vadd.f32 %v3068_v34, %v3004_v40  ;;  %v3134_v51 = vadd.f32 %v3070_v35, %v3006_v41 }
 0x19c   : > { %v1650_v27 = vld [vmem:[%s6195_s15 + $0x14a0] sm:$0xff]  ;;  %v1652_v28 = vld [vmem:[%s6195_s15 + $0x14b0] sm:$0xff]  ;;  %v1586_v32 = vadd.f32 %v1522_v15, %v1458_v21  ;;  %v1588_v33 = vadd.f32 %v1524_v16, %v1460_v22  ;;  %v4407_v36 = vadd.f32 %v4343_v20, %v4279_v25  ;;  %v3198_v47 = vld [vmem:[%s6195_s15 + $0x2c98] sm:$0xff] }
 0x19d   : > { %v1778_v37 = vld [vmem:[%s6195_s15 + $0x16a0] sm:$0xff]  ;;  %v1780_v38 = vld [vmem:[%s6195_s15 + $0x16b0] sm:$0xff]  ;;  %v4409_v42 = vadd.f32 %v4345_v26, %v4281_v31  ;;  %v3324_v52 = vld [vmem:[%s6195_s15 + $0x2e88] sm:$0xff]  ;;  %v3260_v60 = vadd.f32 %v3196_v46, %v3132_v50  ;;  %v3262_v61 = vadd.f32 %v3198_v47, %v3134_v51 }
 0x19e   : > { %v1906_v39 = vld [vmem:[%s6195_s15 + $0x18a0] sm:$0xff]  ;;  %v1714_v43 = vadd.f32 %v1650_v27, %v1586_v32  ;;  %v1716_v44 = vadd.f32 %v1652_v28, %v1588_v33  ;;  %v1908_v45 = vld [vmem:[%s6195_s15 + $0x18b0] sm:$0xff]  ;;  %v3326_v53 = vld [vmem:[%s6195_s15 + $0x2e98] sm:$0xff] }
 0x19f   : > { %v2034_v48 = vld [vmem:[%s6195_s15 + $0x1aa0] sm:$0xff]  ;;  %v2036_v49 = vld [vmem:[%s6195_s15 + $0x1ab0] sm:$0xff]  ;;  %v5338_v54 = vpack.c.bf16 %v4409_v42, %v4407_v36  ;;  %v439_v57 = vld [vmem:[%s6195_s15 + $0xc8] sm:$0xff]  ;;  %v3388_v10 = vadd.f32 %v3324_v52, %v3260_v60  ;;  %v3390_v11 = vadd.f32 %v3326_v53, %v3262_v61 }
 0x1a0   : > { %v1842_v55 = vadd.f32 %v1778_v37, %v1714_v43  ;;  %v1844_v56 = vadd.f32 %v1780_v38, %v1716_v44  ;;  %v441_v58 = vld [vmem:[%s6195_s15 + $0xd8] sm:$0xff]  ;;  %v503_v59 = vld [vmem:[%s6195_s15 + $0x2c8] sm:$0xff]  ;;  %v2162_v8 = vld [vmem:[%s6195_s15 + $0x1ca0] sm:$0xff] }
 0x1a1   : > { %v505_v62 = vld [vmem:[%s6195_s15 + $0x2d8] sm:$0xff]  ;;  %v567_v63 = vadd.f32 %v503_v59, %v439_v57  ;;  %v631_v0 = vld [vmem:[%s6195_s15 + $0x4c8] sm:$0xff]  ;;  %5339 = vmatpush1.bf16.msra.mxu1 %v5338_v54  ;;  %v2164_v9 = vld [vmem:[%s6195_s15 + $0x1cb0] sm:$0xff] }
 0x1a2   : > { %v633_v1 = vld [vmem:[%s6195_s15 + $0x4d8] sm:$0xff]  ;;  %v1970_v2 = vadd.f32 %v1906_v39, %v1842_v55  ;;  %v1972_v3 = vadd.f32 %v1908_v45, %v1844_v56  ;;  %v3452_v4 = vld [vmem:[%s6195_s15 + $0x3088] sm:$0xff]  ;;  %v569_v6 = vadd.f32 %v505_v62, %v441_v58  ;;  %v2290_v20 = vld [vmem:[%s6195_s15 + $0x1ea0] sm:$0xff] }
 0x1a3   : > { %v3454_v5 = vld [vmem:[%s6195_s15 + $0x3098] sm:$0xff]  ;;  %v759_v7 = vld [vmem:[%s6195_s15 + $0x6c8] sm:$0xff]  ;;  %v695_v12 = vadd.f32 %v631_v0, %v567_v63  ;;  %v2292_v21 = vld [vmem:[%s6195_s15 + $0x1eb0] sm:$0xff]  ;;  %v3516_v22 = vadd.f32 %v3452_v4, %v3388_v10 }
 0x1a4   : > { %v761_v13 = vld [vmem:[%s6195_s15 + $0x6d8] sm:$0xff]  ;;  %v2098_v14 = vadd.f32 %v2034_v48, %v1970_v2  ;;  %v2100_v15 = vadd.f32 %v2036_v49, %v1972_v3  ;;  %v3580_v16 = vld [vmem:[%s6195_s15 + $0x3288] sm:$0xff]  ;;  %v697_v18 = vadd.f32 %v633_v1, %v569_v6  ;;  %v3518_v23 = vadd.f32 %v3454_v5, %v3390_v11  ;;  %v2491_v54 = vld [vmem:[%s6195_s15 + $0x2080] sm:$0xff] }
 0x1a5   : > { %v3582_v17 = vld [vmem:[%s6195_s15 + $0x3298] sm:$0xff]  ;;  %v887_v19 = vld [vmem:[%s6195_s15 + $0x8c8] sm:$0xff]  ;;  %v823_v24 = vadd.f32 %v759_v7, %v695_v12  ;;  %v3644_v32 = vadd.f32 %v3580_v16, %v3516_v22  ;;  %v2493_v58 = vld [vmem:[%s6195_s15 + $0x2090] sm:$0xff] }
 0x1a6   : > { %v889_v25 = vld [vmem:[%s6195_s15 + $0x8d8] sm:$0xff]  ;;  %v2226_v26 = vadd.f32 %v2162_v8, %v2098_v14  ;;  %v2228_v27 = vadd.f32 %v2164_v9, %v2100_v15  ;;  %v3708_v28 = vld [vmem:[%s6195_s15 + $0x3488] sm:$0xff]  ;;  %v825_v30 = vadd.f32 %v761_v13, %v697_v18  ;;  %v3646_v33 = vadd.f32 %v3582_v17, %v3518_v23  ;;  %v2555_v59 = vld [vmem:[%s6195_s15 + $0x2280] sm:$0xff] }
 0x1a7   : > { %v3710_v29 = vld [vmem:[%s6195_s15 + $0x3498] sm:$0xff]  ;;  %v1015_v31 = vld [vmem:[%s6195_s15 + $0xac8] sm:$0xff]  ;;  %v951_v34 = vadd.f32 %v887_v19, %v823_v24  ;;  %v3772_v42 = vadd.f32 %v3708_v28, %v3644_v32  ;;  %v2557_v60 = vld [vmem:[%s6195_s15 + $0x2290] sm:$0xff]  ;;  %v2619_v63 = vadd.f32 %v2555_v59, %v2491_v54 }
 0x1a8   : > { %v1017_v35 = vld [vmem:[%s6195_s15 + $0xad8] sm:$0xff]  ;;  %v2354_v36 = vadd.f32 %v2290_v20, %v2226_v26  ;;  %v2356_v37 = vadd.f32 %v2292_v21, %v2228_v27  ;;  %v3836_v38 = vld [vmem:[%s6195_s15 + $0x3688] sm:$0xff]  ;;  %v953_v40 = vadd.f32 %v889_v25, %v825_v30  ;;  %v3774_v43 = vadd.f32 %v3710_v29, %v3646_v33  ;;  %v2683_v1 = vld [vmem:[%s6195_s15 + $0x2480] sm:$0xff] }
 0x1a9   : > { %v3838_v39 = vld [vmem:[%s6195_s15 + $0x3698] sm:$0xff]  ;;  %v1143_v41 = vld [vmem:[%s6195_s15 + $0xcc8] sm:$0xff]  ;;  %v1079_v46 = vadd.f32 %v1015_v31, %v951_v34  ;;  %v3900_v55 = vadd.f32 %v3836_v38, %v3772_v42  ;;  %v2621_v0 = vadd.f32 %v2557_v60, %v2493_v58  ;;  %v2685_v2 = vld [vmem:[%s6195_s15 + $0x2490] sm:$0xff]  ;;  %v2747_v13 = vadd.f32 %v2683_v1, %v2619_v63 }
 0x1aa   : > { %v3964_v44 = vld [vmem:[%s6195_s15 + $0x3888] sm:$0xff]  ;;  %v3966_v45 = vld [vmem:[%s6195_s15 + $0x3898] sm:$0xff]  ;;  %v5282_v48 = vpack.c.bf16 %v2356_v37, %v2354_v36  ;;  %v1081_v51 = vadd.f32 %v1017_v35, %v953_v40  ;;  %v3902_v56 = vadd.f32 %v3838_v39, %v3774_v43  ;;  %v2811_v7 = vld [vmem:[%s6195_s15 + $0x2680] sm:$0xff] }
 0x1ab   : > { %v1145_v47 = vld [vmem:[%s6195_s15 + $0xcd8] sm:$0xff]  ;;  %v4092_v49 = vld [vmem:[%s6195_s15 + $0x3a88] sm:$0xff]  ;;  %v1207_v57 = vadd.f32 %v1143_v41, %v1079_v46  ;;  %v4028_v3 = vadd.f32 %v3964_v44, %v3900_v55  ;;  %v2813_v8 = vld [vmem:[%s6195_s15 + $0x2690] sm:$0xff]  ;;  %v2749_v14 = vadd.f32 %v2685_v2, %v2621_v0  ;;  %v2875_v25 = vadd.f32 %v2811_v7, %v2747_v13 }
 0x1ac   : > { %v4094_v50 = vld [vmem:[%s6195_s15 + $0x3a98] sm:$0xff]  ;;  %v1271_v52 = vld [vmem:[%s6195_s15 + $0xec8] sm:$0xff]  ;;  %5283 = vmatpush1.bf16.msra.mxu0 %v5282_v48  ;;  %v1209_v61 = vadd.f32 %v1145_v47, %v1081_v51  ;;  %v4030_v4 = vadd.f32 %v3966_v45, %v3902_v56  ;;  %v2939_v19 = vld [vmem:[%s6195_s15 + $0x2880] sm:$0xff] }
 0x1ad   : > { %v1273_v53 = vld [vmem:[%s6195_s15 + $0xed8] sm:$0xff]  ;;  %v1399_v62 = vld [vmem:[%s6195_s15 + $0x10c8] sm:$0xff]  ;;  %v1335_v5 = vadd.f32 %v1271_v52, %v1207_v57  ;;  %v4156_v15 = vadd.f32 %v4092_v49, %v4028_v3  ;;  %v2941_v20 = vld [vmem:[%s6195_s15 + $0x2890] sm:$0xff]  ;;  %v2877_v26 = vadd.f32 %v2813_v8, %v2749_v14  ;;  %v3003_v36 = vadd.f32 %v2939_v19, %v2875_v25 }
 0x1ae   : > { %v1401_v6 = vld [vmem:[%s6195_s15 + $0x10d8] sm:$0xff]  ;;  %v4220_v9 = vld [vmem:[%s6195_s15 + $0x3c88] sm:$0xff]  ;;  %v1337_v11 = vadd.f32 %v1273_v53, %v1209_v61  ;;  %v4158_v16 = vadd.f32 %v4094_v50, %v4030_v4  ;;  %v3067_v31 = vld [vmem:[%s6195_s15 + $0x2a80] sm:$0xff] }
 0x1af   : > { %v4222_v10 = vld [vmem:[%s6195_s15 + $0x3c98] sm:$0xff]  ;;  %v1527_v12 = vld [vmem:[%s6195_s15 + $0x12c8] sm:$0xff]  ;;  %v1463_v17 = vadd.f32 %v1399_v62, %v1335_v5  ;;  %v4284_v27 = vadd.f32 %v4220_v9, %v4156_v15  ;;  %v3069_v32 = vld [vmem:[%s6195_s15 + $0x2a90] sm:$0xff]  ;;  %v3005_v37 = vadd.f32 %v2941_v20, %v2877_v26  ;;  %v3131_v47 = vadd.f32 %v3067_v31, %v3003_v36 }
 0x1b0   : > { %v1529_v18 = vld [vmem:[%s6195_s15 + $0x12d8] sm:$0xff]  ;;  %v4348_v21 = vld [vmem:[%s6195_s15 + $0x3e88] sm:$0xff]  ;;  %v1465_v23 = vadd.f32 %v1401_v6, %v1337_v11  ;;  %v4286_v28 = vadd.f32 %v4222_v10, %v4158_v16  ;;  %v3195_v42 = vld [vmem:[%s6195_s15 + $0x2c80] sm:$0xff] }
 0x1b1   : > { %v4350_v22 = vld [vmem:[%s6195_s15 + $0x3e98] sm:$0xff]  ;;  %v1655_v24 = vld [vmem:[%s6195_s15 + $0x14c8] sm:$0xff]  ;;  %v1591_v29 = vadd.f32 %v1527_v12, %v1463_v17  ;;  %v4412_v38 = vadd.f32 %v4348_v21, %v4284_v27  ;;  %v3197_v43 = vld [vmem:[%s6195_s15 + $0x2c90] sm:$0xff]  ;;  %v3133_v48 = vadd.f32 %v3069_v32, %v3005_v37  ;;  %v3259_v57 = vadd.f32 %v3195_v42, %v3131_v47 }
 0x1b2   : > { %v1657_v30 = vld [vmem:[%s6195_s15 + $0x14d8] sm:$0xff]  ;;  %v1593_v33 = vadd.f32 %v1529_v18, %v1465_v23  ;;  %v1783_v34 = vld [vmem:[%s6195_s15 + $0x16c8] sm:$0xff]  ;;  %v4414_v39 = vadd.f32 %v4350_v22, %v4286_v28  ;;  %v3323_v49 = vld [vmem:[%s6195_s15 + $0x2e80] sm:$0xff] }
 0x1b3   : > { %v1785_v35 = vld [vmem:[%s6195_s15 + $0x16d8] sm:$0xff]  ;;  %v1719_v40 = vadd.f32 %v1655_v24, %v1591_v29  ;;  %v1911_v41 = vld [vmem:[%s6195_s15 + $0x18c8] sm:$0xff]  ;;  %v3325_v53 = vld [vmem:[%s6195_s15 + $0x2e90] sm:$0xff]  ;;  %v3261_v58 = vadd.f32 %v3197_v43, %v3133_v48  ;;  %v3387_v6 = vadd.f32 %v3323_v49, %v3259_v57 }
 0x1b4   : > { %v1721_v44 = vadd.f32 %v1657_v30, %v1593_v33  ;;  %v1913_v45 = vld [vmem:[%s6195_s15 + $0x18d8] sm:$0xff]  ;;  %v2039_v46 = vld [vmem:[%s6195_s15 + $0x1ac8] sm:$0xff]  ;;  %v5340_v50 = vpack.c.bf16 %v4414_v39, %v4412_v38  ;;  %v438_v54 = vld [vmem:[%s6195_s15 + $0xc0] sm:$0xff] }
 0x1b5   : > { %v1847_v51 = vadd.f32 %v1783_v34, %v1719_v40  ;;  %v2041_v52 = vld [vmem:[%s6195_s15 + $0x1ad8] sm:$0xff]  ;;  %v440_v55 = vld [vmem:[%s6195_s15 + $0xd0] sm:$0xff]  ;;  %v502_v59 = vld [vmem:[%s6195_s15 + $0x2c0] sm:$0xff]  ;;  %v3389_v7 = vadd.f32 %v3325_v53, %v3261_v58 }
 0x1b6   : > { %v1849_v56 = vadd.f32 %v1785_v35, %v1721_v44  ;;  %v504_v60 = vld [vmem:[%s6195_s15 + $0x2d0] sm:$0xff]  ;;  %v630_v61 = vld [vmem:[%s6195_s15 + $0x4c0] sm:$0xff]  ;;  %5341 = vmatprep.subr.bf16.mxu1 %v5340_v50  ;;  %v566_v1 = vadd.f32 %v502_v59, %v438_v54  ;;  %v2167_v5 = vld [vmem:[%s6195_s15 + $0x1cc8] sm:$0xff] }
 0x1b7   : > { %v1975_v62 = vadd.f32 %v1911_v41, %v1847_v51  ;;  %v3451_v63 = vld [vmem:[%s6195_s15 + $0x3080] sm:$0xff]  ;;  %v3453_v0 = vld [vmem:[%s6195_s15 + $0x3090] sm:$0xff]  ;;  %v568_v2 = vadd.f32 %v504_v60, %v440_v55  ;;  %v2169_v11 = vld [vmem:[%s6195_s15 + $0x1cd8] sm:$0xff] }
 0x1b8   : > { %v632_v3 = vld [vmem:[%s6195_s15 + $0x4d0] sm:$0xff]  ;;  %v1977_v4 = vadd.f32 %v1913_v45, %v1849_v56  ;;  %v758_v8 = vld [vmem:[%s6195_s15 + $0x6c0] sm:$0xff]  ;;  %v694_v14 = vadd.f32 %v630_v61, %v566_v1  ;;  %v2295_v17 = vld [vmem:[%s6195_s15 + $0x1ec8] sm:$0xff]  ;;  %v3515_v18 = vadd.f32 %v3451_v63, %v3387_v6  ;;  %v3517_v19 = vadd.f32 %v3453_v0, %v3389_v7 }
 0x1b9   : > { %v760_v9 = vld [vmem:[%s6195_s15 + $0x6d0] sm:$0xff]  ;;  %v2103_v10 = vadd.f32 %v2039_v46, %v1975_v62  ;;  %v3579_v12 = vld [vmem:[%s6195_s15 + $0x3280] sm:$0xff]  ;;  %v696_v15 = vadd.f32 %v632_v3, %v568_v2  ;;  %v2297_v23 = vld [vmem:[%s6195_s15 + $0x1ed8] sm:$0xff] }
 0x1ba   : > { %v3581_v13 = vld [vmem:[%s6195_s15 + $0x3290] sm:$0xff]  ;;  %v2105_v16 = vadd.f32 %v2041_v52, %v1977_v4  ;;  %v886_v20 = vld [vmem:[%s6195_s15 + $0x8c0] sm:$0xff]  ;;  %v822_v26 = vadd.f32 %v758_v8, %v694_v14  ;;  %v3643_v29 = vadd.f32 %v3579_v12, %v3515_v18  ;;  %v2496_v54 = vld [vmem:[%s6195_s15 + $0x20a8] sm:$0xff] }
 0x1bb   : > { %v888_v21 = vld [vmem:[%s6195_s15 + $0x8d0] sm:$0xff]  ;;  %v2231_v22 = vadd.f32 %v2167_v5, %v2103_v10  ;;  %v3707_v24 = vld [vmem:[%s6195_s15 + $0x3480] sm:$0xff]  ;;  %v824_v27 = vadd.f32 %v760_v9, %v696_v15  ;;  %v3645_v30 = vadd.f32 %v3581_v13, %v3517_v19  ;;  %v2498_v55 = vld [vmem:[%s6195_s15 + $0x20b8] sm:$0xff] }
 0x1bc   : > { %v3709_v25 = vld [vmem:[%s6195_s15 + $0x3490] sm:$0xff]  ;;  %v2233_v28 = vadd.f32 %v2169_v11, %v2105_v16  ;;  %v1014_v31 = vld [vmem:[%s6195_s15 + $0xac0] sm:$0xff]  ;;  %v950_v37 = vadd.f32 %v886_v20, %v822_v26  ;;  %v3771_v40 = vadd.f32 %v3707_v24, %v3643_v29  ;;  %v2560_v56 = vld [vmem:[%s6195_s15 + $0x22a8] sm:$0xff] }
 0x1bd   : > { %v1016_v32 = vld [vmem:[%s6195_s15 + $0xad0] sm:$0xff]  ;;  %v2359_v33 = vadd.f32 %v2295_v17, %v2231_v22  ;;  %v3835_v34 = vld [vmem:[%s6195_s15 + $0x3680] sm:$0xff]  ;;  %v952_v38 = vadd.f32 %v888_v21, %v824_v27  ;;  %v3773_v41 = vadd.f32 %v3709_v25, %v3645_v30  ;;  %v2562_v59 = vld [vmem:[%s6195_s15 + $0x22b8] sm:$0xff]  ;;  %v2624_v60 = vadd.f32 %v2560_v56, %v2496_v54 }
 0x1be   : > { %v3837_v35 = vld [vmem:[%s6195_s15 + $0x3690] sm:$0xff]  ;;  %v3963_v36 = vld [vmem:[%s6195_s15 + $0x3880] sm:$0xff]  ;;  %v2361_v39 = vadd.f32 %v2297_v23, %v2233_v28  ;;  %v1078_v47 = vadd.f32 %v1014_v31, %v950_v37  ;;  %v3899_v52 = vadd.f32 %v3835_v34, %v3771_v40  ;;  %v2688_v61 = vld [vmem:[%s6195_s15 + $0x24a8] sm:$0xff]  ;;  %v2626_v3 = vadd.f32 %v2562_v59, %v2498_v55 }
 0x1bf   : > { %v3965_v42 = vld [vmem:[%s6195_s15 + $0x3890] sm:$0xff]  ;;  %v1142_v43 = vld [vmem:[%s6195_s15 + $0xcc0] sm:$0xff]  ;;  %v1080_v48 = vadd.f32 %v1016_v32, %v952_v38  ;;  %v3901_v53 = vadd.f32 %v3837_v35, %v3773_v41  ;;  %v2690_v62 = vld [vmem:[%s6195_s15 + $0x24b8] sm:$0xff]  ;;  %v2752_v9 = vadd.f32 %v2688_v61, %v2624_v60 }
 0x1c0   : > { %v1144_v44 = vld [vmem:[%s6195_s15 + $0xcd0] sm:$0xff]  ;;  %v4091_v45 = vld [vmem:[%s6195_s15 + $0x3a80] sm:$0xff]  ;;  %v5284_v51 = vpack.c.bf16 %v2361_v39, %v2359_v33  ;;  %v1206_v57 = vadd.f32 %v1142_v43, %v1078_v47  ;;  %v4027_v63 = vadd.f32 %v3963_v36, %v3899_v52  ;;  %v2816_v4 = vld [vmem:[%s6195_s15 + $0x26a8] sm:$0xff]  ;;  %v2754_v15 = vadd.f32 %v2690_v62, %v2626_v3 }
 0x1c1   : > { %v4093_v46 = vld [vmem:[%s6195_s15 + $0x3a90] sm:$0xff]  ;;  %v1270_v49 = vld [vmem:[%s6195_s15 + $0xec0] sm:$0xff]  ;;  %v1208_v58 = vadd.f32 %v1144_v44, %v1080_v48  ;;  %v4029_v0 = vadd.f32 %v3965_v42, %v3901_v53  ;;  %v2818_v10 = vld [vmem:[%s6195_s15 + $0x26b8] sm:$0xff]  ;;  %v2880_v21 = vadd.f32 %v2816_v4, %v2752_v9 }
 0x1c2   : > { %v1272_v50 = vld [vmem:[%s6195_s15 + $0xed0] sm:$0xff]  ;;  %5285 = vmatprep.subr.bf16.mxu0 %v5284_v51  ;;  %v1398_v1 = vld [vmem:[%s6195_s15 + $0x10c0] sm:$0xff]  ;;  %v1334_v7 = vadd.f32 %v1270_v49, %v1206_v57  ;;  %v4155_v11 = vadd.f32 %v4091_v45, %v4027_v63  ;;  %v2944_v16 = vld [vmem:[%s6195_s15 + $0x28a8] sm:$0xff]  ;;  %v2882_v27 = vadd.f32 %v2818_v10, %v2754_v15 }
 0x1c3   : > { %v1400_v2 = vld [vmem:[%s6195_s15 + $0x10d0] sm:$0xff]  ;;  %v4219_v5 = vld [vmem:[%s6195_s15 + $0x3c80] sm:$0xff]  ;;  %v1336_v8 = vadd.f32 %v1272_v50, %v1208_v58  ;;  %v4157_v12 = vadd.f32 %v4093_v46, %v4029_v0  ;;  %v2946_v22 = vld [vmem:[%s6195_s15 + $0x28b8] sm:$0xff]  ;;  %v3008_v31 = vadd.f32 %v2944_v16, %v2880_v21 }
 0x1c4   : > { %v4221_v6 = vld [vmem:[%s6195_s15 + $0x3c90] sm:$0xff]  ;;  %v1526_v13 = vld [vmem:[%s6195_s15 + $0x12c0] sm:$0xff]  ;;  %v1462_v19 = vadd.f32 %v1398_v1, %v1334_v7  ;;  %v4283_v23 = vadd.f32 %v4219_v5, %v4155_v11  ;;  %v3072_v28 = vld [vmem:[%s6195_s15 + $0x2aa8] sm:$0xff]  ;;  %v3010_v37 = vadd.f32 %v2946_v22, %v2882_v27 }
 0x1c5   : > { %v1528_v14 = vld [vmem:[%s6195_s15 + $0x12d0] sm:$0xff]  ;;  %v4347_v17 = vld [vmem:[%s6195_s15 + $0x3e80] sm:$0xff]  ;;  %v1464_v20 = vadd.f32 %v1400_v2, %v1336_v8  ;;  %v4285_v24 = vadd.f32 %v4221_v6, %v4157_v12  ;;  %v3074_v32 = vld [vmem:[%s6195_s15 + $0x2ab8] sm:$0xff]  ;;  %v3136_v43 = vadd.f32 %v3072_v28, %v3008_v31 }
 0x1c6   : > { %v4349_v18 = vld [vmem:[%s6195_s15 + $0x3e90] sm:$0xff]  ;;  %v1654_v25 = vld [vmem:[%s6195_s15 + $0x14c0] sm:$0xff]  ;;  %v1590_v29 = vadd.f32 %v1526_v13, %v1462_v19  ;;  %v4411_v33 = vadd.f32 %v4347_v17, %v4283_v23  ;;  %v3200_v38 = vld [vmem:[%s6195_s15 + $0x2ca8] sm:$0xff]  ;;  %v3138_v48 = vadd.f32 %v3074_v32, %v3010_v37 }
 0x1c7   : > { %v1656_v26 = vld [vmem:[%s6195_s15 + $0x14d0] sm:$0xff]  ;;  %v1592_v30 = vadd.f32 %v1528_v14, %v1464_v20  ;;  %v4413_v34 = vadd.f32 %v4349_v18, %v4285_v24  ;;  %v1782_v35 = vld [vmem:[%s6195_s15 + $0x16c0] sm:$0xff]  ;;  %v3202_v44 = vld [vmem:[%s6195_s15 + $0x2cb8] sm:$0xff]  ;;  %v3264_v54 = vadd.f32 %v3200_v38, %v3136_v43 }
 0x1c8   : > { %v1784_v36 = vld [vmem:[%s6195_s15 + $0x16d0] sm:$0xff]  ;;  %v1718_v39 = vadd.f32 %v1654_v25, %v1590_v29  ;;  %v1910_v41 = vld [vmem:[%s6195_s15 + $0x18c0] sm:$0xff]  ;;  %v3328_v49 = vld [vmem:[%s6195_s15 + $0x2ea8] sm:$0xff]  ;;  %v3266_v58 = vadd.f32 %v3202_v44, %v3138_v48 }
 0x1c9   : > { %v1720_v40 = vadd.f32 %v1656_v26, %v1592_v30  ;;  %v1912_v42 = vld [vmem:[%s6195_s15 + $0x18d0] sm:$0xff]  ;;  %v5342_v45 = vpack.c.bf16 %v4413_v34, %v4411_v33  ;;  %v2038_v46 = vld [vmem:[%s6195_s15 + $0x1ac0] sm:$0xff]  ;;  %v3330_v50 = vld [vmem:[%s6195_s15 + $0x2eb8] sm:$0xff]  ;;  %v3392_v2 = vadd.f32 %v3328_v49, %v3264_v54 }
 0x1ca   : > { %v2040_v47 = vld [vmem:[%s6195_s15 + $0x1ad0] sm:$0xff]  ;;  %v443_v51 = vld [vmem:[%s6195_s15 + $0xe8] sm:$0xff]  ;;  %v1846_v52 = vadd.f32 %v1782_v35, %v1718_v39  ;;  %v445_v55 = vld [vmem:[%s6195_s15 + $0xf8] sm:$0xff]  ;;  %v3394_v8 = vadd.f32 %v3330_v50, %v3266_v58 }
 0x1cb   : > { %v1848_v53 = vadd.f32 %v1784_v36, %v1720_v40  ;;  %v507_v56 = vld [vmem:[%s6195_s15 + $0x2e8] sm:$0xff]  ;;  %v509_v57 = vld [vmem:[%s6195_s15 + $0x2f8] sm:$0xff]  ;;  %5343 = vmatpush1.bf16.msra.mxu1 %v5342_v45  ;;  %v2166_v6 = vld [vmem:[%s6195_s15 + $0x1cc0] sm:$0xff] }
 0x1cc   : > { %v3456_v59 = vld [vmem:[%s6195_s15 + $0x30a8] sm:$0xff]  ;;  %v571_v60 = vadd.f32 %v507_v56, %v443_v51  ;;  %v573_v61 = vadd.f32 %v509_v57, %v445_v55  ;;  %v637_v63 = vld [vmem:[%s6195_s15 + $0x4f8] sm:$0xff]  ;;  %v1974_v0 = vadd.f32 %v1910_v41, %v1846_v52  ;;  %v2168_v7 = vld [vmem:[%s6195_s15 + $0x1cd0] sm:$0xff] }
 0x1cd   : > { %v635_v62 = vld [vmem:[%s6195_s15 + $0x4e8] sm:$0xff]  ;;  %v1976_v1 = vadd.f32 %v1912_v42, %v1848_v53  ;;  %v3458_v3 = vld [vmem:[%s6195_s15 + $0x30b8] sm:$0xff]  ;;  %v3520_v14 = vadd.f32 %v3456_v59, %v3392_v2  ;;  %v2294_v18 = vld [vmem:[%s6195_s15 + $0x1ec0] sm:$0xff] }
 0x1ce   : > { %v763_v4 = vld [vmem:[%s6195_s15 + $0x6e8] sm:$0xff]  ;;  %v765_v5 = vld [vmem:[%s6195_s15 + $0x6f8] sm:$0xff]  ;;  %v699_v10 = vadd.f32 %v635_v62, %v571_v60  ;;  %v701_v11 = vadd.f32 %v637_v63, %v573_v61  ;;  %v2102_v12 = vadd.f32 %v2038_v46, %v1974_v0  ;;  %v2296_v19 = vld [vmem:[%s6195_s15 + $0x1ed0] sm:$0xff]  ;;  %v3522_v20 = vadd.f32 %v3458_v3, %v3394_v8 }
 0x1cf   : > { %v3584_v9 = vld [vmem:[%s6195_s15 + $0x32a8] sm:$0xff]  ;;  %v2104_v13 = vadd.f32 %v2040_v47, %v1976_v1  ;;  %v3586_v15 = vld [vmem:[%s6195_s15 + $0x32b8] sm:$0xff]  ;;  %v2495_v51 = vld [vmem:[%s6195_s15 + $0x20a0] sm:$0xff] }
 0x1d0   : > { %v891_v16 = vld [vmem:[%s6195_s15 + $0x8e8] sm:$0xff]  ;;  %v893_v17 = vld [vmem:[%s6195_s15 + $0x8f8] sm:$0xff]  ;;  %v827_v22 = vadd.f32 %v763_v4, %v699_v10  ;;  %v829_v23 = vadd.f32 %v765_v5, %v701_v11  ;;  %v2230_v24 = vadd.f32 %v2166_v6, %v2102_v12  ;;  %v3648_v26 = vadd.f32 %v3584_v9, %v3520_v14  ;;  %v2497_v52 = vld [vmem:[%s6195_s15 + $0x20b0] sm:$0xff] }
 0x1d1   : > { %v3712_v21 = vld [vmem:[%s6195_s15 + $0x34a8] sm:$0xff]  ;;  %v2232_v25 = vadd.f32 %v2168_v7, %v2104_v13  ;;  %v3714_v27 = vld [vmem:[%s6195_s15 + $0x34b8] sm:$0xff]  ;;  %v3650_v30 = vadd.f32 %v3586_v15, %v3522_v20  ;;  %v2559_v56 = vld [vmem:[%s6195_s15 + $0x22a0] sm:$0xff] }
 0x1d2   : > { %v1019_v28 = vld [vmem:[%s6195_s15 + $0xae8] sm:$0xff]  ;;  %v1021_v29 = vld [vmem:[%s6195_s15 + $0xaf8] sm:$0xff]  ;;  %v955_v33 = vadd.f32 %v891_v16, %v827_v22  ;;  %v957_v34 = vadd.f32 %v893_v17, %v829_v23  ;;  %v2358_v35 = vadd.f32 %v2294_v18, %v2230_v24  ;;  %v3776_v37 = vadd.f32 %v3712_v21, %v3648_v26  ;;  %v2561_v57 = vld [vmem:[%s6195_s15 + $0x22b0] sm:$0xff] }
 0x1d3   : > { %v3840_v31 = vld [vmem:[%s6195_s15 + $0x36a8] sm:$0xff]  ;;  %v3842_v32 = vld [vmem:[%s6195_s15 + $0x36b8] sm:$0xff]  ;;  %v2360_v36 = vadd.f32 %v2296_v19, %v2232_v25  ;;  %v3778_v41 = vadd.f32 %v3714_v27, %v3650_v30  ;;  %v2687_v58 = vld [vmem:[%s6195_s15 + $0x24a0] sm:$0xff]  ;;  %v2623_v62 = vadd.f32 %v2559_v56, %v2495_v51  ;;  %v2625_v63 = vadd.f32 %v2561_v57, %v2497_v52 }
 0x1d4   : > { %v3968_v38 = vld [vmem:[%s6195_s15 + $0x38a8] sm:$0xff]  ;;  %v1149_v40 = vld [vmem:[%s6195_s15 + $0xcf8] sm:$0xff]  ;;  %v1083_v44 = vadd.f32 %v1019_v28, %v955_v33  ;;  %v1085_v45 = vadd.f32 %v1021_v29, %v957_v34  ;;  %v3904_v48 = vadd.f32 %v3840_v31, %v3776_v37  ;;  %v2689_v0 = vld [vmem:[%s6195_s15 + $0x24b0] sm:$0xff] }
 0x1d5   : > { %v1147_v39 = vld [vmem:[%s6195_s15 + $0xce8] sm:$0xff]  ;;  %v3970_v42 = vld [vmem:[%s6195_s15 + $0x38b8] sm:$0xff]  ;;  %v5286_v47 = vpack.c.bf16 %v2360_v36, %v2358_v35  ;;  %v3906_v53 = vadd.f32 %v3842_v32, %v3778_v41  ;;  %v2815_v5 = vld [vmem:[%s6195_s15 + $0x26a0] sm:$0xff]  ;;  %v2751_v11 = vadd.f32 %v2687_v58, %v2623_v62  ;;  %v2753_v12 = vadd.f32 %v2689_v0, %v2625_v63 }
 0x1d6   : > { %v4096_v43 = vld [vmem:[%s6195_s15 + $0x3aa8] sm:$0xff]  ;;  %v4098_v49 = vld [vmem:[%s6195_s15 + $0x3ab8] sm:$0xff]  ;;  %v1211_v54 = vadd.f32 %v1147_v39, %v1083_v44  ;;  %v1213_v55 = vadd.f32 %v1149_v40, %v1085_v45  ;;  %v4032_v59 = vadd.f32 %v3968_v38, %v3904_v48  ;;  %v2817_v6 = vld [vmem:[%s6195_s15 + $0x26b0] sm:$0xff] }
 0x1d7   : > { %v1275_v46 = vld [vmem:[%s6195_s15 + $0xee8] sm:$0xff]  ;;  %v1277_v50 = vld [vmem:[%s6195_s15 + $0xef8] sm:$0xff]  ;;  %5287 = vmatpush1.bf16.msra.mxu0 %v5286_v47  ;;  %v4034_v1 = vadd.f32 %v3970_v42, %v3906_v53  ;;  %v2943_v17 = vld [vmem:[%s6195_s15 + $0x28a0] sm:$0xff]  ;;  %v2879_v23 = vadd.f32 %v2815_v5, %v2751_v11  ;;  %v2881_v24 = vadd.f32 %v2817_v6, %v2753_v12 }
 0x1d8   : > { %v1403_v60 = vld [vmem:[%s6195_s15 + $0x10e8] sm:$0xff]  ;;  %v1405_v61 = vld [vmem:[%s6195_s15 + $0x10f8] sm:$0xff]  ;;  %v1339_v3 = vadd.f32 %v1275_v46, %v1211_v54  ;;  %v1341_v4 = vadd.f32 %v1277_v50, %v1213_v55  ;;  %v4160_v7 = vadd.f32 %v4096_v43, %v4032_v59  ;;  %v2945_v18 = vld [vmem:[%s6195_s15 + $0x28b0] sm:$0xff] }
 0x1d9   : > { %v4224_v2 = vld [vmem:[%s6195_s15 + $0x3ca8] sm:$0xff]  ;;  %v4226_v8 = vld [vmem:[%s6195_s15 + $0x3cb8] sm:$0xff]  ;;  %v4162_v13 = vadd.f32 %v4098_v49, %v4034_v1  ;;  %v3071_v28 = vld [vmem:[%s6195_s15 + $0x2aa0] sm:$0xff]  ;;  %v3007_v34 = vadd.f32 %v2943_v17, %v2879_v23  ;;  %v3009_v35 = vadd.f32 %v2945_v18, %v2881_v24 }
 0x1da   : > { %v1531_v9 = vld [vmem:[%s6195_s15 + $0x12e8] sm:$0xff]  ;;  %v1533_v10 = vld [vmem:[%s6195_s15 + $0x12f8] sm:$0xff]  ;;  %v1467_v15 = vadd.f32 %v1403_v60, %v1339_v3  ;;  %v1469_v16 = vadd.f32 %v1405_v61, %v1341_v4  ;;  %v4288_v19 = vadd.f32 %v4224_v2, %v4160_v7  ;;  %v3073_v29 = vld [vmem:[%s6195_s15 + $0x2ab0] sm:$0xff] }
 0x1db   : > { %v4352_v14 = vld [vmem:[%s6195_s15 + $0x3ea8] sm:$0xff]  ;;  %v4354_v20 = vld [vmem:[%s6195_s15 + $0x3eb8] sm:$0xff]  ;;  %v4290_v25 = vadd.f32 %v4226_v8, %v4162_v13  ;;  %v3199_v40 = vld [vmem:[%s6195_s15 + $0x2ca0] sm:$0xff]  ;;  %v3135_v44 = vadd.f32 %v3071_v28, %v3007_v34  ;;  %v3137_v45 = vadd.f32 %v3073_v29, %v3009_v35 }
 0x1dc   : > { %v1659_v21 = vld [vmem:[%s6195_s15 + $0x14e8] sm:$0xff]  ;;  %v1661_v22 = vld [vmem:[%s6195_s15 + $0x14f8] sm:$0xff]  ;;  %v1595_v26 = vadd.f32 %v1531_v9, %v1467_v15  ;;  %v1597_v27 = vadd.f32 %v1533_v10, %v1469_v16  ;;  %v4416_v30 = vadd.f32 %v4352_v14, %v4288_v19  ;;  %v3201_v41 = vld [vmem:[%s6195_s15 + $0x2cb0] sm:$0xff] }
 0x1dd   : > { %v1787_v31 = vld [vmem:[%s6195_s15 + $0x16e8] sm:$0xff]  ;;  %v1789_v32 = vld [vmem:[%s6195_s15 + $0x16f8] sm:$0xff]  ;;  %v4418_v36 = vadd.f32 %v4354_v20, %v4290_v25  ;;  %v3327_v46 = vld [vmem:[%s6195_s15 + $0x2ea0] sm:$0xff]  ;;  %v3263_v54 = vadd.f32 %v3199_v40, %v3135_v44  ;;  %v3265_v55 = vadd.f32 %v3201_v41, %v3137_v45 }
 0x1de   : > { %v1915_v33 = vld [vmem:[%s6195_s15 + $0x18e8] sm:$0xff]  ;;  %v1723_v37 = vadd.f32 %v1659_v21, %v1595_v26  ;;  %v1725_v38 = vadd.f32 %v1661_v22, %v1597_v27  ;;  %v1917_v39 = vld [vmem:[%s6195_s15 + $0x18f8] sm:$0xff]  ;;  %v3329_v47 = vld [vmem:[%s6195_s15 + $0x2eb0] sm:$0xff] }
 0x1df   : > { %v2043_v42 = vld [vmem:[%s6195_s15 + $0x1ae8] sm:$0xff]  ;;  %v2045_v43 = vld [vmem:[%s6195_s15 + $0x1af8] sm:$0xff]  ;;  %v5344_v48 = vpack.c.bf16 %v4418_v36, %v4416_v30  ;;  %v442_v51 = vld [vmem:[%s6195_s15 + $0xe0] sm:$0xff]  ;;  %v3391_v4 = vadd.f32 %v3327_v46, %v3263_v54  ;;  %v3393_v5 = vadd.f32 %v3329_v47, %v3265_v55 }
 0x1e0   : > { %v1851_v49 = vadd.f32 %v1787_v31, %v1723_v37  ;;  %v1853_v50 = vadd.f32 %v1789_v32, %v1725_v38  ;;  %v444_v52 = vld [vmem:[%s6195_s15 + $0xf0] sm:$0xff]  ;;  %v506_v53 = vld [vmem:[%s6195_s15 + $0x2e0] sm:$0xff]  ;;  %v2171_v2 = vld [vmem:[%s6195_s15 + $0x1ce8] sm:$0xff] }
 0x1e1   : > { %v508_v56 = vld [vmem:[%s6195_s15 + $0x2f0] sm:$0xff]  ;;  %v570_v57 = vadd.f32 %v506_v53, %v442_v51  ;;  %v634_v58 = vld [vmem:[%s6195_s15 + $0x4e0] sm:$0xff]  ;;  %5345 = vmatprep.subr.bf16.mxu1 %v5344_v48  ;;  %v2173_v3 = vld [vmem:[%s6195_s15 + $0x1cf8] sm:$0xff] }
 0x1e2   : > { %v636_v59 = vld [vmem:[%s6195_s15 + $0x4f0] sm:$0xff]  ;;  %v1979_v60 = vadd.f32 %v1915_v33, %v1851_v49  ;;  %v1981_v61 = vadd.f32 %v1917_v39, %v1853_v50  ;;  %v3455_v62 = vld [vmem:[%s6195_s15 + $0x30a0] sm:$0xff]  ;;  %v572_v0 = vadd.f32 %v508_v56, %v444_v52  ;;  %v2299_v14 = vld [vmem:[%s6195_s15 + $0x1ee8] sm:$0xff] }
 0x1e3   : > { %v3457_v63 = vld [vmem:[%s6195_s15 + $0x30b0] sm:$0xff]  ;;  %v762_v1 = vld [vmem:[%s6195_s15 + $0x6e0] sm:$0xff]  ;;  %v698_v6 = vadd.f32 %v634_v58, %v570_v57  ;;  %v2301_v15 = vld [vmem:[%s6195_s15 + $0x1ef8] sm:$0xff]  ;;  %v3519_v16 = vadd.f32 %v3455_v62, %v3391_v4 }
 0x1e4   : > { %v764_v7 = vld [vmem:[%s6195_s15 + $0x6f0] sm:$0xff]  ;;  %v2107_v8 = vadd.f32 %v2043_v42, %v1979_v60  ;;  %v2109_v9 = vadd.f32 %v2045_v43, %v1981_v61  ;;  %v3583_v10 = vld [vmem:[%s6195_s15 + $0x32a0] sm:$0xff]  ;;  %v700_v12 = vadd.f32 %v636_v59, %v572_v0  ;;  %v3521_v17 = vadd.f32 %v3457_v63, %v3393_v5  ;;  %v2500_v48 = vld [vmem:[%s6195_s15 + $0x20c8] sm:$0xff] }
 0x1e5   : > { %v3585_v11 = vld [vmem:[%s6195_s15 + $0x32b0] sm:$0xff]  ;;  %v890_v13 = vld [vmem:[%s6195_s15 + $0x8e0] sm:$0xff]  ;;  %v826_v18 = vadd.f32 %v762_v1, %v698_v6  ;;  %v3647_v26 = vadd.f32 %v3583_v10, %v3519_v16  ;;  %v2502_v52 = vld [vmem:[%s6195_s15 + $0x20d8] sm:$0xff] }
 0x1e6   : > { %v892_v19 = vld [vmem:[%s6195_s15 + $0x8f0] sm:$0xff]  ;;  %v2235_v20 = vadd.f32 %v2171_v2, %v2107_v8  ;;  %v2237_v21 = vadd.f32 %v2173_v3, %v2109_v9  ;;  %v3711_v22 = vld [vmem:[%s6195_s15 + $0x34a0] sm:$0xff]  ;;  %v828_v24 = vadd.f32 %v764_v7, %v700_v12  ;;  %v3649_v27 = vadd.f32 %v3585_v11, %v3521_v17  ;;  %v2564_v53 = vld [vmem:[%s6195_s15 + $0x22c8] sm:$0xff] }
 0x1e7   : > { %v3713_v23 = vld [vmem:[%s6195_s15 + $0x34b0] sm:$0xff]  ;;  %v1018_v25 = vld [vmem:[%s6195_s15 + $0xae0] sm:$0xff]  ;;  %v954_v28 = vadd.f32 %v890_v13, %v826_v18  ;;  %v3775_v36 = vadd.f32 %v3711_v22, %v3647_v26  ;;  %v2566_v54 = vld [vmem:[%s6195_s15 + $0x22d8] sm:$0xff]  ;;  %v2628_v57 = vadd.f32 %v2564_v53, %v2500_v48 }
 0x1e8   : > { %v1020_v29 = vld [vmem:[%s6195_s15 + $0xaf0] sm:$0xff]  ;;  %v2363_v30 = vadd.f32 %v2299_v14, %v2235_v20  ;;  %v2365_v31 = vadd.f32 %v2301_v15, %v2237_v21  ;;  %v3839_v32 = vld [vmem:[%s6195_s15 + $0x36a0] sm:$0xff]  ;;  %v956_v34 = vadd.f32 %v892_v19, %v828_v24  ;;  %v3777_v37 = vadd.f32 %v3713_v23, %v3649_v27  ;;  %v2692_v59 = vld [vmem:[%s6195_s15 + $0x24c8] sm:$0xff] }
 0x1e9   : > { %v3841_v33 = vld [vmem:[%s6195_s15 + $0x36b0] sm:$0xff]  ;;  %v1146_v35 = vld [vmem:[%s6195_s15 + $0xce0] sm:$0xff]  ;;  %v1082_v40 = vadd.f32 %v1018_v25, %v954_v28  ;;  %v3903_v49 = vadd.f32 %v3839_v32, %v3775_v36  ;;  %v2630_v58 = vadd.f32 %v2566_v54, %v2502_v52  ;;  %v2694_v60 = vld [vmem:[%s6195_s15 + $0x24d8] sm:$0xff]  ;;  %v2756_v7 = vadd.f32 %v2692_v59, %v2628_v57 }
 0x1ea   : > { %v3967_v38 = vld [vmem:[%s6195_s15 + $0x38a0] sm:$0xff]  ;;  %v3969_v39 = vld [vmem:[%s6195_s15 + $0x38b0] sm:$0xff]  ;;  %v5288_v42 = vpack.c.bf16 %v2365_v31, %v2363_v30  ;;  %v1084_v45 = vadd.f32 %v1020_v29, %v956_v34  ;;  %v3905_v50 = vadd.f32 %v3841_v33, %v3777_v37  ;;  %v2820_v1 = vld [vmem:[%s6195_s15 + $0x26c8] sm:$0xff] }
 0x1eb   : > { %v1148_v41 = vld [vmem:[%s6195_s15 + $0xcf0] sm:$0xff]  ;;  %v4095_v43 = vld [vmem:[%s6195_s15 + $0x3aa0] sm:$0xff]  ;;  %v1210_v51 = vadd.f32 %v1146_v35, %v1082_v40  ;;  %v4031_v61 = vadd.f32 %v3967_v38, %v3903_v49  ;;  %v2822_v2 = vld [vmem:[%s6195_s15 + $0x26d8] sm:$0xff]  ;;  %v2758_v8 = vadd.f32 %v2694_v60, %v2630_v58  ;;  %v2884_v19 = vadd.f32 %v2820_v1, %v2756_v7 }
 0x1ec   : > { %v4097_v44 = vld [vmem:[%s6195_s15 + $0x3ab0] sm:$0xff]  ;;  %v1274_v46 = vld [vmem:[%s6195_s15 + $0xee0] sm:$0xff]  ;;  %5289 = vmatprep.subr.bf16.mxu0 %v5288_v42  ;;  %v1212_v55 = vadd.f32 %v1148_v41, %v1084_v45  ;;  %v4033_v62 = vadd.f32 %v3969_v39, %v3905_v50  ;;  %v2948_v13 = vld [vmem:[%s6195_s15 + $0x28c8] sm:$0xff] }
 0x1ed   : > { %v1276_v47 = vld [vmem:[%s6195_s15 + $0xef0] sm:$0xff]  ;;  %v1402_v56 = vld [vmem:[%s6195_s15 + $0x10e0] sm:$0xff]  ;;  %v1338_v63 = vadd.f32 %v1274_v46, %v1210_v51  ;;  %v4159_v9 = vadd.f32 %v4095_v43, %v4031_v61  ;;  %v2950_v14 = vld [vmem:[%s6195_s15 + $0x28d8] sm:$0xff]  ;;  %v2886_v20 = vadd.f32 %v2822_v2, %v2758_v8  ;;  %v3012_v30 = vadd.f32 %v2948_v13, %v2884_v19 }
 0x1ee   : > { %v1404_v0 = vld [vmem:[%s6195_s15 + $0x10f0] sm:$0xff]  ;;  %v4223_v3 = vld [vmem:[%s6195_s15 + $0x3ca0] sm:$0xff]  ;;  %v1340_v5 = vadd.f32 %v1276_v47, %v1212_v55  ;;  %v4161_v10 = vadd.f32 %v4097_v44, %v4033_v62  ;;  %v3076_v25 = vld [vmem:[%s6195_s15 + $0x2ac8] sm:$0xff] }
 0x1ef   : > { %v4225_v4 = vld [vmem:[%s6195_s15 + $0x3cb0] sm:$0xff]  ;;  %v1530_v6 = vld [vmem:[%s6195_s15 + $0x12e0] sm:$0xff]  ;;  %v1466_v11 = vadd.f32 %v1402_v56, %v1338_v63  ;;  %v4287_v21 = vadd.f32 %v4223_v3, %v4159_v9  ;;  %v3078_v26 = vld [vmem:[%s6195_s15 + $0x2ad8] sm:$0xff]  ;;  %v3014_v31 = vadd.f32 %v2950_v14, %v2886_v20  ;;  %v3140_v41 = vadd.f32 %v3076_v25, %v3012_v30 }
 0x1f0   : > { %v1532_v12 = vld [vmem:[%s6195_s15 + $0x12f0] sm:$0xff]  ;;  %v4351_v15 = vld [vmem:[%s6195_s15 + $0x3ea0] sm:$0xff]  ;;  %v1468_v17 = vadd.f32 %v1404_v0, %v1340_v5  ;;  %v4289_v22 = vadd.f32 %v4225_v4, %v4161_v10  ;;  %v3204_v36 = vld [vmem:[%s6195_s15 + $0x2cc8] sm:$0xff] }
 0x1f1   : > { %v4353_v16 = vld [vmem:[%s6195_s15 + $0x3eb0] sm:$0xff]  ;;  %v1658_v18 = vld [vmem:[%s6195_s15 + $0x14e0] sm:$0xff]  ;;  %v1594_v23 = vadd.f32 %v1530_v6, %v1466_v11  ;;  %v4415_v32 = vadd.f32 %v4351_v15, %v4287_v21  ;;  %v3206_v37 = vld [vmem:[%s6195_s15 + $0x2cd8] sm:$0xff]  ;;  %v3142_v42 = vadd.f32 %v3078_v26, %v3014_v31  ;;  %v3268_v51 = vadd.f32 %v3204_v36, %v3140_v41 }
 0x1f2   : > { %v1660_v24 = vld [vmem:[%s6195_s15 + $0x14f0] sm:$0xff]  ;;  %v1596_v27 = vadd.f32 %v1532_v12, %v1468_v17  ;;  %v1786_v28 = vld [vmem:[%s6195_s15 + $0x16e0] sm:$0xff]  ;;  %v4417_v33 = vadd.f32 %v4353_v16, %v4289_v22  ;;  %v3332_v43 = vld [vmem:[%s6195_s15 + $0x2ec8] sm:$0xff] }
 0x1f3   : > { %v1788_v29 = vld [vmem:[%s6195_s15 + $0x16f0] sm:$0xff]  ;;  %v1722_v34 = vadd.f32 %v1658_v18, %v1594_v23  ;;  %v1914_v35 = vld [vmem:[%s6195_s15 + $0x18e0] sm:$0xff]  ;;  %v3334_v47 = vld [vmem:[%s6195_s15 + $0x2ed8] sm:$0xff]  ;;  %v3270_v52 = vadd.f32 %v3206_v37, %v3142_v42  ;;  %v3396_v0 = vadd.f32 %v3332_v43, %v3268_v51 }
 0x1f4   : > { %v1724_v38 = vadd.f32 %v1660_v24, %v1596_v27  ;;  %v1916_v39 = vld [vmem:[%s6195_s15 + $0x18f0] sm:$0xff]  ;;  %v2042_v40 = vld [vmem:[%s6195_s15 + $0x1ae0] sm:$0xff]  ;;  %v5346_v44 = vpack.c.bf16 %v4417_v33, %v4415_v32  ;;  %v447_v48 = vld [vmem:[%s6195_s15 + $0x108] sm:$0xff] }
 0x1f5   : > { %v1850_v45 = vadd.f32 %v1786_v28, %v1722_v34  ;;  %v2044_v46 = vld [vmem:[%s6195_s15 + $0x1af0] sm:$0xff]  ;;  %v449_v49 = vld [vmem:[%s6195_s15 + $0x118] sm:$0xff]  ;;  %v511_v53 = vld [vmem:[%s6195_s15 + $0x308] sm:$0xff]  ;;  %v3398_v1 = vadd.f32 %v3334_v47, %v3270_v52 }
 0x1f6   : > { %v1852_v50 = vadd.f32 %v1788_v29, %v1724_v38  ;;  %v513_v54 = vld [vmem:[%s6195_s15 + $0x318] sm:$0xff]  ;;  %v639_v55 = vld [vmem:[%s6195_s15 + $0x508] sm:$0xff]  ;;  %5347 = vmatpush1.bf16.msra.mxu1 %v5346_v44  ;;  %v575_v59 = vadd.f32 %v511_v53, %v447_v48  ;;  %v2170_v63 = vld [vmem:[%s6195_s15 + $0x1ce0] sm:$0xff] }
 0x1f7   : > { %v1978_v56 = vadd.f32 %v1914_v35, %v1850_v45  ;;  %v3460_v57 = vld [vmem:[%s6195_s15 + $0x30c8] sm:$0xff]  ;;  %v3462_v58 = vld [vmem:[%s6195_s15 + $0x30d8] sm:$0xff]  ;;  %v577_v60 = vadd.f32 %v513_v54, %v449_v49  ;;  %v2172_v5 = vld [vmem:[%s6195_s15 + $0x1cf0] sm:$0xff] }
 0x1f8   : > { %v641_v61 = vld [vmem:[%s6195_s15 + $0x518] sm:$0xff]  ;;  %v1980_v62 = vadd.f32 %v1916_v39, %v1852_v50  ;;  %v767_v2 = vld [vmem:[%s6195_s15 + $0x708] sm:$0xff]  ;;  %v703_v8 = vadd.f32 %v639_v55, %v575_v59  ;;  %v2298_v11 = vld [vmem:[%s6195_s15 + $0x1ee0] sm:$0xff]  ;;  %v3524_v12 = vadd.f32 %v3460_v57, %v3396_v0  ;;  %v3526_v13 = vadd.f32 %v3462_v58, %v3398_v1 }
 0x1f9   : > { %v769_v3 = vld [vmem:[%s6195_s15 + $0x718] sm:$0xff]  ;;  %v2106_v4 = vadd.f32 %v2042_v40, %v1978_v56  ;;  %v3588_v6 = vld [vmem:[%s6195_s15 + $0x32c8] sm:$0xff]  ;;  %v705_v9 = vadd.f32 %v641_v61, %v577_v60  ;;  %v2300_v17 = vld [vmem:[%s6195_s15 + $0x1ef0] sm:$0xff] }
 0x1fa   : > { %v3590_v7 = vld [vmem:[%s6195_s15 + $0x32d8] sm:$0xff]  ;;  %v2108_v10 = vadd.f32 %v2044_v46, %v1980_v62  ;;  %v895_v14 = vld [vmem:[%s6195_s15 + $0x908] sm:$0xff]  ;;  %v831_v20 = vadd.f32 %v767_v2, %v703_v8  ;;  %v3652_v23 = vadd.f32 %v3588_v6, %v3524_v12  ;;  %v2499_v48 = vld [vmem:[%s6195_s15 + $0x20c0] sm:$0xff] }
 0x1fb   : > { %v897_v15 = vld [vmem:[%s6195_s15 + $0x918] sm:$0xff]  ;;  %v2234_v16 = vadd.f32 %v2170_v63, %v2106_v4  ;;  %v3716_v18 = vld [vmem:[%s6195_s15 + $0x34c8] sm:$0xff]  ;;  %v833_v21 = vadd.f32 %v769_v3, %v705_v9  ;;  %v3654_v24 = vadd.f32 %v3590_v7, %v3526_v13  ;;  %v2501_v49 = vld [vmem:[%s6195_s15 + $0x20d0] sm:$0xff] }
 0x1fc   : > { %v3718_v19 = vld [vmem:[%s6195_s15 + $0x34d8] sm:$0xff]  ;;  %v2236_v22 = vadd.f32 %v2172_v5, %v2108_v10  ;;  %v1023_v25 = vld [vmem:[%s6195_s15 + $0xb08] sm:$0xff]  ;;  %v959_v31 = vadd.f32 %v895_v14, %v831_v20  ;;  %v3780_v34 = vadd.f32 %v3716_v18, %v3652_v23  ;;  %v2563_v50 = vld [vmem:[%s6195_s15 + $0x22c0] sm:$0xff] }
 0x1fd   : > { %v1025_v26 = vld [vmem:[%s6195_s15 + $0xb18] sm:$0xff]  ;;  %v2362_v27 = vadd.f32 %v2298_v11, %v2234_v16  ;;  %v3844_v28 = vld [vmem:[%s6195_s15 + $0x36c8] sm:$0xff]  ;;  %v961_v32 = vadd.f32 %v897_v15, %v833_v21  ;;  %v3782_v35 = vadd.f32 %v3718_v19, %v3654_v24  ;;  %v2565_v53 = vld [vmem:[%s6195_s15 + $0x22d0] sm:$0xff]  ;;  %v2627_v54 = vadd.f32 %v2563_v50, %v2499_v48 }
 0x1fe   : > { %v3846_v29 = vld [vmem:[%s6195_s15 + $0x36d8] sm:$0xff]  ;;  %v3972_v30 = vld [vmem:[%s6195_s15 + $0x38c8] sm:$0xff]  ;;  %v2364_v33 = vadd.f32 %v2300_v17, %v2236_v22  ;;  %v1087_v41 = vadd.f32 %v1023_v25, %v959_v31  ;;  %v3908_v46 = vadd.f32 %v3844_v28, %v3780_v34  ;;  %v2691_v55 = vld [vmem:[%s6195_s15 + $0x24c0] sm:$0xff]  ;;  %v2629_v61 = vadd.f32 %v2565_v53, %v2501_v49 }
 0x1ff   : > { %v3974_v36 = vld [vmem:[%s6195_s15 + $0x38d8] sm:$0xff]  ;;  %v1151_v37 = vld [vmem:[%s6195_s15 + $0xd08] sm:$0xff]  ;;  %v1089_v42 = vadd.f32 %v1025_v26, %v961_v32  ;;  %v3910_v47 = vadd.f32 %v3846_v29, %v3782_v35  ;;  %v2693_v56 = vld [vmem:[%s6195_s15 + $0x24d0] sm:$0xff]  ;;  %v2755_v3 = vadd.f32 %v2691_v55, %v2627_v54 }
 0x200   : > { %v1153_v38 = vld [vmem:[%s6195_s15 + $0xd18] sm:$0xff]  ;;  %v4100_v39 = vld [vmem:[%s6195_s15 + $0x3ac8] sm:$0xff]  ;;  %v5290_v45 = vpack.c.bf16 %v2364_v33, %v2362_v27  ;;  %v1215_v51 = vadd.f32 %v1151_v37, %v1087_v41  ;;  %v4036_v57 = vadd.f32 %v3972_v30, %v3908_v46  ;;  %v2819_v62 = vld [vmem:[%s6195_s15 + $0x26c0] sm:$0xff]  ;;  %v2757_v9 = vadd.f32 %v2693_v56, %v2629_v61 }
 0x201   : > { %v4102_v40 = vld [vmem:[%s6195_s15 + $0x3ad8] sm:$0xff]  ;;  %v1279_v43 = vld [vmem:[%s6195_s15 + $0xf08] sm:$0xff]  ;;  %v1217_v52 = vadd.f32 %v1153_v38, %v1089_v42  ;;  %v4038_v58 = vadd.f32 %v3974_v36, %v3910_v47  ;;  %v2821_v4 = vld [vmem:[%s6195_s15 + $0x26d0] sm:$0xff]  ;;  %v2883_v15 = vadd.f32 %v2819_v62, %v2755_v3 }
 0x202   : > { %v1281_v44 = vld [vmem:[%s6195_s15 + $0xf18] sm:$0xff]  ;;  %5291 = vmatpush1.bf16.msra.mxu0 %v5290_v45  ;;  %v1407_v59 = vld [vmem:[%s6195_s15 + $0x1108] sm:$0xff]  ;;  %v1343_v1 = vadd.f32 %v1279_v43, %v1215_v51  ;;  %v4164_v5 = vadd.f32 %v4100_v39, %v4036_v57  ;;  %v2947_v10 = vld [vmem:[%s6195_s15 + $0x28c0] sm:$0xff]  ;;  %v2885_v21 = vadd.f32 %v2821_v4, %v2757_v9 }
 0x203   : > { %v1409_v60 = vld [vmem:[%s6195_s15 + $0x1118] sm:$0xff]  ;;  %v4228_v63 = vld [vmem:[%s6195_s15 + $0x3cc8] sm:$0xff]  ;;  %v1345_v2 = vadd.f32 %v1281_v44, %v1217_v52  ;;  %v4166_v6 = vadd.f32 %v4102_v40, %v4038_v58  ;;  %v2949_v16 = vld [vmem:[%s6195_s15 + $0x28d0] sm:$0xff]  ;;  %v3011_v25 = vadd.f32 %v2947_v10, %v2883_v15 }
 0x204   : > { %v4230_v0 = vld [vmem:[%s6195_s15 + $0x3cd8] sm:$0xff]  ;;  %v1535_v7 = vld [vmem:[%s6195_s15 + $0x1308] sm:$0xff]  ;;  %v1471_v13 = vadd.f32 %v1407_v59, %v1343_v1  ;;  %v4292_v17 = vadd.f32 %v4228_v63, %v4164_v5  ;;  %v3075_v22 = vld [vmem:[%s6195_s15 + $0x2ac0] sm:$0xff]  ;;  %v3013_v31 = vadd.f32 %v2949_v16, %v2885_v21 }
 0x205   : > { %v1537_v8 = vld [vmem:[%s6195_s15 + $0x1318] sm:$0xff]  ;;  %v4356_v11 = vld [vmem:[%s6195_s15 + $0x3ec8] sm:$0xff]  ;;  %v1473_v14 = vadd.f32 %v1409_v60, %v1345_v2  ;;  %v4294_v18 = vadd.f32 %v4230_v0, %v4166_v6  ;;  %v3077_v26 = vld [vmem:[%s6195_s15 + $0x2ad0] sm:$0xff]  ;;  %v3139_v37 = vadd.f32 %v3075_v22, %v3011_v25 }
 0x206   : > { %v4358_v12 = vld [vmem:[%s6195_s15 + $0x3ed8] sm:$0xff]  ;;  %v1663_v19 = vld [vmem:[%s6195_s15 + $0x1508] sm:$0xff]  ;;  %v1599_v23 = vadd.f32 %v1535_v7, %v1471_v13  ;;  %v4420_v27 = vadd.f32 %v4356_v11, %v4292_v17  ;;  %v3203_v32 = vld [vmem:[%s6195_s15 + $0x2cc0] sm:$0xff]  ;;  %v3141_v42 = vadd.f32 %v3077_v26, %v3013_v31 }
 0x207   : > { %v1665_v20 = vld [vmem:[%s6195_s15 + $0x1518] sm:$0xff]  ;;  %v1601_v24 = vadd.f32 %v1537_v8, %v1473_v14  ;;  %v4422_v28 = vadd.f32 %v4358_v12, %v4294_v18  ;;  %v1791_v29 = vld [vmem:[%s6195_s15 + $0x1708] sm:$0xff]  ;;  %v3205_v38 = vld [vmem:[%s6195_s15 + $0x2cd0] sm:$0xff]  ;;  %v3267_v48 = vadd.f32 %v3203_v32, %v3139_v37 }
 0x208   : > { %v1793_v30 = vld [vmem:[%s6195_s15 + $0x1718] sm:$0xff]  ;;  %v1727_v33 = vadd.f32 %v1663_v19, %v1599_v23  ;;  %v1919_v35 = vld [vmem:[%s6195_s15 + $0x1908] sm:$0xff]  ;;  %v3331_v43 = vld [vmem:[%s6195_s15 + $0x2ec0] sm:$0xff]  ;;  %v3269_v52 = vadd.f32 %v3205_v38, %v3141_v42 }
 0x209   : > { %v1729_v34 = vadd.f32 %v1665_v20, %v1601_v24  ;;  %v1921_v36 = vld [vmem:[%s6195_s15 + $0x1918] sm:$0xff]  ;;  %v5348_v39 = vpack.c.bf16 %v4422_v28, %v4420_v27  ;;  %v2047_v40 = vld [vmem:[%s6195_s15 + $0x1b08] sm:$0xff]  ;;  %v3333_v44 = vld [vmem:[%s6195_s15 + $0x2ed0] sm:$0xff]  ;;  %v3395_v60 = vadd.f32 %v3331_v43, %v3267_v48 }
 0x20a   : > { %v2049_v41 = vld [vmem:[%s6195_s15 + $0x1b18] sm:$0xff]  ;;  %v446_v45 = vld [vmem:[%s6195_s15 + $0x100] sm:$0xff]  ;;  %v1855_v46 = vadd.f32 %v1791_v29, %v1727_v33  ;;  %v448_v49 = vld [vmem:[%s6195_s15 + $0x110] sm:$0xff]  ;;  %v3397_v2 = vadd.f32 %v3333_v44, %v3269_v52 }
 0x20b   : > { %v1857_v47 = vadd.f32 %v1793_v30, %v1729_v34  ;;  %v510_v50 = vld [vmem:[%s6195_s15 + $0x300] sm:$0xff]  ;;  %v512_v51 = vld [vmem:[%s6195_s15 + $0x310] sm:$0xff]  ;;  %5349 = vmatprep.subr.bf16.mxu1 %v5348_v39  ;;  %v2175_v0 = vld [vmem:[%s6195_s15 + $0x1d08] sm:$0xff] }
 0x20c   : > { %v3459_v53 = vld [vmem:[%s6195_s15 + $0x30c0] sm:$0xff]  ;;  %v574_v54 = vadd.f32 %v510_v50, %v446_v45  ;;  %v576_v55 = vadd.f32 %v512_v51, %v448_v49  ;;  %v640_v57 = vld [vmem:[%s6195_s15 + $0x510] sm:$0xff]  ;;  %v1983_v58 = vadd.f32 %v1919_v35, %v1855_v46  ;;  %v2177_v1 = vld [vmem:[%s6195_s15 + $0x1d18] sm:$0xff] }
 0x20d   : > { %v638_v56 = vld [vmem:[%s6195_s15 + $0x500] sm:$0xff]  ;;  %v1985_v59 = vadd.f32 %v1921_v36, %v1857_v47  ;;  %v3461_v61 = vld [vmem:[%s6195_s15 + $0x30d0] sm:$0xff]  ;;  %v3523_v8 = vadd.f32 %v3459_v53, %v3395_v60  ;;  %v2303_v12 = vld [vmem:[%s6195_s15 + $0x1f08] sm:$0xff] }
 0x20e   : > { %v766_v62 = vld [vmem:[%s6195_s15 + $0x700] sm:$0xff]  ;;  %v768_v63 = vld [vmem:[%s6195_s15 + $0x710] sm:$0xff]  ;;  %v702_v4 = vadd.f32 %v638_v56, %v574_v54  ;;  %v704_v5 = vadd.f32 %v640_v57, %v576_v55  ;;  %v2111_v6 = vadd.f32 %v2047_v40, %v1983_v58  ;;  %v2305_v13 = vld [vmem:[%s6195_s15 + $0x1f18] sm:$0xff]  ;;  %v3525_v14 = vadd.f32 %v3461_v61, %v3397_v2 }
 0x20f   : > { %v3587_v3 = vld [vmem:[%s6195_s15 + $0x32c0] sm:$0xff]  ;;  %v2113_v7 = vadd.f32 %v2049_v41, %v1985_v59  ;;  %v3589_v9 = vld [vmem:[%s6195_s15 + $0x32d0] sm:$0xff]  ;;  %v2504_v45 = vld [vmem:[%s6195_s15 + $0x20e8] sm:$0xff] }
 0x210   : > { %v894_v10 = vld [vmem:[%s6195_s15 + $0x900] sm:$0xff]  ;;  %v896_v11 = vld [vmem:[%s6195_s15 + $0x910] sm:$0xff]  ;;  %v830_v16 = vadd.f32 %v766_v62, %v702_v4  ;;  %v832_v17 = vadd.f32 %v768_v63, %v704_v5  ;;  %v2239_v18 = vadd.f32 %v2175_v0, %v2111_v6  ;;  %v3651_v20 = vadd.f32 %v3587_v3, %v3523_v8  ;;  %v2506_v46 = vld [vmem:[%s6195_s15 + $0x20f8] sm:$0xff] }
 0x211   : > { %v3715_v15 = vld [vmem:[%s6195_s15 + $0x34c0] sm:$0xff]  ;;  %v2241_v19 = vadd.f32 %v2177_v1, %v2113_v7  ;;  %v3717_v21 = vld [vmem:[%s6195_s15 + $0x34d0] sm:$0xff]  ;;  %v3653_v24 = vadd.f32 %v3589_v9, %v3525_v14  ;;  %v2568_v50 = vld [vmem:[%s6195_s15 + $0x22e8] sm:$0xff] }
 0x212   : > { %v1022_v22 = vld [vmem:[%s6195_s15 + $0xb00] sm:$0xff]  ;;  %v1024_v23 = vld [vmem:[%s6195_s15 + $0xb10] sm:$0xff]  ;;  %v958_v27 = vadd.f32 %v894_v10, %v830_v16  ;;  %v960_v28 = vadd.f32 %v896_v11, %v832_v17  ;;  %v2367_v29 = vadd.f32 %v2303_v12, %v2239_v18  ;;  %v3779_v31 = vadd.f32 %v3715_v15, %v3651_v20  ;;  %v2570_v51 = vld [vmem:[%s6195_s15 + $0x22f8] sm:$0xff] }
 0x213   : > { %v3843_v25 = vld [vmem:[%s6195_s15 + $0x36c0] sm:$0xff]  ;;  %v3845_v26 = vld [vmem:[%s6195_s15 + $0x36d0] sm:$0xff]  ;;  %v2369_v30 = vadd.f32 %v2305_v13, %v2241_v19  ;;  %v3781_v35 = vadd.f32 %v3717_v21, %v3653_v24  ;;  %v2696_v52 = vld [vmem:[%s6195_s15 + $0x24e8] sm:$0xff]  ;;  %v2632_v56 = vadd.f32 %v2568_v50, %v2504_v45  ;;  %v2634_v57 = vadd.f32 %v2570_v51, %v2506_v46 }
 0x214   : > { %v3971_v32 = vld [vmem:[%s6195_s15 + $0x38c0] sm:$0xff]  ;;  %v1152_v34 = vld [vmem:[%s6195_s15 + $0xd10] sm:$0xff]  ;;  %v1086_v38 = vadd.f32 %v1022_v22, %v958_v27  ;;  %v1088_v39 = vadd.f32 %v1024_v23, %v960_v28  ;;  %v3907_v42 = vadd.f32 %v3843_v25, %v3779_v31  ;;  %v2698_v58 = vld [vmem:[%s6195_s15 + $0x24f8] sm:$0xff] }
 0x215   : > { %v1150_v33 = vld [vmem:[%s6195_s15 + $0xd00] sm:$0xff]  ;;  %v3973_v36 = vld [vmem:[%s6195_s15 + $0x38d0] sm:$0xff]  ;;  %v5292_v41 = vpack.c.bf16 %v2369_v30, %v2367_v29  ;;  %v3909_v47 = vadd.f32 %v3845_v26, %v3781_v35  ;;  %v2824_v63 = vld [vmem:[%s6195_s15 + $0x26e8] sm:$0xff]  ;;  %v2760_v5 = vadd.f32 %v2696_v52, %v2632_v56  ;;  %v2762_v6 = vadd.f32 %v2698_v58, %v2634_v57 }
 0x216   : > { %v4099_v37 = vld [vmem:[%s6195_s15 + $0x3ac0] sm:$0xff]  ;;  %v4101_v43 = vld [vmem:[%s6195_s15 + $0x3ad0] sm:$0xff]  ;;  %v1214_v48 = vadd.f32 %v1150_v33, %v1086_v38  ;;  %v1216_v49 = vadd.f32 %v1152_v34, %v1088_v39  ;;  %v4035_v53 = vadd.f32 %v3971_v32, %v3907_v42  ;;  %v2826_v0 = vld [vmem:[%s6195_s15 + $0x26f8] sm:$0xff] }
 0x217   : > { %v1278_v40 = vld [vmem:[%s6195_s15 + $0xf00] sm:$0xff]  ;;  %v1280_v44 = vld [vmem:[%s6195_s15 + $0xf10] sm:$0xff]  ;;  %5293 = vmatprep.subr.bf16.mxu0 %v5292_v41  ;;  %v4037_v59 = vadd.f32 %v3973_v36, %v3909_v47  ;;  %v2952_v11 = vld [vmem:[%s6195_s15 + $0x28e8] sm:$0xff]  ;;  %v2888_v17 = vadd.f32 %v2824_v63, %v2760_v5  ;;  %v2890_v18 = vadd.f32 %v2826_v0, %v2762_v6 }
 0x218   : > { %v1406_v54 = vld [vmem:[%s6195_s15 + $0x1100] sm:$0xff]  ;;  %v1408_v55 = vld [vmem:[%s6195_s15 + $0x1110] sm:$0xff]  ;;  %v1342_v61 = vadd.f32 %v1278_v40, %v1214_v48  ;;  %v1344_v62 = vadd.f32 %v1280_v44, %v1216_v49  ;;  %v4163_v1 = vadd.f32 %v4099_v37, %v4035_v53  ;;  %v2954_v12 = vld [vmem:[%s6195_s15 + $0x28f8] sm:$0xff] }
 0x219   : > { %v4227_v60 = vld [vmem:[%s6195_s15 + $0x3cc0] sm:$0xff]  ;;  %v4229_v2 = vld [vmem:[%s6195_s15 + $0x3cd0] sm:$0xff]  ;;  %v4165_v7 = vadd.f32 %v4101_v43, %v4037_v59  ;;  %v3080_v22 = vld [vmem:[%s6195_s15 + $0x2ae8] sm:$0xff]  ;;  %v3016_v28 = vadd.f32 %v2952_v11, %v2888_v17  ;;  %v3018_v29 = vadd.f32 %v2954_v12, %v2890_v18 }
 0x21a   : > { %v1534_v3 = vld [vmem:[%s6195_s15 + $0x1300] sm:$0xff]  ;;  %v1536_v4 = vld [vmem:[%s6195_s15 + $0x1310] sm:$0xff]  ;;  %v1470_v9 = vadd.f32 %v1406_v54, %v1342_v61  ;;  %v1472_v10 = vadd.f32 %v1408_v55, %v1344_v62  ;;  %v4291_v13 = vadd.f32 %v4227_v60, %v4163_v1  ;;  %v3082_v23 = vld [vmem:[%s6195_s15 + $0x2af8] sm:$0xff] }
 0x21b   : > { %v4355_v8 = vld [vmem:[%s6195_s15 + $0x3ec0] sm:$0xff]  ;;  %v4357_v14 = vld [vmem:[%s6195_s15 + $0x3ed0] sm:$0xff]  ;;  %v4293_v19 = vadd.f32 %v4229_v2, %v4165_v7  ;;  %v3208_v34 = vld [vmem:[%s6195_s15 + $0x2ce8] sm:$0xff]  ;;  %v3144_v38 = vadd.f32 %v3080_v22, %v3016_v28  ;;  %v3146_v39 = vadd.f32 %v3082_v23, %v3018_v29 }
 0x21c   : > { %v1662_v15 = vld [vmem:[%s6195_s15 + $0x1500] sm:$0xff]  ;;  %v1664_v16 = vld [vmem:[%s6195_s15 + $0x1510] sm:$0xff]  ;;  %v1598_v20 = vadd.f32 %v1534_v3, %v1470_v9  ;;  %v1600_v21 = vadd.f32 %v1536_v4, %v1472_v10  ;;  %v4419_v24 = vadd.f32 %v4355_v8, %v4291_v13  ;;  %v3210_v35 = vld [vmem:[%s6195_s15 + $0x2cf8] sm:$0xff] }
 0x21d   : > { %v1790_v25 = vld [vmem:[%s6195_s15 + $0x1700] sm:$0xff]  ;;  %v1792_v26 = vld [vmem:[%s6195_s15 + $0x1710] sm:$0xff]  ;;  %v4421_v30 = vadd.f32 %v4357_v14, %v4293_v19  ;;  %v3336_v40 = vld [vmem:[%s6195_s15 + $0x2ee8] sm:$0xff]  ;;  %v3272_v48 = vadd.f32 %v3208_v34, %v3144_v38  ;;  %v3274_v49 = vadd.f32 %v3210_v35, %v3146_v39 }
 0x21e   : > { %v1918_v27 = vld [vmem:[%s6195_s15 + $0x1900] sm:$0xff]  ;;  %v1726_v31 = vadd.f32 %v1662_v15, %v1598_v20  ;;  %v1728_v32 = vadd.f32 %v1664_v16, %v1600_v21  ;;  %v1920_v33 = vld [vmem:[%s6195_s15 + $0x1910] sm:$0xff]  ;;  %v3338_v41 = vld [vmem:[%s6195_s15 + $0x2ef8] sm:$0xff] }
 0x21f   : > { %v2046_v36 = vld [vmem:[%s6195_s15 + $0x1b00] sm:$0xff]  ;;  %v2048_v37 = vld [vmem:[%s6195_s15 + $0x1b10] sm:$0xff]  ;;  %v5350_v42 = vpack.c.bf16 %v4421_v30, %v4419_v24  ;;  %v451_v45 = vld [vmem:[%s6195_s15 + $0x128] sm:$0xff]  ;;  %v3400_v62 = vadd.f32 %v3336_v40, %v3272_v48  ;;  %v3402_v63 = vadd.f32 %v3338_v41, %v3274_v49 }
 0x220   : > { %v1854_v43 = vadd.f32 %v1790_v25, %v1726_v31  ;;  %v1856_v44 = vadd.f32 %v1792_v26, %v1728_v32  ;;  %v453_v46 = vld [vmem:[%s6195_s15 + $0x138] sm:$0xff]  ;;  %v515_v47 = vld [vmem:[%s6195_s15 + $0x328] sm:$0xff]  ;;  %v2174_v60 = vld [vmem:[%s6195_s15 + $0x1d00] sm:$0xff] }
 0x221   : > { %v517_v50 = vld [vmem:[%s6195_s15 + $0x338] sm:$0xff]  ;;  %v579_v51 = vadd.f32 %v515_v47, %v451_v45  ;;  %v643_v52 = vld [vmem:[%s6195_s15 + $0x528] sm:$0xff]  ;;  %5351 = vmatpush1.bf16.msra.mxu1 %v5350_v42  ;;  %v2176_v61 = vld [vmem:[%s6195_s15 + $0x1d10] sm:$0xff] }
 0x222   : > { %v645_v53 = vld [vmem:[%s6195_s15 + $0x538] sm:$0xff]  ;;  %v1982_v54 = vadd.f32 %v1918_v27, %v1854_v43  ;;  %v1984_v55 = vadd.f32 %v1920_v33, %v1856_v44  ;;  %v3464_v56 = vld [vmem:[%s6195_s15 + $0x30e8] sm:$0xff]  ;;  %v581_v58 = vadd.f32 %v517_v50, %v453_v46  ;;  %v2302_v8 = vld [vmem:[%s6195_s15 + $0x1f00] sm:$0xff] }
 0x223   : > { %v3466_v57 = vld [vmem:[%s6195_s15 + $0x30f8] sm:$0xff]  ;;  %v771_v59 = vld [vmem:[%s6195_s15 + $0x728] sm:$0xff]  ;;  %v707_v0 = vadd.f32 %v643_v52, %v579_v51  ;;  %v2304_v9 = vld [vmem:[%s6195_s15 + $0x1f10] sm:$0xff]  ;;  %v3528_v10 = vadd.f32 %v3464_v56, %v3400_v62 }
 0x224   : > { %v773_v1 = vld [vmem:[%s6195_s15 + $0x738] sm:$0xff]  ;;  %v2110_v2 = vadd.f32 %v2046_v36, %v1982_v54  ;;  %v2112_v3 = vadd.f32 %v2048_v37, %v1984_v55  ;;  %v3592_v4 = vld [vmem:[%s6195_s15 + $0x32e8] sm:$0xff]  ;;  %v709_v6 = vadd.f32 %v645_v53, %v581_v58  ;;  %v3530_v11 = vadd.f32 %v3466_v57, %v3402_v63  ;;  %v2503_v42 = vld [vmem:[%s6195_s15 + $0x20e0] sm:$0xff] }
 0x225   : > { %v3594_v5 = vld [vmem:[%s6195_s15 + $0x32f8] sm:$0xff]  ;;  %v899_v7 = vld [vmem:[%s6195_s15 + $0x928] sm:$0xff]  ;;  %v835_v12 = vadd.f32 %v771_v59, %v707_v0  ;;  %v3656_v20 = vadd.f32 %v3592_v4, %v3528_v10  ;;  %v2505_v46 = vld [vmem:[%s6195_s15 + $0x20f0] sm:$0xff] }
 0x226   : > { %v901_v13 = vld [vmem:[%s6195_s15 + $0x938] sm:$0xff]  ;;  %v2238_v14 = vadd.f32 %v2174_v60, %v2110_v2  ;;  %v2240_v15 = vadd.f32 %v2176_v61, %v2112_v3  ;;  %v3720_v16 = vld [vmem:[%s6195_s15 + $0x34e8] sm:$0xff]  ;;  %v837_v18 = vadd.f32 %v773_v1, %v709_v6  ;;  %v3658_v21 = vadd.f32 %v3594_v5, %v3530_v11  ;;  %v2567_v47 = vld [vmem:[%s6195_s15 + $0x22e0] sm:$0xff] }
 0x227   : > { %v3722_v17 = vld [vmem:[%s6195_s15 + $0x34f8] sm:$0xff]  ;;  %v1027_v19 = vld [vmem:[%s6195_s15 + $0xb28] sm:$0xff]  ;;  %v963_v22 = vadd.f32 %v899_v7, %v835_v12  ;;  %v3784_v30 = vadd.f32 %v3720_v16, %v3656_v20  ;;  %v2569_v48 = vld [vmem:[%s6195_s15 + $0x22f0] sm:$0xff]  ;;  %v2631_v51 = vadd.f32 %v2567_v47, %v2503_v42 }
 0x228   : > { %v1029_v23 = vld [vmem:[%s6195_s15 + $0xb38] sm:$0xff]  ;;  %v2366_v24 = vadd.f32 %v2302_v8, %v2238_v14  ;;  %v2368_v25 = vadd.f32 %v2304_v9, %v2240_v15  ;;  %v3848_v26 = vld [vmem:[%s6195_s15 + $0x36e8] sm:$0xff]  ;;  %v965_v28 = vadd.f32 %v901_v13, %v837_v18  ;;  %v3786_v31 = vadd.f32 %v3722_v17, %v3658_v21  ;;  %v2695_v53 = vld [vmem:[%s6195_s15 + $0x24e0] sm:$0xff] }
 0x229   : > { %v3850_v27 = vld [vmem:[%s6195_s15 + $0x36f8] sm:$0xff]  ;;  %v1155_v29 = vld [vmem:[%s6195_s15 + $0xd28] sm:$0xff]  ;;  %v1091_v34 = vadd.f32 %v1027_v19, %v963_v22  ;;  %v3912_v43 = vadd.f32 %v3848_v26, %v3784_v30  ;;  %v2633_v52 = vadd.f32 %v2569_v48, %v2505_v46  ;;  %v2697_v54 = vld [vmem:[%s6195_s15 + $0x24f0] sm:$0xff]  ;;  %v2759_v1 = vadd.f32 %v2695_v53, %v2631_v51 }
 0x22a   : > { %v3976_v32 = vld [vmem:[%s6195_s15 + $0x38e8] sm:$0xff]  ;;  %v3978_v33 = vld [vmem:[%s6195_s15 + $0x38f8] sm:$0xff]  ;;  %v5294_v36 = vpack.c.bf16 %v2368_v25, %v2366_v24  ;;  %v1093_v39 = vadd.f32 %v1029_v23, %v965_v28  ;;  %v3914_v44 = vadd.f32 %v3850_v27, %v3786_v31  ;;  %v2823_v59 = vld [vmem:[%s6195_s15 + $0x26e0] sm:$0xff] }
 0x22b   : > { %v1157_v35 = vld [vmem:[%s6195_s15 + $0xd38] sm:$0xff]  ;;  %v4104_v37 = vld [vmem:[%s6195_s15 + $0x3ae8] sm:$0xff]  ;;  %v1219_v45 = vadd.f32 %v1155_v29, %v1091_v34  ;;  %v4040_v55 = vadd.f32 %v3976_v32, %v3912_v43  ;;  %v2825_v60 = vld [vmem:[%s6195_s15 + $0x26f0] sm:$0xff]  ;;  %v2761_v2 = vadd.f32 %v2697_v54, %v2633_v52  ;;  %v2887_v13 = vadd.f32 %v2823_v59, %v2759_v1 }
 0x22c   : > { %v4106_v38 = vld [vmem:[%s6195_s15 + $0x3af8] sm:$0xff]  ;;  %v1283_v40 = vld [vmem:[%s6195_s15 + $0xf28] sm:$0xff]  ;;  %5295 = vmatpush1.bf16.msra.mxu0 %v5294_v36  ;;  %v1221_v49 = vadd.f32 %v1157_v35, %v1093_v39  ;;  %v4042_v56 = vadd.f32 %v3978_v33, %v3914_v44  ;;  %v2951_v7 = vld [vmem:[%s6195_s15 + $0x28e0] sm:$0xff] }
 0x22d   : > { %v1285_v41 = vld [vmem:[%s6195_s15 + $0xf38] sm:$0xff]  ;;  %v1411_v50 = vld [vmem:[%s6195_s15 + $0x1128] sm:$0xff]  ;;  %v1347_v57 = vadd.f32 %v1283_v40, %v1219_v45  ;;  %v4168_v3 = vadd.f32 %v4104_v37, %v4040_v55  ;;  %v2953_v8 = vld [vmem:[%s6195_s15 + $0x28f0] sm:$0xff]  ;;  %v2889_v14 = vadd.f32 %v2825_v60, %v2761_v2  ;;  %v3015_v24 = vadd.f32 %v2951_v7, %v2887_v13 }
 0x22e   : > { %v1413_v58 = vld [vmem:[%s6195_s15 + $0x1138] sm:$0xff]  ;;  %v4232_v61 = vld [vmem:[%s6195_s15 + $0x3ce8] sm:$0xff]  ;;  %v1349_v63 = vadd.f32 %v1285_v41, %v1221_v49  ;;  %v4170_v4 = vadd.f32 %v4106_v38, %v4042_v56  ;;  %v3079_v19 = vld [vmem:[%s6195_s15 + $0x2ae0] sm:$0xff] }
 0x22f   : > { %v4234_v62 = vld [vmem:[%s6195_s15 + $0x3cf8] sm:$0xff]  ;;  %v1539_v0 = vld [vmem:[%s6195_s15 + $0x1328] sm:$0xff]  ;;  %v1475_v5 = vadd.f32 %v1411_v50, %v1347_v57  ;;  %v4296_v15 = vadd.f32 %v4232_v61, %v4168_v3  ;;  %v3081_v20 = vld [vmem:[%s6195_s15 + $0x2af0] sm:$0xff]  ;;  %v3017_v25 = vadd.f32 %v2953_v8, %v2889_v14  ;;  %v3143_v35 = vadd.f32 %v3079_v19, %v3015_v24 }
 0x230   : > { %v1541_v6 = vld [vmem:[%s6195_s15 + $0x1338] sm:$0xff]  ;;  %v4360_v9 = vld [vmem:[%s6195_s15 + $0x3ee8] sm:$0xff]  ;;  %v1477_v11 = vadd.f32 %v1413_v58, %v1349_v63  ;;  %v4298_v16 = vadd.f32 %v4234_v62, %v4170_v4  ;;  %v3207_v30 = vld [vmem:[%s6195_s15 + $0x2ce0] sm:$0xff] }
 0x231   : > { %v4362_v10 = vld [vmem:[%s6195_s15 + $0x3ef8] sm:$0xff]  ;;  %v1667_v12 = vld [vmem:[%s6195_s15 + $0x1528] sm:$0xff]  ;;  %v1603_v17 = vadd.f32 %v1539_v0, %v1475_v5  ;;  %v4424_v26 = vadd.f32 %v4360_v9, %v4296_v15  ;;  %v3209_v31 = vld [vmem:[%s6195_s15 + $0x2cf0] sm:$0xff]  ;;  %v3145_v36 = vadd.f32 %v3081_v20, %v3017_v25  ;;  %v3271_v45 = vadd.f32 %v3207_v30, %v3143_v35 }
 0x232   : > { %v1669_v18 = vld [vmem:[%s6195_s15 + $0x1538] sm:$0xff]  ;;  %v1605_v21 = vadd.f32 %v1541_v6, %v1477_v11  ;;  %v1795_v22 = vld [vmem:[%s6195_s15 + $0x1728] sm:$0xff]  ;;  %v4426_v27 = vadd.f32 %v4362_v10, %v4298_v16  ;;  %v3335_v37 = vld [vmem:[%s6195_s15 + $0x2ee0] sm:$0xff] }
 0x233   : > { %v1797_v23 = vld [vmem:[%s6195_s15 + $0x1738] sm:$0xff]  ;;  %v1731_v28 = vadd.f32 %v1667_v12, %v1603_v17  ;;  %v1923_v29 = vld [vmem:[%s6195_s15 + $0x1928] sm:$0xff]  ;;  %v3337_v41 = vld [vmem:[%s6195_s15 + $0x2ef0] sm:$0xff]  ;;  %v3273_v46 = vadd.f32 %v3209_v31, %v3145_v36  ;;  %v3399_v58 = vadd.f32 %v3335_v37, %v3271_v45 }
 0x234   : > { %v1733_v32 = vadd.f32 %v1669_v18, %v1605_v21  ;;  %v1925_v33 = vld [vmem:[%s6195_s15 + $0x1938] sm:$0xff]  ;;  %v2051_v34 = vld [vmem:[%s6195_s15 + $0x1b28] sm:$0xff]  ;;  %v5352_v38 = vpack.c.bf16 %v4426_v27, %v4424_v26  ;;  %v450_v42 = vld [vmem:[%s6195_s15 + $0x120] sm:$0xff] }
 0x235   : > { %v1859_v39 = vadd.f32 %v1795_v22, %v1731_v28  ;;  %v2053_v40 = vld [vmem:[%s6195_s15 + $0x1b38] sm:$0xff]  ;;  %v452_v43 = vld [vmem:[%s6195_s15 + $0x130] sm:$0xff]  ;;  %v514_v47 = vld [vmem:[%s6195_s15 + $0x320] sm:$0xff]  ;;  %v3401_v59 = vadd.f32 %v3337_v41, %v3273_v46 }
 0x236   : > { %v1861_v44 = vadd.f32 %v1797_v23, %v1733_v32  ;;  %v516_v48 = vld [vmem:[%s6195_s15 + $0x330] sm:$0xff]  ;;  %v642_v49 = vld [vmem:[%s6195_s15 + $0x520] sm:$0xff]  ;;  %5353 = vmatprep.subr.bf16.mxu1 %v5352_v38  ;;  %v578_v53 = vadd.f32 %v514_v47, %v450_v42  ;;  %v2179_v57 = vld [vmem:[%s6195_s15 + $0x1d28] sm:$0xff] }
 0x237   : > { %v1987_v50 = vadd.f32 %v1923_v29, %v1859_v39  ;;  %v3463_v51 = vld [vmem:[%s6195_s15 + $0x30e0] sm:$0xff]  ;;  %v3465_v52 = vld [vmem:[%s6195_s15 + $0x30f0] sm:$0xff]  ;;  %v580_v54 = vadd.f32 %v516_v48, %v452_v43  ;;  %v2181_v63 = vld [vmem:[%s6195_s15 + $0x1d38] sm:$0xff] }
 0x238   : > { %v644_v55 = vld [vmem:[%s6195_s15 + $0x530] sm:$0xff]  ;;  %v1989_v56 = vadd.f32 %v1925_v33, %v1861_v44  ;;  %v770_v60 = vld [vmem:[%s6195_s15 + $0x720] sm:$0xff]  ;;  %v706_v2 = vadd.f32 %v642_v49, %v578_v53  ;;  %v2307_v5 = vld [vmem:[%s6195_s15 + $0x1f28] sm:$0xff]  ;;  %v3527_v6 = vadd.f32 %v3463_v51, %v3399_v58  ;;  %v3529_v7 = vadd.f32 %v3465_v52, %v3401_v59 }
 0x239   : > { %v772_v61 = vld [vmem:[%s6195_s15 + $0x730] sm:$0xff]  ;;  %v2115_v62 = vadd.f32 %v2051_v34, %v1987_v50  ;;  %v3591_v0 = vld [vmem:[%s6195_s15 + $0x32e0] sm:$0xff]  ;;  %v708_v3 = vadd.f32 %v644_v55, %v580_v54  ;;  %v2309_v11 = vld [vmem:[%s6195_s15 + $0x1f38] sm:$0xff] }
 0x23a   : > { %v3593_v1 = vld [vmem:[%s6195_s15 + $0x32f0] sm:$0xff]  ;;  %v2117_v4 = vadd.f32 %v2053_v40, %v1989_v56  ;;  %v898_v8 = vld [vmem:[%s6195_s15 + $0x920] sm:$0xff]  ;;  %v834_v14 = vadd.f32 %v770_v60, %v706_v2  ;;  %v3655_v17 = vadd.f32 %v3591_v0, %v3527_v6  ;;  %v2508_v42 = vld [vmem:[%s6195_s15 + $0x2108] sm:$0xff] }
 0x23b   : > { %v900_v9 = vld [vmem:[%s6195_s15 + $0x930] sm:$0xff]  ;;  %v2243_v10 = vadd.f32 %v2179_v57, %v2115_v62  ;;  %v3719_v12 = vld [vmem:[%s6195_s15 + $0x34e0] sm:$0xff]  ;;  %v836_v15 = vadd.f32 %v772_v61, %v708_v3  ;;  %v3657_v18 = vadd.f32 %v3593_v1, %v3529_v7  ;;  %v2510_v43 = vld [vmem:[%s6195_s15 + $0x2118] sm:$0xff] }
 0x23c   : > { %v3721_v13 = vld [vmem:[%s6195_s15 + $0x34f0] sm:$0xff]  ;;  %v2245_v16 = vadd.f32 %v2181_v63, %v2117_v4  ;;  %v1026_v19 = vld [vmem:[%s6195_s15 + $0xb20] sm:$0xff]  ;;  %v962_v25 = vadd.f32 %v898_v8, %v834_v14  ;;  %v3783_v28 = vadd.f32 %v3719_v12, %v3655_v17  ;;  %v2572_v44 = vld [vmem:[%s6195_s15 + $0x2308] sm:$0xff] }
 0x23d   : > { %v1028_v20 = vld [vmem:[%s6195_s15 + $0xb30] sm:$0xff]  ;;  %v2371_v21 = vadd.f32 %v2307_v5, %v2243_v10  ;;  %v3847_v22 = vld [vmem:[%s6195_s15 + $0x36e0] sm:$0xff]  ;;  %v964_v26 = vadd.f32 %v900_v9, %v836_v15  ;;  %v3785_v29 = vadd.f32 %v3721_v13, %v3657_v18  ;;  %v2574_v47 = vld [vmem:[%s6195_s15 + $0x2318] sm:$0xff]  ;;  %v2636_v48 = vadd.f32 %v2572_v44, %v2508_v42 }
 0x23e   : > { %v3849_v23 = vld [vmem:[%s6195_s15 + $0x36f0] sm:$0xff]  ;;  %v3975_v24 = vld [vmem:[%s6195_s15 + $0x38e0] sm:$0xff]  ;;  %v2373_v27 = vadd.f32 %v2309_v11, %v2245_v16  ;;  %v1090_v35 = vadd.f32 %v1026_v19, %v962_v25  ;;  %v3911_v40 = vadd.f32 %v3847_v22, %v3783_v28  ;;  %v2700_v49 = vld [vmem:[%s6195_s15 + $0x2508] sm:$0xff]  ;;  %v2638_v55 = vadd.f32 %v2574_v47, %v2510_v43 }
 0x23f   : > { %v3977_v30 = vld [vmem:[%s6195_s15 + $0x38f0] sm:$0xff]  ;;  %v1154_v31 = vld [vmem:[%s6195_s15 + $0xd20] sm:$0xff]  ;;  %v1092_v36 = vadd.f32 %v1028_v20, %v964_v26  ;;  %v3913_v41 = vadd.f32 %v3849_v23, %v3785_v29  ;;  %v2702_v50 = vld [vmem:[%s6195_s15 + $0x2518] sm:$0xff]  ;;  %v2764_v61 = vadd.f32 %v2700_v49, %v2636_v48 }
 0x240   : > { %v1156_v32 = vld [vmem:[%s6195_s15 + $0xd30] sm:$0xff]  ;;  %v4103_v33 = vld [vmem:[%s6195_s15 + $0x3ae0] sm:$0xff]  ;;  %v5296_v39 = vpack.c.bf16 %v2373_v27, %v2371_v21  ;;  %v1218_v45 = vadd.f32 %v1154_v31, %v1090_v35  ;;  %v4039_v51 = vadd.f32 %v3975_v24, %v3911_v40  ;;  %v2828_v56 = vld [vmem:[%s6195_s15 + $0x2708] sm:$0xff]  ;;  %v2766_v3 = vadd.f32 %v2702_v50, %v2638_v55 }
 0x241   : > { %v4105_v34 = vld [vmem:[%s6195_s15 + $0x3af0] sm:$0xff]  ;;  %v1282_v37 = vld [vmem:[%s6195_s15 + $0xf20] sm:$0xff]  ;;  %v1220_v46 = vadd.f32 %v1156_v32, %v1092_v36  ;;  %v4041_v52 = vadd.f32 %v3977_v30, %v3913_v41  ;;  %v2830_v62 = vld [vmem:[%s6195_s15 + $0x2718] sm:$0xff]  ;;  %v2892_v9 = vadd.f32 %v2828_v56, %v2764_v61 }
 0x242   : > { %v1284_v38 = vld [vmem:[%s6195_s15 + $0xf30] sm:$0xff]  ;;  %5297 = vmatprep.subr.bf16.mxu0 %v5296_v39  ;;  %v1410_v53 = vld [vmem:[%s6195_s15 + $0x1120] sm:$0xff]  ;;  %v1346_v59 = vadd.f32 %v1282_v37, %v1218_v45  ;;  %v4167_v63 = vadd.f32 %v4103_v33, %v4039_v51  ;;  %v2956_v4 = vld [vmem:[%s6195_s15 + $0x2908] sm:$0xff]  ;;  %v2894_v15 = vadd.f32 %v2830_v62, %v2766_v3 }
 0x243   : > { %v1412_v54 = vld [vmem:[%s6195_s15 + $0x1130] sm:$0xff]  ;;  %v4231_v57 = vld [vmem:[%s6195_s15 + $0x3ce0] sm:$0xff]  ;;  %v1348_v60 = vadd.f32 %v1284_v38, %v1220_v46  ;;  %v4169_v0 = vadd.f32 %v4105_v34, %v4041_v52  ;;  %v2958_v10 = vld [vmem:[%s6195_s15 + $0x2918] sm:$0xff]  ;;  %v3020_v19 = vadd.f32 %v2956_v4, %v2892_v9 }
 0x244   : > { %v4233_v58 = vld [vmem:[%s6195_s15 + $0x3cf0] sm:$0xff]  ;;  %v1538_v1 = vld [vmem:[%s6195_s15 + $0x1320] sm:$0xff]  ;;  %v1474_v7 = vadd.f32 %v1410_v53, %v1346_v59  ;;  %v4295_v11 = vadd.f32 %v4231_v57, %v4167_v63  ;;  %v3084_v16 = vld [vmem:[%s6195_s15 + $0x2b08] sm:$0xff]  ;;  %v3022_v25 = vadd.f32 %v2958_v10, %v2894_v15 }
 0x245   : > { %v1540_v2 = vld [vmem:[%s6195_s15 + $0x1330] sm:$0xff]  ;;  %v4359_v5 = vld [vmem:[%s6195_s15 + $0x3ee0] sm:$0xff]  ;;  %v1476_v8 = vadd.f32 %v1412_v54, %v1348_v60  ;;  %v4297_v12 = vadd.f32 %v4233_v58, %v4169_v0  ;;  %v3086_v20 = vld [vmem:[%s6195_s15 + $0x2b18] sm:$0xff]  ;;  %v3148_v31 = vadd.f32 %v3084_v16, %v3020_v19 }
 0x246   : > { %v4361_v6 = vld [vmem:[%s6195_s15 + $0x3ef0] sm:$0xff]  ;;  %v1666_v13 = vld [vmem:[%s6195_s15 + $0x1520] sm:$0xff]  ;;  %v1602_v17 = vadd.f32 %v1538_v1, %v1474_v7  ;;  %v4423_v21 = vadd.f32 %v4359_v5, %v4295_v11  ;;  %v3212_v26 = vld [vmem:[%s6195_s15 + $0x2d08] sm:$0xff]  ;;  %v3150_v36 = vadd.f32 %v3086_v20, %v3022_v25 }
 0x247   : > { %v1668_v14 = vld [vmem:[%s6195_s15 + $0x1530] sm:$0xff]  ;;  %v1604_v18 = vadd.f32 %v1540_v2, %v1476_v8  ;;  %v4425_v22 = vadd.f32 %v4361_v6, %v4297_v12  ;;  %v1794_v23 = vld [vmem:[%s6195_s15 + $0x1720] sm:$0xff]  ;;  %v3214_v32 = vld [vmem:[%s6195_s15 + $0x2d18] sm:$0xff]  ;;  %v3276_v42 = vadd.f32 %v3212_v26, %v3148_v31 }
 0x248   : > { %v1796_v24 = vld [vmem:[%s6195_s15 + $0x1730] sm:$0xff]  ;;  %v1730_v27 = vadd.f32 %v1666_v13, %v1602_v17  ;;  %v1922_v29 = vld [vmem:[%s6195_s15 + $0x1920] sm:$0xff]  ;;  %v3340_v37 = vld [vmem:[%s6195_s15 + $0x2f08] sm:$0xff]  ;;  %v3278_v46 = vadd.f32 %v3214_v32, %v3150_v36 }
 0x249   : > { %v1732_v28 = vadd.f32 %v1668_v14, %v1604_v18  ;;  %v1924_v30 = vld [vmem:[%s6195_s15 + $0x1930] sm:$0xff]  ;;  %v5354_v33 = vpack.c.bf16 %v4425_v22, %v4423_v21  ;;  %v2050_v34 = vld [vmem:[%s6195_s15 + $0x1b20] sm:$0xff]  ;;  %v3342_v38 = vld [vmem:[%s6195_s15 + $0x2f18] sm:$0xff]  ;;  %v3404_v54 = vadd.f32 %v3340_v37, %v3276_v42 }
 0x24a   : > { %v2052_v35 = vld [vmem:[%s6195_s15 + $0x1b30] sm:$0xff]  ;;  %v455_v39 = vld [vmem:[%s6195_s15 + $0x148] sm:$0xff]  ;;  %v1858_v40 = vadd.f32 %v1794_v23, %v1730_v27  ;;  %v457_v43 = vld [vmem:[%s6195_s15 + $0x158] sm:$0xff]  ;;  %v3406_v60 = vadd.f32 %v3342_v38, %v3278_v46 }
 0x24b   : > { %v1860_v41 = vadd.f32 %v1796_v24, %v1732_v28  ;;  %v519_v44 = vld [vmem:[%s6195_s15 + $0x348] sm:$0xff]  ;;  %v521_v45 = vld [vmem:[%s6195_s15 + $0x358] sm:$0xff]  ;;  %5355 = vmatpush1.bf16.msra.mxu1 %v5354_v33  ;;  %v2178_v58 = vld [vmem:[%s6195_s15 + $0x1d20] sm:$0xff] }
 0x24c   : > { %v3468_v47 = vld [vmem:[%s6195_s15 + $0x3108] sm:$0xff]  ;;  %v583_v48 = vadd.f32 %v519_v44, %v455_v39  ;;  %v585_v49 = vadd.f32 %v521_v45, %v457_v43  ;;  %v649_v51 = vld [vmem:[%s6195_s15 + $0x558] sm:$0xff]  ;;  %v1986_v52 = vadd.f32 %v1922_v29, %v1858_v40  ;;  %v2180_v59 = vld [vmem:[%s6195_s15 + $0x1d30] sm:$0xff] }
 0x24d   : > { %v647_v50 = vld [vmem:[%s6195_s15 + $0x548] sm:$0xff]  ;;  %v1988_v53 = vadd.f32 %v1924_v30, %v1860_v41  ;;  %v3470_v55 = vld [vmem:[%s6195_s15 + $0x3118] sm:$0xff]  ;;  %v3532_v2 = vadd.f32 %v3468_v47, %v3404_v54  ;;  %v2306_v6 = vld [vmem:[%s6195_s15 + $0x1f20] sm:$0xff] }
 0x24e   : > { %v775_v56 = vld [vmem:[%s6195_s15 + $0x748] sm:$0xff]  ;;  %v777_v57 = vld [vmem:[%s6195_s15 + $0x758] sm:$0xff]  ;;  %v711_v62 = vadd.f32 %v647_v50, %v583_v48  ;;  %v713_v63 = vadd.f32 %v649_v51, %v585_v49  ;;  %v2114_v0 = vadd.f32 %v2050_v34, %v1986_v52  ;;  %v2308_v7 = vld [vmem:[%s6195_s15 + $0x1f30] sm:$0xff]  ;;  %v3534_v8 = vadd.f32 %v3470_v55, %v3406_v60 }
 0x24f   : > { %v3596_v61 = vld [vmem:[%s6195_s15 + $0x3308] sm:$0xff]  ;;  %v2116_v1 = vadd.f32 %v2052_v35, %v1988_v53  ;;  %v3598_v3 = vld [vmem:[%s6195_s15 + $0x3318] sm:$0xff]  ;;  %v2507_v39 = vld [vmem:[%s6195_s15 + $0x2100] sm:$0xff] }
 0x250   : > { %v903_v4 = vld [vmem:[%s6195_s15 + $0x948] sm:$0xff]  ;;  %v905_v5 = vld [vmem:[%s6195_s15 + $0x958] sm:$0xff]  ;;  %v839_v10 = vadd.f32 %v775_v56, %v711_v62  ;;  %v841_v11 = vadd.f32 %v777_v57, %v713_v63  ;;  %v2242_v12 = vadd.f32 %v2178_v58, %v2114_v0  ;;  %v3660_v14 = vadd.f32 %v3596_v61, %v3532_v2  ;;  %v2509_v40 = vld [vmem:[%s6195_s15 + $0x2110] sm:$0xff] }
 0x251   : > { %v3724_v9 = vld [vmem:[%s6195_s15 + $0x3508] sm:$0xff]  ;;  %v2244_v13 = vadd.f32 %v2180_v59, %v2116_v1  ;;  %v3726_v15 = vld [vmem:[%s6195_s15 + $0x3518] sm:$0xff]  ;;  %v3662_v18 = vadd.f32 %v3598_v3, %v3534_v8  ;;  %v2571_v44 = vld [vmem:[%s6195_s15 + $0x2300] sm:$0xff] }
 0x252   : > { %v1031_v16 = vld [vmem:[%s6195_s15 + $0xb48] sm:$0xff]  ;;  %v1033_v17 = vld [vmem:[%s6195_s15 + $0xb58] sm:$0xff]  ;;  %v967_v21 = vadd.f32 %v903_v4, %v839_v10  ;;  %v969_v22 = vadd.f32 %v905_v5, %v841_v11  ;;  %v2370_v23 = vadd.f32 %v2306_v6, %v2242_v12  ;;  %v3788_v25 = vadd.f32 %v3724_v9, %v3660_v14  ;;  %v2573_v45 = vld [vmem:[%s6195_s15 + $0x2310] sm:$0xff] }
 0x253   : > { %v3852_v19 = vld [vmem:[%s6195_s15 + $0x3708] sm:$0xff]  ;;  %v3854_v20 = vld [vmem:[%s6195_s15 + $0x3718] sm:$0xff]  ;;  %v2372_v24 = vadd.f32 %v2308_v7, %v2244_v13  ;;  %v3790_v29 = vadd.f32 %v3726_v15, %v3662_v18  ;;  %v2699_v46 = vld [vmem:[%s6195_s15 + $0x2500] sm:$0xff]  ;;  %v2635_v50 = vadd.f32 %v2571_v44, %v2507_v39  ;;  %v2637_v51 = vadd.f32 %v2573_v45, %v2509_v40 }
 0x254   : > { %v3980_v26 = vld [vmem:[%s6195_s15 + $0x3908] sm:$0xff]  ;;  %v1161_v28 = vld [vmem:[%s6195_s15 + $0xd58] sm:$0xff]  ;;  %v1095_v32 = vadd.f32 %v1031_v16, %v967_v21  ;;  %v1097_v33 = vadd.f32 %v1033_v17, %v969_v22  ;;  %v3916_v36 = vadd.f32 %v3852_v19, %v3788_v25  ;;  %v2701_v52 = vld [vmem:[%s6195_s15 + $0x2510] sm:$0xff] }
 0x255   : > { %v1159_v27 = vld [vmem:[%s6195_s15 + $0xd48] sm:$0xff]  ;;  %v3982_v30 = vld [vmem:[%s6195_s15 + $0x3918] sm:$0xff]  ;;  %v5298_v35 = vpack.c.bf16 %v2372_v24, %v2370_v23  ;;  %v3918_v41 = vadd.f32 %v3854_v20, %v3790_v29  ;;  %v2827_v57 = vld [vmem:[%s6195_s15 + $0x2700] sm:$0xff]  ;;  %v2763_v63 = vadd.f32 %v2699_v46, %v2635_v50  ;;  %v2765_v0 = vadd.f32 %v2701_v52, %v2637_v51 }
 0x256   : > { %v4108_v31 = vld [vmem:[%s6195_s15 + $0x3b08] sm:$0xff]  ;;  %v4110_v37 = vld [vmem:[%s6195_s15 + $0x3b18] sm:$0xff]  ;;  %v1223_v42 = vadd.f32 %v1159_v27, %v1095_v32  ;;  %v1225_v43 = vadd.f32 %v1161_v28, %v1097_v33  ;;  %v4044_v47 = vadd.f32 %v3980_v26, %v3916_v36  ;;  %v2829_v58 = vld [vmem:[%s6195_s15 + $0x2710] sm:$0xff] }
 0x257   : > { %v1287_v34 = vld [vmem:[%s6195_s15 + $0xf48] sm:$0xff]  ;;  %v1289_v38 = vld [vmem:[%s6195_s15 + $0xf58] sm:$0xff]  ;;  %5299 = vmatpush1.bf16.msra.mxu0 %v5298_v35  ;;  %v4046_v53 = vadd.f32 %v3982_v30, %v3918_v41  ;;  %v2955_v5 = vld [vmem:[%s6195_s15 + $0x2900] sm:$0xff]  ;;  %v2891_v11 = vadd.f32 %v2827_v57, %v2763_v63  ;;  %v2893_v12 = vadd.f32 %v2829_v58, %v2765_v0 }
 0x258   : > { %v1415_v48 = vld [vmem:[%s6195_s15 + $0x1148] sm:$0xff]  ;;  %v1417_v49 = vld [vmem:[%s6195_s15 + $0x1158] sm:$0xff]  ;;  %v1351_v55 = vadd.f32 %v1287_v34, %v1223_v42  ;;  %v1353_v56 = vadd.f32 %v1289_v38, %v1225_v43  ;;  %v4172_v59 = vadd.f32 %v4108_v31, %v4044_v47  ;;  %v2957_v6 = vld [vmem:[%s6195_s15 + $0x2910] sm:$0xff] }
 0x259   : > { %v4236_v54 = vld [vmem:[%s6195_s15 + $0x3d08] sm:$0xff]  ;;  %v4238_v60 = vld [vmem:[%s6195_s15 + $0x3d18] sm:$0xff]  ;;  %v4174_v1 = vadd.f32 %v4110_v37, %v4046_v53  ;;  %v3083_v16 = vld [vmem:[%s6195_s15 + $0x2b00] sm:$0xff]  ;;  %v3019_v22 = vadd.f32 %v2955_v5, %v2891_v11  ;;  %v3021_v23 = vadd.f32 %v2957_v6, %v2893_v12 }
 0x25a   : > { %v1543_v61 = vld [vmem:[%s6195_s15 + $0x1348] sm:$0xff]  ;;  %v1545_v62 = vld [vmem:[%s6195_s15 + $0x1358] sm:$0xff]  ;;  %v1479_v3 = vadd.f32 %v1415_v48, %v1351_v55  ;;  %v1481_v4 = vadd.f32 %v1417_v49, %v1353_v56  ;;  %v4300_v7 = vadd.f32 %v4236_v54, %v4172_v59  ;;  %v3085_v17 = vld [vmem:[%s6195_s15 + $0x2b10] sm:$0xff] }
 0x25b   : > { %v4364_v2 = vld [vmem:[%s6195_s15 + $0x3f08] sm:$0xff]  ;;  %v4366_v8 = vld [vmem:[%s6195_s15 + $0x3f18] sm:$0xff]  ;;  %v4302_v13 = vadd.f32 %v4238_v60, %v4174_v1  ;;  %v3211_v28 = vld [vmem:[%s6195_s15 + $0x2d00] sm:$0xff]  ;;  %v3147_v32 = vadd.f32 %v3083_v16, %v3019_v22  ;;  %v3149_v33 = vadd.f32 %v3085_v17, %v3021_v23 }
 0x25c   : > { %v1671_v9 = vld [vmem:[%s6195_s15 + $0x1548] sm:$0xff]  ;;  %v1673_v10 = vld [vmem:[%s6195_s15 + $0x1558] sm:$0xff]  ;;  %v1607_v14 = vadd.f32 %v1543_v61, %v1479_v3  ;;  %v1609_v15 = vadd.f32 %v1545_v62, %v1481_v4  ;;  %v4428_v18 = vadd.f32 %v4364_v2, %v4300_v7  ;;  %v3213_v29 = vld [vmem:[%s6195_s15 + $0x2d10] sm:$0xff] }
 0x25d   : > { %v1799_v19 = vld [vmem:[%s6195_s15 + $0x1748] sm:$0xff]  ;;  %v1801_v20 = vld [vmem:[%s6195_s15 + $0x1758] sm:$0xff]  ;;  %v4430_v24 = vadd.f32 %v4366_v8, %v4302_v13  ;;  %v3339_v34 = vld [vmem:[%s6195_s15 + $0x2f00] sm:$0xff]  ;;  %v3275_v42 = vadd.f32 %v3211_v28, %v3147_v32  ;;  %v3277_v43 = vadd.f32 %v3213_v29, %v3149_v33 }
 0x25e   : > { %v1927_v21 = vld [vmem:[%s6195_s15 + $0x1948] sm:$0xff]  ;;  %v1735_v25 = vadd.f32 %v1671_v9, %v1607_v14  ;;  %v1737_v26 = vadd.f32 %v1673_v10, %v1609_v15  ;;  %v1929_v27 = vld [vmem:[%s6195_s15 + $0x1958] sm:$0xff]  ;;  %v3341_v35 = vld [vmem:[%s6195_s15 + $0x2f10] sm:$0xff] }
 0x25f   : > { %v2055_v30 = vld [vmem:[%s6195_s15 + $0x1b48] sm:$0xff]  ;;  %v2057_v31 = vld [vmem:[%s6195_s15 + $0x1b58] sm:$0xff]  ;;  %v5356_v36 = vpack.c.bf16 %v4430_v24, %v4428_v18  ;;  %v454_v39 = vld [vmem:[%s6195_s15 + $0x140] sm:$0xff]  ;;  %v3403_v56 = vadd.f32 %v3339_v34, %v3275_v42  ;;  %v3405_v57 = vadd.f32 %v3341_v35, %v3277_v43 }
 0x260   : > { %v1863_v37 = vadd.f32 %v1799_v19, %v1735_v25  ;;  %v1865_v38 = vadd.f32 %v1801_v20, %v1737_v26  ;;  %v456_v40 = vld [vmem:[%s6195_s15 + $0x150] sm:$0xff]  ;;  %v518_v41 = vld [vmem:[%s6195_s15 + $0x340] sm:$0xff]  ;;  %v2183_v54 = vld [vmem:[%s6195_s15 + $0x1d48] sm:$0xff] }
 0x261   : > { %v520_v44 = vld [vmem:[%s6195_s15 + $0x350] sm:$0xff]  ;;  %v582_v45 = vadd.f32 %v518_v41, %v454_v39  ;;  %v646_v46 = vld [vmem:[%s6195_s15 + $0x540] sm:$0xff]  ;;  %5357 = vmatprep.subr.bf16.mxu1 %v5356_v36  ;;  %v2185_v55 = vld [vmem:[%s6195_s15 + $0x1d58] sm:$0xff] }
 0x262   : > { %v648_v47 = vld [vmem:[%s6195_s15 + $0x550] sm:$0xff]  ;;  %v1991_v48 = vadd.f32 %v1927_v21, %v1863_v37  ;;  %v1993_v49 = vadd.f32 %v1929_v27, %v1865_v38  ;;  %v3467_v50 = vld [vmem:[%s6195_s15 + $0x3100] sm:$0xff]  ;;  %v584_v52 = vadd.f32 %v520_v44, %v456_v40  ;;  %v2311_v2 = vld [vmem:[%s6195_s15 + $0x1f48] sm:$0xff] }
 0x263   : > { %v3469_v51 = vld [vmem:[%s6195_s15 + $0x3110] sm:$0xff]  ;;  %v774_v53 = vld [vmem:[%s6195_s15 + $0x740] sm:$0xff]  ;;  %v710_v58 = vadd.f32 %v646_v46, %v582_v45  ;;  %v2313_v3 = vld [vmem:[%s6195_s15 + $0x1f58] sm:$0xff]  ;;  %v3531_v4 = vadd.f32 %v3467_v50, %v3403_v56 }
 0x264   : > { %v776_v59 = vld [vmem:[%s6195_s15 + $0x750] sm:$0xff]  ;;  %v2119_v60 = vadd.f32 %v2055_v30, %v1991_v48  ;;  %v2121_v61 = vadd.f32 %v2057_v31, %v1993_v49  ;;  %v3595_v62 = vld [vmem:[%s6195_s15 + $0x3300] sm:$0xff]  ;;  %v712_v0 = vadd.f32 %v648_v47, %v584_v52  ;;  %v3533_v5 = vadd.f32 %v3469_v51, %v3405_v57  ;;  %v2512_v36 = vld [vmem:[%s6195_s15 + $0x2128] sm:$0xff] }
 0x265   : > { %v3597_v63 = vld [vmem:[%s6195_s15 + $0x3310] sm:$0xff]  ;;  %v902_v1 = vld [vmem:[%s6195_s15 + $0x940] sm:$0xff]  ;;  %v838_v6 = vadd.f32 %v774_v53, %v710_v58  ;;  %v3659_v14 = vadd.f32 %v3595_v62, %v3531_v4  ;;  %v2514_v40 = vld [vmem:[%s6195_s15 + $0x2138] sm:$0xff] }
 0x266   : > { %v904_v7 = vld [vmem:[%s6195_s15 + $0x950] sm:$0xff]  ;;  %v2247_v8 = vadd.f32 %v2183_v54, %v2119_v60  ;;  %v2249_v9 = vadd.f32 %v2185_v55, %v2121_v61  ;;  %v3723_v10 = vld [vmem:[%s6195_s15 + $0x3500] sm:$0xff]  ;;  %v840_v12 = vadd.f32 %v776_v59, %v712_v0  ;;  %v3661_v15 = vadd.f32 %v3597_v63, %v3533_v5  ;;  %v2576_v41 = vld [vmem:[%s6195_s15 + $0x2328] sm:$0xff] }
 0x267   : > { %v3725_v11 = vld [vmem:[%s6195_s15 + $0x3510] sm:$0xff]  ;;  %v1030_v13 = vld [vmem:[%s6195_s15 + $0xb40] sm:$0xff]  ;;  %v966_v16 = vadd.f32 %v902_v1, %v838_v6  ;;  %v3787_v24 = vadd.f32 %v3723_v10, %v3659_v14  ;;  %v2578_v42 = vld [vmem:[%s6195_s15 + $0x2338] sm:$0xff]  ;;  %v2640_v45 = vadd.f32 %v2576_v41, %v2512_v36 }
 0x268   : > { %v1032_v17 = vld [vmem:[%s6195_s15 + $0xb50] sm:$0xff]  ;;  %v2375_v18 = vadd.f32 %v2311_v2, %v2247_v8  ;;  %v2377_v19 = vadd.f32 %v2313_v3, %v2249_v9  ;;  %v3851_v20 = vld [vmem:[%s6195_s15 + $0x3700] sm:$0xff]  ;;  %v968_v22 = vadd.f32 %v904_v7, %v840_v12  ;;  %v3789_v25 = vadd.f32 %v3725_v11, %v3661_v15  ;;  %v2704_v47 = vld [vmem:[%s6195_s15 + $0x2528] sm:$0xff] }
 0x269   : > { %v3853_v21 = vld [vmem:[%s6195_s15 + $0x3710] sm:$0xff]  ;;  %v1158_v23 = vld [vmem:[%s6195_s15 + $0xd40] sm:$0xff]  ;;  %v1094_v28 = vadd.f32 %v1030_v13, %v966_v16  ;;  %v3915_v37 = vadd.f32 %v3851_v20, %v3787_v24  ;;  %v2642_v46 = vadd.f32 %v2578_v42, %v2514_v40  ;;  %v2706_v48 = vld [vmem:[%s6195_s15 + $0x2538] sm:$0xff]  ;;  %v2768_v59 = vadd.f32 %v2704_v47, %v2640_v45 }
 0x26a   : > { %v3979_v26 = vld [vmem:[%s6195_s15 + $0x3900] sm:$0xff]  ;;  %v3981_v27 = vld [vmem:[%s6195_s15 + $0x3910] sm:$0xff]  ;;  %v5300_v30 = vpack.c.bf16 %v2377_v19, %v2375_v18  ;;  %v1096_v33 = vadd.f32 %v1032_v17, %v968_v22  ;;  %v3917_v38 = vadd.f32 %v3853_v21, %v3789_v25  ;;  %v2832_v53 = vld [vmem:[%s6195_s15 + $0x2728] sm:$0xff] }
 0x26b   : > { %v1160_v29 = vld [vmem:[%s6195_s15 + $0xd50] sm:$0xff]  ;;  %v4107_v31 = vld [vmem:[%s6195_s15 + $0x3b00] sm:$0xff]  ;;  %v1222_v39 = vadd.f32 %v1158_v23, %v1094_v28  ;;  %v4043_v49 = vadd.f32 %v3979_v26, %v3915_v37  ;;  %v2834_v54 = vld [vmem:[%s6195_s15 + $0x2738] sm:$0xff]  ;;  %v2770_v60 = vadd.f32 %v2706_v48, %v2642_v46  ;;  %v2896_v7 = vadd.f32 %v2832_v53, %v2768_v59 }
 0x26c   : > { %v4109_v32 = vld [vmem:[%s6195_s15 + $0x3b10] sm:$0xff]  ;;  %v1286_v34 = vld [vmem:[%s6195_s15 + $0xf40] sm:$0xff]  ;;  %5301 = vmatprep.subr.bf16.mxu0 %v5300_v30  ;;  %v1224_v43 = vadd.f32 %v1160_v29, %v1096_v33  ;;  %v4045_v50 = vadd.f32 %v3981_v27, %v3917_v38  ;;  %v2960_v1 = vld [vmem:[%s6195_s15 + $0x2928] sm:$0xff] }
 0x26d   : > { %v1288_v35 = vld [vmem:[%s6195_s15 + $0xf50] sm:$0xff]  ;;  %v1414_v44 = vld [vmem:[%s6195_s15 + $0x1140] sm:$0xff]  ;;  %v1350_v51 = vadd.f32 %v1286_v34, %v1222_v39  ;;  %v4171_v61 = vadd.f32 %v4107_v31, %v4043_v49  ;;  %v2962_v2 = vld [vmem:[%s6195_s15 + $0x2938] sm:$0xff]  ;;  %v2898_v8 = vadd.f32 %v2834_v54, %v2770_v60  ;;  %v3024_v18 = vadd.f32 %v2960_v1, %v2896_v7 }
 0x26e   : > { %v1416_v52 = vld [vmem:[%s6195_s15 + $0x1150] sm:$0xff]  ;;  %v4235_v55 = vld [vmem:[%s6195_s15 + $0x3d00] sm:$0xff]  ;;  %v1352_v57 = vadd.f32 %v1288_v35, %v1224_v43  ;;  %v4173_v62 = vadd.f32 %v4109_v32, %v4045_v50  ;;  %v3088_v13 = vld [vmem:[%s6195_s15 + $0x2b28] sm:$0xff] }
 0x26f   : > { %v4237_v56 = vld [vmem:[%s6195_s15 + $0x3d10] sm:$0xff]  ;;  %v1542_v58 = vld [vmem:[%s6195_s15 + $0x1340] sm:$0xff]  ;;  %v1478_v63 = vadd.f32 %v1414_v44, %v1350_v51  ;;  %v4299_v9 = vadd.f32 %v4235_v55, %v4171_v61  ;;  %v3090_v14 = vld [vmem:[%s6195_s15 + $0x2b38] sm:$0xff]  ;;  %v3026_v19 = vadd.f32 %v2962_v2, %v2898_v8  ;;  %v3152_v29 = vadd.f32 %v3088_v13, %v3024_v18 }
 0x270   : > { %v1544_v0 = vld [vmem:[%s6195_s15 + $0x1350] sm:$0xff]  ;;  %v4363_v3 = vld [vmem:[%s6195_s15 + $0x3f00] sm:$0xff]  ;;  %v1480_v5 = vadd.f32 %v1416_v52, %v1352_v57  ;;  %v4301_v10 = vadd.f32 %v4237_v56, %v4173_v62  ;;  %v3216_v24 = vld [vmem:[%s6195_s15 + $0x2d28] sm:$0xff] }
 0x271   : > { %v4365_v4 = vld [vmem:[%s6195_s15 + $0x3f10] sm:$0xff]  ;;  %v1670_v6 = vld [vmem:[%s6195_s15 + $0x1540] sm:$0xff]  ;;  %v1606_v11 = vadd.f32 %v1542_v58, %v1478_v63  ;;  %v4427_v20 = vadd.f32 %v4363_v3, %v4299_v9  ;;  %v3218_v25 = vld [vmem:[%s6195_s15 + $0x2d38] sm:$0xff]  ;;  %v3154_v30 = vadd.f32 %v3090_v14, %v3026_v19  ;;  %v3280_v39 = vadd.f32 %v3216_v24, %v3152_v29 }
 0x272   : > { %v1672_v12 = vld [vmem:[%s6195_s15 + $0x1550] sm:$0xff]  ;;  %v1608_v15 = vadd.f32 %v1544_v0, %v1480_v5  ;;  %v1798_v16 = vld [vmem:[%s6195_s15 + $0x1740] sm:$0xff]  ;;  %v4429_v21 = vadd.f32 %v4365_v4, %v4301_v10  ;;  %v3344_v31 = vld [vmem:[%s6195_s15 + $0x2f28] sm:$0xff] }
 0x273   : > { %v1800_v17 = vld [vmem:[%s6195_s15 + $0x1750] sm:$0xff]  ;;  %v1734_v22 = vadd.f32 %v1670_v6, %v1606_v11  ;;  %v1926_v23 = vld [vmem:[%s6195_s15 + $0x1940] sm:$0xff]  ;;  %v3346_v35 = vld [vmem:[%s6195_s15 + $0x2f38] sm:$0xff]  ;;  %v3282_v40 = vadd.f32 %v3218_v25, %v3154_v30  ;;  %v3408_v52 = vadd.f32 %v3344_v31, %v3280_v39 }
 0x274   : > { %v1736_v26 = vadd.f32 %v1672_v12, %v1608_v15  ;;  %v1928_v27 = vld [vmem:[%s6195_s15 + $0x1950] sm:$0xff]  ;;  %v2054_v28 = vld [vmem:[%s6195_s15 + $0x1b40] sm:$0xff]  ;;  %v5358_v32 = vpack.c.bf16 %v4429_v21, %v4427_v20  ;;  %v459_v36 = vld [vmem:[%s6195_s15 + $0x168] sm:$0xff] }
 0x275   : > { %v1862_v33 = vadd.f32 %v1798_v16, %v1734_v22  ;;  %v2056_v34 = vld [vmem:[%s6195_s15 + $0x1b50] sm:$0xff]  ;;  %v461_v37 = vld [vmem:[%s6195_s15 + $0x178] sm:$0xff]  ;;  %v523_v41 = vld [vmem:[%s6195_s15 + $0x368] sm:$0xff]  ;;  %v3410_v53 = vadd.f32 %v3346_v35, %v3282_v40 }
 0x276   : > { %v1864_v38 = vadd.f32 %v1800_v17, %v1736_v26  ;;  %v525_v42 = vld [vmem:[%s6195_s15 + $0x378] sm:$0xff]  ;;  %v651_v43 = vld [vmem:[%s6195_s15 + $0x568] sm:$0xff]  ;;  %5359 = vmatpush1.bf16.msra.mxu1 %v5358_v32  ;;  %v587_v47 = vadd.f32 %v523_v41, %v459_v36  ;;  %v2182_v51 = vld [vmem:[%s6195_s15 + $0x1d40] sm:$0xff] }
 0x277   : > { %v1990_v44 = vadd.f32 %v1926_v23, %v1862_v33  ;;  %v3472_v45 = vld [vmem:[%s6195_s15 + $0x3128] sm:$0xff]  ;;  %v3474_v46 = vld [vmem:[%s6195_s15 + $0x3138] sm:$0xff]  ;;  %v589_v48 = vadd.f32 %v525_v42, %v461_v37  ;;  %v2184_v57 = vld [vmem:[%s6195_s15 + $0x1d50] sm:$0xff] }
 0x278   : > { %v653_v49 = vld [vmem:[%s6195_s15 + $0x578] sm:$0xff]  ;;  %v1992_v50 = vadd.f32 %v1928_v27, %v1864_v38  ;;  %v779_v54 = vld [vmem:[%s6195_s15 + $0x768] sm:$0xff]  ;;  %v715_v60 = vadd.f32 %v651_v43, %v587_v47  ;;  %v2310_v63 = vld [vmem:[%s6195_s15 + $0x1f40] sm:$0xff]  ;;  %v3536_v0 = vadd.f32 %v3472_v45, %v3408_v52  ;;  %v3538_v1 = vadd.f32 %v3474_v46, %v3410_v53 }
 0x279   : > { %v781_v55 = vld [vmem:[%s6195_s15 + $0x778] sm:$0xff]  ;;  %v2118_v56 = vadd.f32 %v2054_v28, %v1990_v44  ;;  %v3600_v58 = vld [vmem:[%s6195_s15 + $0x3328] sm:$0xff]  ;;  %v717_v61 = vadd.f32 %v653_v49, %v589_v48  ;;  %v2312_v5 = vld [vmem:[%s6195_s15 + $0x1f50] sm:$0xff] }
 0x27a   : > { %v3602_v59 = vld [vmem:[%s6195_s15 + $0x3338] sm:$0xff]  ;;  %v2120_v62 = vadd.f32 %v2056_v34, %v1992_v50  ;;  %v907_v2 = vld [vmem:[%s6195_s15 + $0x968] sm:$0xff]  ;;  %v843_v8 = vadd.f32 %v779_v54, %v715_v60  ;;  %v3664_v11 = vadd.f32 %v3600_v58, %v3536_v0  ;;  %v2511_v36 = vld [vmem:[%s6195_s15 + $0x2120] sm:$0xff] }
 0x27b   : > { %v909_v3 = vld [vmem:[%s6195_s15 + $0x978] sm:$0xff]  ;;  %v2246_v4 = vadd.f32 %v2182_v51, %v2118_v56  ;;  %v3728_v6 = vld [vmem:[%s6195_s15 + $0x3528] sm:$0xff]  ;;  %v845_v9 = vadd.f32 %v781_v55, %v717_v61  ;;  %v3666_v12 = vadd.f32 %v3602_v59, %v3538_v1  ;;  %v2513_v37 = vld [vmem:[%s6195_s15 + $0x2130] sm:$0xff] }
 0x27c   : > { %v3730_v7 = vld [vmem:[%s6195_s15 + $0x3538] sm:$0xff]  ;;  %v2248_v10 = vadd.f32 %v2184_v57, %v2120_v62  ;;  %v1035_v13 = vld [vmem:[%s6195_s15 + $0xb68] sm:$0xff]  ;;  %v971_v19 = vadd.f32 %v907_v2, %v843_v8  ;;  %v3792_v22 = vadd.f32 %v3728_v6, %v3664_v11  ;;  %v2575_v38 = vld [vmem:[%s6195_s15 + $0x2320] sm:$0xff] }
 0x27d   : > { %v1037_v14 = vld [vmem:[%s6195_s15 + $0xb78] sm:$0xff]  ;;  %v2374_v15 = vadd.f32 %v2310_v63, %v2246_v4  ;;  %v3856_v16 = vld [vmem:[%s6195_s15 + $0x3728] sm:$0xff]  ;;  %v973_v20 = vadd.f32 %v909_v3, %v845_v9  ;;  %v3794_v23 = vadd.f32 %v3730_v7, %v3666_v12  ;;  %v2577_v41 = vld [vmem:[%s6195_s15 + $0x2330] sm:$0xff]  ;;  %v2639_v42 = vadd.f32 %v2575_v38, %v2511_v36 }
 0x27e   : > { %v3858_v17 = vld [vmem:[%s6195_s15 + $0x3738] sm:$0xff]  ;;  %v3984_v18 = vld [vmem:[%s6195_s15 + $0x3928] sm:$0xff]  ;;  %v2376_v21 = vadd.f32 %v2312_v5, %v2248_v10  ;;  %v1099_v29 = vadd.f32 %v1035_v13, %v971_v19  ;;  %v3920_v34 = vadd.f32 %v3856_v16, %v3792_v22  ;;  %v2703_v43 = vld [vmem:[%s6195_s15 + $0x2520] sm:$0xff]  ;;  %v2641_v49 = vadd.f32 %v2577_v41, %v2513_v37 }
 0x27f   : > { %v3986_v24 = vld [vmem:[%s6195_s15 + $0x3938] sm:$0xff]  ;;  %v1163_v25 = vld [vmem:[%s6195_s15 + $0xd68] sm:$0xff]  ;;  %v1101_v30 = vadd.f32 %v1037_v14, %v973_v20  ;;  %v3922_v35 = vadd.f32 %v3858_v17, %v3794_v23  ;;  %v2705_v44 = vld [vmem:[%s6195_s15 + $0x2530] sm:$0xff]  ;;  %v2767_v55 = vadd.f32 %v2703_v43, %v2639_v42 }
 0x280   : > { %v1165_v26 = vld [vmem:[%s6195_s15 + $0xd78] sm:$0xff]  ;;  %v4112_v27 = vld [vmem:[%s6195_s15 + $0x3b28] sm:$0xff]  ;;  %v5302_v33 = vpack.c.bf16 %v2376_v21, %v2374_v15  ;;  %v1227_v39 = vadd.f32 %v1163_v25, %v1099_v29  ;;  %v4048_v45 = vadd.f32 %v3984_v18, %v3920_v34  ;;  %v2831_v50 = vld [vmem:[%s6195_s15 + $0x2720] sm:$0xff]  ;;  %v2769_v61 = vadd.f32 %v2705_v44, %v2641_v49 }
 0x281   : > { %v4114_v28 = vld [vmem:[%s6195_s15 + $0x3b38] sm:$0xff]  ;;  %v1291_v31 = vld [vmem:[%s6195_s15 + $0xf68] sm:$0xff]  ;;  %v1229_v40 = vadd.f32 %v1165_v26, %v1101_v30  ;;  %v4050_v46 = vadd.f32 %v3986_v24, %v3922_v35  ;;  %v2833_v56 = vld [vmem:[%s6195_s15 + $0x2730] sm:$0xff]  ;;  %v2895_v3 = vadd.f32 %v2831_v50, %v2767_v55 }
 0x282   : > { %v1293_v32 = vld [vmem:[%s6195_s15 + $0xf78] sm:$0xff]  ;;  %5303 = vmatpush1.bf16.msra.mxu0 %v5302_v33  ;;  %v1419_v47 = vld [vmem:[%s6195_s15 + $0x1168] sm:$0xff]  ;;  %v1355_v53 = vadd.f32 %v1291_v31, %v1227_v39  ;;  %v4176_v57 = vadd.f32 %v4112_v27, %v4048_v45  ;;  %v2959_v62 = vld [vmem:[%s6195_s15 + $0x2920] sm:$0xff]  ;;  %v2897_v9 = vadd.f32 %v2833_v56, %v2769_v61 }
 0x283   : > { %v1421_v48 = vld [vmem:[%s6195_s15 + $0x1178] sm:$0xff]  ;;  %v4240_v51 = vld [vmem:[%s6195_s15 + $0x3d28] sm:$0xff]  ;;  %v1357_v54 = vadd.f32 %v1293_v32, %v1229_v40  ;;  %v4178_v58 = vadd.f32 %v4114_v28, %v4050_v46  ;;  %v2961_v4 = vld [vmem:[%s6195_s15 + $0x2930] sm:$0xff]  ;;  %v3023_v13 = vadd.f32 %v2959_v62, %v2895_v3 }
 0x284   : > { %v4242_v52 = vld [vmem:[%s6195_s15 + $0x3d38] sm:$0xff]  ;;  %v1547_v59 = vld [vmem:[%s6195_s15 + $0x1368] sm:$0xff]  ;;  %v1483_v1 = vadd.f32 %v1419_v47, %v1355_v53  ;;  %v4304_v5 = vadd.f32 %v4240_v51, %v4176_v57  ;;  %v3087_v10 = vld [vmem:[%s6195_s15 + $0x2b20] sm:$0xff]  ;;  %v3025_v19 = vadd.f32 %v2961_v4, %v2897_v9 }
 0x285   : > { %v1549_v60 = vld [vmem:[%s6195_s15 + $0x1378] sm:$0xff]  ;;  %v4368_v63 = vld [vmem:[%s6195_s15 + $0x3f28] sm:$0xff]  ;;  %v1485_v2 = vadd.f32 %v1421_v48, %v1357_v54  ;;  %v4306_v6 = vadd.f32 %v4242_v52, %v4178_v58  ;;  %v3089_v14 = vld [vmem:[%s6195_s15 + $0x2b30] sm:$0xff]  ;;  %v3151_v25 = vadd.f32 %v3087_v10, %v3023_v13 }
 0x286   : > { %v4370_v0 = vld [vmem:[%s6195_s15 + $0x3f38] sm:$0xff]  ;;  %v1675_v7 = vld [vmem:[%s6195_s15 + $0x1568] sm:$0xff]  ;;  %v1611_v11 = vadd.f32 %v1547_v59, %v1483_v1  ;;  %v4432_v15 = vadd.f32 %v4368_v63, %v4304_v5  ;;  %v3215_v20 = vld [vmem:[%s6195_s15 + $0x2d20] sm:$0xff]  ;;  %v3153_v30 = vadd.f32 %v3089_v14, %v3025_v19 }
 0x287   : > { %v1677_v8 = vld [vmem:[%s6195_s15 + $0x1578] sm:$0xff]  ;;  %v1613_v12 = vadd.f32 %v1549_v60, %v1485_v2  ;;  %v4434_v16 = vadd.f32 %v4370_v0, %v4306_v6  ;;  %v1803_v17 = vld [vmem:[%s6195_s15 + $0x1768] sm:$0xff]  ;;  %v3217_v26 = vld [vmem:[%s6195_s15 + $0x2d30] sm:$0xff]  ;;  %v3279_v36 = vadd.f32 %v3215_v20, %v3151_v25 }
 0x288   : > { %v1805_v18 = vld [vmem:[%s6195_s15 + $0x1778] sm:$0xff]  ;;  %v1739_v21 = vadd.f32 %v1675_v7, %v1611_v11  ;;  %v1931_v23 = vld [vmem:[%s6195_s15 + $0x1968] sm:$0xff]  ;;  %v3343_v31 = vld [vmem:[%s6195_s15 + $0x2f20] sm:$0xff]  ;;  %v3281_v40 = vadd.f32 %v3217_v26, %v3153_v30 }
 0x289   : > { %v1741_v22 = vadd.f32 %v1677_v8, %v1613_v12  ;;  %v1933_v24 = vld [vmem:[%s6195_s15 + $0x1978] sm:$0xff]  ;;  %v5360_v27 = vpack.c.bf16 %v4434_v16, %v4432_v15  ;;  %v2059_v28 = vld [vmem:[%s6195_s15 + $0x1b68] sm:$0xff]  ;;  %v3345_v32 = vld [vmem:[%s6195_s15 + $0x2f30] sm:$0xff]  ;;  %v3407_v48 = vadd.f32 %v3343_v31, %v3279_v36 }
 0x28a   : > { %v2061_v29 = vld [vmem:[%s6195_s15 + $0x1b78] sm:$0xff]  ;;  %v458_v33 = vld [vmem:[%s6195_s15 + $0x160] sm:$0xff]  ;;  %v1867_v34 = vadd.f32 %v1803_v17, %v1739_v21  ;;  %v460_v37 = vld [vmem:[%s6195_s15 + $0x170] sm:$0xff]  ;;  %v3409_v54 = vadd.f32 %v3345_v32, %v3281_v40 }
 0x28b   : > { %v1869_v35 = vadd.f32 %v1805_v18, %v1741_v22  ;;  %v522_v38 = vld [vmem:[%s6195_s15 + $0x360] sm:$0xff]  ;;  %v524_v39 = vld [vmem:[%s6195_s15 + $0x370] sm:$0xff]  ;;  %5361 = vmatprep.subr.bf16.mxu1 %v5360_v27  ;;  %v2187_v52 = vld [vmem:[%s6195_s15 + $0x1d68] sm:$0xff] }
 0x28c   : > { %v3471_v41 = vld [vmem:[%s6195_s15 + $0x3120] sm:$0xff]  ;;  %v586_v42 = vadd.f32 %v522_v38, %v458_v33  ;;  %v588_v43 = vadd.f32 %v524_v39, %v460_v37  ;;  %v652_v45 = vld [vmem:[%s6195_s15 + $0x570] sm:$0xff]  ;;  %v1995_v46 = vadd.f32 %v1931_v23, %v1867_v34  ;;  %v2189_v53 = vld [vmem:[%s6195_s15 + $0x1d78] sm:$0xff] }
 0x28d   : > { %v650_v44 = vld [vmem:[%s6195_s15 + $0x560] sm:$0xff]  ;;  %v1997_v47 = vadd.f32 %v1933_v24, %v1869_v35  ;;  %v3473_v49 = vld [vmem:[%s6195_s15 + $0x3130] sm:$0xff]  ;;  %v3535_v60 = vadd.f32 %v3471_v41, %v3407_v48  ;;  %v2315_v0 = vld [vmem:[%s6195_s15 + $0x1f68] sm:$0xff] }
 0x28e   : > { %v778_v50 = vld [vmem:[%s6195_s15 + $0x760] sm:$0xff]  ;;  %v780_v51 = vld [vmem:[%s6195_s15 + $0x770] sm:$0xff]  ;;  %v714_v56 = vadd.f32 %v650_v44, %v586_v42  ;;  %v716_v57 = vadd.f32 %v652_v45, %v588_v43  ;;  %v2123_v58 = vadd.f32 %v2059_v28, %v1995_v46  ;;  %v2317_v1 = vld [vmem:[%s6195_s15 + $0x1f78] sm:$0xff]  ;;  %v3537_v2 = vadd.f32 %v3473_v49, %v3409_v54 }
 0x28f   : > { %v3599_v55 = vld [vmem:[%s6195_s15 + $0x3320] sm:$0xff]  ;;  %v2125_v59 = vadd.f32 %v2061_v29, %v1997_v47  ;;  %v3601_v61 = vld [vmem:[%s6195_s15 + $0x3330] sm:$0xff]  ;;  %v2516_v33 = vld [vmem:[%s6195_s15 + $0x2148] sm:$0xff] }
 0x290   : > { %v906_v62 = vld [vmem:[%s6195_s15 + $0x960] sm:$0xff]  ;;  %v908_v63 = vld [vmem:[%s6195_s15 + $0x970] sm:$0xff]  ;;  %v842_v4 = vadd.f32 %v778_v50, %v714_v56  ;;  %v844_v5 = vadd.f32 %v780_v51, %v716_v57  ;;  %v2251_v6 = vadd.f32 %v2187_v52, %v2123_v58  ;;  %v3663_v8 = vadd.f32 %v3599_v55, %v3535_v60  ;;  %v2518_v34 = vld [vmem:[%s6195_s15 + $0x2158] sm:$0xff] }
 0x291   : > { %v3727_v3 = vld [vmem:[%s6195_s15 + $0x3520] sm:$0xff]  ;;  %v2253_v7 = vadd.f32 %v2189_v53, %v2125_v59  ;;  %v3729_v9 = vld [vmem:[%s6195_s15 + $0x3530] sm:$0xff]  ;;  %v3665_v12 = vadd.f32 %v3601_v61, %v3537_v2  ;;  %v2580_v38 = vld [vmem:[%s6195_s15 + $0x2348] sm:$0xff] }
 0x292   : > { %v1034_v10 = vld [vmem:[%s6195_s15 + $0xb60] sm:$0xff]  ;;  %v1036_v11 = vld [vmem:[%s6195_s15 + $0xb70] sm:$0xff]  ;;  %v970_v15 = vadd.f32 %v906_v62, %v842_v4  ;;  %v972_v16 = vadd.f32 %v908_v63, %v844_v5  ;;  %v2379_v17 = vadd.f32 %v2315_v0, %v2251_v6  ;;  %v3791_v19 = vadd.f32 %v3727_v3, %v3663_v8  ;;  %v2582_v39 = vld [vmem:[%s6195_s15 + $0x2358] sm:$0xff] }
 0x293   : > { %v3855_v13 = vld [vmem:[%s6195_s15 + $0x3720] sm:$0xff]  ;;  %v3857_v14 = vld [vmem:[%s6195_s15 + $0x3730] sm:$0xff]  ;;  %v2381_v18 = vadd.f32 %v2317_v1, %v2253_v7  ;;  %v3793_v23 = vadd.f32 %v3729_v9, %v3665_v12  ;;  %v2708_v40 = vld [vmem:[%s6195_s15 + $0x2548] sm:$0xff]  ;;  %v2644_v44 = vadd.f32 %v2580_v38, %v2516_v33  ;;  %v2646_v45 = vadd.f32 %v2582_v39, %v2518_v34 }
 0x294   : > { %v3983_v20 = vld [vmem:[%s6195_s15 + $0x3920] sm:$0xff]  ;;  %v1164_v22 = vld [vmem:[%s6195_s15 + $0xd70] sm:$0xff]  ;;  %v1098_v26 = vadd.f32 %v1034_v10, %v970_v15  ;;  %v1100_v27 = vadd.f32 %v1036_v11, %v972_v16  ;;  %v3919_v30 = vadd.f32 %v3855_v13, %v3791_v19  ;;  %v2710_v46 = vld [vmem:[%s6195_s15 + $0x2558] sm:$0xff] }
 0x295   : > { %v1162_v21 = vld [vmem:[%s6195_s15 + $0xd60] sm:$0xff]  ;;  %v3985_v24 = vld [vmem:[%s6195_s15 + $0x3930] sm:$0xff]  ;;  %v5304_v29 = vpack.c.bf16 %v2381_v18, %v2379_v17  ;;  %v3921_v35 = vadd.f32 %v3857_v14, %v3793_v23  ;;  %v2836_v51 = vld [vmem:[%s6195_s15 + $0x2748] sm:$0xff]  ;;  %v2772_v57 = vadd.f32 %v2708_v40, %v2644_v44  ;;  %v2774_v58 = vadd.f32 %v2710_v46, %v2646_v45 }
 0x296   : > { %v4111_v25 = vld [vmem:[%s6195_s15 + $0x3b20] sm:$0xff]  ;;  %v4113_v31 = vld [vmem:[%s6195_s15 + $0x3b30] sm:$0xff]  ;;  %v1226_v36 = vadd.f32 %v1162_v21, %v1098_v26  ;;  %v1228_v37 = vadd.f32 %v1164_v22, %v1100_v27  ;;  %v4047_v41 = vadd.f32 %v3983_v20, %v3919_v30  ;;  %v2838_v52 = vld [vmem:[%s6195_s15 + $0x2758] sm:$0xff] }
 0x297   : > { %v1290_v28 = vld [vmem:[%s6195_s15 + $0xf60] sm:$0xff]  ;;  %v1292_v32 = vld [vmem:[%s6195_s15 + $0xf70] sm:$0xff]  ;;  %5305 = vmatprep.subr.bf16.mxu0 %v5304_v29  ;;  %v4049_v47 = vadd.f32 %v3985_v24, %v3921_v35  ;;  %v2964_v63 = vld [vmem:[%s6195_s15 + $0x2948] sm:$0xff]  ;;  %v2900_v5 = vadd.f32 %v2836_v51, %v2772_v57  ;;  %v2902_v6 = vadd.f32 %v2838_v52, %v2774_v58 }
 0x298   : > { %v1418_v42 = vld [vmem:[%s6195_s15 + $0x1160] sm:$0xff]  ;;  %v1420_v43 = vld [vmem:[%s6195_s15 + $0x1170] sm:$0xff]  ;;  %v1354_v49 = vadd.f32 %v1290_v28, %v1226_v36  ;;  %v1356_v50 = vadd.f32 %v1292_v32, %v1228_v37  ;;  %v4175_v53 = vadd.f32 %v4111_v25, %v4047_v41  ;;  %v2966_v0 = vld [vmem:[%s6195_s15 + $0x2958] sm:$0xff] }
 0x299   : > { %v4239_v48 = vld [vmem:[%s6195_s15 + $0x3d20] sm:$0xff]  ;;  %v4241_v54 = vld [vmem:[%s6195_s15 + $0x3d30] sm:$0xff]  ;;  %v4177_v59 = vadd.f32 %v4113_v31, %v4049_v47  ;;  %v3092_v10 = vld [vmem:[%s6195_s15 + $0x2b48] sm:$0xff]  ;;  %v3028_v16 = vadd.f32 %v2964_v63, %v2900_v5  ;;  %v3030_v17 = vadd.f32 %v2966_v0, %v2902_v6 }
 0x29a   : > { %v1546_v55 = vld [vmem:[%s6195_s15 + $0x1360] sm:$0xff]  ;;  %v1548_v56 = vld [vmem:[%s6195_s15 + $0x1370] sm:$0xff]  ;;  %v1482_v61 = vadd.f32 %v1418_v42, %v1354_v49  ;;  %v1484_v62 = vadd.f32 %v1420_v43, %v1356_v50  ;;  %v4303_v1 = vadd.f32 %v4239_v48, %v4175_v53  ;;  %v3094_v11 = vld [vmem:[%s6195_s15 + $0x2b58] sm:$0xff] }
 0x29b   : > { %v4367_v60 = vld [vmem:[%s6195_s15 + $0x3f20] sm:$0xff]  ;;  %v4369_v2 = vld [vmem:[%s6195_s15 + $0x3f30] sm:$0xff]  ;;  %v4305_v7 = vadd.f32 %v4241_v54, %v4177_v59  ;;  %v3220_v22 = vld [vmem:[%s6195_s15 + $0x2d48] sm:$0xff]  ;;  %v3156_v26 = vadd.f32 %v3092_v10, %v3028_v16  ;;  %v3158_v27 = vadd.f32 %v3094_v11, %v3030_v17 }
 0x29c   : > { %v1674_v3 = vld [vmem:[%s6195_s15 + $0x1560] sm:$0xff]  ;;  %v1676_v4 = vld [vmem:[%s6195_s15 + $0x1570] sm:$0xff]  ;;  %v1610_v8 = vadd.f32 %v1546_v55, %v1482_v61  ;;  %v1612_v9 = vadd.f32 %v1548_v56, %v1484_v62  ;;  %v4431_v12 = vadd.f32 %v4367_v60, %v4303_v1  ;;  %v3222_v23 = vld [vmem:[%s6195_s15 + $0x2d58] sm:$0xff] }
 0x29d   : > { %v1802_v13 = vld [vmem:[%s6195_s15 + $0x1760] sm:$0xff]  ;;  %v1804_v14 = vld [vmem:[%s6195_s15 + $0x1770] sm:$0xff]  ;;  %v4433_v18 = vadd.f32 %v4369_v2, %v4305_v7  ;;  %v3348_v28 = vld [vmem:[%s6195_s15 + $0x2f48] sm:$0xff]  ;;  %v3284_v36 = vadd.f32 %v3220_v22, %v3156_v26  ;;  %v3286_v37 = vadd.f32 %v3222_v23, %v3158_v27 }
 0x29e   : > { %v1930_v15 = vld [vmem:[%s6195_s15 + $0x1960] sm:$0xff]  ;;  %v1738_v19 = vadd.f32 %v1674_v3, %v1610_v8  ;;  %v1740_v20 = vadd.f32 %v1676_v4, %v1612_v9  ;;  %v1932_v21 = vld [vmem:[%s6195_s15 + $0x1970] sm:$0xff]  ;;  %v3350_v29 = vld [vmem:[%s6195_s15 + $0x2f58] sm:$0xff] }
 0x29f   : > { %v2058_v24 = vld [vmem:[%s6195_s15 + $0x1b60] sm:$0xff]  ;;  %v2060_v25 = vld [vmem:[%s6195_s15 + $0x1b70] sm:$0xff]  ;;  %v5362_v30 = vpack.c.bf16 %v4433_v18, %v4431_v12  ;;  %v463_v33 = vld [vmem:[%s6195_s15 + $0x188] sm:$0xff]  ;;  %v3412_v50 = vadd.f32 %v3348_v28, %v3284_v36  ;;  %v3414_v51 = vadd.f32 %v3350_v29, %v3286_v37 }
 0x2a0   : > { %v1866_v31 = vadd.f32 %v1802_v13, %v1738_v19  ;;  %v1868_v32 = vadd.f32 %v1804_v14, %v1740_v20  ;;  %v465_v34 = vld [vmem:[%s6195_s15 + $0x198] sm:$0xff]  ;;  %v527_v35 = vld [vmem:[%s6195_s15 + $0x388] sm:$0xff]  ;;  %v2186_v48 = vld [vmem:[%s6195_s15 + $0x1d60] sm:$0xff] }
 0x2a1   : > { %v529_v38 = vld [vmem:[%s6195_s15 + $0x398] sm:$0xff]  ;;  %v591_v39 = vadd.f32 %v527_v35, %v463_v33  ;;  %v655_v40 = vld [vmem:[%s6195_s15 + $0x588] sm:$0xff]  ;;  %5363 = vmatpush1.bf16.msra.mxu1 %v5362_v30  ;;  %v2188_v49 = vld [vmem:[%s6195_s15 + $0x1d70] sm:$0xff] }
 0x2a2   : > { %v657_v41 = vld [vmem:[%s6195_s15 + $0x598] sm:$0xff]  ;;  %v1994_v42 = vadd.f32 %v1930_v15, %v1866_v31  ;;  %v1996_v43 = vadd.f32 %v1932_v21, %v1868_v32  ;;  %v3476_v44 = vld [vmem:[%s6195_s15 + $0x3148] sm:$0xff]  ;;  %v593_v46 = vadd.f32 %v529_v38, %v465_v34  ;;  %v2314_v60 = vld [vmem:[%s6195_s15 + $0x1f60] sm:$0xff] }
 0x2a3   : > { %v3478_v45 = vld [vmem:[%s6195_s15 + $0x3158] sm:$0xff]  ;;  %v783_v47 = vld [vmem:[%s6195_s15 + $0x788] sm:$0xff]  ;;  %v719_v52 = vadd.f32 %v655_v40, %v591_v39  ;;  %v2316_v61 = vld [vmem:[%s6195_s15 + $0x1f70] sm:$0xff]  ;;  %v3540_v62 = vadd.f32 %v3476_v44, %v3412_v50 }
 0x2a4   : > { %v785_v53 = vld [vmem:[%s6195_s15 + $0x798] sm:$0xff]  ;;  %v2122_v54 = vadd.f32 %v2058_v24, %v1994_v42  ;;  %v2124_v55 = vadd.f32 %v2060_v25, %v1996_v43  ;;  %v3604_v56 = vld [vmem:[%s6195_s15 + $0x3348] sm:$0xff]  ;;  %v721_v58 = vadd.f32 %v657_v41, %v593_v46  ;;  %v3542_v63 = vadd.f32 %v3478_v45, %v3414_v51  ;;  %v2515_v30 = vld [vmem:[%s6195_s15 + $0x2140] sm:$0xff] }
 0x2a5   : > { %v3606_v57 = vld [vmem:[%s6195_s15 + $0x3358] sm:$0xff]  ;;  %v911_v59 = vld [vmem:[%s6195_s15 + $0x988] sm:$0xff]  ;;  %v847_v0 = vadd.f32 %v783_v47, %v719_v52  ;;  %v3668_v8 = vadd.f32 %v3604_v56, %v3540_v62  ;;  %v2517_v34 = vld [vmem:[%s6195_s15 + $0x2150] sm:$0xff] }
 0x2a6   : > { %v913_v1 = vld [vmem:[%s6195_s15 + $0x998] sm:$0xff]  ;;  %v2250_v2 = vadd.f32 %v2186_v48, %v2122_v54  ;;  %v2252_v3 = vadd.f32 %v2188_v49, %v2124_v55  ;;  %v3732_v4 = vld [vmem:[%s6195_s15 + $0x3548] sm:$0xff]  ;;  %v849_v6 = vadd.f32 %v785_v53, %v721_v58  ;;  %v3670_v9 = vadd.f32 %v3606_v57, %v3542_v63  ;;  %v2579_v35 = vld [vmem:[%s6195_s15 + $0x2340] sm:$0xff] }
 0x2a7   : > { %v3734_v5 = vld [vmem:[%s6195_s15 + $0x3558] sm:$0xff]  ;;  %v1039_v7 = vld [vmem:[%s6195_s15 + $0xb88] sm:$0xff]  ;;  %v975_v10 = vadd.f32 %v911_v59, %v847_v0  ;;  %v3796_v18 = vadd.f32 %v3732_v4, %v3668_v8  ;;  %v2581_v36 = vld [vmem:[%s6195_s15 + $0x2350] sm:$0xff]  ;;  %v2643_v39 = vadd.f32 %v2579_v35, %v2515_v30 }
 0x2a8   : > { %v1041_v11 = vld [vmem:[%s6195_s15 + $0xb98] sm:$0xff]  ;;  %v2378_v12 = vadd.f32 %v2314_v60, %v2250_v2  ;;  %v2380_v13 = vadd.f32 %v2316_v61, %v2252_v3  ;;  %v3860_v14 = vld [vmem:[%s6195_s15 + $0x3748] sm:$0xff]  ;;  %v977_v16 = vadd.f32 %v913_v1, %v849_v6  ;;  %v3798_v19 = vadd.f32 %v3734_v5, %v3670_v9  ;;  %v2707_v41 = vld [vmem:[%s6195_s15 + $0x2540] sm:$0xff] }
 0x2a9   : > { %v3862_v15 = vld [vmem:[%s6195_s15 + $0x3758] sm:$0xff]  ;;  %v1167_v17 = vld [vmem:[%s6195_s15 + $0xd88] sm:$0xff]  ;;  %v1103_v22 = vadd.f32 %v1039_v7, %v975_v10  ;;  %v3924_v31 = vadd.f32 %v3860_v14, %v3796_v18  ;;  %v2645_v40 = vadd.f32 %v2581_v36, %v2517_v34  ;;  %v2709_v42 = vld [vmem:[%s6195_s15 + $0x2550] sm:$0xff]  ;;  %v2771_v53 = vadd.f32 %v2707_v41, %v2643_v39 }
 0x2aa   : > { %v3988_v20 = vld [vmem:[%s6195_s15 + $0x3948] sm:$0xff]  ;;  %v3990_v21 = vld [vmem:[%s6195_s15 + $0x3958] sm:$0xff]  ;;  %v5306_v24 = vpack.c.bf16 %v2380_v13, %v2378_v12  ;;  %v1105_v27 = vadd.f32 %v1041_v11, %v977_v16  ;;  %v3926_v32 = vadd.f32 %v3862_v15, %v3798_v19  ;;  %v2835_v47 = vld [vmem:[%s6195_s15 + $0x2740] sm:$0xff] }
 0x2ab   : > { %v1169_v23 = vld [vmem:[%s6195_s15 + $0xd98] sm:$0xff]  ;;  %v4116_v25 = vld [vmem:[%s6195_s15 + $0x3b48] sm:$0xff]  ;;  %v1231_v33 = vadd.f32 %v1167_v17, %v1103_v22  ;;  %v4052_v43 = vadd.f32 %v3988_v20, %v3924_v31  ;;  %v2837_v48 = vld [vmem:[%s6195_s15 + $0x2750] sm:$0xff]  ;;  %v2773_v54 = vadd.f32 %v2709_v42, %v2645_v40  ;;  %v2899_v1 = vadd.f32 %v2835_v47, %v2771_v53 }
 0x2ac   : > { %v4118_v26 = vld [vmem:[%s6195_s15 + $0x3b58] sm:$0xff]  ;;  %v1295_v28 = vld [vmem:[%s6195_s15 + $0xf88] sm:$0xff]  ;;  %5307 = vmatpush1.bf16.msra.mxu0 %v5306_v24  ;;  %v1233_v37 = vadd.f32 %v1169_v23, %v1105_v27  ;;  %v4054_v44 = vadd.f32 %v3990_v21, %v3926_v32  ;;  %v2963_v59 = vld [vmem:[%s6195_s15 + $0x2940] sm:$0xff] }
 0x2ad   : > { %v1297_v29 = vld [vmem:[%s6195_s15 + $0xf98] sm:$0xff]  ;;  %v1423_v38 = vld [vmem:[%s6195_s15 + $0x1188] sm:$0xff]  ;;  %v1359_v45 = vadd.f32 %v1295_v28, %v1231_v33  ;;  %v4180_v55 = vadd.f32 %v4116_v25, %v4052_v43  ;;  %v2965_v60 = vld [vmem:[%s6195_s15 + $0x2950] sm:$0xff]  ;;  %v2901_v2 = vadd.f32 %v2837_v48, %v2773_v54  ;;  %v3027_v12 = vadd.f32 %v2963_v59, %v2899_v1 }
 0x2ae   : > { %v1425_v46 = vld [vmem:[%s6195_s15 + $0x1198] sm:$0xff]  ;;  %v4244_v49 = vld [vmem:[%s6195_s15 + $0x3d48] sm:$0xff]  ;;  %v1361_v51 = vadd.f32 %v1297_v29, %v1233_v37  ;;  %v4182_v56 = vadd.f32 %v4118_v26, %v4054_v44  ;;  %v3091_v7 = vld [vmem:[%s6195_s15 + $0x2b40] sm:$0xff] }
 0x2af   : > { %v4246_v50 = vld [vmem:[%s6195_s15 + $0x3d58] sm:$0xff]  ;;  %v1551_v52 = vld [vmem:[%s6195_s15 + $0x1388] sm:$0xff]  ;;  %v1487_v57 = vadd.f32 %v1423_v38, %v1359_v45  ;;  %v4308_v3 = vadd.f32 %v4244_v49, %v4180_v55  ;;  %v3093_v8 = vld [vmem:[%s6195_s15 + $0x2b50] sm:$0xff]  ;;  %v3029_v13 = vadd.f32 %v2965_v60, %v2901_v2  ;;  %v3155_v23 = vadd.f32 %v3091_v7, %v3027_v12 }
 0x2b0   : > { %v1553_v58 = vld [vmem:[%s6195_s15 + $0x1398] sm:$0xff]  ;;  %v4372_v61 = vld [vmem:[%s6195_s15 + $0x3f48] sm:$0xff]  ;;  %v1489_v63 = vadd.f32 %v1425_v46, %v1361_v51  ;;  %v4310_v4 = vadd.f32 %v4246_v50, %v4182_v56  ;;  %v3219_v18 = vld [vmem:[%s6195_s15 + $0x2d40] sm:$0xff] }
 0x2b1   : > { %v4374_v62 = vld [vmem:[%s6195_s15 + $0x3f58] sm:$0xff]  ;;  %v1679_v0 = vld [vmem:[%s6195_s15 + $0x1588] sm:$0xff]  ;;  %v1615_v5 = vadd.f32 %v1551_v52, %v1487_v57  ;;  %v4436_v14 = vadd.f32 %v4372_v61, %v4308_v3  ;;  %v3221_v19 = vld [vmem:[%s6195_s15 + $0x2d50] sm:$0xff]  ;;  %v3157_v24 = vadd.f32 %v3093_v8, %v3029_v13  ;;  %v3283_v33 = vadd.f32 %v3219_v18, %v3155_v23 }
 0x2b2   : > { %v1681_v6 = vld [vmem:[%s6195_s15 + $0x1598] sm:$0xff]  ;;  %v1617_v9 = vadd.f32 %v1553_v58, %v1489_v63  ;;  %v1807_v10 = vld [vmem:[%s6195_s15 + $0x1788] sm:$0xff]  ;;  %v4438_v15 = vadd.f32 %v4374_v62, %v4310_v4  ;;  %v3347_v25 = vld [vmem:[%s6195_s15 + $0x2f40] sm:$0xff] }
 0x2b3   : > { %v1809_v11 = vld [vmem:[%s6195_s15 + $0x1798] sm:$0xff]  ;;  %v1743_v16 = vadd.f32 %v1679_v0, %v1615_v5  ;;  %v1935_v17 = vld [vmem:[%s6195_s15 + $0x1988] sm:$0xff]  ;;  %v3349_v29 = vld [vmem:[%s6195_s15 + $0x2f50] sm:$0xff]  ;;  %v3285_v34 = vadd.f32 %v3221_v19, %v3157_v24  ;;  %v3411_v46 = vadd.f32 %v3347_v25, %v3283_v33 }
 0x2b4   : > { %v1745_v20 = vadd.f32 %v1681_v6, %v1617_v9  ;;  %v1937_v21 = vld [vmem:[%s6195_s15 + $0x1998] sm:$0xff]  ;;  %v2063_v22 = vld [vmem:[%s6195_s15 + $0x1b88] sm:$0xff]  ;;  %v5364_v26 = vpack.c.bf16 %v4438_v15, %v4436_v14  ;;  %v462_v30 = vld [vmem:[%s6195_s15 + $0x180] sm:$0xff] }
 0x2b5   : > { %v1871_v27 = vadd.f32 %v1807_v10, %v1743_v16  ;;  %v2065_v28 = vld [vmem:[%s6195_s15 + $0x1b98] sm:$0xff]  ;;  %v464_v31 = vld [vmem:[%s6195_s15 + $0x190] sm:$0xff]  ;;  %v526_v35 = vld [vmem:[%s6195_s15 + $0x380] sm:$0xff]  ;;  %v3413_v47 = vadd.f32 %v3349_v29, %v3285_v34 }
 0x2b6   : > { %v1873_v32 = vadd.f32 %v1809_v11, %v1745_v20  ;;  %v528_v36 = vld [vmem:[%s6195_s15 + $0x390] sm:$0xff]  ;;  %v654_v37 = vld [vmem:[%s6195_s15 + $0x580] sm:$0xff]  ;;  %5365 = vmatprep.subr.bf16.mxu1 %v5364_v26  ;;  %v590_v41 = vadd.f32 %v526_v35, %v462_v30  ;;  %v2191_v45 = vld [vmem:[%s6195_s15 + $0x1d88] sm:$0xff] }
 0x2b7   : > { %v1999_v38 = vadd.f32 %v1935_v17, %v1871_v27  ;;  %v3475_v39 = vld [vmem:[%s6195_s15 + $0x3140] sm:$0xff]  ;;  %v3477_v40 = vld [vmem:[%s6195_s15 + $0x3150] sm:$0xff]  ;;  %v592_v42 = vadd.f32 %v528_v36, %v464_v31  ;;  %v2193_v51 = vld [vmem:[%s6195_s15 + $0x1d98] sm:$0xff] }
 0x2b8   : > { %v656_v43 = vld [vmem:[%s6195_s15 + $0x590] sm:$0xff]  ;;  %v2001_v44 = vadd.f32 %v1937_v21, %v1873_v32  ;;  %v782_v48 = vld [vmem:[%s6195_s15 + $0x780] sm:$0xff]  ;;  %v718_v54 = vadd.f32 %v654_v37, %v590_v41  ;;  %v2319_v57 = vld [vmem:[%s6195_s15 + $0x1f88] sm:$0xff]  ;;  %v3539_v58 = vadd.f32 %v3475_v39, %v3411_v46  ;;  %v3541_v59 = vadd.f32 %v3477_v40, %v3413_v47 }
 0x2b9   : > { %v784_v49 = vld [vmem:[%s6195_s15 + $0x790] sm:$0xff]  ;;  %v2127_v50 = vadd.f32 %v2063_v22, %v1999_v38  ;;  %v3603_v52 = vld [vmem:[%s6195_s15 + $0x3340] sm:$0xff]  ;;  %v720_v55 = vadd.f32 %v656_v43, %v592_v42  ;;  %v2321_v63 = vld [vmem:[%s6195_s15 + $0x1f98] sm:$0xff] }
 0x2ba   : > { %v3605_v53 = vld [vmem:[%s6195_s15 + $0x3350] sm:$0xff]  ;;  %v2129_v56 = vadd.f32 %v2065_v28, %v2001_v44  ;;  %v910_v60 = vld [vmem:[%s6195_s15 + $0x980] sm:$0xff]  ;;  %v846_v2 = vadd.f32 %v782_v48, %v718_v54  ;;  %v3667_v5 = vadd.f32 %v3603_v52, %v3539_v58  ;;  %v2520_v30 = vld [vmem:[%s6195_s15 + $0x2168] sm:$0xff] }
 0x2bb   : > { %v912_v61 = vld [vmem:[%s6195_s15 + $0x990] sm:$0xff]  ;;  %v2255_v62 = vadd.f32 %v2191_v45, %v2127_v50  ;;  %v3731_v0 = vld [vmem:[%s6195_s15 + $0x3540] sm:$0xff]  ;;  %v848_v3 = vadd.f32 %v784_v49, %v720_v55  ;;  %v3669_v6 = vadd.f32 %v3605_v53, %v3541_v59  ;;  %v2522_v31 = vld [vmem:[%s6195_s15 + $0x2178] sm:$0xff] }
 0x2bc   : > { %v3733_v1 = vld [vmem:[%s6195_s15 + $0x3550] sm:$0xff]  ;;  %v2257_v4 = vadd.f32 %v2193_v51, %v2129_v56  ;;  %v1038_v7 = vld [vmem:[%s6195_s15 + $0xb80] sm:$0xff]  ;;  %v974_v13 = vadd.f32 %v910_v60, %v846_v2  ;;  %v3795_v16 = vadd.f32 %v3731_v0, %v3667_v5  ;;  %v2584_v32 = vld [vmem:[%s6195_s15 + $0x2368] sm:$0xff] }
 0x2bd   : > { %v1040_v8 = vld [vmem:[%s6195_s15 + $0xb90] sm:$0xff]  ;;  %v2383_v9 = vadd.f32 %v2319_v57, %v2255_v62  ;;  %v3859_v10 = vld [vmem:[%s6195_s15 + $0x3740] sm:$0xff]  ;;  %v976_v14 = vadd.f32 %v912_v61, %v848_v3  ;;  %v3797_v17 = vadd.f32 %v3733_v1, %v3669_v6  ;;  %v2586_v35 = vld [vmem:[%s6195_s15 + $0x2378] sm:$0xff]  ;;  %v2648_v36 = vadd.f32 %v2584_v32, %v2520_v30 }
 0x2be   : > { %v3861_v11 = vld [vmem:[%s6195_s15 + $0x3750] sm:$0xff]  ;;  %v3987_v12 = vld [vmem:[%s6195_s15 + $0x3940] sm:$0xff]  ;;  %v2385_v15 = vadd.f32 %v2321_v63, %v2257_v4  ;;  %v1102_v23 = vadd.f32 %v1038_v7, %v974_v13  ;;  %v3923_v28 = vadd.f32 %v3859_v10, %v3795_v16  ;;  %v2712_v37 = vld [vmem:[%s6195_s15 + $0x2568] sm:$0xff]  ;;  %v2650_v43 = vadd.f32 %v2586_v35, %v2522_v31 }
 0x2bf   : > { %v3989_v18 = vld [vmem:[%s6195_s15 + $0x3950] sm:$0xff]  ;;  %v1166_v19 = vld [vmem:[%s6195_s15 + $0xd80] sm:$0xff]  ;;  %v1104_v24 = vadd.f32 %v1040_v8, %v976_v14  ;;  %v3925_v29 = vadd.f32 %v3861_v11, %v3797_v17  ;;  %v2714_v38 = vld [vmem:[%s6195_s15 + $0x2578] sm:$0xff]  ;;  %v2776_v49 = vadd.f32 %v2712_v37, %v2648_v36 }
 0x2c0   : > { %v1168_v20 = vld [vmem:[%s6195_s15 + $0xd90] sm:$0xff]  ;;  %v4115_v21 = vld [vmem:[%s6195_s15 + $0x3b40] sm:$0xff]  ;;  %v5308_v27 = vpack.c.bf16 %v2385_v15, %v2383_v9  ;;  %v1230_v33 = vadd.f32 %v1166_v19, %v1102_v23  ;;  %v4051_v39 = vadd.f32 %v3987_v12, %v3923_v28  ;;  %v2840_v44 = vld [vmem:[%s6195_s15 + $0x2768] sm:$0xff]  ;;  %v2778_v55 = vadd.f32 %v2714_v38, %v2650_v43 }
 0x2c1   : > { %v4117_v22 = vld [vmem:[%s6195_s15 + $0x3b50] sm:$0xff]  ;;  %v1294_v25 = vld [vmem:[%s6195_s15 + $0xf80] sm:$0xff]  ;;  %v1232_v34 = vadd.f32 %v1168_v20, %v1104_v24  ;;  %v4053_v40 = vadd.f32 %v3989_v18, %v3925_v29  ;;  %v2842_v50 = vld [vmem:[%s6195_s15 + $0x2778] sm:$0xff]  ;;  %v2904_v61 = vadd.f32 %v2840_v44, %v2776_v49 }
 0x2c2   : > { %v1296_v26 = vld [vmem:[%s6195_s15 + $0xf90] sm:$0xff]  ;;  %5309 = vmatprep.subr.bf16.mxu0 %v5308_v27  ;;  %v1422_v41 = vld [vmem:[%s6195_s15 + $0x1180] sm:$0xff]  ;;  %v1358_v47 = vadd.f32 %v1294_v25, %v1230_v33  ;;  %v4179_v51 = vadd.f32 %v4115_v21, %v4051_v39  ;;  %v2968_v56 = vld [vmem:[%s6195_s15 + $0x2968] sm:$0xff]  ;;  %v2906_v3 = vadd.f32 %v2842_v50, %v2778_v55 }
 0x2c3   : > { %v1424_v42 = vld [vmem:[%s6195_s15 + $0x1190] sm:$0xff]  ;;  %v4243_v45 = vld [vmem:[%s6195_s15 + $0x3d40] sm:$0xff]  ;;  %v1360_v48 = vadd.f32 %v1296_v26, %v1232_v34  ;;  %v4181_v52 = vadd.f32 %v4117_v22, %v4053_v40  ;;  %v2970_v62 = vld [vmem:[%s6195_s15 + $0x2978] sm:$0xff]  ;;  %v3032_v7 = vadd.f32 %v2968_v56, %v2904_v61 }
 0x2c4   : > { %v4245_v46 = vld [vmem:[%s6195_s15 + $0x3d50] sm:$0xff]  ;;  %v1550_v53 = vld [vmem:[%s6195_s15 + $0x1380] sm:$0xff]  ;;  %v1486_v59 = vadd.f32 %v1422_v41, %v1358_v47  ;;  %v4307_v63 = vadd.f32 %v4243_v45, %v4179_v51  ;;  %v3096_v4 = vld [vmem:[%s6195_s15 + $0x2b68] sm:$0xff]  ;;  %v3034_v13 = vadd.f32 %v2970_v62, %v2906_v3 }
 0x2c5   : > { %v1552_v54 = vld [vmem:[%s6195_s15 + $0x1390] sm:$0xff]  ;;  %v4371_v57 = vld [vmem:[%s6195_s15 + $0x3f40] sm:$0xff]  ;;  %v1488_v60 = vadd.f32 %v1424_v42, %v1360_v48  ;;  %v4309_v0 = vadd.f32 %v4245_v46, %v4181_v52  ;;  %v3098_v8 = vld [vmem:[%s6195_s15 + $0x2b78] sm:$0xff]  ;;  %v3160_v19 = vadd.f32 %v3096_v4, %v3032_v7 }
 0x2c6   : > { %v4373_v58 = vld [vmem:[%s6195_s15 + $0x3f50] sm:$0xff]  ;;  %v1678_v1 = vld [vmem:[%s6195_s15 + $0x1580] sm:$0xff]  ;;  %v1614_v5 = vadd.f32 %v1550_v53, %v1486_v59  ;;  %v4435_v9 = vadd.f32 %v4371_v57, %v4307_v63  ;;  %v3224_v14 = vld [vmem:[%s6195_s15 + $0x2d68] sm:$0xff]  ;;  %v3162_v24 = vadd.f32 %v3098_v8, %v3034_v13 }
 0x2c7   : > { %v1680_v2 = vld [vmem:[%s6195_s15 + $0x1590] sm:$0xff]  ;;  %v1616_v6 = vadd.f32 %v1552_v54, %v1488_v60  ;;  %v4437_v10 = vadd.f32 %v4373_v58, %v4309_v0  ;;  %v1806_v11 = vld [vmem:[%s6195_s15 + $0x1780] sm:$0xff]  ;;  %v3226_v20 = vld [vmem:[%s6195_s15 + $0x2d78] sm:$0xff]  ;;  %v3288_v30 = vadd.f32 %v3224_v14, %v3160_v19 }
 0x2c8   : > { %v1808_v12 = vld [vmem:[%s6195_s15 + $0x1790] sm:$0xff]  ;;  %v1742_v15 = vadd.f32 %v1678_v1, %v1614_v5  ;;  %v1934_v17 = vld [vmem:[%s6195_s15 + $0x1980] sm:$0xff]  ;;  %v3352_v25 = vld [vmem:[%s6195_s15 + $0x2f68] sm:$0xff]  ;;  %v3290_v34 = vadd.f32 %v3226_v20, %v3162_v24 }
 0x2c9   : > { %v1744_v16 = vadd.f32 %v1680_v2, %v1616_v6  ;;  %v1936_v18 = vld [vmem:[%s6195_s15 + $0x1990] sm:$0xff]  ;;  %v5366_v21 = vpack.c.bf16 %v4437_v10, %v4435_v9  ;;  %v2062_v22 = vld [vmem:[%s6195_s15 + $0x1b80] sm:$0xff]  ;;  %v3354_v26 = vld [vmem:[%s6195_s15 + $0x2f78] sm:$0xff]  ;;  %v3416_v42 = vadd.f32 %v3352_v25, %v3288_v30 }
 0x2ca   : > { %v2064_v23 = vld [vmem:[%s6195_s15 + $0x1b90] sm:$0xff]  ;;  %v467_v27 = vld [vmem:[%s6195_s15 + $0x1a8] sm:$0xff]  ;;  %v1870_v28 = vadd.f32 %v1806_v11, %v1742_v15  ;;  %v469_v31 = vld [vmem:[%s6195_s15 + $0x1b8] sm:$0xff]  ;;  %v3418_v48 = vadd.f32 %v3354_v26, %v3290_v34 }
 0x2cb   : > { %v1872_v29 = vadd.f32 %v1808_v12, %v1744_v16  ;;  %v531_v32 = vld [vmem:[%s6195_s15 + $0x3a8] sm:$0xff]  ;;  %v533_v33 = vld [vmem:[%s6195_s15 + $0x3b8] sm:$0xff]  ;;  %5367 = vmatpush1.bf16.msra.mxu1 %v5366_v21  ;;  %v2190_v46 = vld [vmem:[%s6195_s15 + $0x1d80] sm:$0xff] }
 0x2cc   : > { %v3480_v35 = vld [vmem:[%s6195_s15 + $0x3168] sm:$0xff]  ;;  %v595_v36 = vadd.f32 %v531_v32, %v467_v27  ;;  %v597_v37 = vadd.f32 %v533_v33, %v469_v31  ;;  %v661_v39 = vld [vmem:[%s6195_s15 + $0x5b8] sm:$0xff]  ;;  %v1998_v40 = vadd.f32 %v1934_v17, %v1870_v28  ;;  %v2192_v47 = vld [vmem:[%s6195_s15 + $0x1d90] sm:$0xff] }
 0x2cd   : > { %v659_v38 = vld [vmem:[%s6195_s15 + $0x5a8] sm:$0xff]  ;;  %v2000_v41 = vadd.f32 %v1936_v18, %v1872_v29  ;;  %v3482_v43 = vld [vmem:[%s6195_s15 + $0x3178] sm:$0xff]  ;;  %v3544_v54 = vadd.f32 %v3480_v35, %v3416_v42  ;;  %v2318_v58 = vld [vmem:[%s6195_s15 + $0x1f80] sm:$0xff] }
 0x2ce   : > { %v787_v44 = vld [vmem:[%s6195_s15 + $0x7a8] sm:$0xff]  ;;  %v789_v45 = vld [vmem:[%s6195_s15 + $0x7b8] sm:$0xff]  ;;  %v723_v50 = vadd.f32 %v659_v38, %v595_v36  ;;  %v725_v51 = vadd.f32 %v661_v39, %v597_v37  ;;  %v2126_v52 = vadd.f32 %v2062_v22, %v1998_v40  ;;  %v2320_v59 = vld [vmem:[%s6195_s15 + $0x1f90] sm:$0xff]  ;;  %v3546_v60 = vadd.f32 %v3482_v43, %v3418_v48 }
 0x2cf   : > { %v3608_v49 = vld [vmem:[%s6195_s15 + $0x3368] sm:$0xff]  ;;  %v2128_v53 = vadd.f32 %v2064_v23, %v2000_v41  ;;  %v3610_v55 = vld [vmem:[%s6195_s15 + $0x3378] sm:$0xff]  ;;  %v2519_v27 = vld [vmem:[%s6195_s15 + $0x2160] sm:$0xff] }
 0x2d0   : > { %v915_v56 = vld [vmem:[%s6195_s15 + $0x9a8] sm:$0xff]  ;;  %v917_v57 = vld [vmem:[%s6195_s15 + $0x9b8] sm:$0xff]  ;;  %v851_v62 = vadd.f32 %v787_v44, %v723_v50  ;;  %v853_v63 = vadd.f32 %v789_v45, %v725_v51  ;;  %v2254_v0 = vadd.f32 %v2190_v46, %v2126_v52  ;;  %v3672_v2 = vadd.f32 %v3608_v49, %v3544_v54  ;;  %v2521_v28 = vld [vmem:[%s6195_s15 + $0x2170] sm:$0xff] }
 0x2d1   : > { %v3736_v61 = vld [vmem:[%s6195_s15 + $0x3568] sm:$0xff]  ;;  %v2256_v1 = vadd.f32 %v2192_v47, %v2128_v53  ;;  %v3738_v3 = vld [vmem:[%s6195_s15 + $0x3578] sm:$0xff]  ;;  %v3674_v6 = vadd.f32 %v3610_v55, %v3546_v60  ;;  %v2583_v32 = vld [vmem:[%s6195_s15 + $0x2360] sm:$0xff] }
 0x2d2   : > { %v1043_v4 = vld [vmem:[%s6195_s15 + $0xba8] sm:$0xff]  ;;  %v1045_v5 = vld [vmem:[%s6195_s15 + $0xbb8] sm:$0xff]  ;;  %v979_v9 = vadd.f32 %v915_v56, %v851_v62  ;;  %v981_v10 = vadd.f32 %v917_v57, %v853_v63  ;;  %v2382_v11 = vadd.f32 %v2318_v58, %v2254_v0  ;;  %v3800_v13 = vadd.f32 %v3736_v61, %v3672_v2  ;;  %v2585_v33 = vld [vmem:[%s6195_s15 + $0x2370] sm:$0xff] }
 0x2d3   : > { %v3864_v7 = vld [vmem:[%s6195_s15 + $0x3768] sm:$0xff]  ;;  %v3866_v8 = vld [vmem:[%s6195_s15 + $0x3778] sm:$0xff]  ;;  %v2384_v12 = vadd.f32 %v2320_v59, %v2256_v1  ;;  %v3802_v17 = vadd.f32 %v3738_v3, %v3674_v6  ;;  %v2711_v34 = vld [vmem:[%s6195_s15 + $0x2560] sm:$0xff]  ;;  %v2647_v38 = vadd.f32 %v2583_v32, %v2519_v27  ;;  %v2649_v39 = vadd.f32 %v2585_v33, %v2521_v28 }
 0x2d4   : > { %v3992_v14 = vld [vmem:[%s6195_s15 + $0x3968] sm:$0xff]  ;;  %v1173_v16 = vld [vmem:[%s6195_s15 + $0xdb8] sm:$0xff]  ;;  %v1107_v20 = vadd.f32 %v1043_v4, %v979_v9  ;;  %v1109_v21 = vadd.f32 %v1045_v5, %v981_v10  ;;  %v3928_v24 = vadd.f32 %v3864_v7, %v3800_v13  ;;  %v2713_v40 = vld [vmem:[%s6195_s15 + $0x2570] sm:$0xff] }
 0x2d5   : > { %v1171_v15 = vld [vmem:[%s6195_s15 + $0xda8] sm:$0xff]  ;;  %v3994_v18 = vld [vmem:[%s6195_s15 + $0x3978] sm:$0xff]  ;;  %v5310_v23 = vpack.c.bf16 %v2384_v12, %v2382_v11  ;;  %v3930_v29 = vadd.f32 %v3866_v8, %v3802_v17  ;;  %v2839_v45 = vld [vmem:[%s6195_s15 + $0x2760] sm:$0xff]  ;;  %v2775_v51 = vadd.f32 %v2711_v34, %v2647_v38  ;;  %v2777_v52 = vadd.f32 %v2713_v40, %v2649_v39 }
 0x2d6   : > { %v4120_v19 = vld [vmem:[%s6195_s15 + $0x3b68] sm:$0xff]  ;;  %v4122_v25 = vld [vmem:[%s6195_s15 + $0x3b78] sm:$0xff]  ;;  %v1235_v30 = vadd.f32 %v1171_v15, %v1107_v20  ;;  %v1237_v31 = vadd.f32 %v1173_v16, %v1109_v21  ;;  %v4056_v35 = vadd.f32 %v3992_v14, %v3928_v24  ;;  %v2841_v46 = vld [vmem:[%s6195_s15 + $0x2770] sm:$0xff] }
 0x2d7   : > { %v1299_v22 = vld [vmem:[%s6195_s15 + $0xfa8] sm:$0xff]  ;;  %v1301_v26 = vld [vmem:[%s6195_s15 + $0xfb8] sm:$0xff]  ;;  %5311 = vmatpush1.bf16.msra.mxu0 %v5310_v23  ;;  %v4058_v41 = vadd.f32 %v3994_v18, %v3930_v29  ;;  %v2967_v57 = vld [vmem:[%s6195_s15 + $0x2960] sm:$0xff]  ;;  %v2903_v63 = vadd.f32 %v2839_v45, %v2775_v51  ;;  %v2905_v0 = vadd.f32 %v2841_v46, %v2777_v52 }
 0x2d8   : > { %v1427_v36 = vld [vmem:[%s6195_s15 + $0x11a8] sm:$0xff]  ;;  %v1429_v37 = vld [vmem:[%s6195_s15 + $0x11b8] sm:$0xff]  ;;  %v1363_v43 = vadd.f32 %v1299_v22, %v1235_v30  ;;  %v1365_v44 = vadd.f32 %v1301_v26, %v1237_v31  ;;  %v4184_v47 = vadd.f32 %v4120_v19, %v4056_v35  ;;  %v2969_v58 = vld [vmem:[%s6195_s15 + $0x2970] sm:$0xff] }
 0x2d9   : > { %v4248_v42 = vld [vmem:[%s6195_s15 + $0x3d68] sm:$0xff]  ;;  %v4250_v48 = vld [vmem:[%s6195_s15 + $0x3d78] sm:$0xff]  ;;  %v4186_v53 = vadd.f32 %v4122_v25, %v4058_v41  ;;  %v3095_v4 = vld [vmem:[%s6195_s15 + $0x2b60] sm:$0xff]  ;;  %v3031_v10 = vadd.f32 %v2967_v57, %v2903_v63  ;;  %v3033_v11 = vadd.f32 %v2969_v58, %v2905_v0 }
 0x2da   : > { %v1555_v49 = vld [vmem:[%s6195_s15 + $0x13a8] sm:$0xff]  ;;  %v1557_v50 = vld [vmem:[%s6195_s15 + $0x13b8] sm:$0xff]  ;;  %v1491_v55 = vadd.f32 %v1427_v36, %v1363_v43  ;;  %v1493_v56 = vadd.f32 %v1429_v37, %v1365_v44  ;;  %v4312_v59 = vadd.f32 %v4248_v42, %v4184_v47  ;;  %v3097_v5 = vld [vmem:[%s6195_s15 + $0x2b70] sm:$0xff] }
 0x2db   : > { %v4376_v54 = vld [vmem:[%s6195_s15 + $0x3f68] sm:$0xff]  ;;  %v4378_v60 = vld [vmem:[%s6195_s15 + $0x3f78] sm:$0xff]  ;;  %v4314_v1 = vadd.f32 %v4250_v48, %v4186_v53  ;;  %v3223_v16 = vld [vmem:[%s6195_s15 + $0x2d60] sm:$0xff]  ;;  %v3159_v20 = vadd.f32 %v3095_v4, %v3031_v10  ;;  %v3161_v21 = vadd.f32 %v3097_v5, %v3033_v11 }
 0x2dc   : > { %v1683_v61 = vld [vmem:[%s6195_s15 + $0x15a8] sm:$0xff]  ;;  %v1685_v62 = vld [vmem:[%s6195_s15 + $0x15b8] sm:$0xff]  ;;  %v1619_v2 = vadd.f32 %v1555_v49, %v1491_v55  ;;  %v1621_v3 = vadd.f32 %v1557_v50, %v1493_v56  ;;  %v4440_v6 = vadd.f32 %v4376_v54, %v4312_v59  ;;  %v3225_v17 = vld [vmem:[%s6195_s15 + $0x2d70] sm:$0xff] }
 0x2dd   : > { %v1811_v7 = vld [vmem:[%s6195_s15 + $0x17a8] sm:$0xff]  ;;  %v1813_v8 = vld [vmem:[%s6195_s15 + $0x17b8] sm:$0xff]  ;;  %v4442_v12 = vadd.f32 %v4378_v60, %v4314_v1  ;;  %v3351_v22 = vld [vmem:[%s6195_s15 + $0x2f60] sm:$0xff]  ;;  %v3287_v30 = vadd.f32 %v3223_v16, %v3159_v20  ;;  %v3289_v31 = vadd.f32 %v3225_v17, %v3161_v21 }
 0x2de   : > { %v1939_v9 = vld [vmem:[%s6195_s15 + $0x19a8] sm:$0xff]  ;;  %v1747_v13 = vadd.f32 %v1683_v61, %v1619_v2  ;;  %v1749_v14 = vadd.f32 %v1685_v62, %v1621_v3  ;;  %v1941_v15 = vld [vmem:[%s6195_s15 + $0x19b8] sm:$0xff]  ;;  %v3353_v23 = vld [vmem:[%s6195_s15 + $0x2f70] sm:$0xff] }
 0x2df   : > { %v2067_v18 = vld [vmem:[%s6195_s15 + $0x1ba8] sm:$0xff]  ;;  %v2069_v19 = vld [vmem:[%s6195_s15 + $0x1bb8] sm:$0xff]  ;;  %v5368_v24 = vpack.c.bf16 %v4442_v12, %v4440_v6  ;;  %v466_v27 = vld [vmem:[%s6195_s15 + $0x1a0] sm:$0xff]  ;;  %v3415_v44 = vadd.f32 %v3351_v22, %v3287_v30  ;;  %v3417_v45 = vadd.f32 %v3353_v23, %v3289_v31 }
 0x2e0   : > { %v1875_v25 = vadd.f32 %v1811_v7, %v1747_v13  ;;  %v1877_v26 = vadd.f32 %v1813_v8, %v1749_v14  ;;  %v468_v28 = vld [vmem:[%s6195_s15 + $0x1b0] sm:$0xff]  ;;  %v530_v29 = vld [vmem:[%s6195_s15 + $0x3a0] sm:$0xff]  ;;  %v2195_v42 = vld [vmem:[%s6195_s15 + $0x1da8] sm:$0xff] }
 0x2e1   : > { %v532_v32 = vld [vmem:[%s6195_s15 + $0x3b0] sm:$0xff]  ;;  %v594_v33 = vadd.f32 %v530_v29, %v466_v27  ;;  %v658_v34 = vld [vmem:[%s6195_s15 + $0x5a0] sm:$0xff]  ;;  %5369 = vmatprep.subr.bf16.mxu1 %v5368_v24  ;;  %v2197_v43 = vld [vmem:[%s6195_s15 + $0x1db8] sm:$0xff] }
 0x2e2   : > { %v660_v35 = vld [vmem:[%s6195_s15 + $0x5b0] sm:$0xff]  ;;  %v2003_v36 = vadd.f32 %v1939_v9, %v1875_v25  ;;  %v2005_v37 = vadd.f32 %v1941_v15, %v1877_v26  ;;  %v3479_v38 = vld [vmem:[%s6195_s15 + $0x3160] sm:$0xff]  ;;  %v596_v40 = vadd.f32 %v532_v32, %v468_v28  ;;  %v2323_v54 = vld [vmem:[%s6195_s15 + $0x1fa8] sm:$0xff] }
 0x2e3   : > { %v3481_v39 = vld [vmem:[%s6195_s15 + $0x3170] sm:$0xff]  ;;  %v786_v41 = vld [vmem:[%s6195_s15 + $0x7a0] sm:$0xff]  ;;  %v722_v46 = vadd.f32 %v658_v34, %v594_v33  ;;  %v2325_v55 = vld [vmem:[%s6195_s15 + $0x1fb8] sm:$0xff]  ;;  %v3543_v56 = vadd.f32 %v3479_v38, %v3415_v44 }
 0x2e4   : > { %v788_v47 = vld [vmem:[%s6195_s15 + $0x7b0] sm:$0xff]  ;;  %v2131_v48 = vadd.f32 %v2067_v18, %v2003_v36  ;;  %v2133_v49 = vadd.f32 %v2069_v19, %v2005_v37  ;;  %v3607_v50 = vld [vmem:[%s6195_s15 + $0x3360] sm:$0xff]  ;;  %v724_v52 = vadd.f32 %v660_v35, %v596_v40  ;;  %v3545_v57 = vadd.f32 %v3481_v39, %v3417_v45  ;;  %v2524_v24 = vld [vmem:[%s6195_s15 + $0x2188] sm:$0xff] }
 0x2e5   : > { %v3609_v51 = vld [vmem:[%s6195_s15 + $0x3370] sm:$0xff]  ;;  %v914_v53 = vld [vmem:[%s6195_s15 + $0x9a0] sm:$0xff]  ;;  %v850_v58 = vadd.f32 %v786_v41, %v722_v46  ;;  %v3671_v2 = vadd.f32 %v3607_v50, %v3543_v56  ;;  %v2526_v28 = vld [vmem:[%s6195_s15 + $0x2198] sm:$0xff] }
 0x2e6   : > { %v916_v59 = vld [vmem:[%s6195_s15 + $0x9b0] sm:$0xff]  ;;  %v2259_v60 = vadd.f32 %v2195_v42, %v2131_v48  ;;  %v2261_v61 = vadd.f32 %v2197_v43, %v2133_v49  ;;  %v3735_v62 = vld [vmem:[%s6195_s15 + $0x3560] sm:$0xff]  ;;  %v852_v0 = vadd.f32 %v788_v47, %v724_v52  ;;  %v3673_v3 = vadd.f32 %v3609_v51, %v3545_v57  ;;  %v2588_v29 = vld [vmem:[%s6195_s15 + $0x2388] sm:$0xff] }
 0x2e7   : > { %v3737_v63 = vld [vmem:[%s6195_s15 + $0x3570] sm:$0xff]  ;;  %v1042_v1 = vld [vmem:[%s6195_s15 + $0xba0] sm:$0xff]  ;;  %v978_v4 = vadd.f32 %v914_v53, %v850_v58  ;;  %v3799_v12 = vadd.f32 %v3735_v62, %v3671_v2  ;;  %v2590_v30 = vld [vmem:[%s6195_s15 + $0x2398] sm:$0xff]  ;;  %v2652_v33 = vadd.f32 %v2588_v29, %v2524_v24 }
 0x2e8   : > { %v1044_v5 = vld [vmem:[%s6195_s15 + $0xbb0] sm:$0xff]  ;;  %v2387_v6 = vadd.f32 %v2323_v54, %v2259_v60  ;;  %v2389_v7 = vadd.f32 %v2325_v55, %v2261_v61  ;;  %v3863_v8 = vld [vmem:[%s6195_s15 + $0x3760] sm:$0xff]  ;;  %v980_v10 = vadd.f32 %v916_v59, %v852_v0  ;;  %v3801_v13 = vadd.f32 %v3737_v63, %v3673_v3  ;;  %v2716_v35 = vld [vmem:[%s6195_s15 + $0x2588] sm:$0xff] }
 0x2e9   : > { %v3865_v9 = vld [vmem:[%s6195_s15 + $0x3770] sm:$0xff]  ;;  %v1170_v11 = vld [vmem:[%s6195_s15 + $0xda0] sm:$0xff]  ;;  %v1106_v16 = vadd.f32 %v1042_v1, %v978_v4  ;;  %v3927_v25 = vadd.f32 %v3863_v8, %v3799_v12  ;;  %v2654_v34 = vadd.f32 %v2590_v30, %v2526_v28  ;;  %v2718_v36 = vld [vmem:[%s6195_s15 + $0x2598] sm:$0xff]  ;;  %v2780_v47 = vadd.f32 %v2716_v35, %v2652_v33 }
 0x2ea   : > { %v3991_v14 = vld [vmem:[%s6195_s15 + $0x3960] sm:$0xff]  ;;  %v3993_v15 = vld [vmem:[%s6195_s15 + $0x3970] sm:$0xff]  ;;  %v5312_v18 = vpack.c.bf16 %v2389_v7, %v2387_v6  ;;  %v1108_v21 = vadd.f32 %v1044_v5, %v980_v10  ;;  %v3929_v26 = vadd.f32 %v3865_v9, %v3801_v13  ;;  %v2844_v41 = vld [vmem:[%s6195_s15 + $0x2788] sm:$0xff] }
 0x2eb   : > { %v1172_v17 = vld [vmem:[%s6195_s15 + $0xdb0] sm:$0xff]  ;;  %v4119_v19 = vld [vmem:[%s6195_s15 + $0x3b60] sm:$0xff]  ;;  %v1234_v27 = vadd.f32 %v1170_v11, %v1106_v16  ;;  %v4055_v37 = vadd.f32 %v3991_v14, %v3927_v25  ;;  %v2846_v42 = vld [vmem:[%s6195_s15 + $0x2798] sm:$0xff]  ;;  %v2782_v48 = vadd.f32 %v2718_v36, %v2654_v34  ;;  %v2908_v59 = vadd.f32 %v2844_v41, %v2780_v47 }
 0x2ec   : > { %v4121_v20 = vld [vmem:[%s6195_s15 + $0x3b70] sm:$0xff]  ;;  %v1298_v22 = vld [vmem:[%s6195_s15 + $0xfa0] sm:$0xff]  ;;  %5313 = vmatprep.subr.bf16.mxu0 %v5312_v18  ;;  %v1236_v31 = vadd.f32 %v1172_v17, %v1108_v21  ;;  %v4057_v38 = vadd.f32 %v3993_v15, %v3929_v26  ;;  %v2972_v53 = vld [vmem:[%s6195_s15 + $0x2988] sm:$0xff] }
 0x2ed   : > { %v1300_v23 = vld [vmem:[%s6195_s15 + $0xfb0] sm:$0xff]  ;;  %v1426_v32 = vld [vmem:[%s6195_s15 + $0x11a0] sm:$0xff]  ;;  %v1362_v39 = vadd.f32 %v1298_v22, %v1234_v27  ;;  %v4183_v49 = vadd.f32 %v4119_v19, %v4055_v37  ;;  %v2974_v54 = vld [vmem:[%s6195_s15 + $0x2998] sm:$0xff]  ;;  %v2910_v60 = vadd.f32 %v2846_v42, %v2782_v48  ;;  %v3036_v6 = vadd.f32 %v2972_v53, %v2908_v59 }
 0x2ee   : > { %v1428_v40 = vld [vmem:[%s6195_s15 + $0x11b0] sm:$0xff]  ;;  %v4247_v43 = vld [vmem:[%s6195_s15 + $0x3d60] sm:$0xff]  ;;  %v1364_v45 = vadd.f32 %v1300_v23, %v1236_v31  ;;  %v4185_v50 = vadd.f32 %v4121_v20, %v4057_v38  ;;  %v3100_v1 = vld [vmem:[%s6195_s15 + $0x2b88] sm:$0xff] }
 0x2ef   : > { %v4249_v44 = vld [vmem:[%s6195_s15 + $0x3d70] sm:$0xff]  ;;  %v1554_v46 = vld [vmem:[%s6195_s15 + $0x13a0] sm:$0xff]  ;;  %v1490_v51 = vadd.f32 %v1426_v32, %v1362_v39  ;;  %v4311_v61 = vadd.f32 %v4247_v43, %v4183_v49  ;;  %v3102_v2 = vld [vmem:[%s6195_s15 + $0x2b98] sm:$0xff]  ;;  %v3038_v7 = vadd.f32 %v2974_v54, %v2910_v60  ;;  %v3164_v17 = vadd.f32 %v3100_v1, %v3036_v6 }
 0x2f0   : > { %v1556_v52 = vld [vmem:[%s6195_s15 + $0x13b0] sm:$0xff]  ;;  %v4375_v55 = vld [vmem:[%s6195_s15 + $0x3f60] sm:$0xff]  ;;  %v1492_v57 = vadd.f32 %v1428_v40, %v1364_v45  ;;  %v4313_v62 = vadd.f32 %v4249_v44, %v4185_v50  ;;  %v3228_v12 = vld [vmem:[%s6195_s15 + $0x2d88] sm:$0xff] }
 0x2f1   : > { %v4377_v56 = vld [vmem:[%s6195_s15 + $0x3f70] sm:$0xff]  ;;  %v1682_v58 = vld [vmem:[%s6195_s15 + $0x15a0] sm:$0xff]  ;;  %v1618_v63 = vadd.f32 %v1554_v46, %v1490_v51  ;;  %v4439_v8 = vadd.f32 %v4375_v55, %v4311_v61  ;;  %v3230_v13 = vld [vmem:[%s6195_s15 + $0x2d98] sm:$0xff]  ;;  %v3166_v18 = vadd.f32 %v3102_v2, %v3038_v7  ;;  %v3292_v27 = vadd.f32 %v3228_v12, %v3164_v17 }
 0x2f2   : > { %v1684_v0 = vld [vmem:[%s6195_s15 + $0x15b0] sm:$0xff]  ;;  %v1620_v3 = vadd.f32 %v1556_v52, %v1492_v57  ;;  %v1810_v4 = vld [vmem:[%s6195_s15 + $0x17a0] sm:$0xff]  ;;  %v4441_v9 = vadd.f32 %v4377_v56, %v4313_v62  ;;  %v3356_v19 = vld [vmem:[%s6195_s15 + $0x2f88] sm:$0xff] }
 0x2f3   : > { %v1812_v5 = vld [vmem:[%s6195_s15 + $0x17b0] sm:$0xff]  ;;  %v1746_v10 = vadd.f32 %v1682_v58, %v1618_v63  ;;  %v1938_v11 = vld [vmem:[%s6195_s15 + $0x19a0] sm:$0xff]  ;;  %v3358_v23 = vld [vmem:[%s6195_s15 + $0x2f98] sm:$0xff]  ;;  %v3294_v28 = vadd.f32 %v3230_v13, %v3166_v18  ;;  %v3420_v40 = vadd.f32 %v3356_v19, %v3292_v27 }
 0x2f4   : > { %v1748_v14 = vadd.f32 %v1684_v0, %v1620_v3  ;;  %v1940_v15 = vld [vmem:[%s6195_s15 + $0x19b0] sm:$0xff]  ;;  %v2066_v16 = vld [vmem:[%s6195_s15 + $0x1ba0] sm:$0xff]  ;;  %v5370_v20 = vpack.c.bf16 %v4441_v9, %v4439_v8  ;;  %v471_v24 = vld [vmem:[%s6195_s15 + $0x1c8] sm:$0xff] }
 0x2f5   : > { %v1874_v21 = vadd.f32 %v1810_v4, %v1746_v10  ;;  %v2068_v22 = vld [vmem:[%s6195_s15 + $0x1bb0] sm:$0xff]  ;;  %v473_v25 = vld [vmem:[%s6195_s15 + $0x1d8] sm:$0xff]  ;;  %v535_v29 = vld [vmem:[%s6195_s15 + $0x3c8] sm:$0xff]  ;;  %v3422_v41 = vadd.f32 %v3358_v23, %v3294_v28 }
 0x2f6   : > { %v1876_v26 = vadd.f32 %v1812_v5, %v1748_v14  ;;  %v537_v30 = vld [vmem:[%s6195_s15 + $0x3d8] sm:$0xff]  ;;  %v663_v31 = vld [vmem:[%s6195_s15 + $0x5c8] sm:$0xff]  ;;  %5371 = vmatpush1.bf16.msra.mxu1 %v5370_v20  ;;  %v599_v35 = vadd.f32 %v535_v29, %v471_v24  ;;  %v2194_v39 = vld [vmem:[%s6195_s15 + $0x1da0] sm:$0xff] }
 0x2f7   : > { %v2002_v32 = vadd.f32 %v1938_v11, %v1874_v21  ;;  %v3484_v33 = vld [vmem:[%s6195_s15 + $0x3188] sm:$0xff]  ;;  %v3486_v34 = vld [vmem:[%s6195_s15 + $0x3198] sm:$0xff]  ;;  %v601_v36 = vadd.f32 %v537_v30, %v473_v25  ;;  %v2196_v45 = vld [vmem:[%s6195_s15 + $0x1db0] sm:$0xff] }
 0x2f8   : > { %v665_v37 = vld [vmem:[%s6195_s15 + $0x5d8] sm:$0xff]  ;;  %v2004_v38 = vadd.f32 %v1940_v15, %v1876_v26  ;;  %v791_v42 = vld [vmem:[%s6195_s15 + $0x7c8] sm:$0xff]  ;;  %v727_v48 = vadd.f32 %v663_v31, %v599_v35  ;;  %v2322_v51 = vld [vmem:[%s6195_s15 + $0x1fa0] sm:$0xff]  ;;  %v3548_v52 = vadd.f32 %v3484_v33, %v3420_v40  ;;  %v3550_v53 = vadd.f32 %v3486_v34, %v3422_v41 }
 0x2f9   : > { %v793_v43 = vld [vmem:[%s6195_s15 + $0x7d8] sm:$0xff]  ;;  %v2130_v44 = vadd.f32 %v2066_v16, %v2002_v32  ;;  %v3612_v46 = vld [vmem:[%s6195_s15 + $0x3388] sm:$0xff]  ;;  %v729_v49 = vadd.f32 %v665_v37, %v601_v36  ;;  %v2324_v57 = vld [vmem:[%s6195_s15 + $0x1fb0] sm:$0xff] }
 0x2fa   : > { %v3614_v47 = vld [vmem:[%s6195_s15 + $0x3398] sm:$0xff]  ;;  %v2132_v50 = vadd.f32 %v2068_v22, %v2004_v38  ;;  %v919_v54 = vld [vmem:[%s6195_s15 + $0x9c8] sm:$0xff]  ;;  %v855_v60 = vadd.f32 %v791_v42, %v727_v48  ;;  %v3676_v63 = vadd.f32 %v3612_v46, %v3548_v52  ;;  %v2523_v24 = vld [vmem:[%s6195_s15 + $0x2180] sm:$0xff] }
 0x2fb   : > { %v921_v55 = vld [vmem:[%s6195_s15 + $0x9d8] sm:$0xff]  ;;  %v2258_v56 = vadd.f32 %v2194_v39, %v2130_v44  ;;  %v3740_v58 = vld [vmem:[%s6195_s15 + $0x3588] sm:$0xff]  ;;  %v857_v61 = vadd.f32 %v793_v43, %v729_v49  ;;  %v3678_v0 = vadd.f32 %v3614_v47, %v3550_v53  ;;  %v2525_v25 = vld [vmem:[%s6195_s15 + $0x2190] sm:$0xff] }
 0x2fc   : > { %v3742_v59 = vld [vmem:[%s6195_s15 + $0x3598] sm:$0xff]  ;;  %v2260_v62 = vadd.f32 %v2196_v45, %v2132_v50  ;;  %v1047_v1 = vld [vmem:[%s6195_s15 + $0xbc8] sm:$0xff]  ;;  %v983_v7 = vadd.f32 %v919_v54, %v855_v60  ;;  %v3804_v10 = vadd.f32 %v3740_v58, %v3676_v63  ;;  %v2587_v26 = vld [vmem:[%s6195_s15 + $0x2380] sm:$0xff] }
 0x2fd   : > { %v1049_v2 = vld [vmem:[%s6195_s15 + $0xbd8] sm:$0xff]  ;;  %v2386_v3 = vadd.f32 %v2322_v51, %v2258_v56  ;;  %v3868_v4 = vld [vmem:[%s6195_s15 + $0x3788] sm:$0xff]  ;;  %v985_v8 = vadd.f32 %v921_v55, %v857_v61  ;;  %v3806_v11 = vadd.f32 %v3742_v59, %v3678_v0  ;;  %v2589_v29 = vld [vmem:[%s6195_s15 + $0x2390] sm:$0xff]  ;;  %v2651_v30 = vadd.f32 %v2587_v26, %v2523_v24 }
 0x2fe   : > { %v3870_v5 = vld [vmem:[%s6195_s15 + $0x3798] sm:$0xff]  ;;  %v3996_v6 = vld [vmem:[%s6195_s15 + $0x3988] sm:$0xff]  ;;  %v2388_v9 = vadd.f32 %v2324_v57, %v2260_v62  ;;  %v1111_v17 = vadd.f32 %v1047_v1, %v983_v7  ;;  %v3932_v22 = vadd.f32 %v3868_v4, %v3804_v10  ;;  %v2715_v31 = vld [vmem:[%s6195_s15 + $0x2580] sm:$0xff]  ;;  %v2653_v37 = vadd.f32 %v2589_v29, %v2525_v25 }
 0x2ff   : > { %v3998_v12 = vld [vmem:[%s6195_s15 + $0x3998] sm:$0xff]  ;;  %v1175_v13 = vld [vmem:[%s6195_s15 + $0xdc8] sm:$0xff]  ;;  %v1113_v18 = vadd.f32 %v1049_v2, %v985_v8  ;;  %v3934_v23 = vadd.f32 %v3870_v5, %v3806_v11  ;;  %v2717_v32 = vld [vmem:[%s6195_s15 + $0x2590] sm:$0xff]  ;;  %v2779_v43 = vadd.f32 %v2715_v31, %v2651_v30 }
 0x300   : > { %v1177_v14 = vld [vmem:[%s6195_s15 + $0xdd8] sm:$0xff]  ;;  %v4124_v15 = vld [vmem:[%s6195_s15 + $0x3b88] sm:$0xff]  ;;  %v5314_v21 = vpack.c.bf16 %v2388_v9, %v2386_v3  ;;  %v1239_v27 = vadd.f32 %v1175_v13, %v1111_v17  ;;  %v4060_v33 = vadd.f32 %v3996_v6, %v3932_v22  ;;  %v2843_v38 = vld [vmem:[%s6195_s15 + $0x2780] sm:$0xff]  ;;  %v2781_v49 = vadd.f32 %v2717_v32, %v2653_v37 }
 0x301   : > { %v4126_v16 = vld [vmem:[%s6195_s15 + $0x3b98] sm:$0xff]  ;;  %v1303_v19 = vld [vmem:[%s6195_s15 + $0xfc8] sm:$0xff]  ;;  %v1241_v28 = vadd.f32 %v1177_v14, %v1113_v18  ;;  %v4062_v34 = vadd.f32 %v3998_v12, %v3934_v23  ;;  %v2845_v44 = vld [vmem:[%s6195_s15 + $0x2790] sm:$0xff]  ;;  %v2907_v55 = vadd.f32 %v2843_v38, %v2779_v43 }
 0x302   : > { %v1305_v20 = vld [vmem:[%s6195_s15 + $0xfd8] sm:$0xff]  ;;  %5315 = vmatpush1.bf16.msra.mxu0 %v5314_v21  ;;  %v1431_v35 = vld [vmem:[%s6195_s15 + $0x11c8] sm:$0xff]  ;;  %v1367_v41 = vadd.f32 %v1303_v19, %v1239_v27  ;;  %v4188_v45 = vadd.f32 %v4124_v15, %v4060_v33  ;;  %v2971_v50 = vld [vmem:[%s6195_s15 + $0x2980] sm:$0xff]  ;;  %v2909_v61 = vadd.f32 %v2845_v44, %v2781_v49 }
 0x303   : > { %v1433_v36 = vld [vmem:[%s6195_s15 + $0x11d8] sm:$0xff]  ;;  %v4252_v39 = vld [vmem:[%s6195_s15 + $0x3d88] sm:$0xff]  ;;  %v1369_v42 = vadd.f32 %v1305_v20, %v1241_v28  ;;  %v4190_v46 = vadd.f32 %v4126_v16, %v4062_v34  ;;  %v2973_v56 = vld [vmem:[%s6195_s15 + $0x2990] sm:$0xff]  ;;  %v3035_v1 = vadd.f32 %v2971_v50, %v2907_v55 }
 0x304   : > { %v4254_v40 = vld [vmem:[%s6195_s15 + $0x3d98] sm:$0xff]  ;;  %v1559_v47 = vld [vmem:[%s6195_s15 + $0x13c8] sm:$0xff]  ;;  %v1495_v53 = vadd.f32 %v1431_v35, %v1367_v41  ;;  %v4316_v57 = vadd.f32 %v4252_v39, %v4188_v45  ;;  %v3099_v62 = vld [vmem:[%s6195_s15 + $0x2b80] sm:$0xff]  ;;  %v3037_v7 = vadd.f32 %v2973_v56, %v2909_v61 }
 0x305   : > { %v1561_v48 = vld [vmem:[%s6195_s15 + $0x13d8] sm:$0xff]  ;;  %v4380_v51 = vld [vmem:[%s6195_s15 + $0x3f88] sm:$0xff]  ;;  %v1497_v54 = vadd.f32 %v1433_v36, %v1369_v42  ;;  %v4318_v58 = vadd.f32 %v4254_v40, %v4190_v46  ;;  %v3101_v2 = vld [vmem:[%s6195_s15 + $0x2b90] sm:$0xff]  ;;  %v3163_v13 = vadd.f32 %v3099_v62, %v3035_v1 }
 0x306   : > { %v4382_v52 = vld [vmem:[%s6195_s15 + $0x3f98] sm:$0xff]  ;;  %v1687_v59 = vld [vmem:[%s6195_s15 + $0x15c8] sm:$0xff]  ;;  %v1623_v63 = vadd.f32 %v1559_v47, %v1495_v53  ;;  %v4444_v3 = vadd.f32 %v4380_v51, %v4316_v57  ;;  %v3227_v8 = vld [vmem:[%s6195_s15 + $0x2d80] sm:$0xff]  ;;  %v3165_v18 = vadd.f32 %v3101_v2, %v3037_v7 }
 0x307   : > { %v1689_v60 = vld [vmem:[%s6195_s15 + $0x15d8] sm:$0xff]  ;;  %v1625_v0 = vadd.f32 %v1561_v48, %v1497_v54  ;;  %v4446_v4 = vadd.f32 %v4382_v52, %v4318_v58  ;;  %v1815_v5 = vld [vmem:[%s6195_s15 + $0x17c8] sm:$0xff]  ;;  %v3229_v14 = vld [vmem:[%s6195_s15 + $0x2d90] sm:$0xff]  ;;  %v3291_v24 = vadd.f32 %v3227_v8, %v3163_v13 }
 0x308   : > { %v1817_v6 = vld [vmem:[%s6195_s15 + $0x17d8] sm:$0xff]  ;;  %v1751_v9 = vadd.f32 %v1687_v59, %v1623_v63  ;;  %v1943_v11 = vld [vmem:[%s6195_s15 + $0x19c8] sm:$0xff]  ;;  %v3355_v19 = vld [vmem:[%s6195_s15 + $0x2f80] sm:$0xff]  ;;  %v3293_v28 = vadd.f32 %v3229_v14, %v3165_v18 }
 0x309   : > { %v1753_v10 = vadd.f32 %v1689_v60, %v1625_v0  ;;  %v1945_v12 = vld [vmem:[%s6195_s15 + $0x19d8] sm:$0xff]  ;;  %v5372_v15 = vpack.c.bf16 %v4446_v4, %v4444_v3  ;;  %v2071_v16 = vld [vmem:[%s6195_s15 + $0x1bc8] sm:$0xff]  ;;  %v3357_v20 = vld [vmem:[%s6195_s15 + $0x2f90] sm:$0xff]  ;;  %v3419_v36 = vadd.f32 %v3355_v19, %v3291_v24 }
 0x30a   : > { %v2073_v17 = vld [vmem:[%s6195_s15 + $0x1bd8] sm:$0xff]  ;;  %v470_v21 = vld [vmem:[%s6195_s15 + $0x1c0] sm:$0xff]  ;;  %v1879_v22 = vadd.f32 %v1815_v5, %v1751_v9  ;;  %v472_v25 = vld [vmem:[%s6195_s15 + $0x1d0] sm:$0xff]  ;;  %v3421_v42 = vadd.f32 %v3357_v20, %v3293_v28 }
 0x30b   : > { %v1881_v23 = vadd.f32 %v1817_v6, %v1753_v10  ;;  %v534_v26 = vld [vmem:[%s6195_s15 + $0x3c0] sm:$0xff]  ;;  %v536_v27 = vld [vmem:[%s6195_s15 + $0x3d0] sm:$0xff]  ;;  %5373 = vmatprep.subr.bf16.mxu1 %v5372_v15  ;;  %v2199_v40 = vld [vmem:[%s6195_s15 + $0x1dc8] sm:$0xff] }
 0x30c   : > { %v3483_v29 = vld [vmem:[%s6195_s15 + $0x3180] sm:$0xff]  ;;  %v598_v30 = vadd.f32 %v534_v26, %v470_v21  ;;  %v600_v31 = vadd.f32 %v536_v27, %v472_v25  ;;  %v664_v33 = vld [vmem:[%s6195_s15 + $0x5d0] sm:$0xff]  ;;  %v2007_v34 = vadd.f32 %v1943_v11, %v1879_v22  ;;  %v2201_v41 = vld [vmem:[%s6195_s15 + $0x1dd8] sm:$0xff] }
 0x30d   : > { %v662_v32 = vld [vmem:[%s6195_s15 + $0x5c0] sm:$0xff]  ;;  %v2009_v35 = vadd.f32 %v1945_v12, %v1881_v23  ;;  %v3485_v37 = vld [vmem:[%s6195_s15 + $0x3190] sm:$0xff]  ;;  %v3547_v48 = vadd.f32 %v3483_v29, %v3419_v36  ;;  %v2327_v52 = vld [vmem:[%s6195_s15 + $0x1fc8] sm:$0xff] }
 0x30e   : > { %v790_v38 = vld [vmem:[%s6195_s15 + $0x7c0] sm:$0xff]  ;;  %v792_v39 = vld [vmem:[%s6195_s15 + $0x7d0] sm:$0xff]  ;;  %v726_v44 = vadd.f32 %v662_v32, %v598_v30  ;;  %v728_v45 = vadd.f32 %v664_v33, %v600_v31  ;;  %v2135_v46 = vadd.f32 %v2071_v16, %v2007_v34  ;;  %v2329_v53 = vld [vmem:[%s6195_s15 + $0x1fd8] sm:$0xff]  ;;  %v3549_v54 = vadd.f32 %v3485_v37, %v3421_v42 }
 0x30f   : > { %v3611_v43 = vld [vmem:[%s6195_s15 + $0x3380] sm:$0xff]  ;;  %v2137_v47 = vadd.f32 %v2073_v17, %v2009_v35  ;;  %v3613_v49 = vld [vmem:[%s6195_s15 + $0x3390] sm:$0xff]  ;;  %v2528_v21 = vld [vmem:[%s6195_s15 + $0x21a8] sm:$0xff] }
 0x310   : > { %v918_v50 = vld [vmem:[%s6195_s15 + $0x9c0] sm:$0xff]  ;;  %v920_v51 = vld [vmem:[%s6195_s15 + $0x9d0] sm:$0xff]  ;;  %v854_v56 = vadd.f32 %v790_v38, %v726_v44  ;;  %v856_v57 = vadd.f32 %v792_v39, %v728_v45  ;;  %v2263_v58 = vadd.f32 %v2199_v40, %v2135_v46  ;;  %v3675_v60 = vadd.f32 %v3611_v43, %v3547_v48  ;;  %v2530_v22 = vld [vmem:[%s6195_s15 + $0x21b8] sm:$0xff] }
 0x311   : > { %v3739_v55 = vld [vmem:[%s6195_s15 + $0x3580] sm:$0xff]  ;;  %v2265_v59 = vadd.f32 %v2201_v41, %v2137_v47  ;;  %v3741_v61 = vld [vmem:[%s6195_s15 + $0x3590] sm:$0xff]  ;;  %v3677_v0 = vadd.f32 %v3613_v49, %v3549_v54  ;;  %v2592_v26 = vld [vmem:[%s6195_s15 + $0x23a8] sm:$0xff] }
 0x312   : > { %v1046_v62 = vld [vmem:[%s6195_s15 + $0xbc0] sm:$0xff]  ;;  %v1048_v63 = vld [vmem:[%s6195_s15 + $0xbd0] sm:$0xff]  ;;  %v982_v3 = vadd.f32 %v918_v50, %v854_v56  ;;  %v984_v4 = vadd.f32 %v920_v51, %v856_v57  ;;  %v2391_v5 = vadd.f32 %v2327_v52, %v2263_v58  ;;  %v3803_v7 = vadd.f32 %v3739_v55, %v3675_v60  ;;  %v2594_v27 = vld [vmem:[%s6195_s15 + $0x23b8] sm:$0xff] }
 0x313   : > { %v3867_v1 = vld [vmem:[%s6195_s15 + $0x3780] sm:$0xff]  ;;  %v3869_v2 = vld [vmem:[%s6195_s15 + $0x3790] sm:$0xff]  ;;  %v2393_v6 = vadd.f32 %v2329_v53, %v2265_v59  ;;  %v3805_v11 = vadd.f32 %v3741_v61, %v3677_v0  ;;  %v2720_v28 = vld [vmem:[%s6195_s15 + $0x25a8] sm:$0xff]  ;;  %v2656_v32 = vadd.f32 %v2592_v26, %v2528_v21  ;;  %v2658_v33 = vadd.f32 %v2594_v27, %v2530_v22 }
 0x314   : > { %v3995_v8 = vld [vmem:[%s6195_s15 + $0x3980] sm:$0xff]  ;;  %v1176_v10 = vld [vmem:[%s6195_s15 + $0xdd0] sm:$0xff]  ;;  %v1110_v14 = vadd.f32 %v1046_v62, %v982_v3  ;;  %v1112_v15 = vadd.f32 %v1048_v63, %v984_v4  ;;  %v3931_v18 = vadd.f32 %v3867_v1, %v3803_v7  ;;  %v2722_v34 = vld [vmem:[%s6195_s15 + $0x25b8] sm:$0xff] }
 0x315   : > { %v1174_v9 = vld [vmem:[%s6195_s15 + $0xdc0] sm:$0xff]  ;;  %v3997_v12 = vld [vmem:[%s6195_s15 + $0x3990] sm:$0xff]  ;;  %v5316_v17 = vpack.c.bf16 %v2393_v6, %v2391_v5  ;;  %v3933_v23 = vadd.f32 %v3869_v2, %v3805_v11  ;;  %v2848_v39 = vld [vmem:[%s6195_s15 + $0x27a8] sm:$0xff]  ;;  %v2784_v45 = vadd.f32 %v2720_v28, %v2656_v32  ;;  %v2786_v46 = vadd.f32 %v2722_v34, %v2658_v33 }
 0x316   : > { %v4123_v13 = vld [vmem:[%s6195_s15 + $0x3b80] sm:$0xff]  ;;  %v4125_v19 = vld [vmem:[%s6195_s15 + $0x3b90] sm:$0xff]  ;;  %v1238_v24 = vadd.f32 %v1174_v9, %v1110_v14  ;;  %v1240_v25 = vadd.f32 %v1176_v10, %v1112_v15  ;;  %v4059_v29 = vadd.f32 %v3995_v8, %v3931_v18  ;;  %v2850_v40 = vld [vmem:[%s6195_s15 + $0x27b8] sm:$0xff] }
 0x317   : > { %v1302_v16 = vld [vmem:[%s6195_s15 + $0xfc0] sm:$0xff]  ;;  %v1304_v20 = vld [vmem:[%s6195_s15 + $0xfd0] sm:$0xff]  ;;  %5317 = vmatprep.subr.bf16.mxu0 %v5316_v17  ;;  %v4061_v35 = vadd.f32 %v3997_v12, %v3933_v23  ;;  %v2976_v51 = vld [vmem:[%s6195_s15 + $0x29a8] sm:$0xff]  ;;  %v2912_v57 = vadd.f32 %v2848_v39, %v2784_v45  ;;  %v2914_v58 = vadd.f32 %v2850_v40, %v2786_v46 }
 0x318   : > { %v1430_v30 = vld [vmem:[%s6195_s15 + $0x11c0] sm:$0xff]  ;;  %v1432_v31 = vld [vmem:[%s6195_s15 + $0x11d0] sm:$0xff]  ;;  %v1366_v37 = vadd.f32 %v1302_v16, %v1238_v24  ;;  %v1368_v38 = vadd.f32 %v1304_v20, %v1240_v25  ;;  %v4187_v41 = vadd.f32 %v4123_v13, %v4059_v29  ;;  %v2978_v52 = vld [vmem:[%s6195_s15 + $0x29b8] sm:$0xff] }
 0x319   : > { %v4251_v36 = vld [vmem:[%s6195_s15 + $0x3d80] sm:$0xff]  ;;  %v4253_v42 = vld [vmem:[%s6195_s15 + $0x3d90] sm:$0xff]  ;;  %v4189_v47 = vadd.f32 %v4125_v19, %v4061_v35  ;;  %v3104_v62 = vld [vmem:[%s6195_s15 + $0x2ba8] sm:$0xff]  ;;  %v3040_v4 = vadd.f32 %v2976_v51, %v2912_v57  ;;  %v3042_v5 = vadd.f32 %v2978_v52, %v2914_v58 }
 0x31a   : > { %v1558_v43 = vld [vmem:[%s6195_s15 + $0x13c0] sm:$0xff]  ;;  %v1560_v44 = vld [vmem:[%s6195_s15 + $0x13d0] sm:$0xff]  ;;  %v1494_v49 = vadd.f32 %v1430_v30, %v1366_v37  ;;  %v1496_v50 = vadd.f32 %v1432_v31, %v1368_v38  ;;  %v4315_v53 = vadd.f32 %v4251_v36, %v4187_v41  ;;  %v3106_v63 = vld [vmem:[%s6195_s15 + $0x2bb8] sm:$0xff] }
 0x31b   : > { %v4379_v48 = vld [vmem:[%s6195_s15 + $0x3f80] sm:$0xff]  ;;  %v4381_v54 = vld [vmem:[%s6195_s15 + $0x3f90] sm:$0xff]  ;;  %v4317_v59 = vadd.f32 %v4253_v42, %v4189_v47  ;;  %v3232_v10 = vld [vmem:[%s6195_s15 + $0x2da8] sm:$0xff]  ;;  %v3168_v14 = vadd.f32 %v3104_v62, %v3040_v4  ;;  %v3170_v15 = vadd.f32 %v3106_v63, %v3042_v5 }
 0x31c   : > { %v1686_v55 = vld [vmem:[%s6195_s15 + $0x15c0] sm:$0xff]  ;;  %v1688_v56 = vld [vmem:[%s6195_s15 + $0x15d0] sm:$0xff]  ;;  %v1622_v60 = vadd.f32 %v1558_v43, %v1494_v49  ;;  %v1624_v61 = vadd.f32 %v1560_v44, %v1496_v50  ;;  %v4443_v0 = vadd.f32 %v4379_v48, %v4315_v53  ;;  %v3234_v11 = vld [vmem:[%s6195_s15 + $0x2db8] sm:$0xff] }
 0x31d   : > { %v1814_v1 = vld [vmem:[%s6195_s15 + $0x17c0] sm:$0xff]  ;;  %v1816_v2 = vld [vmem:[%s6195_s15 + $0x17d0] sm:$0xff]  ;;  %v4445_v6 = vadd.f32 %v4381_v54, %v4317_v59  ;;  %v3360_v16 = vld [vmem:[%s6195_s15 + $0x2fa8] sm:$0xff]  ;;  %v3296_v24 = vadd.f32 %v3232_v10, %v3168_v14  ;;  %v3298_v25 = vadd.f32 %v3234_v11, %v3170_v15 }
 0x31e   : > { %v1942_v3 = vld [vmem:[%s6195_s15 + $0x19c0] sm:$0xff]  ;;  %v1750_v7 = vadd.f32 %v1686_v55, %v1622_v60  ;;  %v1752_v8 = vadd.f32 %v1688_v56, %v1624_v61  ;;  %v1944_v9 = vld [vmem:[%s6195_s15 + $0x19d0] sm:$0xff]  ;;  %v3362_v17 = vld [vmem:[%s6195_s15 + $0x2fb8] sm:$0xff] }
 0x31f   : > { %v2070_v12 = vld [vmem:[%s6195_s15 + $0x1bc0] sm:$0xff]  ;;  %v2072_v13 = vld [vmem:[%s6195_s15 + $0x1bd0] sm:$0xff]  ;;  %v5374_v18 = vpack.c.bf16 %v4445_v6, %v4443_v0  ;;  %v475_v21 = vld [vmem:[%s6195_s15 + $0x1e8] sm:$0xff]  ;;  %v3424_v38 = vadd.f32 %v3360_v16, %v3296_v24  ;;  %v3426_v39 = vadd.f32 %v3362_v17, %v3298_v25 }
 0x320   : > { %v1878_v19 = vadd.f32 %v1814_v1, %v1750_v7  ;;  %v1880_v20 = vadd.f32 %v1816_v2, %v1752_v8  ;;  %v477_v22 = vld [vmem:[%s6195_s15 + $0x1f8] sm:$0xff]  ;;  %v539_v23 = vld [vmem:[%s6195_s15 + $0x3e8] sm:$0xff]  ;;  %v2198_v36 = vld [vmem:[%s6195_s15 + $0x1dc0] sm:$0xff] }
 0x321   : > { %v541_v26 = vld [vmem:[%s6195_s15 + $0x3f8] sm:$0xff]  ;;  %v603_v27 = vadd.f32 %v539_v23, %v475_v21  ;;  %v667_v28 = vld [vmem:[%s6195_s15 + $0x5e8] sm:$0xff]  ;;  %5375 = vmatpush1.bf16.msra.mxu1 %v5374_v18  ;;  %v2200_v37 = vld [vmem:[%s6195_s15 + $0x1dd0] sm:$0xff] }
 0x322   : > { %v669_v29 = vld [vmem:[%s6195_s15 + $0x5f8] sm:$0xff]  ;;  %v2006_v30 = vadd.f32 %v1942_v3, %v1878_v19  ;;  %v2008_v31 = vadd.f32 %v1944_v9, %v1880_v20  ;;  %v3488_v32 = vld [vmem:[%s6195_s15 + $0x31a8] sm:$0xff]  ;;  %v605_v34 = vadd.f32 %v541_v26, %v477_v22  ;;  %v2326_v48 = vld [vmem:[%s6195_s15 + $0x1fc0] sm:$0xff] }
 0x323   : > { %v3490_v33 = vld [vmem:[%s6195_s15 + $0x31b8] sm:$0xff]  ;;  %v795_v35 = vld [vmem:[%s6195_s15 + $0x7e8] sm:$0xff]  ;;  %v731_v40 = vadd.f32 %v667_v28, %v603_v27  ;;  %v2328_v49 = vld [vmem:[%s6195_s15 + $0x1fd0] sm:$0xff]  ;;  %v3552_v50 = vadd.f32 %v3488_v32, %v3424_v38 }
 0x324   : > { %v797_v41 = vld [vmem:[%s6195_s15 + $0x7f8] sm:$0xff]  ;;  %v2134_v42 = vadd.f32 %v2070_v12, %v2006_v30  ;;  %v2136_v43 = vadd.f32 %v2072_v13, %v2008_v31  ;;  %v3616_v44 = vld [vmem:[%s6195_s15 + $0x33a8] sm:$0xff]  ;;  %v733_v46 = vadd.f32 %v669_v29, %v605_v34  ;;  %v3554_v51 = vadd.f32 %v3490_v33, %v3426_v39  ;;  %v2527_v18 = vld [vmem:[%s6195_s15 + $0x21a0] sm:$0xff] }
 0x325   : > { %v3618_v45 = vld [vmem:[%s6195_s15 + $0x33b8] sm:$0xff]  ;;  %v923_v47 = vld [vmem:[%s6195_s15 + $0x9e8] sm:$0xff]  ;;  %v859_v52 = vadd.f32 %v795_v35, %v731_v40  ;;  %v3680_v60 = vadd.f32 %v3616_v44, %v3552_v50  ;;  %v2529_v22 = vld [vmem:[%s6195_s15 + $0x21b0] sm:$0xff] }
 0x326   : > { %v925_v53 = vld [vmem:[%s6195_s15 + $0x9f8] sm:$0xff]  ;;  %v2262_v54 = vadd.f32 %v2198_v36, %v2134_v42  ;;  %v2264_v55 = vadd.f32 %v2200_v37, %v2136_v43  ;;  %v3744_v56 = vld [vmem:[%s6195_s15 + $0x35a8] sm:$0xff]  ;;  %v861_v58 = vadd.f32 %v797_v41, %v733_v46  ;;  %v3682_v61 = vadd.f32 %v3618_v45, %v3554_v51  ;;  %v2591_v23 = vld [vmem:[%s6195_s15 + $0x23a0] sm:$0xff] }
 0x327   : > { %v3746_v57 = vld [vmem:[%s6195_s15 + $0x35b8] sm:$0xff]  ;;  %v1051_v59 = vld [vmem:[%s6195_s15 + $0xbe8] sm:$0xff]  ;;  %v987_v62 = vadd.f32 %v923_v47, %v859_v52  ;;  %v3808_v6 = vadd.f32 %v3744_v56, %v3680_v60  ;;  %v2593_v24 = vld [vmem:[%s6195_s15 + $0x23b0] sm:$0xff]  ;;  %v2655_v27 = vadd.f32 %v2591_v23, %v2527_v18 }
 0x328   : > { %v1053_v63 = vld [vmem:[%s6195_s15 + $0xbf8] sm:$0xff]  ;;  %v2390_v0 = vadd.f32 %v2326_v48, %v2262_v54  ;;  %v2392_v1 = vadd.f32 %v2328_v49, %v2264_v55  ;;  %v3872_v2 = vld [vmem:[%s6195_s15 + $0x37a8] sm:$0xff]  ;;  %v989_v4 = vadd.f32 %v925_v53, %v861_v58  ;;  %v3810_v7 = vadd.f32 %v3746_v57, %v3682_v61  ;;  %v2719_v29 = vld [vmem:[%s6195_s15 + $0x25a0] sm:$0xff] }
 0x329   : > { %v3874_v3 = vld [vmem:[%s6195_s15 + $0x37b8] sm:$0xff]  ;;  %v1179_v5 = vld [vmem:[%s6195_s15 + $0xde8] sm:$0xff]  ;;  %v1115_v10 = vadd.f32 %v1051_v59, %v987_v62  ;;  %v3936_v19 = vadd.f32 %v3872_v2, %v3808_v6  ;;  %v2657_v28 = vadd.f32 %v2593_v24, %v2529_v22  ;;  %v2721_v30 = vld [vmem:[%s6195_s15 + $0x25b0] sm:$0xff]  ;;  %v2783_v41 = vadd.f32 %v2719_v29, %v2655_v27 }
 0x32a   : > { %v4000_v8 = vld [vmem:[%s6195_s15 + $0x39a8] sm:$0xff]  ;;  %v4002_v9 = vld [vmem:[%s6195_s15 + $0x39b8] sm:$0xff]  ;;  %v5318_v12 = vpack.c.bf16 %v2392_v1, %v2390_v0  ;;  %v1117_v15 = vadd.f32 %v1053_v63, %v989_v4  ;;  %v3938_v20 = vadd.f32 %v3874_v3, %v3810_v7  ;;  %v2847_v35 = vld [vmem:[%s6195_s15 + $0x27a0] sm:$0xff] }
 0x32b   : > { %v1181_v11 = vld [vmem:[%s6195_s15 + $0xdf8] sm:$0xff]  ;;  %v4128_v13 = vld [vmem:[%s6195_s15 + $0x3ba8] sm:$0xff]  ;;  %v1243_v21 = vadd.f32 %v1179_v5, %v1115_v10  ;;  %v4064_v31 = vadd.f32 %v4000_v8, %v3936_v19  ;;  %v2849_v36 = vld [vmem:[%s6195_s15 + $0x27b0] sm:$0xff]  ;;  %v2785_v42 = vadd.f32 %v2721_v30, %v2657_v28  ;;  %v2911_v53 = vadd.f32 %v2847_v35, %v2783_v41 }
 0x32c   : > { %v4130_v14 = vld [vmem:[%s6195_s15 + $0x3bb8] sm:$0xff]  ;;  %v1307_v16 = vld [vmem:[%s6195_s15 + $0xfe8] sm:$0xff]  ;;  %5319 = vmatpush1.bf16.msra.mxu0 %v5318_v12  ;;  %v1245_v25 = vadd.f32 %v1181_v11, %v1117_v15  ;;  %v4066_v32 = vadd.f32 %v4002_v9, %v3938_v20  ;;  %v2975_v47 = vld [vmem:[%s6195_s15 + $0x29a0] sm:$0xff] }
 0x32d   : > { %v1309_v17 = vld [vmem:[%s6195_s15 + $0xff8] sm:$0xff]  ;;  %v1435_v26 = vld [vmem:[%s6195_s15 + $0x11e8] sm:$0xff]  ;;  %v1371_v33 = vadd.f32 %v1307_v16, %v1243_v21  ;;  %v4192_v43 = vadd.f32 %v4128_v13, %v4064_v31  ;;  %v2977_v48 = vld [vmem:[%s6195_s15 + $0x29b0] sm:$0xff]  ;;  %v2913_v54 = vadd.f32 %v2849_v36, %v2785_v42  ;;  %v3039_v0 = vadd.f32 %v2975_v47, %v2911_v53 }
 0x32e   : > { %v1437_v34 = vld [vmem:[%s6195_s15 + $0x11f8] sm:$0xff]  ;;  %v4256_v37 = vld [vmem:[%s6195_s15 + $0x3da8] sm:$0xff]  ;;  %v1373_v39 = vadd.f32 %v1309_v17, %v1245_v25  ;;  %v4194_v44 = vadd.f32 %v4130_v14, %v4066_v32  ;;  %v3103_v59 = vld [vmem:[%s6195_s15 + $0x2ba0] sm:$0xff] }
 0x32f   : > { %v4258_v38 = vld [vmem:[%s6195_s15 + $0x3db8] sm:$0xff]  ;;  %v1563_v40 = vld [vmem:[%s6195_s15 + $0x13e8] sm:$0xff]  ;;  %v1499_v45 = vadd.f32 %v1435_v26, %v1371_v33  ;;  %v4320_v55 = vadd.f32 %v4256_v37, %v4192_v43  ;;  %v3105_v60 = vld [vmem:[%s6195_s15 + $0x2bb0] sm:$0xff]  ;;  %v3041_v1 = vadd.f32 %v2977_v48, %v2913_v54  ;;  %v3167_v11 = vadd.f32 %v3103_v59, %v3039_v0 }
 0x330   : > { %v1565_v46 = vld [vmem:[%s6195_s15 + $0x13f8] sm:$0xff]  ;;  %v4384_v49 = vld [vmem:[%s6195_s15 + $0x3fa8] sm:$0xff]  ;;  %v1501_v51 = vadd.f32 %v1437_v34, %v1373_v39  ;;  %v4322_v56 = vadd.f32 %v4258_v38, %v4194_v44  ;;  %v3231_v6 = vld [vmem:[%s6195_s15 + $0x2da0] sm:$0xff] }
 0x331   : > { %v4386_v50 = vld [vmem:[%s6195_s15 + $0x3fb8] sm:$0xff]  ;;  %v1691_v52 = vld [vmem:[%s6195_s15 + $0x15e8] sm:$0xff]  ;;  %v1627_v57 = vadd.f32 %v1563_v40, %v1499_v45  ;;  %v4448_v2 = vadd.f32 %v4384_v49, %v4320_v55  ;;  %v3233_v7 = vld [vmem:[%s6195_s15 + $0x2db0] sm:$0xff]  ;;  %v3169_v12 = vadd.f32 %v3105_v60, %v3041_v1  ;;  %v3295_v21 = vadd.f32 %v3231_v6, %v3167_v11 }
 0x332   : > { %v1693_v58 = vld [vmem:[%s6195_s15 + $0x15f8] sm:$0xff]  ;;  %v1629_v61 = vadd.f32 %v1565_v46, %v1501_v51  ;;  %v1819_v62 = vld [vmem:[%s6195_s15 + $0x17e8] sm:$0xff]  ;;  %v4450_v3 = vadd.f32 %v4386_v50, %v4322_v56  ;;  %v3359_v13 = vld [vmem:[%s6195_s15 + $0x2fa0] sm:$0xff] }
 0x333   : > { %v1821_v63 = vld [vmem:[%s6195_s15 + $0x17f8] sm:$0xff]  ;;  %v1755_v4 = vadd.f32 %v1691_v52, %v1627_v57  ;;  %v1947_v5 = vld [vmem:[%s6195_s15 + $0x19e8] sm:$0xff]  ;;  %v3361_v17 = vld [vmem:[%s6195_s15 + $0x2fb0] sm:$0xff]  ;;  %v3297_v22 = vadd.f32 %v3233_v7, %v3169_v12  ;;  %v3423_v34 = vadd.f32 %v3359_v13, %v3295_v21 }
 0x334   : > { %v1757_v8 = vadd.f32 %v1693_v58, %v1629_v61  ;;  %v1949_v9 = vld [vmem:[%s6195_s15 + $0x19f8] sm:$0xff]  ;;  %v2075_v10 = vld [vmem:[%s6195_s15 + $0x1be8] sm:$0xff]  ;;  %v5376_v14 = vpack.c.bf16 %v4450_v3, %v4448_v2  ;;  %v474_v18 = vld [vmem:[%s6195_s15 + $0x1e0] sm:$0xff] }
 0x335   : > { %v1883_v15 = vadd.f32 %v1819_v62, %v1755_v4  ;;  %v2077_v16 = vld [vmem:[%s6195_s15 + $0x1bf8] sm:$0xff]  ;;  %v476_v19 = vld [vmem:[%s6195_s15 + $0x1f0] sm:$0xff]  ;;  %v538_v23 = vld [vmem:[%s6195_s15 + $0x3e0] sm:$0xff]  ;;  %v3425_v35 = vadd.f32 %v3361_v17, %v3297_v22 }
 0x336   : > { %v1885_v20 = vadd.f32 %v1821_v63, %v1757_v8  ;;  %v540_v24 = vld [vmem:[%s6195_s15 + $0x3f0] sm:$0xff]  ;;  %v666_v25 = vld [vmem:[%s6195_s15 + $0x5e0] sm:$0xff]  ;;  %5377 = vmatprep.subr.bf16.mxu1 %v5376_v14  ;;  %v602_v29 = vadd.f32 %v538_v23, %v474_v18  ;;  %v2203_v33 = vld [vmem:[%s6195_s15 + $0x1de8] sm:$0xff] }
 0x337   : > { %v2011_v26 = vadd.f32 %v1947_v5, %v1883_v15  ;;  %v3487_v27 = vld [vmem:[%s6195_s15 + $0x31a0] sm:$0xff]  ;;  %v3489_v28 = vld [vmem:[%s6195_s15 + $0x31b0] sm:$0xff]  ;;  %v604_v30 = vadd.f32 %v540_v24, %v476_v19  ;;  %v2205_v39 = vld [vmem:[%s6195_s15 + $0x1df8] sm:$0xff] }
 0x338   : > { %v668_v31 = vld [vmem:[%s6195_s15 + $0x5f0] sm:$0xff]  ;;  %v2013_v32 = vadd.f32 %v1949_v9, %v1885_v20  ;;  %v794_v36 = vld [vmem:[%s6195_s15 + $0x7e0] sm:$0xff]  ;;  %v730_v42 = vadd.f32 %v666_v25, %v602_v29  ;;  %v2331_v45 = vld [vmem:[%s6195_s15 + $0x1fe8] sm:$0xff]  ;;  %v3551_v46 = vadd.f32 %v3487_v27, %v3423_v34  ;;  %v3553_v47 = vadd.f32 %v3489_v28, %v3425_v35 }
 0x339   : > { %v796_v37 = vld [vmem:[%s6195_s15 + $0x7f0] sm:$0xff]  ;;  %v2139_v38 = vadd.f32 %v2075_v10, %v2011_v26  ;;  %v3615_v40 = vld [vmem:[%s6195_s15 + $0x33a0] sm:$0xff]  ;;  %v732_v43 = vadd.f32 %v668_v31, %v604_v30  ;;  %v2333_v51 = vld [vmem:[%s6195_s15 + $0x1ff8] sm:$0xff] }
 0x33a   : > { %v3617_v41 = vld [vmem:[%s6195_s15 + $0x33b0] sm:$0xff]  ;;  %v2141_v44 = vadd.f32 %v2077_v16, %v2013_v32  ;;  %v922_v48 = vld [vmem:[%s6195_s15 + $0x9e0] sm:$0xff]  ;;  %v858_v54 = vadd.f32 %v794_v36, %v730_v42  ;;  %v3679_v57 = vadd.f32 %v3615_v40, %v3551_v46  ;;  %v411_v18 = vld [vmem:[#allocation4 + $0x8] sm:$0xff] }
 0x33b   : > { %v924_v49 = vld [vmem:[%s6195_s15 + $0x9f0] sm:$0xff]  ;;  %v2267_v50 = vadd.f32 %v2203_v33, %v2139_v38  ;;  %v3743_v52 = vld [vmem:[%s6195_s15 + $0x35a0] sm:$0xff]  ;;  %v860_v55 = vadd.f32 %v796_v37, %v732_v43  ;;  %v3681_v58 = vadd.f32 %v3617_v41, %v3553_v47  ;;  %v2532_v19 = vld [vmem:[%s6195_s15 + $0x21c8] sm:$0xff]  ;;  %2462 = vmatprep.mubr.f32.mxu0 %v411_v18  ;;  %4523 = vmatprep.mubr.f32.mxu1 %v411_v18 }
 0x33c   : > { %v3745_v53 = vld [vmem:[%s6195_s15 + $0x35b0] sm:$0xff]  ;;  %v2269_v56 = vadd.f32 %v2205_v39, %v2141_v44  ;;  %v1050_v59 = vld [vmem:[%s6195_s15 + $0xbe0] sm:$0xff]  ;;  %v986_v1 = vadd.f32 %v922_v48, %v858_v54  ;;  %v3807_v4 = vadd.f32 %v3743_v52, %v3679_v57  ;;  %v2534_v20 = vld [vmem:[%s6195_s15 + $0x21d8] sm:$0xff] }
 0x33d   : > { %v1052_v60 = vld [vmem:[%s6195_s15 + $0xbf0] sm:$0xff]  ;;  %v2395_v61 = vadd.f32 %v2331_v45, %v2267_v50  ;;  %v3871_v62 = vld [vmem:[%s6195_s15 + $0x37a0] sm:$0xff]  ;;  %v988_v2 = vadd.f32 %v924_v49, %v860_v55  ;;  %v3809_v5 = vadd.f32 %v3745_v53, %v3681_v58  ;;  %v2596_v24 = vld [vmem:[%s6195_s15 + $0x23c8] sm:$0xff] }
 0x33e   : > { %v3873_v63 = vld [vmem:[%s6195_s15 + $0x37b0] sm:$0xff]  ;;  %v3999_v0 = vld [vmem:[%s6195_s15 + $0x39a0] sm:$0xff]  ;;  %v2397_v3 = vadd.f32 %v2333_v51, %v2269_v56  ;;  %v1114_v11 = vadd.f32 %v1050_v59, %v986_v1  ;;  %v3935_v16 = vadd.f32 %v3871_v62, %v3807_v4  ;;  %v2598_v25 = vld [vmem:[%s6195_s15 + $0x23d8] sm:$0xff]  ;;  %v2660_v31 = vadd.f32 %v2596_v24, %v2532_v19 }
 0x33f   : > { %v4001_v6 = vld [vmem:[%s6195_s15 + $0x39b0] sm:$0xff]  ;;  %v1178_v7 = vld [vmem:[%s6195_s15 + $0xde0] sm:$0xff]  ;;  %v1116_v12 = vadd.f32 %v1052_v60, %v988_v2  ;;  %v3937_v17 = vadd.f32 %v3873_v63, %v3809_v5  ;;  %v2724_v26 = vld [vmem:[%s6195_s15 + $0x25c8] sm:$0xff]  ;;  %v2662_v32 = vadd.f32 %v2598_v25, %v2534_v20 }
 0x340   : > { %v1180_v8 = vld [vmem:[%s6195_s15 + $0xdf0] sm:$0xff]  ;;  %v4127_v9 = vld [vmem:[%s6195_s15 + $0x3ba0] sm:$0xff]  ;;  %v5320_v15 = vpack.c.bf16 %v2397_v3, %v2395_v61  ;;  %v1242_v22 = vadd.f32 %v1178_v7, %v1114_v11  ;;  %v4063_v27 = vadd.f32 %v3999_v0, %v3935_v16  ;;  %v2726_v33 = vld [vmem:[%s6195_s15 + $0x25d8] sm:$0xff]  ;;  %v2788_v44 = vadd.f32 %v2724_v26, %v2660_v31 }
 0x341   : > { %v4129_v10 = vld [vmem:[%s6195_s15 + $0x3bb0] sm:$0xff]  ;;  %v1306_v13 = vld [vmem:[%s6195_s15 + $0xfe0] sm:$0xff]  ;;  %v1244_v23 = vadd.f32 %v1180_v8, %v1116_v12  ;;  %v4065_v28 = vadd.f32 %v4001_v6, %v3937_v17  ;;  %v2852_v37 = vld [vmem:[%s6195_s15 + $0x27c8] sm:$0xff]  ;;  %v2790_v45 = vadd.f32 %v2726_v33, %v2662_v32 }
 0x342   : > { %v1308_v14 = vld [vmem:[%s6195_s15 + $0xff0] sm:$0xff]  ;;  %v4255_v21 = vld [vmem:[%s6195_s15 + $0x3da0] sm:$0xff]  ;;  %5321 = vmatprep.subr.bf16.mxu0 %v5320_v15  ;;  %v1370_v35 = vadd.f32 %v1306_v13, %v1242_v22  ;;  %v2854_v38 = vld [vmem:[%s6195_s15 + $0x27d8] sm:$0xff]  ;;  %v4191_v39 = vadd.f32 %v4127_v9, %v4063_v27  ;;  %v2916_v55 = vadd.f32 %v2852_v37, %v2788_v44 }
 0x343   : > { %v1434_v29 = vld [vmem:[%s6195_s15 + $0x11e0] sm:$0xff]  ;;  %v1436_v30 = vld [vmem:[%s6195_s15 + $0x11f0] sm:$0xff]  ;;  %v1372_v36 = vadd.f32 %v1308_v14, %v1244_v23  ;;  %v4193_v40 = vadd.f32 %v4129_v10, %v4065_v28  ;;  %v2980_v49 = vld [vmem:[%s6195_s15 + $0x29c8] sm:$0xff]  ;;  %v2918_v56 = vadd.f32 %v2854_v38, %v2790_v45 }
 0x344   : > { %v4257_v34 = vld [vmem:[%s6195_s15 + $0x3db0] sm:$0xff]  ;;  %v4383_v41 = vld [vmem:[%s6195_s15 + $0x3fa0] sm:$0xff]  ;;  %v1498_v47 = vadd.f32 %v1434_v29, %v1370_v35  ;;  %v2982_v50 = vld [vmem:[%s6195_s15 + $0x29d8] sm:$0xff]  ;;  %v4319_v51 = vadd.f32 %v4255_v21, %v4191_v39  ;;  %v3044_v2 = vadd.f32 %v2980_v49, %v2916_v55 }
 0x345   : > { %v1562_v42 = vld [vmem:[%s6195_s15 + $0x13e0] sm:$0xff]  ;;  %v1564_v43 = vld [vmem:[%s6195_s15 + $0x13f0] sm:$0xff]  ;;  %v1500_v48 = vadd.f32 %v1436_v30, %v1372_v36  ;;  %v4321_v52 = vadd.f32 %v4257_v34, %v4193_v40  ;;  %v3108_v59 = vld [vmem:[%s6195_s15 + $0x2bc8] sm:$0xff]  ;;  %v3046_v3 = vadd.f32 %v2982_v50, %v2918_v56 }
 0x346   : > { %v4385_v46 = vld [vmem:[%s6195_s15 + $0x3fb0] sm:$0xff]  ;;  %v1690_v53 = vld [vmem:[%s6195_s15 + $0x15e0] sm:$0xff]  ;;  %v1626_v57 = vadd.f32 %v1562_v42, %v1498_v47  ;;  %v3110_v60 = vld [vmem:[%s6195_s15 + $0x2bd8] sm:$0xff]  ;;  %v4447_v61 = vadd.f32 %v4383_v41, %v4319_v51  ;;  %v3172_v12 = vadd.f32 %v3108_v59, %v3044_v2 }
 0x347   : > { %v1692_v54 = vld [vmem:[%s6195_s15 + $0x15f0] sm:$0xff]  ;;  %v1628_v58 = vadd.f32 %v1564_v43, %v1500_v48  ;;  %v4449_v62 = vadd.f32 %v4385_v46, %v4321_v52  ;;  %v1818_v63 = vld [vmem:[%s6195_s15 + $0x17e0] sm:$0xff]  ;;  %v3236_v7 = vld [vmem:[%s6195_s15 + $0x2dc8] sm:$0xff]  ;;  %v3174_v13 = vadd.f32 %v3110_v60, %v3046_v3 }
 0x348   : > { %v1820_v0 = vld [vmem:[%s6195_s15 + $0x17f0] sm:$0xff]  ;;  %v1946_v1 = vld [vmem:[%s6195_s15 + $0x19e0] sm:$0xff]  ;;  %v1754_v4 = vadd.f32 %v1690_v53, %v1626_v57  ;;  %v3238_v8 = vld [vmem:[%s6195_s15 + $0x2dd8] sm:$0xff]  ;;  %v3300_v21 = vadd.f32 %v3236_v7, %v3172_v12 }
 0x349   : > { %v1756_v5 = vadd.f32 %v1692_v54, %v1628_v58  ;;  %v1948_v6 = vld [vmem:[%s6195_s15 + $0x19f0] sm:$0xff]  ;;  %v5378_v9 = vpack.c.bf16 %v4449_v62, %v4447_v61  ;;  %v2074_v10 = vld [vmem:[%s6195_s15 + $0x1be0] sm:$0xff]  ;;  %v3364_v14 = vld [vmem:[%s6195_s15 + $0x2fc8] sm:$0xff]  ;;  %v3302_v22 = vadd.f32 %v3238_v8, %v3174_v13 }
 0x34a   : > { %v2076_v11 = vld [vmem:[%s6195_s15 + $0x1bf0] sm:$0xff]  ;;  %v1882_v15 = vadd.f32 %v1818_v63, %v1754_v4  ;;  %v3366_v17 = vld [vmem:[%s6195_s15 + $0x2fd8] sm:$0xff]  ;;  %v2531_v18 = vld [vmem:[%s6195_s15 + $0x21c0] sm:$0xff]  ;;  %v3428_v34 = vadd.f32 %v3364_v14, %v3300_v21 }
 0x34b   : > { %v1884_v16 = vadd.f32 %v1820_v0, %v1756_v5  ;;  %v2533_v19 = vld [vmem:[%s6195_s15 + $0x21d0] sm:$0xff]  ;;  %5379 = vmatpush1.bf16.msra.mxu1 %v5378_v9  ;;  %v2202_v20 = vld [vmem:[%s6195_s15 + $0x1de0] sm:$0xff]  ;;  %v3492_v28 = vld [vmem:[%s6195_s15 + $0x31c8] sm:$0xff]  ;;  %v3430_v35 = vadd.f32 %v3366_v17, %v3302_v22 }
 0x34c   : > { %v2595_v23 = vld [vmem:[%s6195_s15 + $0x23c0] sm:$0xff]  ;;  %v2597_v24 = vld [vmem:[%s6195_s15 + $0x23d0] sm:$0xff]  ;;  %v2010_v26 = vadd.f32 %v1946_v1, %v1882_v15  ;;  %v3494_v29 = vld [vmem:[%s6195_s15 + $0x31d8] sm:$0xff]  ;;  %v3556_v46 = vadd.f32 %v3492_v28, %v3428_v34 }
 0x34d   : > { %v2723_v25 = vld [vmem:[%s6195_s15 + $0x25c0] sm:$0xff]  ;;  %v2012_v27 = vadd.f32 %v1948_v6, %v1884_v16  ;;  %v2659_v30 = vadd.f32 %v2595_v23, %v2531_v18  ;;  %v2661_v31 = vadd.f32 %v2597_v24, %v2533_v19  ;;  %v2725_v32 = vld [vmem:[%s6195_s15 + $0x25d0] sm:$0xff]  ;;  %v3620_v41 = vld [vmem:[%s6195_s15 + $0x33c8] sm:$0xff]  ;;  %v3558_v47 = vadd.f32 %v3494_v29, %v3430_v35 }
 0x34e   : > { %v2204_v33 = vld [vmem:[%s6195_s15 + $0x1df0] sm:$0xff]  ;;  %v2851_v36 = vld [vmem:[%s6195_s15 + $0x27c0] sm:$0xff]  ;;  %v2138_v38 = vadd.f32 %v2074_v10, %v2010_v26  ;;  %v3622_v42 = vld [vmem:[%s6195_s15 + $0x33d8] sm:$0xff]  ;;  %v3684_v56 = vadd.f32 %v3620_v41, %v3556_v46 }
 0x34f   : > { %v2853_v37 = vld [vmem:[%s6195_s15 + $0x27d0] sm:$0xff]  ;;  %v2140_v39 = vadd.f32 %v2076_v11, %v2012_v27  ;;  %v2330_v40 = vld [vmem:[%s6195_s15 + $0x1fe0] sm:$0xff]  ;;  %v2787_v43 = vadd.f32 %v2723_v25, %v2659_v30  ;;  %v2789_v44 = vadd.f32 %v2725_v32, %v2661_v31  ;;  %v3748_v52 = vld [vmem:[%s6195_s15 + $0x35c8] sm:$0xff]  ;;  %v3686_v57 = vadd.f32 %v3622_v42, %v3558_v47 }
 0x350   : > { %v2332_v45 = vld [vmem:[%s6195_s15 + $0x1ff0] sm:$0xff]  ;;  %v2979_v48 = vld [vmem:[%s6195_s15 + $0x29c0] sm:$0xff]  ;;  %v2266_v50 = vadd.f32 %v2202_v20, %v2138_v38  ;;  %v3750_v53 = vld [vmem:[%s6195_s15 + $0x35d8] sm:$0xff]  ;;  %v3812_v3 = vadd.f32 %v3748_v52, %v3684_v56 }
 0x351   : > { %v2981_v49 = vld [vmem:[%s6195_s15 + $0x29d0] sm:$0xff]  ;;  %v2268_v51 = vadd.f32 %v2204_v33, %v2140_v39  ;;  %v2915_v54 = vadd.f32 %v2851_v36, %v2787_v43  ;;  %v2917_v55 = vadd.f32 %v2853_v37, %v2789_v44  ;;  %v3107_v58 = vld [vmem:[%s6195_s15 + $0x2bc0] sm:$0xff]  ;;  %v3876_v62 = vld [vmem:[%s6195_s15 + $0x37c8] sm:$0xff]  ;;  %v3814_v4 = vadd.f32 %v3750_v53, %v3686_v57 }
 0x352   : > { %v3109_v59 = vld [vmem:[%s6195_s15 + $0x2bd0] sm:$0xff]  ;;  %v2394_v60 = vadd.f32 %v2330_v40, %v2266_v50  ;;  %v3878_v63 = vld [vmem:[%s6195_s15 + $0x37d8] sm:$0xff]  ;;  %v4004_v0 = vld [vmem:[%s6195_s15 + $0x39c8] sm:$0xff]  ;;  %v3940_v16 = vadd.f32 %v3876_v62, %v3812_v3 }
 0x353   : > { %v2396_v61 = vadd.f32 %v2332_v45, %v2268_v51  ;;  %v3043_v1 = vadd.f32 %v2979_v48, %v2915_v54  ;;  %v3045_v2 = vadd.f32 %v2981_v49, %v2917_v55  ;;  %v4006_v5 = vld [vmem:[%s6195_s15 + $0x39d8] sm:$0xff]  ;;  %v3235_v6 = vld [vmem:[%s6195_s15 + $0x2dc0] sm:$0xff]  ;;  %v3237_v7 = vld [vmem:[%s6195_s15 + $0x2dd0] sm:$0xff]  ;;  %v3942_v17 = vadd.f32 %v3878_v63, %v3814_v4 }
 0x354   : > { %v4132_v9 = vld [vmem:[%s6195_s15 + $0x3bc8] sm:$0xff]  ;;  %v4134_v10 = vld [vmem:[%s6195_s15 + $0x3bd8] sm:$0xff]  ;;  %v8175_v11 = vld [vmem:[#allocation4] sm:$0xff]  ;;  %v4068_v27 = vadd.f32 %v4004_v0, %v3940_v16 }
 0x355   : > { %v5322_v8 = vpack.c.bf16 %v2396_v61, %v2394_v60  ;;  %v3171_v12 = vadd.f32 %v3107_v58, %v3043_v1  ;;  %v3173_v13 = vadd.f32 %v3109_v59, %v3045_v2  ;;  %v3363_v14 = vld [vmem:[%s6195_s15 + $0x2fc0] sm:$0xff]  ;;  %v3365_v15 = vld [vmem:[%s6195_s15 + $0x2fd0] sm:$0xff]  ;;  %v2536_v19 = vld [vmem:[%s6195_s15 + $0x21e8] sm:$0xff]  ;;  %v4070_v28 = vadd.f32 %v4006_v5, %v3942_v17 }
 0x356   : > { %v3491_v18 = vld [vmem:[%s6195_s15 + $0x31c0] sm:$0xff]  ;;  %v2538_v20 = vld [vmem:[%s6195_s15 + $0x21f8] sm:$0xff]  ;;  %v4260_v21 = vld [vmem:[%s6195_s15 + $0x3dc8] sm:$0xff]  ;;  %v4196_v39 = vadd.f32 %v4132_v9, %v4068_v27 }
 0x357   : > { %5323 = vmatpush1.bf16.msra.mxu0 %v5322_v8  ;;  %v3299_v22 = vadd.f32 %v3235_v6, %v3171_v12  ;;  %v3301_v23 = vadd.f32 %v3237_v7, %v3173_v13  ;;  %v2600_v24 = vld [vmem:[%s6195_s15 + $0x23e8] sm:$0xff]  ;;  %v2602_v25 = vld [vmem:[%s6195_s15 + $0x23f8] sm:$0xff]  ;;  %v3493_v29 = vld [vmem:[%s6195_s15 + $0x31d0] sm:$0xff]  ;;  %v4198_v40 = vadd.f32 %v4134_v10, %v4070_v28 }
 0x358   : > { %v2728_v26 = vld [vmem:[%s6195_s15 + $0x25e8] sm:$0xff]  ;;  %v8187_v30 = vld [vmem:[#allocation4 + $0x18] sm:$0xff]  ;;  %v2664_v31 = vadd.f32 %v2600_v24, %v2536_v19  ;;  %v2666_v32 = vadd.f32 %v2602_v25, %v2538_v20  ;;  %v3619_v42 = vld [vmem:[%s6195_s15 + $0x33c0] sm:$0xff]  ;;  %v4324_v51 = vadd.f32 %v4260_v21, %v4196_v39 }
 0x359   : > { %v2730_v33 = vld [vmem:[%s6195_s15 + $0x25f8] sm:$0xff]  ;;  %v3427_v35 = vadd.f32 %v3363_v14, %v3299_v22  ;;  %v3429_v36 = vadd.f32 %v3365_v15, %v3301_v23  ;;  %v2856_v37 = vld [vmem:[%s6195_s15 + $0x27e8] sm:$0xff]  ;;  %v3621_v43 = vld [vmem:[%s6195_s15 + $0x33d0] sm:$0xff] }
 0x35a   : > { %v4262_v34 = vld [vmem:[%s6195_s15 + $0x3dd8] sm:$0xff]  ;;  %v4388_v41 = vld [vmem:[%s6195_s15 + $0x3fc8] sm:$0xff]  ;;  %2463 = vmatmul.mubr.f32.vlgmr.msra.gmra.mrb[0].mxu0 %v8175_v11  ;;  %v2792_v44 = vadd.f32 %v2728_v26, %v2664_v31  ;;  %v2794_v45 = vadd.f32 %v2730_v33, %v2666_v32  ;;  %v3747_v53 = vld [vmem:[%s6195_s15 + $0x35c0] sm:$0xff] }
 0x35b   : > { %v2858_v38 = vld [vmem:[%s6195_s15 + $0x27f8] sm:$0xff]  ;;  %v3555_v47 = vadd.f32 %v3491_v18, %v3427_v35  ;;  %v3557_v48 = vadd.f32 %v3493_v29, %v3429_v36  ;;  %2468 = vmatprep.mubr.f32.mxu0 %v8187_v30  ;;  %v2984_v49 = vld [vmem:[%s6195_s15 + $0x29e8] sm:$0xff]  ;;  %v4326_v52 = vadd.f32 %v4262_v34, %v4198_v40  ;;  %v3749_v54 = vld [vmem:[%s6195_s15 + $0x35d0] sm:$0xff]  ;;  %v4452_v61 = vadd.f32 %v4388_v41, %v4324_v51 }
 0x35c   : > { %v4390_v46 = vld [vmem:[%s6195_s15 + $0x3fd8] sm:$0xff]  ;;  %v2920_v55 = vadd.f32 %v2856_v37, %v2792_v44  ;;  %v2922_v56 = vadd.f32 %v2858_v38, %v2794_v45  ;;  %v3112_v59 = vld [vmem:[%s6195_s15 + $0x2be8] sm:$0xff]  ;;  %v3875_v63 = vld [vmem:[%s6195_s15 + $0x37c0] sm:$0xff] }
 0x35d   : > { %v2986_v50 = vld [vmem:[%s6195_s15 + $0x29f8] sm:$0xff]  ;;  %v3683_v57 = vadd.f32 %v3619_v42, %v3555_v47  ;;  %v3685_v58 = vadd.f32 %v3621_v43, %v3557_v48  ;;  %v4454_v62 = vadd.f32 %v4390_v46, %v4326_v52  ;;  %v3877_v0 = vld [vmem:[%s6195_s15 + $0x37d0] sm:$0xff]  ;;  %v4003_v1 = vld [vmem:[%s6195_s15 + $0x39c0] sm:$0xff] }
 0x35e   : > { %v3114_v60 = vld [vmem:[%s6195_s15 + $0x2bf8] sm:$0xff]  ;;  %v3048_v2 = vadd.f32 %v2984_v49, %v2920_v55  ;;  %v3050_v3 = vadd.f32 %v2986_v50, %v2922_v56  ;;  %v4005_v6 = vld [vmem:[%s6195_s15 + $0x39d0] sm:$0xff]  ;;  %v3240_v7 = vld [vmem:[%s6195_s15 + $0x2de8] sm:$0xff] }
 0x35f   : > { %v3811_v4 = vadd.f32 %v3747_v53, %v3683_v57  ;;  %v3813_v5 = vadd.f32 %v3749_v54, %v3685_v58  ;;  %v3242_v8 = vld [vmem:[%s6195_s15 + $0x2df8] sm:$0xff]  ;;  %v5380_v9 = vpack.c.bf16 %v4454_v62, %v4452_v61  ;;  %v4131_v10 = vld [vmem:[%s6195_s15 + $0x3bc0] sm:$0xff]  ;;  %v4133_v12 = vld [vmem:[%s6195_s15 + $0x3bd0] sm:$0xff] }
 0x360   : > { %v3176_v13 = vadd.f32 %v3112_v59, %v3048_v2  ;;  %v3178_v14 = vadd.f32 %v3114_v60, %v3050_v3  ;;  %v3368_v15 = vld [vmem:[%s6195_s15 + $0x2fe8] sm:$0xff]  ;;  %v3370_v16 = vld [vmem:[%s6195_s15 + $0x2ff8] sm:$0xff]  ;;  %v8215_v19 = vld [vmem:[#allocation4 + $0x10] sm:$0xff] }
 0x361   : > { %v3939_v17 = vadd.f32 %v3875_v63, %v3811_v4  ;;  %v3941_v18 = vadd.f32 %v3877_v0, %v3813_v5  ;;  %v2535_v20 = vld [vmem:[%s6195_s15 + $0x21e0] sm:$0xff]  ;;  %v2537_v21 = vld [vmem:[%s6195_s15 + $0x21f0] sm:$0xff]  ;;  %5381 = vmatprep.subr.bf16.mxu1 %v5380_v9  ;;  %2469 = vmatmul.mubr.f32.gmra.mrb[2].mxu0 %v8215_v19  ;;  %v3496_v31 = vld [vmem:[%s6195_s15 + $0x31e8] sm:$0xff] }
 0x362   : > { %v4259_v22 = vld [vmem:[%s6195_s15 + $0x3dc0] sm:$0xff]  ;;  %v3304_v23 = vadd.f32 %v3240_v7, %v3176_v13  ;;  %v3306_v24 = vadd.f32 %v3242_v8, %v3178_v14  ;;  %v2601_v26 = vld [vmem:[%s6195_s15 + $0x23f0] sm:$0xff]  ;;  %v3498_v32 = vld [vmem:[%s6195_s15 + $0x31f8] sm:$0xff] }
 0x363   : > { %v2599_v25 = vld [vmem:[%s6195_s15 + $0x23e0] sm:$0xff]  ;;  %v4067_v28 = vadd.f32 %v4003_v1, %v3939_v17  ;;  %v4069_v29 = vadd.f32 %v4005_v6, %v3941_v18  ;;  %v2665_v34 = vadd.f32 %v2601_v26, %v2537_v21  ;;  %v2729_v35 = vld [vmem:[%s6195_s15 + $0x25f0] sm:$0xff]  ;;  %v3624_v44 = vld [vmem:[%s6195_s15 + $0x33e8] sm:$0xff] }
 0x364   : > { %v2727_v27 = vld [vmem:[%s6195_s15 + $0x25e0] sm:$0xff]  ;;  %v2663_v33 = vadd.f32 %v2599_v25, %v2535_v20  ;;  %v4261_v36 = vld [vmem:[%s6195_s15 + $0x3dd0] sm:$0xff]  ;;  %v3432_v37 = vadd.f32 %v3368_v15, %v3304_v23  ;;  %v3434_v38 = vadd.f32 %v3370_v16, %v3306_v24  ;;  %v3626_v45 = vld [vmem:[%s6195_s15 + $0x33f8] sm:$0xff] }
 0x365   : > { %v2855_v39 = vld [vmem:[%s6195_s15 + $0x27e0] sm:$0xff]  ;;  %v2857_v40 = vld [vmem:[%s6195_s15 + $0x27f0] sm:$0xff]  ;;  %v4195_v41 = vadd.f32 %v4131_v10, %v4067_v28  ;;  %v4197_v42 = vadd.f32 %v4133_v12, %v4069_v29  ;;  %v2793_v47 = vadd.f32 %v2729_v35, %v2665_v34  ;;  %v3752_v55 = vld [vmem:[%s6195_s15 + $0x35e8] sm:$0xff] }
 0x366   : > { %v4387_v43 = vld [vmem:[%s6195_s15 + $0x3fc0] sm:$0xff]  ;;  %v2791_v46 = vadd.f32 %v2727_v27, %v2663_v33  ;;  %v4389_v48 = vld [vmem:[%s6195_s15 + $0x3fd0] sm:$0xff]  ;;  %v3560_v49 = vadd.f32 %v3496_v31, %v3432_v37  ;;  %v3562_v50 = vadd.f32 %v3498_v32, %v3434_v38  ;;  %v3754_v56 = vld [vmem:[%s6195_s15 + $0x35f8] sm:$0xff] }
 0x367   : > { %v2983_v51 = vld [vmem:[%s6195_s15 + $0x29e0] sm:$0xff]  ;;  %v2985_v52 = vld [vmem:[%s6195_s15 + $0x29f0] sm:$0xff]  ;;  %v4323_v53 = vadd.f32 %v4259_v22, %v4195_v41  ;;  %v4325_v54 = vadd.f32 %v4261_v36, %v4197_v42  ;;  %v2921_v58 = vadd.f32 %v2857_v40, %v2793_v47  ;;  %v3880_v1 = vld [vmem:[%s6195_s15 + $0x37e8] sm:$0xff] }
 0x368   : > { %v2919_v57 = vadd.f32 %v2855_v39, %v2791_v46  ;;  %v3688_v59 = vadd.f32 %v3624_v44, %v3560_v49  ;;  %v3690_v60 = vadd.f32 %v3626_v45, %v3562_v50  ;;  %v3111_v61 = vld [vmem:[%s6195_s15 + $0x2be0] sm:$0xff]  ;;  %v3113_v62 = vld [vmem:[%s6195_s15 + $0x2bf0] sm:$0xff]  ;;  %v3882_v2 = vld [vmem:[%s6195_s15 + $0x37f8] sm:$0xff] }
 0x369   : > { %v4451_v63 = vadd.f32 %v4387_v43, %v4323_v53  ;;  %v4453_v0 = vadd.f32 %v4389_v48, %v4325_v54  ;;  %v4008_v3 = vld [vmem:[%s6195_s15 + $0x39e8] sm:$0xff]  ;;  %v3049_v5 = vadd.f32 %v2985_v52, %v2921_v58  ;;  %v4010_v8 = vld [vmem:[%s6195_s15 + $0x39f8] sm:$0xff]  ;;  %v3239_v9 = vld [vmem:[%s6195_s15 + $0x2de0] sm:$0xff] }
 0x36a   : > { %v3047_v4 = vadd.f32 %v2983_v51, %v2919_v57  ;;  %v3816_v6 = vadd.f32 %v3752_v55, %v3688_v59  ;;  %v3818_v7 = vadd.f32 %v3754_v56, %v3690_v60  ;;  %v3241_v10 = vld [vmem:[%s6195_s15 + $0x2df0] sm:$0xff]  ;;  %v4136_v13 = vld [vmem:[%s6195_s15 + $0x3be8] sm:$0xff]  ;;  %v4138_v14 = vld [vmem:[%s6195_s15 + $0x3bf8] sm:$0xff] }
 0x36b   : > { %v5382_v12 = vpack.c.bf16 %v4453_v0, %v4451_v63  ;;  %v3177_v16 = vadd.f32 %v3113_v62, %v3049_v5  ;;  %v3367_v17 = vld [vmem:[%s6195_s15 + $0x2fe0] sm:$0xff]  ;;  %v3369_v18 = vld [vmem:[%s6195_s15 + $0x2ff0] sm:$0xff]  ;;  %v4553_v25 = vld [vmem:[#allocation6 + $0x88] sm:$0xff] }
 0x36c   : > { %v3175_v15 = vadd.f32 %v3111_v61, %v3047_v4  ;;  %v3944_v20 = vadd.f32 %v3880_v1, %v3816_v6  ;;  %v3946_v21 = vadd.f32 %v3882_v2, %v3818_v7  ;;  %v3495_v22 = vld [vmem:[%s6195_s15 + $0x31e0] sm:$0xff]  ;;  %v3497_v23 = vld [vmem:[%s6195_s15 + $0x31f0] sm:$0xff]  ;;  %v4264_v27 = vld [vmem:[%s6195_s15 + $0x3de8] sm:$0xff] }
 0x36d   : > { %v4552_v24 = vld [vmem:[#allocation6 + $0x80] sm:$0xff]  ;;  %5383 = vmatpush1.bf16.msra.mxu1 %v5382_v12  ;;  %v3305_v29 = vadd.f32 %v3241_v10, %v3177_v16  ;;  %v4537_v32 = vld [vmem:[#allocation6 + $0x8] sm:$0xff]  ;;  %v4554_v33 = vld [vmem:[#allocation6 + $0x90] sm:$0xff] }
 0x36e   : > { %v4536_v26 = vld [vmem:[#allocation6] sm:$0xff]  ;;  %v3303_v28 = vadd.f32 %v3239_v9, %v3175_v15  ;;  %v5388_v31 = vpack.c.bf16 %v4553_v25, %v4552_v24  ;;  %v4555_v34 = vld [vmem:[#allocation6 + $0x98] sm:$0xff]  ;;  %v4072_v35 = vadd.f32 %v4008_v3, %v3944_v20  ;;  %v4074_v36 = vadd.f32 %v4010_v8, %v3946_v21  ;;  %v4538_v39 = vld [vmem:[#allocation6 + $0x10] sm:$0xff] }
 0x36f   : > { %v5390_v37 = vpack.c.bf16 %v4537_v32, %v4536_v26  ;;  %v5392_v38 = vpack.c.bf16 %v4555_v34, %v4554_v33  ;;  %v4539_v40 = vld [vmem:[#allocation6 + $0x18] sm:$0xff]  ;;  %v4556_v41 = vld [vmem:[#allocation6 + $0xa0] sm:$0xff]  ;;  %v4392_v43 = vld [vmem:[%s6195_s15 + $0x3fe8] sm:$0xff]  ;;  %v3433_v45 = vadd.f32 %v3369_v18, %v3305_v29 }
 0x370   : > { %v4266_v42 = vld [vmem:[%s6195_s15 + $0x3df8] sm:$0xff]  ;;  %v3431_v44 = vadd.f32 %v3367_v17, %v3303_v28  ;;  %5389 = vmatprep.subr.bf16.mxu0 %v5388_v31  ;;  %v4557_v46 = vld [vmem:[#allocation6 + $0xa8] sm:$0xff]  ;;  %v4200_v47 = vadd.f32 %v4136_v13, %v4072_v35  ;;  %v4202_v48 = vadd.f32 %v4138_v14, %v4074_v36  ;;  %v3623_v50 = vld [vmem:[%s6195_s15 + $0x33e0] sm:$0xff]  ;;  %v5394_v52 = vpack.c.bf16 %v4539_v40, %v4538_v39 }
 0x371   : > { %v4394_v49 = vld [vmem:[%s6195_s15 + $0x3ff8] sm:$0xff]  ;;  %v3625_v51 = vld [vmem:[%s6195_s15 + $0x33f0] sm:$0xff]  ;;  %5391 = vmatpush3.bf16.msra.mxu0 %v5390_v37  ;;  %v3561_v54 = vadd.f32 %v3497_v23, %v3433_v45  ;;  %v3751_v55 = vld [vmem:[%s6195_s15 + $0x35e0] sm:$0xff]  ;;  %v5396_v56 = vpack.c.bf16 %v4557_v46, %v4556_v41 }
 0x372   : > { %v3559_v53 = vadd.f32 %v3495_v22, %v3431_v44  ;;  %5393 = vmatprep.subr.bf16.mxu0 %v5392_v38  ;;  %v4540_v57 = vld [vmem:[#allocation6 + $0x20] sm:$0xff]  ;;  %v4541_v58 = vld [vmem:[#allocation6 + $0x28] sm:$0xff]  ;;  %v4328_v59 = vadd.f32 %v4264_v27, %v4200_v47  ;;  %v4330_v60 = vadd.f32 %v4266_v42, %v4202_v48  ;;  %v3753_v61 = vld [vmem:[%s6195_s15 + $0x35f0] sm:$0xff] }
 0x373   : > { %v4558_v62 = vld [vmem:[#allocation6 + $0xb0] sm:$0xff]  ;;  %v4559_v63 = vld [vmem:[#allocation6 + $0xb8] sm:$0xff]  ;;  %v3689_v1 = vadd.f32 %v3625_v51, %v3561_v54  ;;  %v3879_v4 = vld [vmem:[%s6195_s15 + $0x37e0] sm:$0xff]  ;;  %v5398_v6 = vpack.c.bf16 %v4541_v58, %v4540_v57 }
 0x374   : > { %v3687_v0 = vadd.f32 %v3623_v50, %v3559_v53  ;;  %v4456_v2 = vadd.f32 %v4392_v43, %v4328_v59  ;;  %v4458_v3 = vadd.f32 %v4394_v49, %v4330_v60  ;;  %v3881_v5 = vld [vmem:[%s6195_s15 + $0x37f0] sm:$0xff]  ;;  %v4007_v9 = vld [vmem:[%s6195_s15 + $0x39e0] sm:$0xff]  ;;  %v5400_v10 = vpack.c.bf16 %v4559_v63, %v4558_v62  ;;  %v4543_v13 = vld [vmem:[#allocation6 + $0x38] sm:$0xff] }
 0x375   : > { %5395 = vmatpush3.bf16.msra.mxu0 %v5394_v52  ;;  %v3817_v8 = vadd.f32 %v3753_v61, %v3689_v1  ;;  %v4542_v12 = vld [vmem:[#allocation6 + $0x30] sm:$0xff]  ;;  %v4560_v16 = vld [vmem:[#allocation6 + $0xc0] sm:$0xff]  ;;  %v4561_v17 = vld [vmem:[#allocation6 + $0xc8] sm:$0xff] }
 0x376   : > { %v3815_v7 = vadd.f32 %v3751_v55, %v3687_v0  ;;  %5397 = vmatprep.subr.bf16.mxu0 %v5396_v56  ;;  %v5384_v14 = vpack.c.bf16 %v4458_v3, %v4456_v2  ;;  %v4009_v15 = vld [vmem:[%s6195_s15 + $0x39f0] sm:$0xff]  ;;  %v4135_v21 = vld [vmem:[%s6195_s15 + $0x3be0] sm:$0xff]  ;;  %v5402_v23 = vpack.c.bf16 %v4543_v13, %v4542_v12  ;;  %v5404_v27 = vpack.c.bf16 %v4561_v17, %v4560_v16  ;;  %v4545_v29 = vld [vmem:[#allocation6 + $0x48] sm:$0xff] }
 0x377   : > { %v3945_v20 = vadd.f32 %v3881_v5, %v3817_v8  ;;  %v4137_v22 = vld [vmem:[%s6195_s15 + $0x3bf0] sm:$0xff]  ;;  %v4263_v26 = vld [vmem:[%s6195_s15 + $0x3de0] sm:$0xff]  ;;  %v4563_v33 = vld [vmem:[#allocation6 + $0xd8] sm:$0xff] }
 0x378   : > { %v3943_v18 = vadd.f32 %v3879_v4, %v3815_v7  ;;  %5385 = vmatprep.subr.bf16.mxu1 %v5384_v14  ;;  %v4544_v28 = vld [vmem:[#allocation6 + $0x40] sm:$0xff]  ;;  %v4265_v31 = vld [vmem:[%s6195_s15 + $0x3df0] sm:$0xff]  ;;  %v4547_v43 = vld [vmem:[#allocation6 + $0x58] sm:$0xff] }
 0x379   : > { %5399 = vmatpush3.bf16.msra.mxu0 %v5398_v6  ;;  %v4073_v25 = vadd.f32 %v4009_v15, %v3945_v20  ;;  %v4562_v32 = vld [vmem:[#allocation6 + $0xd0] sm:$0xff]  ;;  %v4391_v36 = vld [vmem:[%s6195_s15 + $0x3fe0] sm:$0xff]  ;;  %v5406_v38 = vpack.c.bf16 %v4545_v29, %v4544_v28  ;;  %v4565_v45 = vld [vmem:[#allocation6 + $0xe8] sm:$0xff] }
 0x37a   : > { %v4071_v24 = vadd.f32 %v4007_v9, %v3943_v18  ;;  %5401 = vmatprep.subr.bf16.mxu0 %v5400_v10  ;;  %v4393_v37 = vld [vmem:[%s6195_s15 + $0x3ff0] sm:$0xff]  ;;  %v5408_v41 = vpack.c.bf16 %v4563_v33, %v4562_v32  ;;  %v4564_v44 = vld [vmem:[#allocation6 + $0xe0] sm:$0xff]  ;;  %v4549_v52 = vld [vmem:[#allocation6 + $0x68] sm:$0xff]  ;;  %s5083_s15 = sshll.u32 %s8365_s10, 2 }
 0x37b   : > { %v4201_v35 = vadd.f32 %v4137_v22, %v4073_v25  ;;  %v4546_v42 = vld [vmem:[#allocation6 + $0x50] sm:$0xff]  ;;  %v5412_v50 = vpack.c.bf16 %v4565_v45, %v4564_v44  ;;  %v4548_v51 = vld [vmem:[#allocation6 + $0x60] sm:$0xff]  ;;  %v4567_v54 = vld [vmem:[#allocation6 + $0xf8] sm:$0xff]  ;;  %p405_p6 = scmp.lt.s32.totalorder %s5083_s15, 31 }
 0x37c   : > { %v4199_v34 = vadd.f32 %v4135_v21, %v4071_v24  ;;  %v5410_v48 = vpack.c.bf16 %v4547_v43, %v4546_v42  ;;  %v4566_v53 = vld [vmem:[#allocation6 + $0xf0] sm:$0xff]  ;;  %v5414_v55 = vpack.c.bf16 %v4549_v52, %v4548_v51  ;;  %v4551_v58 = vld [vmem:[#allocation6 + $0x78] sm:$0xff]  ;;  %v4692_v7 = vld [vmem:[#allocation9 + $0x20] sm:$0xff] }
 0x37d   : > { %5403 = vmatpush3.bf16.msra.mxu0 %v5402_v23  ;;  %v4329_v40 = vadd.f32 %v4265_v31, %v4201_v35  ;;  %v5416_v56 = vpack.c.bf16 %v4567_v54, %v4566_v53  ;;  %v4550_v57 = vld [vmem:[#allocation6 + $0x70] sm:$0xff]  ;;  %v4691_v5 = vld [vmem:[#allocation9 + $0x18] sm:$0xff]  ;;  %v4696_v14 = vld [vmem:[#allocation9 + $0x40] sm:$0xff]  ;;  %s8371_s15 = smov (!%p405_p6, %s5083_s15), 31 }
 0x37e   : > { %v4327_v39 = vadd.f32 %v4263_v26, %v4199_v34  ;;  %5405 = vmatprep.subr.bf16.mxu0 %v5404_v27  ;;  %v5418_v59 = vpack.c.bf16 %v4551_v58, %v4550_v57  ;;  %v4689_v2 = vld [vmem:[#allocation9 + $0x8] sm:$0xff]  ;;  %v4690_v4 = vld [vmem:[#allocation9 + $0x10] sm:$0xff]  ;;  %v4695_v12 = vld [vmem:[#allocation9 + $0x38] sm:$0xff]  ;;  %s5084_s12 = sshll.u32 %s8371_s15, 3 }
 0x37f   : > { %v4457_v47 = vadd.f32 %v4393_v37, %v4329_v40  ;;  %v5424_v6 = vpack.c.bf16 %v4691_v5, %v4690_v4  ;;  %v4693_v8 = vld [vmem:[#allocation9 + $0x28] sm:$0xff]  ;;  %v4694_v10 = vld [vmem:[#allocation9 + $0x30] sm:$0xff]  ;;  %v4699_v18 = vld [vmem:[#allocation9 + $0x58] sm:$0xff]  ;;  %s408_s21 = scalar_lea.vmem %s8347_s8, %s5084_s12 }
 0x380   : > { %v4455_v46 = vadd.f32 %v4391_v36, %v4327_v39  ;;  %v5428_v9 = vpack.c.bf16 %v4693_v8, %v4692_v7  ;;  %v5432_v13 = vpack.c.bf16 %v4695_v12, %v4694_v10  ;;  %v4697_v15 = vld [vmem:[#allocation9 + $0x48] sm:$0xff]  ;;  %v4698_v17 = vld [vmem:[#allocation9 + $0x50] sm:$0xff]  ;;  %v4700_v21 = vld [vmem:[#allocation9 + $0x60] sm:$0xff] }
 0x381   : > { %5407 = vmatpush3.bf16.msra.mxu0 %v5406_v38  ;;  %v5436_v16 = vpack.c.bf16 %v4697_v15, %v4696_v14  ;;  %v5440_v20 = vpack.c.bf16 %v4699_v18, %v4698_v17  ;;  %v4701_v22 = vld [vmem:[#allocation9 + $0x68] sm:$0xff]  ;;  %v4702_v24 = vld [vmem:[#allocation9 + $0x70] sm:$0xff]  ;;  %v4703_v25 = vld [vmem:[#allocation9 + $0x78] sm:$0xff] }
 0x382   : > { %v5386_v49 = vpack.c.bf16 %v4457_v47, %v4455_v46  ;;  %5409 = vmatprep.subr.bf16.mxu0 %v5408_v41  ;;  %v5444_v23 = vpack.c.bf16 %v4701_v22, %v4700_v21  ;;  %v5448_v26 = vpack.c.bf16 %v4703_v25, %v4702_v24  ;;  %v5085_v28 = vld [vmem:[#allocation7] ss:$0 sm:$0xff]  ;;  %v4829_v5 = vld [vmem:[%s8345_s6 + $0x28] sm:$0xff]  ;;  %v4830_v7 = vld [vmem:[%s8345_s6 + $0x30] sm:$0xff] }
 0x383   : > { %v4828_v4 = vld [vmem:[%s8345_s6 + $0x20] sm:$0xff]  ;;  %v4831_v8 = vld [vmem:[%s8345_s6 + $0x38] sm:$0xff]  ;;  %v4833_v12 = vld [vmem:[%s8345_s6 + $0x48] sm:$0xff] }
 0x384   : > { %5387 = vmatpush1.bf16.msra.mxu1 %v5386_v49  ;;  %v4832_v10 = vld [vmem:[%s8345_s6 + $0x40] sm:$0xff]  ;;  %v4834_v14 = vld [vmem:[%s8345_s6 + $0x50] sm:$0xff]  ;;  %v4835_v15 = vld [vmem:[%s8345_s6 + $0x58] sm:$0xff] }
 0x385   : > { %5411 = vmatpush3.bf16.msra.mxu0 %v5410_v48  ;;  %v4836_v17 = vld [vmem:[%s8345_s6 + $0x60] sm:$0xff]  ;;  %v4837_v18 = vld [vmem:[%s8345_s6 + $0x68] sm:$0xff]  ;;  %v4838_v21 = vld [vmem:[%s8345_s6 + $0x70] sm:$0xff] }
 0x386   : > { %5413 = vmatprep.subr.bf16.mxu0 %v5412_v50  ;;  %v4839_v22 = vld [vmem:[%s8345_s6 + $0x78] sm:$0xff]  ;;  %v5090_v24 = vld [vmem:[#allocation10] ss:$0 sm:$0xff] }
 0x387   : > { %4524 = vmatmul.mubr.f32.vlgmr.msra.gmra.mrb[0].mxu1 %v8175_v11 }
 0x388   : > { %4529 = vmatprep.mubr.f32.mxu1 %v8187_v30 }
 0x389   : > { %5415 = vmatpush3.bf16.msra.mxu0 %v5414_v55 }
 0x38a   : > { %5417 = vmatprep.subr.bf16.mxu0 %v5416_v56 }
 0x38b   : > { %4530 = vmatmul.mubr.f32.gmra.mrb[2].mxu1 %v8215_v19  ;;  %v4688_v19 = vld [vmem:[#allocation9] sm:$0xff] }
 0x38c   : > { %v5420_v3 = vpack.c.bf16 %v4689_v2, %v4688_v19  ;;  %v4827_v2 = vld [vmem:[%s8345_s6 + $0x18] sm:$0xff] }
 0x38d   : > { %5419 = vmatpush3.bf16.msra.mxu0 %v5418_v59 }
 0x38e   : > { %5421 = vmatprep.subr.bf16.mxu1 %v5420_v3 }
 0x38f   : > { %5423 = vmatpush3.bf16.msra.mxu1 %v5420_v3 }
 0x390   : > { %5425 = vmatprep.subr.bf16.mxu1 %v5424_v6 }
 0x393   : > { %5427 = vmatpush3.bf16.msra.mxu1 %v5424_v6  ;;  %v5460_v6 = vpack.c.bf16 %v4829_v5, %v4828_v4 }
 0x394   : > { %5429 = vmatprep.subr.bf16.mxu1 %v5428_v9 }
 0x397   : > { %5431 = vmatpush3.bf16.msra.mxu1 %v5428_v9  ;;  %v5464_v9 = vpack.c.bf16 %v4831_v8, %v4830_v7 }
 0x398   : > { %5433 = vmatprep.subr.bf16.mxu1 %v5432_v13 }
 0x39b   : > { %5435 = vmatpush3.bf16.msra.mxu1 %v5432_v13  ;;  %v5468_v13 = vpack.c.bf16 %v4833_v12, %v4832_v10 }
 0x39c   : > { %5437 = vmatprep.subr.bf16.mxu1 %v5436_v16 }
 0x39f   : > { %5439 = vmatpush3.bf16.msra.mxu1 %v5436_v16  ;;  %v5472_v16 = vpack.c.bf16 %v4835_v15, %v4834_v14 }
 0x3a0   : > { %5441 = vmatprep.subr.bf16.mxu1 %v5440_v20 }
 0x3a3   : > { %5443 = vmatpush3.bf16.msra.mxu1 %v5440_v20  ;;  %v5476_v20 = vpack.c.bf16 %v4837_v18, %v4836_v17 }
 0x3a4   : > { %5445 = vmatprep.subr.bf16.mxu1 %v5444_v23 }
 0x3a7   : > { %5447 = vmatpush3.bf16.msra.mxu1 %v5444_v23  ;;  %v5480_v23 = vpack.c.bf16 %v4839_v22, %v4838_v21 }
 0x3a8   : > { %5449 = vmatprep.subr.bf16.mxu1 %v5448_v26 }
 0x3ab   : > { %5451 = vmatpush3.bf16.msra.mxu1 %v5448_v26 }
 0x42d   : > { %v2464_v60 = vpop.f32.mrb[0].mxu0 }
 0x42e   : > { %v2466_v61 = vpop.f32.mrb[1].mxu0 }
 0x42f   : > { %4639 = vmatprep.mubr.f32.mxu0 %v2466_v61 }
 0x430   : > { %4640 = vmatmul.mubr.f32.vlgmr.msra.gmra.mrb[4].mxu0 %v2464_v60 }
 0x434   : > { %v2470_v62 = vpop.f32.mrb[2].mxu0 }
 0x435   : > { %v2472_v63 = vpop.f32.mrb[3].mxu0 }
 0x436   : > { %4644 = vmatprep.mubr.f32.mxu0 %v2472_v63 }
 0x437   : > { %4645 = vmatmul.mubr.f32.gmra.mrb[6].mxu0 %v2470_v62 }
 0x45a   : > { %v4525_v0 = vpop.f32.mrb[0].mxu1 }
 0x45b   : > { %v4527_v11 = vpop.f32.mrb[1].mxu1 }
 0x45c   : > { %4649 = vmatprep.mubr.f32.mxu0 %v4527_v11  ;;  %v4824_v11 = vld [vmem:[%s8345_s6] sm:$0xff] }
 0x45d   : > { %4650 = vmatmul.mubr.f32.gmra.mrb[8].mxu0 %v4525_v0 }
 0x45e   : > { %v4531_v30 = vpop.f32.mrb[2].mxu1 }
 0x45f   : > { %v4533_v1 = vpop.f32.mrb[3].mxu1 }
 0x460   : > { %4654 = vmatprep.mubr.f32.mxu0 %v4533_v1  ;;  %v4826_v1 = vld [vmem:[%s8345_s6 + $0x10] sm:$0xff] }
 0x461   : > { %4655 = vmatmul.mubr.f32.gmra.mrb[10].mxu0 %v4531_v30  ;;  %v4825_v30 = vld [vmem:[%s8345_s6 + $0x8] sm:$0xff]  ;;  %v5456_v3 = vpack.c.bf16 %v4827_v2, %v4826_v1 }
 0x462   : > { %v5452_v19 = vpack.c.bf16 %v4825_v30, %v4824_v11 }
 0x464   : > { %5453 = vmatprep.subr.bf16.mxu0 %v5452_v19  ;;  %5484 = vmatprep.subr.bf16.mxu1 %v5452_v19 }
 0x465   : > { %5455 = vmatpush3.bf16.msra.mxu0 %v5452_v19 }
 0x466   : > { %5457 = vmatprep.subr.bf16.mxu0 %v5456_v3 }
 0x469   : > { %5459 = vmatpush3.bf16.msra.mxu0 %v5456_v3 }
 0x46a   : > { %5461 = vmatprep.subr.bf16.mxu0 %v5460_v6 }
 0x46d   : > { %5463 = vmatpush3.bf16.msra.mxu0 %v5460_v6 }
 0x46e   : > { %5465 = vmatprep.subr.bf16.mxu0 %v5464_v9 }
 0x471   : > { %5467 = vmatpush3.bf16.msra.mxu0 %v5464_v9 }
 0x472   : > { %5469 = vmatprep.subr.bf16.mxu0 %v5468_v13 }
 0x475   : > { %5471 = vmatpush3.bf16.msra.mxu0 %v5468_v13 }
 0x476   : > { %5473 = vmatprep.subr.bf16.mxu0 %v5472_v16 }
 0x479   : > { %5475 = vmatpush3.bf16.msra.mxu0 %v5472_v16 }
 0x47a   : > { %5477 = vmatprep.subr.bf16.mxu0 %v5476_v20 }
 0x47d   : > { %5479 = vmatpush3.bf16.msra.mxu0 %v5476_v20 }
 0x47e   : > { %5481 = vmatprep.subr.bf16.mxu0 %v5480_v23 }
 0x481   : > { %5483 = vmatpush3.bf16.msra.mxu0 %v5480_v23 }
 0x503   : > { %v5132_v27 = vpop.f32.mrb[4].mxu0 }
 0x504   : > { %v5133_v29 = vpop.f32.mrb[5].mxu0 }
 0x505   : > { %v5134_v31 = vadd.f32 %v5133_v29, %v5132_v27 }
 0x507   : > { %v4642_v32 = vadd.f32 %v5134_v31, %v5085_v28 }
 0x509   : > { %v5086_v33 = vmul.f32 -1.442695, %v4642_v32 }
 0x50a   : > { %v5135_v34 = vpop.f32.mrb[6].mxu0 }
 0x50b   : > { %5604 = vpow2.f32 %v5086_v33  ;;  %v5136_v35 = vpop.f32.mrb[7].mxu0 }
 0x50c   : > { %v5137_v36 = vadd.f32 %v5136_v35, %v5135_v34 }
 0x50e   : > { %v4647_v37 = vadd.f32 %v5137_v36, %v5085_v28 }
 0x510   : > { %v5087_v38 = vmul.f32 -1.442695, %v4647_v37 }
 0x512   : > { %5606 = vpow2.f32 %v5087_v38 }
 0x515   : > { %v5605_v39 = vpop.eup %5604 }
 0x516   : > { %v4672_v40 = vadd.f32 1.0, %v5605_v39 }
 0x518   : > { %5608 = vrcp.f32 %v4672_v40 }
 0x51c   : > { %v5607_v41 = vpop.eup %5606 }
 0x51d   : > { %v4673_v42 = vadd.f32 1.0, %v5607_v41 }
 0x51f   : > { %5610 = vrcp.f32 %v4673_v42 }
 0x522   : > { %v5609_v43 = vpop.eup %5608 }
 0x523   : > { %v4684_v44 = vmul.f32 %v5609_v43, %v4642_v32 }
 0x525   : > { %5216 = vmatprep.mubr.f32.mxu1 %v4684_v44 }
 0x529   : > { %v5611_v45 = vpop.eup %5610 }
 0x52a   : > { %v4685_v46 = vmul.f32 %v5611_v45, %v4647_v37 }
 0x52c   : > { %5217 = vmatmul.mubr.f32.vlgmr.msra.gmra.mrb[4].mxu1 %v4685_v46 }
 0x52d   : > { %5492 = vmatpush3.bf16.msra.mxu1 %v5452_v19 }
 0x52e   : > { %5485 = vmatprep.subr.bf16.mxu1 %v5456_v3 }
 0x530   : > { %v5138_v47 = vpop.f32.mrb[8].mxu0 }
 0x531   : > { %v5139_v48 = vpop.f32.mrb[9].mxu0  ;;  %5493 = vmatpush3.bf16.msra.mxu1 %v5456_v3 }
 0x532   : > { %v5140_v49 = vadd.f32 %v5139_v48, %v5138_v47  ;;  %5486 = vmatprep.subr.bf16.mxu1 %v5460_v6 }
 0x534   : > { %v4652_v50 = vadd.f32 %v5140_v49, %v5085_v28  ;;  %v5141_v51 = vpop.f32.mrb[10].mxu0 }
 0x535   : > { %v5142_v52 = vpop.f32.mrb[11].mxu0  ;;  %5494 = vmatpush3.bf16.msra.mxu1 %v5460_v6 }
 0x536   : > { %v5088_v53 = vmul.f32 -1.442695, %v4652_v50  ;;  %v5143_v54 = vadd.f32 %v5142_v52, %v5141_v51  ;;  %5487 = vmatprep.subr.bf16.mxu1 %v5464_v9 }
 0x538   : > { %5612 = vpow2.f32 %v5088_v53  ;;  %v4657_v55 = vadd.f32 %v5143_v54, %v5085_v28  ;;  %v5095_v54 = vld [vmem:[#allocation12] ss:$0 sm:$0xff] }
 0x539   : > { %5495 = vmatpush3.bf16.msra.mxu1 %v5464_v9 }
 0x53a   : > { %v5089_v56 = vmul.f32 -1.442695, %v4657_v55  ;;  %5488 = vmatprep.subr.bf16.mxu1 %v5468_v13 }
 0x53c   : > { %5614 = vpow2.f32 %v5089_v56 }
 0x53d   : > { %5496 = vmatpush3.bf16.msra.mxu1 %v5468_v13 }
 0x53e   : > { %5489 = vmatprep.subr.bf16.mxu1 %v5472_v16 }
 0x541   : > { %5497 = vmatpush3.bf16.msra.mxu1 %v5472_v16 }
 0x542   : > { %v5613_v57 = vpop.eup %5612  ;;  %5490 = vmatprep.subr.bf16.mxu1 %v5476_v20 }
 0x543   : > { %v4674_v58 = vadd.f32 1.0, %v5613_v57 }
 0x545   : > { %5616 = vrcp.f32 %v4674_v58  ;;  %5498 = vmatpush3.bf16.msra.mxu1 %v5476_v20 }
 0x546   : > { %v5615_v59 = vpop.eup %5614  ;;  %5491 = vmatprep.subr.bf16.mxu1 %v5480_v23 }
 0x547   : > { %v4675_v60 = vadd.f32 1.0, %v5615_v59 }
 0x549   : > { %5618 = vrcp.f32 %v4675_v60  ;;  %5499 = vmatpush3.bf16.msra.mxu1 %v5480_v23 }
 0x54f   : > { %v5617_v61 = vpop.eup %5616 }
 0x550   : > { %v4686_v62 = vmul.f32 %v5617_v61, %v4652_v50 }
 0x552   : > { %5219 = vmatprep.mubr.f32.mxu1 %v4686_v62 }
 0x553   : > { %v5619_v63 = vpop.eup %5618 }
 0x554   : > { %v4687_v0 = vmul.f32 %v5619_v63, %v4657_v55 }
 0x556   : > { %5220 = vmatmul.mubr.f32.gmra.mrb[6].mxu1 %v4687_v0 }
 0x5ff   : > { %v5218_v25 = vpop.f32.mrb[4].mxu1 }
 0x600   : > { %v4783_v26 = vadd.f32 %v5218_v25, %v5090_v24  ;;  %v4777_v27 = vpop.f32.mrb[5].mxu1 }
 0x601   : > { %v4778_v28 = vadd.f32 %v5090_v24, %v4777_v27 }
 0x602   : > { %v5092_v29 = vmul.f32 -1.442695, %v4783_v26 }
 0x603   : > { %v5091_v31 = vmul.f32 -1.442695, %v4778_v28 }
 0x604   : > { %5620 = vpow2.f32 %v5092_v29 }
 0x605   : > { %5622 = vpow2.f32 %v5091_v31 }
 0x60e   : > { %v5621_v32 = vpop.eup %5620 }
 0x60f   : > { %v5623_v33 = vpop.eup %5622  ;;  %v4809_v34 = vadd.f32 1.0, %v5621_v32 }
 0x610   : > { %v4808_v35 = vadd.f32 1.0, %v5623_v33 }
 0x611   : > { %5624 = vrcp.f32 %v4809_v34 }
 0x612   : > { %5626 = vrcp.f32 %v4808_v35 }
 0x61b   : > { %v5625_v36 = vpop.eup %5624 }
 0x61c   : > { %v5627_v37 = vpop.eup %5626  ;;  %v4821_v39 = vmul.f32 %v5625_v36, %v4783_v26 }
 0x61d   : > { %v4820_v38 = vmul.f32 %v5627_v37, %v4778_v28 }
 0x61f   : > { %5254 = vmatprep.mubr.f32.mxu0 %v4820_v38 }
 0x620   : > { %5255 = vmatmul.mubr.f32.vlgmr.msra.gmra.mrb[12].mxu0 %v4821_v39 }
 0x629   : > { %v5221_v40 = vpop.f32.mrb[6].mxu1 }
 0x62a   : > { %v4793_v41 = vadd.f32 %v5221_v40, %v5090_v24  ;;  %v4787_v42 = vpop.f32.mrb[7].mxu1 }
 0x62b   : > { %v4788_v43 = vadd.f32 %v5090_v24, %v4787_v42 }
 0x62c   : > { %v5094_v44 = vmul.f32 -1.442695, %v4793_v41 }
 0x62d   : > { %v5093_v45 = vmul.f32 -1.442695, %v4788_v43 }
 0x62e   : > { %5628 = vpow2.f32 %v5094_v44 }
 0x62f   : > { %5630 = vpow2.f32 %v5093_v45 }
 0x638   : > { %v5629_v46 = vpop.eup %5628 }
 0x639   : > { %v5631_v47 = vpop.eup %5630  ;;  %v4811_v48 = vadd.f32 1.0, %v5629_v46 }
 0x63a   : > { %v4810_v49 = vadd.f32 1.0, %v5631_v47 }
 0x63b   : > { %5632 = vrcp.f32 %v4811_v48 }
 0x63c   : > { %5634 = vrcp.f32 %v4810_v49 }
 0x645   : > { %v5633_v50 = vpop.eup %5632 }
 0x646   : > { %v5635_v51 = vpop.eup %5634  ;;  %v4823_v53 = vmul.f32 %v5633_v50, %v4793_v41 }
 0x647   : > { %v4822_v52 = vmul.f32 %v5635_v51, %v4788_v43 }
 0x649   : > { %5257 = vmatprep.mubr.f32.mxu1 %v4822_v52 }
 0x64a   : > { %5258 = vmatmul.mubr.f32.vlgmr.msra.gmra.mrb[8].mxu1 %v4823_v53 }
 0x6f3   : > { %v5256_v55 = vpop.f32.mrb[12].mxu0 }
 0x6f4   : > { %v4919_v56 = vadd.f32 %v5256_v55, %v5095_v54  ;;  %v4913_v57 = vpop.f32.mrb[13].mxu0 }
 0x6f5   : > { %v4914_v58 = vadd.f32 %v5095_v54, %v4913_v57 }
 0x6f6   : > { %4934 = vst.msk [vmem:[%s408_s21 + $0x8] sm:$0xff] %vm4932_vm0, %v4919_v56 }
 0x6f7   : > { %4933 = vst.msk [vmem:[%s408_s21] sm:$0xff] %vm4932_vm0, %v4914_v58 }
 0x71d   : > { %v5259_v59 = vpop.f32.mrb[8].mxu1 }
 0x71e   : > { %v4929_v60 = vadd.f32 %v5259_v59, %v5095_v54  ;;  %v4923_v61 = vpop.f32.mrb[9].mxu1 }
 0x71f   : > { %v4924_v62 = vadd.f32 %v5095_v54, %v4923_v61 }
 0x720   : > { %4936 = vst.msk [vmem:[%s408_s21 + $0x18] sm:$0xff] %vm4932_vm0, %v4929_v60 }
 0x721   : > { %4935 = vst.msk [vmem:[%s408_s21 + $0x10] sm:$0xff] %vm4932_vm0, %v4924_v62 }
 0x722 PF: > { %p21_p5 = scmp.ge.s32.totalorder %s6128_s24, 10   ;;  %s8366_s27 = smov %s5872_s28 }
 0x723   : > { %s8367_s28 = smov %s5876_s29  ;;  %s8368_s29 = smov %s6140_s17 }
 0x724   : > { %s8369_s30 = smov %s6128_s24  ;;  %23 = sbr.rel (!%p21_p5) target bundleno = 6 (0x6), region = 116 }
 0x72b   :  { %4959 = vsyncpa [#allocation3], 1 }
 0x72c   :  { %4961 = vsyncpa [#allocation3 + $0x1], 1 }
 0x72d   :  { %4962 = vsyncpa [#allocation5], 1 }
 0x72e   :  { %4963 = vsyncpa [#allocation8], 1 }
 0x72f   :  { %4964 = vsyncpa [#allocation11], 1 }

</bundles_post_ra>
